<compile_context>
chip_gen: v6e
topology: v6e:2x2x1
jax: 0.10.0
libtpu: 0.0.40
codegen_flags: <defaults>
</compile_context>

<pallas_src>
import jax
import jax.numpy as jnp
from jax.experimental import pallas as pl
from jax.experimental.pallas import tpu as pltpu

K = 7                # conv kernel size
PAD = (K - 1) // 2   # 3
CBLK = 8             # channel-block width for the streaming pooling/apply loops


def _ru(v, m):
    """Round v up to a multiple of m."""
    return (v + m - 1) // m * m


def _zero_halo(p_ref, rows, cols):
    """Zero only the PAD-wide halo the 'same' conv reads; the interior
    [PAD:PAD+rows, PAD:PAD+cols] is fully overwritten by the pooling pass."""
    full_w = cols + 2 * PAD
    p_ref[:, 0:PAD, 0:full_w] = jnp.zeros((2, PAD, full_w), jnp.float32)
    p_ref[:, PAD + rows:rows + 2 * PAD, 0:full_w] = jnp.zeros(
        (2, PAD, full_w), jnp.float32)
    p_ref[:, PAD:PAD + rows, 0:PAD] = jnp.zeros((2, rows, PAD), jnp.float32)
    p_ref[:, PAD:PAD + rows, PAD + cols:full_w] = jnp.zeros(
        (2, rows, PAD), jnp.float32)


def _conv7x7_sigmoid(p_ref, w_ref, b_ref, rows, cols, branch, swapped):
    """7x7 'same' conv (2-in / 1-out) of a zero-padded pooled map + sigmoid.

    One independent accumulator per lane (column) offset -> 7 chains of 14
    FMAs each (instead of one 98-long serial chain), summed with a tree.
    swapped=True applies weight tap (i, j) at slice offset (j, i): used by the
    width branch, whose pooled map is stored transposed so the result is
    already in broadcast-ready (C, H) layout.
    """
    accs = []
    for lane_off in range(K):
        acc = None
        for ch in range(2):                       # 0 = max channel, 1 = mean
            base = branch * 2 * K * K + ch * K * K
            for row_off in range(K):
                if swapped:
                    widx = base + lane_off * K + row_off     # (i, j) = (lane, row)
                else:
                    widx = base + row_off * K + lane_off     # (i, j) = (row, lane)
                term = w_ref[widx] * p_ref[ch,
                                           row_off:row_off + rows,
                                           lane_off:lane_off + cols]
                acc = term if acc is None else acc + term
        accs.append(acc)
    total = (((accs[0] + accs[1]) + (accs[2] + accs[3]))
             + ((accs[4] + accs[5]) + accs[6]))
    return jax.nn.sigmoid(total + b_ref[branch])


def _fused_kernel(x_ref, w_ref, b_ref, o_ref, pc_ref, ph_ref, pw_ref):
    """All three TripleAttention branches + combine, for one batch element.

    x_ref : (1, C, H, W) VMEM   input tile (NCHW, W on lanes)
    w_ref : (3*2*K*K,)   SMEM   conv weights, flat [branch, {max,mean}, i, j]
    b_ref : (3,)         SMEM   conv bias per branch
    o_ref : (1, C, H, W) VMEM   output tile
    pc/ph/pw : (2, rpad, cpad) f32 VMEM zero-padded pooled maps:
        pc -> channel branch, interior (H, W)
        ph -> height  branch, interior (C, W)
        pw -> width   branch, interior (C, H)   (stored transposed)
    """
    C, H, W = x_ref.shape[1], x_ref.shape[2], x_ref.shape[3]
    cblk = min(C, CBLK)
    starts = list(range(0, C, cblk))              # static channel blocks

    # --- halo init (interior written below; halo must read as zero) ---------
    _zero_halo(pc_ref, H, W)
    _zero_halo(ph_ref, C, W)
    _zero_halo(pw_ref, C, H)

    # --- ZPool for all three branches: ONE streaming pass over x ------------
    cmax = jnp.full((H, W), -jnp.inf, jnp.float32)
    csum = jnp.zeros((H, W), jnp.float32)
    for c0 in starts:
        nc = min(cblk, C - c0)
        slab = x_ref[0, c0:c0 + nc].astype(jnp.float32)          # (nc, H, W)
        cmax = jnp.maximum(cmax, jnp.max(slab, axis=0))
        csum = csum + jnp.sum(slab, axis=0)
        ph_ref[0, PAD + c0:PAD + c0 + nc, PAD:PAD + W] = jnp.max(slab, axis=1)
        ph_ref[1, PAD + c0:PAD + c0 + nc, PAD:PAD + W] = (
            jnp.sum(slab, axis=1) * (1.0 / H))
        pw_ref[0, PAD + c0:PAD + c0 + nc, PAD:PAD + H] = jnp.max(slab, axis=2)
        pw_ref[1, PAD + c0:PAD + c0 + nc, PAD:PAD + H] = (
            jnp.sum(slab, axis=2) * (1.0 / W))
    pc_ref[0, PAD:PAD + H, PAD:PAD + W] = cmax
    pc_ref[1, PAD:PAD + H, PAD:PAD + W] = csum * (1.0 / C)

    # --- 7x7 conv + sigmoid per branch (tiny pooled maps) --------------------
    m_c = _conv7x7_sigmoid(pc_ref, w_ref, b_ref, H, W, 0, False)   # (H, W)
    m_h = _conv7x7_sigmoid(ph_ref, w_ref, b_ref, C, W, 1, False)   # (C, W)
    m_w = _conv7x7_sigmoid(pw_ref, w_ref, b_ref, C, H, 2, True)    # (C, H)

    # --- apply + combine, blocked over C (no full-tile mask temporary) ------
    third = jnp.float32(1.0 / 3.0)
    for c0 in starts:
        nc = min(cblk, C - c0)
        slab = x_ref[0, c0:c0 + nc].astype(jnp.float32)          # (nc, H, W)
        mask = (m_c[None, :, :]
                + m_h[c0:c0 + nc][:, None, :]
                + m_w[c0:c0 + nc][:, :, None])
        o_ref[0, c0:c0 + nc] = (slab * mask * third).astype(o_ref.dtype)


def _triple_attention_impl(x, params):
    """x: (N, C, H, W); params: dict branch -> (weight (1,2,K,K), bias (1,))."""
    N, C, H, W = x.shape
    w_flat = jnp.concatenate([
        params["channel"][0].reshape(-1),
        params["height"][0].reshape(-1),
        params["width"][0].reshape(-1),
    ]).astype(jnp.float32)                                  # (3*2*K*K,)
    b_all = jnp.concatenate([
        params["channel"][1], params["height"][1], params["width"][1],
    ]).astype(jnp.float32)                                  # (3,)

    pad_shapes = [
        (_ru(H + 2 * PAD, 8), _ru(W + 2 * PAD, 128)),   # channel branch (H, W)
        (_ru(C + 2 * PAD, 8), _ru(W + 2 * PAD, 128)),   # height  branch (C, W)
        (_ru(C + 2 * PAD, 8), _ru(H + 2 * PAD, 128)),   # width   branch (C, H)
    ]
    scratch_shapes = [pltpu.VMEM((2, r, c), jnp.float32) for r, c in pad_shapes]
    scratch_bytes = sum(2 * r * c * 4 for r, c in pad_shapes)

    # VMEM budget: 2x double-buffered input block + 2x output block + scratch,
    # capped at ~90% of this generation's physical VMEM (64 MiB on v7x,
    # 128 MiB on v5e/v6e), floor of 32 MiB.
    blk_bytes = C * H * W * jnp.dtype(x.dtype).itemsize
    needed = 4 * blk_bytes + scratch_bytes + (4 << 20)
    try:
        cap = int(getattr(pltpu.get_tpu_info(), "vmem_capacity_bytes", 64 << 20))
    except Exception:
        cap = 64 << 20
    vmem_limit = int(min(max(needed, 32 << 20), int(cap * 0.9)))

    return pl.pallas_call(
        _fused_kernel,
        out_shape=jax.ShapeDtypeStruct((N, C, H, W), x.dtype),
        grid=(N,),
        in_specs=[
            pl.BlockSpec((1, C, H, W), lambda n: (n, 0, 0, 0)),
            pl.BlockSpec(memory_space=pltpu.MemorySpace.SMEM),
            pl.BlockSpec(memory_space=pltpu.MemorySpace.SMEM),
        ],
        out_specs=pl.BlockSpec((1, C, H, W), lambda n: (n, 0, 0, 0)),
        scratch_shapes=scratch_shapes,
        compiler_params=pltpu.CompilerParams(
            dimension_semantics=("parallel",),
            vmem_limit_bytes=vmem_limit,
        ),
    )(x, w_flat, b_all)


triple_attention = jax.jit(_triple_attention_impl)


# ------------------------- pure-JAX reference ------------------------------ #
def _ref_branch(data, w, b):
    pooled = jnp.concatenate(
        [jnp.max(data, axis=1, keepdims=True),
         jnp.mean(data, axis=1, keepdims=True)], axis=1)
    conv = jax.lax.conv_general_dilated(
        pooled, w, window_strides=(1, 1), padding=[(PAD, PAD), (PAD, PAD)],
        dimension_numbers=("NCHW", "OIHW", "NCHW")) + b[0]
    return jax.nn.sigmoid(conv) * data


def _ref_forward(x, params):
    cw = _ref_branch(x, *params["channel"])
    hw = jnp.transpose(_ref_branch(jnp.transpose(x, (0, 2, 1, 3)),
                                   *params["height"]), (0, 2, 1, 3))
    ww = jnp.transpose(_ref_branch(jnp.transpose(x, (0, 3, 2, 1)),
                                   *params["width"]), (0, 3, 2, 1))
    return (cw + hw + ww) / 3.0


# ---------------------------------------------------------------------------- #
def _init_conv(key):
    """Deterministic init matching nn.Conv2d(2, 1, 7) parameter shapes."""
    kw, kb = jax.random.split(key)
    fan_in = 2 * K * K
    bound = 1.0 / (fan_in ** 0.5)
    w = jax.random.uniform(kw, (1, 2, K, K), jnp.float32, -bound, bound)
    b = jax.random.uniform(kb, (1,), jnp.float32, -bound, bound)
    return w, b


if __name__ == "__main__":
    key = jax.random.PRNGKey(0)
    kx, kc, kh, kw = jax.random.split(key, 4)

    x = jax.random.normal(kx, (2, 4, 16, 16), jnp.float32)   # (N, C, H, W)
    params = {
        "channel": _init_conv(kc),
        "height": _init_conv(kh),
        "width": _init_conv(kw),
    }

    out = triple_attention(x, params)
    out = jax.block_until_ready(out)

    ref = _ref_forward(x, params)
    assert out.shape == x.shape and out.dtype == x.dtype
    assert jnp.allclose(out, ref, atol=1e-5, rtol=1e-5), "mismatch vs reference"

    print("KERNEL_OK")
</pallas_src>

<mosaic_0001>
module attributes {stable_mosaic.version = 11 : i64} {
  func.func @_fused_kernel(%arg0: i32, %arg1: memref<1x4x16x16xf32, #tpu.memory_space<vmem>>, %arg2: memref<294xf32, #tpu.memory_space<smem>>, %arg3: memref<3xf32, #tpu.memory_space<smem>>, %arg4: memref<1x4x16x16xf32, #tpu.memory_space<vmem>>, %arg5: memref<2x24x128xf32, #tpu.memory_space<vmem>>, %arg6: memref<2x16x128xf32, #tpu.memory_space<vmem>>, %arg7: memref<2x16x128xf32, #tpu.memory_space<vmem>>) attributes {dimension_semantics = [#tpu.dimension_semantics<parallel>], iteration_bounds = array<i64: 2>, scalar_prefetch = 0 : i64, scratch_operands = 3 : i64, tpu.core_type = #tpu.core_type<tc>, window_params = [{transform_indices = @transform_0, window_bounds = array<i64: 1, 4, 16, 16>}, {transform_indices = @transform_1, window_bounds = array<i64: 294>}, {transform_indices = @transform_2, window_bounds = array<i64: 3>}, {transform_indices = @transform_3, window_bounds = array<i64: 1, 4, 16, 16>}]} {
    %cst = arith.constant 0.000000e+00 : f32
    %0 = vector.broadcast %cst : f32 to vector<2x3x22xf32>
    %c0 = arith.constant 0 : index
    %c0_0 = arith.constant 0 : index
    %c0_1 = arith.constant 0 : index
    %1 = vector.load %arg5[%c0, %c0_0, %c0_1] : memref<2x24x128xf32, #tpu.memory_space<vmem>>, vector<2x3x22xf32>
    tpu.vector_store %arg5[%c0, %c0_0, %c0_1], %0 {strides = array<i32>} : memref<2x24x128xf32, #tpu.memory_space<vmem>>, vector<2x3x22xf32>,
    %cst_2 = arith.constant 0.000000e+00 : f32
    %2 = vector.broadcast %cst_2 : f32 to vector<2x3x22xf32>
    %c0_3 = arith.constant 0 : index
    %c19 = arith.constant 19 : index
    %c0_4 = arith.constant 0 : index
    %3 = vector.load %arg5[%c0_3, %c19, %c0_4] : memref<2x24x128xf32, #tpu.memory_space<vmem>>, vector<2x3x22xf32>
    tpu.vector_store %arg5[%c0_3, %c19, %c0_4], %2 {strides = array<i32>} : memref<2x24x128xf32, #tpu.memory_space<vmem>>, vector<2x3x22xf32>,
    %cst_5 = arith.constant 0.000000e+00 : f32
    %4 = vector.broadcast %cst_5 : f32 to vector<2x16x3xf32>
    %c0_6 = arith.constant 0 : index
    %c3 = arith.constant 3 : index
    %c0_7 = arith.constant 0 : index
    %5 = vector.load %arg5[%c0_6, %c3, %c0_7] : memref<2x24x128xf32, #tpu.memory_space<vmem>>, vector<2x16x3xf32>
    tpu.vector_store %arg5[%c0_6, %c3, %c0_7], %4 {strides = array<i32>} : memref<2x24x128xf32, #tpu.memory_space<vmem>>, vector<2x16x3xf32>,
    %cst_8 = arith.constant 0.000000e+00 : f32
    %6 = vector.broadcast %cst_8 : f32 to vector<2x16x3xf32>
    %c0_9 = arith.constant 0 : index
    %c3_10 = arith.constant 3 : index
    %c19_11 = arith.constant 19 : index
    %7 = vector.load %arg5[%c0_9, %c3_10, %c19_11] : memref<2x24x128xf32, #tpu.memory_space<vmem>>, vector<2x16x3xf32>
    tpu.vector_store %arg5[%c0_9, %c3_10, %c19_11], %6 {strides = array<i32>} : memref<2x24x128xf32, #tpu.memory_space<vmem>>, vector<2x16x3xf32>,
    %cst_12 = arith.constant 0.000000e+00 : f32
    %8 = vector.broadcast %cst_12 : f32 to vector<2x3x22xf32>
    %c0_13 = arith.constant 0 : index
    %c0_14 = arith.constant 0 : index
    %c0_15 = arith.constant 0 : index
    %9 = vector.load %arg6[%c0_13, %c0_14, %c0_15] : memref<2x16x128xf32, #tpu.memory_space<vmem>>, vector<2x3x22xf32>
    tpu.vector_store %arg6[%c0_13, %c0_14, %c0_15], %8 {strides = array<i32>} : memref<2x16x128xf32, #tpu.memory_space<vmem>>, vector<2x3x22xf32>,
    %cst_16 = arith.constant 0.000000e+00 : f32
    %10 = vector.broadcast %cst_16 : f32 to vector<2x3x22xf32>
    %c0_17 = arith.constant 0 : index
    %c7 = arith.constant 7 : index
    %c0_18 = arith.constant 0 : index
    %11 = vector.load %arg6[%c0_17, %c7, %c0_18] : memref<2x16x128xf32, #tpu.memory_space<vmem>>, vector<2x3x22xf32>
    tpu.vector_store %arg6[%c0_17, %c7, %c0_18], %10 {strides = array<i32>} : memref<2x16x128xf32, #tpu.memory_space<vmem>>, vector<2x3x22xf32>,
    %cst_19 = arith.constant 0.000000e+00 : f32
    %12 = vector.broadcast %cst_19 : f32 to vector<2x4x3xf32>
    %c0_20 = arith.constant 0 : index
    %c3_21 = arith.constant 3 : index
    %c0_22 = arith.constant 0 : index
    %13 = vector.load %arg6[%c0_20, %c3_21, %c0_22] : memref<2x16x128xf32, #tpu.memory_space<vmem>>, vector<2x4x3xf32>
    tpu.vector_store %arg6[%c0_20, %c3_21, %c0_22], %12 {strides = array<i32>} : memref<2x16x128xf32, #tpu.memory_space<vmem>>, vector<2x4x3xf32>,
    %cst_23 = arith.constant 0.000000e+00 : f32
    %14 = vector.broadcast %cst_23 : f32 to vector<2x4x3xf32>
    %c0_24 = arith.constant 0 : index
    %c3_25 = arith.constant 3 : index
    %c19_26 = arith.constant 19 : index
    %15 = vector.load %arg6[%c0_24, %c3_25, %c19_26] : memref<2x16x128xf32, #tpu.memory_space<vmem>>, vector<2x4x3xf32>
    tpu.vector_store %arg6[%c0_24, %c3_25, %c19_26], %14 {strides = array<i32>} : memref<2x16x128xf32, #tpu.memory_space<vmem>>, vector<2x4x3xf32>,
    %cst_27 = arith.constant 0.000000e+00 : f32
    %16 = vector.broadcast %cst_27 : f32 to vector<2x3x22xf32>
    %c0_28 = arith.constant 0 : index
    %c0_29 = arith.constant 0 : index
    %c0_30 = arith.constant 0 : index
    %17 = vector.load %arg7[%c0_28, %c0_29, %c0_30] : memref<2x16x128xf32, #tpu.memory_space<vmem>>, vector<2x3x22xf32>
    tpu.vector_store %arg7[%c0_28, %c0_29, %c0_30], %16 {strides = array<i32>} : memref<2x16x128xf32, #tpu.memory_space<vmem>>, vector<2x3x22xf32>,
    %cst_31 = arith.constant 0.000000e+00 : f32
    %18 = vector.broadcast %cst_31 : f32 to vector<2x3x22xf32>
    %c0_32 = arith.constant 0 : index
    %c7_33 = arith.constant 7 : index
    %c0_34 = arith.constant 0 : index
    %19 = vector.load %arg7[%c0_32, %c7_33, %c0_34] : memref<2x16x128xf32, #tpu.memory_space<vmem>>, vector<2x3x22xf32>
    tpu.vector_store %arg7[%c0_32, %c7_33, %c0_34], %18 {strides = array<i32>} : memref<2x16x128xf32, #tpu.memory_space<vmem>>, vector<2x3x22xf32>,
    %cst_35 = arith.constant 0.000000e+00 : f32
    %20 = vector.broadcast %cst_35 : f32 to vector<2x4x3xf32>
    %c0_36 = arith.constant 0 : index
    %c3_37 = arith.constant 3 : index
    %c0_38 = arith.constant 0 : index
    %21 = vector.load %arg7[%c0_36, %c3_37, %c0_38] : memref<2x16x128xf32, #tpu.memory_space<vmem>>, vector<2x4x3xf32>
    tpu.vector_store %arg7[%c0_36, %c3_37, %c0_38], %20 {strides = array<i32>} : memref<2x16x128xf32, #tpu.memory_space<vmem>>, vector<2x4x3xf32>,
    %cst_39 = arith.constant 0.000000e+00 : f32
    %22 = vector.broadcast %cst_39 : f32 to vector<2x4x3xf32>
    %c0_40 = arith.constant 0 : index
    %c3_41 = arith.constant 3 : index
    %c19_42 = arith.constant 19 : index
    %23 = vector.load %arg7[%c0_40, %c3_41, %c19_42] : memref<2x16x128xf32, #tpu.memory_space<vmem>>, vector<2x4x3xf32>
    tpu.vector_store %arg7[%c0_40, %c3_41, %c19_42], %22 {strides = array<i32>} : memref<2x16x128xf32, #tpu.memory_space<vmem>>, vector<2x4x3xf32>,
    %cst_43 = arith.constant 0xFF800000 : f32
    %24 = vector.broadcast %cst_43 : f32 to vector<16x16xf32>
    %cst_44 = arith.constant 0.000000e+00 : f32
    %25 = vector.broadcast %cst_44 : f32 to vector<16x16xf32>
    %c0_45 = arith.constant 0 : index
    %c0_46 = arith.constant 0 : index
    %c0_47 = arith.constant 0 : index
    %c0_48 = arith.constant 0 : index
    %26 = vector.load %arg1[%c0_45, %c0_46, %c0_47, %c0_48] : memref<1x4x16x16xf32, #tpu.memory_space<vmem>>, vector<1x4x16x16xf32>
    %27 = vector.shape_cast %26 : vector<1x4x16x16xf32> to vector<4x16x16xf32>
    %cst_49 = arith.constant dense<0xFF800000> : vector<16x16xf32>
    %28 = vector.multi_reduction <maximumf>, %27, %cst_49 [0] : vector<4x16x16xf32> to vector<16x16xf32>
    %29 = arith.maximumf %24, %28 : vector<16x16xf32>
    %cst_50 = arith.constant dense<0.000000e+00> : vector<16x16xf32>
    %30 = vector.multi_reduction <add>, %27, %cst_50 [0] : vector<4x16x16xf32> to vector<16x16xf32>
    %31 = arith.addf %25, %30 : vector<16x16xf32>
    %cst_51 = arith.constant dense<0xFF800000> : vector<4x16xf32>
    %32 = vector.multi_reduction <maximumf>, %27, %cst_51 [1] : vector<4x16x16xf32> to vector<4x16xf32>
    %c0_52 = arith.constant 0 : index
    %c3_53 = arith.constant 3 : index
    %c3_54 = arith.constant 3 : index
    %33 = vector.load %arg6[%c0_52, %c3_53, %c3_54] : memref<2x16x128xf32, #tpu.memory_space<vmem>>, vector<1x4x16xf32>
    %34 = vector.shape_cast %33 : vector<1x4x16xf32> to vector<4x16xf32>
    %35 = vector.shape_cast %32 : vector<4x16xf32> to vector<1x4x16xf32>
    tpu.vector_store %arg6[%c0_52, %c3_53, %c3_54], %35 {strides = array<i32>} : memref<2x16x128xf32, #tpu.memory_space<vmem>>, vector<1x4x16xf32>,
    %cst_55 = arith.constant dense<0.000000e+00> : vector<4x16xf32>
    %36 = vector.multi_reduction <add>, %27, %cst_55 [1] : vector<4x16x16xf32> to vector<4x16xf32>
    %cst_56 = arith.constant 6.250000e-02 : f32
    %37 = vector.broadcast %cst_56 : f32 to vector<4x16xf32>
    %38 = arith.mulf %36, %37 : vector<4x16xf32>
    %c1 = arith.constant 1 : index
    %c3_57 = arith.constant 3 : index
    %c3_58 = arith.constant 3 : index
    %39 = vector.load %arg6[%c1, %c3_57, %c3_58] : memref<2x16x128xf32, #tpu.memory_space<vmem>>, vector<1x4x16xf32>
    %40 = vector.shape_cast %39 : vector<1x4x16xf32> to vector<4x16xf32>
    %41 = vector.shape_cast %38 : vector<4x16xf32> to vector<1x4x16xf32>
    tpu.vector_store %arg6[%c1, %c3_57, %c3_58], %41 {strides = array<i32>} : memref<2x16x128xf32, #tpu.memory_space<vmem>>, vector<1x4x16xf32>,
    %cst_59 = arith.constant dense<0xFF800000> : vector<4x16xf32>
    %42 = vector.multi_reduction <maximumf>, %27, %cst_59 [2] : vector<4x16x16xf32> to vector<4x16xf32>
    %c0_60 = arith.constant 0 : index
    %c3_61 = arith.constant 3 : index
    %c3_62 = arith.constant 3 : index
    %43 = vector.load %arg7[%c0_60, %c3_61, %c3_62] : memref<2x16x128xf32, #tpu.memory_space<vmem>>, vector<1x4x16xf32>
    %44 = vector.shape_cast %43 : vector<1x4x16xf32> to vector<4x16xf32>
    %45 = vector.shape_cast %42 : vector<4x16xf32> to vector<1x4x16xf32>
    tpu.vector_store %arg7[%c0_60, %c3_61, %c3_62], %45 {strides = array<i32>} : memref<2x16x128xf32, #tpu.memory_space<vmem>>, vector<1x4x16xf32>,
    %cst_63 = arith.constant dense<0.000000e+00> : vector<4x16xf32>
    %46 = vector.multi_reduction <add>, %27, %cst_63 [2] : vector<4x16x16xf32> to vector<4x16xf32>
    %cst_64 = arith.constant 6.250000e-02 : f32
    %47 = vector.broadcast %cst_64 : f32 to vector<4x16xf32>
    %48 = arith.mulf %46, %47 : vector<4x16xf32>
    %c1_65 = arith.constant 1 : index
    %c3_66 = arith.constant 3 : index
    %c3_67 = arith.constant 3 : index
    %49 = vector.load %arg7[%c1_65, %c3_66, %c3_67] : memref<2x16x128xf32, #tpu.memory_space<vmem>>, vector<1x4x16xf32>
    %50 = vector.shape_cast %49 : vector<1x4x16xf32> to vector<4x16xf32>
    %51 = vector.shape_cast %48 : vector<4x16xf32> to vector<1x4x16xf32>
    tpu.vector_store %arg7[%c1_65, %c3_66, %c3_67], %51 {strides = array<i32>} : memref<2x16x128xf32, #tpu.memory_space<vmem>>, vector<1x4x16xf32>,
    %c0_68 = arith.constant 0 : index
    %c3_69 = arith.constant 3 : index
    %c3_70 = arith.constant 3 : index
    %52 = vector.load %arg5[%c0_68, %c3_69, %c3_70] : memref<2x24x128xf32, #tpu.memory_space<vmem>>, vector<1x16x16xf32>
    %53 = vector.shape_cast %52 : vector<1x16x16xf32> to vector<16x16xf32>
    %54 = vector.shape_cast %29 : vector<16x16xf32> to vector<1x16x16xf32>
    tpu.vector_store %arg5[%c0_68, %c3_69, %c3_70], %54 {strides = array<i32>} : memref<2x24x128xf32, #tpu.memory_space<vmem>>, vector<1x16x16xf32>,
    %cst_71 = arith.constant 2.500000e-01 : f32
    %55 = vector.broadcast %cst_71 : f32 to vector<16x16xf32>
    %56 = arith.mulf %31, %55 : vector<16x16xf32>
    %c1_72 = arith.constant 1 : index
    %c3_73 = arith.constant 3 : index
    %c3_74 = arith.constant 3 : index
    %57 = vector.load %arg5[%c1_72, %c3_73, %c3_74] : memref<2x24x128xf32, #tpu.memory_space<vmem>>, vector<1x16x16xf32>
    %58 = vector.shape_cast %57 : vector<1x16x16xf32> to vector<16x16xf32>
    %59 = vector.shape_cast %56 : vector<16x16xf32> to vector<1x16x16xf32>
    tpu.vector_store %arg5[%c1_72, %c3_73, %c3_74], %59 {strides = array<i32>} : memref<2x24x128xf32, #tpu.memory_space<vmem>>, vector<1x16x16xf32>,
    %c0_75 = arith.constant 0 : index
    %60 = memref.load %arg2[%c0_75] : memref<294xf32, #tpu.memory_space<smem>>
    %c0_76 = arith.constant 0 : index
    %c0_77 = arith.constant 0 : index
    %c0_78 = arith.constant 0 : index
    %61 = vector.load %arg5[%c0_76, %c0_77, %c0_78] : memref<2x24x128xf32, #tpu.memory_space<vmem>>, vector<1x16x16xf32>
    %62 = vector.shape_cast %61 : vector<1x16x16xf32> to vector<16x16xf32>
    %63 = vector.broadcast %60 : f32 to vector<16x16xf32>
    %64 = arith.mulf %63, %62 : vector<16x16xf32>
    %c7_79 = arith.constant 7 : index
    %65 = memref.load %arg2[%c7_79] : memref<294xf32, #tpu.memory_space<smem>>
    %c0_80 = arith.constant 0 : index
    %c1_81 = arith.constant 1 : index
    %c0_82 = arith.constant 0 : index
    %66 = vector.load %arg5[%c0_80, %c1_81, %c0_82] : memref<2x24x128xf32, #tpu.memory_space<vmem>>, vector<1x16x16xf32>
    %67 = vector.shape_cast %66 : vector<1x16x16xf32> to vector<16x16xf32>
    %68 = vector.broadcast %65 : f32 to vector<16x16xf32>
    %69 = arith.mulf %68, %67 : vector<16x16xf32>
    %70 = arith.addf %64, %69 : vector<16x16xf32>
    %c14 = arith.constant 14 : index
    %71 = memref.load %arg2[%c14] : memref<294xf32, #tpu.memory_space<smem>>
    %c0_83 = arith.constant 0 : index
    %c2 = arith.constant 2 : index
    %c0_84 = arith.constant 0 : index
    %72 = vector.load %arg5[%c0_83, %c2, %c0_84] : memref<2x24x128xf32, #tpu.memory_space<vmem>>, vector<1x16x16xf32>
    %73 = vector.shape_cast %72 : vector<1x16x16xf32> to vector<16x16xf32>
    %74 = vector.broadcast %71 : f32 to vector<16x16xf32>
    %75 = arith.mulf %74, %73 : vector<16x16xf32>
    %76 = arith.addf %70, %75 : vector<16x16xf32>
    %c21 = arith.constant 21 : index
    %77 = memref.load %arg2[%c21] : memref<294xf32, #tpu.memory_space<smem>>
    %c0_85 = arith.constant 0 : index
    %c3_86 = arith.constant 3 : index
    %c0_87 = arith.constant 0 : index
    %78 = vector.load %arg5[%c0_85, %c3_86, %c0_87] : memref<2x24x128xf32, #tpu.memory_space<vmem>>, vector<1x16x16xf32>
    %79 = vector.shape_cast %78 : vector<1x16x16xf32> to vector<16x16xf32>
    %80 = vector.broadcast %77 : f32 to vector<16x16xf32>
    %81 = arith.mulf %80, %79 : vector<16x16xf32>
    %82 = arith.addf %76, %81 : vector<16x16xf32>
    %c28 = arith.constant 28 : index
    %83 = memref.load %arg2[%c28] : memref<294xf32, #tpu.memory_space<smem>>
    %c0_88 = arith.constant 0 : index
    %c4 = arith.constant 4 : index
    %c0_89 = arith.constant 0 : index
    %84 = vector.load %arg5[%c0_88, %c4, %c0_89] : memref<2x24x128xf32, #tpu.memory_space<vmem>>, vector<1x16x16xf32>
    %85 = vector.shape_cast %84 : vector<1x16x16xf32> to vector<16x16xf32>
    %86 = vector.broadcast %83 : f32 to vector<16x16xf32>
    %87 = arith.mulf %86, %85 : vector<16x16xf32>
    %88 = arith.addf %82, %87 : vector<16x16xf32>
    %c35 = arith.constant 35 : index
    %89 = memref.load %arg2[%c35] : memref<294xf32, #tpu.memory_space<smem>>
    %c0_90 = arith.constant 0 : index
    %c5 = arith.constant 5 : index
    %c0_91 = arith.constant 0 : index
    %90 = vector.load %arg5[%c0_90, %c5, %c0_91] : memref<2x24x128xf32, #tpu.memory_space<vmem>>, vector<1x16x16xf32>
    %91 = vector.shape_cast %90 : vector<1x16x16xf32> to vector<16x16xf32>
    %92 = vector.broadcast %89 : f32 to vector<16x16xf32>
    %93 = arith.mulf %92, %91 : vector<16x16xf32>
    %94 = arith.addf %88, %93 : vector<16x16xf32>
    %c42 = arith.constant 42 : index
    %95 = memref.load %arg2[%c42] : memref<294xf32, #tpu.memory_space<smem>>
    %c0_92 = arith.constant 0 : index
    %c6 = arith.constant 6 : index
    %c0_93 = arith.constant 0 : index
    %96 = vector.load %arg5[%c0_92, %c6, %c0_93] : memref<2x24x128xf32, #tpu.memory_space<vmem>>, vector<1x16x16xf32>
    %97 = vector.shape_cast %96 : vector<1x16x16xf32> to vector<16x16xf32>
    %98 = vector.broadcast %95 : f32 to vector<16x16xf32>
    %99 = arith.mulf %98, %97 : vector<16x16xf32>
    %100 = arith.addf %94, %99 : vector<16x16xf32>
    %c49 = arith.constant 49 : index
    %101 = memref.load %arg2[%c49] : memref<294xf32, #tpu.memory_space<smem>>
    %c1_94 = arith.constant 1 : index
    %c0_95 = arith.constant 0 : index
    %c0_96 = arith.constant 0 : index
    %102 = vector.load %arg5[%c1_94, %c0_95, %c0_96] : memref<2x24x128xf32, #tpu.memory_space<vmem>>, vector<1x16x16xf32>
    %103 = vector.shape_cast %102 : vector<1x16x16xf32> to vector<16x16xf32>
    %104 = vector.broadcast %101 : f32 to vector<16x16xf32>
    %105 = arith.mulf %104, %103 : vector<16x16xf32>
    %106 = arith.addf %100, %105 : vector<16x16xf32>
    %c56 = arith.constant 56 : index
    %107 = memref.load %arg2[%c56] : memref<294xf32, #tpu.memory_space<smem>>
    %c1_97 = arith.constant 1 : index
    %c1_98 = arith.constant 1 : index
    %c0_99 = arith.constant 0 : index
    %108 = vector.load %arg5[%c1_97, %c1_98, %c0_99] : memref<2x24x128xf32, #tpu.memory_space<vmem>>, vector<1x16x16xf32>
    %109 = vector.shape_cast %108 : vector<1x16x16xf32> to vector<16x16xf32>
    %110 = vector.broadcast %107 : f32 to vector<16x16xf32>
    %111 = arith.mulf %110, %109 : vector<16x16xf32>
    %112 = arith.addf %106, %111 : vector<16x16xf32>
    %c63 = arith.constant 63 : index
    %113 = memref.load %arg2[%c63] : memref<294xf32, #tpu.memory_space<smem>>
    %c1_100 = arith.constant 1 : index
    %c2_101 = arith.constant 2 : index
    %c0_102 = arith.constant 0 : index
    %114 = vector.load %arg5[%c1_100, %c2_101, %c0_102] : memref<2x24x128xf32, #tpu.memory_space<vmem>>, vector<1x16x16xf32>
    %115 = vector.shape_cast %114 : vector<1x16x16xf32> to vector<16x16xf32>
    %116 = vector.broadcast %113 : f32 to vector<16x16xf32>
    %117 = arith.mulf %116, %115 : vector<16x16xf32>
    %118 = arith.addf %112, %117 : vector<16x16xf32>
    %c70 = arith.constant 70 : index
    %119 = memref.load %arg2[%c70] : memref<294xf32, #tpu.memory_space<smem>>
    %c1_103 = arith.constant 1 : index
    %c3_104 = arith.constant 3 : index
    %c0_105 = arith.constant 0 : index
    %120 = vector.load %arg5[%c1_103, %c3_104, %c0_105] : memref<2x24x128xf32, #tpu.memory_space<vmem>>, vector<1x16x16xf32>
    %121 = vector.shape_cast %120 : vector<1x16x16xf32> to vector<16x16xf32>
    %122 = vector.broadcast %119 : f32 to vector<16x16xf32>
    %123 = arith.mulf %122, %121 : vector<16x16xf32>
    %124 = arith.addf %118, %123 : vector<16x16xf32>
    %c77 = arith.constant 77 : index
    %125 = memref.load %arg2[%c77] : memref<294xf32, #tpu.memory_space<smem>>
    %c1_106 = arith.constant 1 : index
    %c4_107 = arith.constant 4 : index
    %c0_108 = arith.constant 0 : index
    %126 = vector.load %arg5[%c1_106, %c4_107, %c0_108] : memref<2x24x128xf32, #tpu.memory_space<vmem>>, vector<1x16x16xf32>
    %127 = vector.shape_cast %126 : vector<1x16x16xf32> to vector<16x16xf32>
    %128 = vector.broadcast %125 : f32 to vector<16x16xf32>
    %129 = arith.mulf %128, %127 : vector<16x16xf32>
    %130 = arith.addf %124, %129 : vector<16x16xf32>
    %c84 = arith.constant 84 : index
    %131 = memref.load %arg2[%c84] : memref<294xf32, #tpu.memory_space<smem>>
    %c1_109 = arith.constant 1 : index
    %c5_110 = arith.constant 5 : index
    %c0_111 = arith.constant 0 : index
    %132 = vector.load %arg5[%c1_109, %c5_110, %c0_111] : memref<2x24x128xf32, #tpu.memory_space<vmem>>, vector<1x16x16xf32>
    %133 = vector.shape_cast %132 : vector<1x16x16xf32> to vector<16x16xf32>
    %134 = vector.broadcast %131 : f32 to vector<16x16xf32>
    %135 = arith.mulf %134, %133 : vector<16x16xf32>
    %136 = arith.addf %130, %135 : vector<16x16xf32>
    %c91 = arith.constant 91 : index
    %137 = memref.load %arg2[%c91] : memref<294xf32, #tpu.memory_space<smem>>
    %c1_112 = arith.constant 1 : index
    %c6_113 = arith.constant 6 : index
    %c0_114 = arith.constant 0 : index
    %138 = vector.load %arg5[%c1_112, %c6_113, %c0_114] : memref<2x24x128xf32, #tpu.memory_space<vmem>>, vector<1x16x16xf32>
    %139 = vector.shape_cast %138 : vector<1x16x16xf32> to vector<16x16xf32>
    %140 = vector.broadcast %137 : f32 to vector<16x16xf32>
    %141 = arith.mulf %140, %139 : vector<16x16xf32>
    %142 = arith.addf %136, %141 : vector<16x16xf32>
    %c1_115 = arith.constant 1 : index
    %143 = memref.load %arg2[%c1_115] : memref<294xf32, #tpu.memory_space<smem>>
    %c0_116 = arith.constant 0 : index
    %c0_117 = arith.constant 0 : index
    %c1_118 = arith.constant 1 : index
    %144 = vector.load %arg5[%c0_116, %c0_117, %c1_118] : memref<2x24x128xf32, #tpu.memory_space<vmem>>, vector<1x16x16xf32>
    %145 = vector.shape_cast %144 : vector<1x16x16xf32> to vector<16x16xf32>
    %146 = vector.broadcast %143 : f32 to vector<16x16xf32>
    %147 = arith.mulf %146, %145 : vector<16x16xf32>
    %c8 = arith.constant 8 : index
    %148 = memref.load %arg2[%c8] : memref<294xf32, #tpu.memory_space<smem>>
    %c0_119 = arith.constant 0 : index
    %c1_120 = arith.constant 1 : index
    %c1_121 = arith.constant 1 : index
    %149 = vector.load %arg5[%c0_119, %c1_120, %c1_121] : memref<2x24x128xf32, #tpu.memory_space<vmem>>, vector<1x16x16xf32>
    %150 = vector.shape_cast %149 : vector<1x16x16xf32> to vector<16x16xf32>
    %151 = vector.broadcast %148 : f32 to vector<16x16xf32>
    %152 = arith.mulf %151, %150 : vector<16x16xf32>
    %153 = arith.addf %147, %152 : vector<16x16xf32>
    %c15 = arith.constant 15 : index
    %154 = memref.load %arg2[%c15] : memref<294xf32, #tpu.memory_space<smem>>
    %c0_122 = arith.constant 0 : index
    %c2_123 = arith.constant 2 : index
    %c1_124 = arith.constant 1 : index
    %155 = vector.load %arg5[%c0_122, %c2_123, %c1_124] : memref<2x24x128xf32, #tpu.memory_space<vmem>>, vector<1x16x16xf32>
    %156 = vector.shape_cast %155 : vector<1x16x16xf32> to vector<16x16xf32>
    %157 = vector.broadcast %154 : f32 to vector<16x16xf32>
    %158 = arith.mulf %157, %156 : vector<16x16xf32>
    %159 = arith.addf %153, %158 : vector<16x16xf32>
    %c22 = arith.constant 22 : index
    %160 = memref.load %arg2[%c22] : memref<294xf32, #tpu.memory_space<smem>>
    %c0_125 = arith.constant 0 : index
    %c3_126 = arith.constant 3 : index
    %c1_127 = arith.constant 1 : index
    %161 = vector.load %arg5[%c0_125, %c3_126, %c1_127] : memref<2x24x128xf32, #tpu.memory_space<vmem>>, vector<1x16x16xf32>
    %162 = vector.shape_cast %161 : vector<1x16x16xf32> to vector<16x16xf32>
    %163 = vector.broadcast %160 : f32 to vector<16x16xf32>
    %164 = arith.mulf %163, %162 : vector<16x16xf32>
    %165 = arith.addf %159, %164 : vector<16x16xf32>
    %c29 = arith.constant 29 : index
    %166 = memref.load %arg2[%c29] : memref<294xf32, #tpu.memory_space<smem>>
    %c0_128 = arith.constant 0 : index
    %c4_129 = arith.constant 4 : index
    %c1_130 = arith.constant 1 : index
    %167 = vector.load %arg5[%c0_128, %c4_129, %c1_130] : memref<2x24x128xf32, #tpu.memory_space<vmem>>, vector<1x16x16xf32>
    %168 = vector.shape_cast %167 : vector<1x16x16xf32> to vector<16x16xf32>
    %169 = vector.broadcast %166 : f32 to vector<16x16xf32>
    %170 = arith.mulf %169, %168 : vector<16x16xf32>
    %171 = arith.addf %165, %170 : vector<16x16xf32>
    %c36 = arith.constant 36 : index
    %172 = memref.load %arg2[%c36] : memref<294xf32, #tpu.memory_space<smem>>
    %c0_131 = arith.constant 0 : index
    %c5_132 = arith.constant 5 : index
    %c1_133 = arith.constant 1 : index
    %173 = vector.load %arg5[%c0_131, %c5_132, %c1_133] : memref<2x24x128xf32, #tpu.memory_space<vmem>>, vector<1x16x16xf32>
    %174 = vector.shape_cast %173 : vector<1x16x16xf32> to vector<16x16xf32>
    %175 = vector.broadcast %172 : f32 to vector<16x16xf32>
    %176 = arith.mulf %175, %174 : vector<16x16xf32>
    %177 = arith.addf %171, %176 : vector<16x16xf32>
    %c43 = arith.constant 43 : index
    %178 = memref.load %arg2[%c43] : memref<294xf32, #tpu.memory_space<smem>>
    %c0_134 = arith.constant 0 : index
    %c6_135 = arith.constant 6 : index
    %c1_136 = arith.constant 1 : index
    %179 = vector.load %arg5[%c0_134, %c6_135, %c1_136] : memref<2x24x128xf32, #tpu.memory_space<vmem>>, vector<1x16x16xf32>
    %180 = vector.shape_cast %179 : vector<1x16x16xf32> to vector<16x16xf32>
    %181 = vector.broadcast %178 : f32 to vector<16x16xf32>
    %182 = arith.mulf %181, %180 : vector<16x16xf32>
    %183 = arith.addf %177, %182 : vector<16x16xf32>
    %c50 = arith.constant 50 : index
    %184 = memref.load %arg2[%c50] : memref<294xf32, #tpu.memory_space<smem>>
    %c1_137 = arith.constant 1 : index
    %c0_138 = arith.constant 0 : index
    %c1_139 = arith.constant 1 : index
    %185 = vector.load %arg5[%c1_137, %c0_138, %c1_139] : memref<2x24x128xf32, #tpu.memory_space<vmem>>, vector<1x16x16xf32>
    %186 = vector.shape_cast %185 : vector<1x16x16xf32> to vector<16x16xf32>
    %187 = vector.broadcast %184 : f32 to vector<16x16xf32>
    %188 = arith.mulf %187, %186 : vector<16x16xf32>
    %189 = arith.addf %183, %188 : vector<16x16xf32>
    %c57 = arith.constant 57 : index
    %190 = memref.load %arg2[%c57] : memref<294xf32, #tpu.memory_space<smem>>
    %c1_140 = arith.constant 1 : index
    %c1_141 = arith.constant 1 : index
    %c1_142 = arith.constant 1 : index
    %191 = vector.load %arg5[%c1_140, %c1_141, %c1_142] : memref<2x24x128xf32, #tpu.memory_space<vmem>>, vector<1x16x16xf32>
    %192 = vector.shape_cast %191 : vector<1x16x16xf32> to vector<16x16xf32>
    %193 = vector.broadcast %190 : f32 to vector<16x16xf32>
    %194 = arith.mulf %193, %192 : vector<16x16xf32>
    %195 = arith.addf %189, %194 : vector<16x16xf32>
    %c64 = arith.constant 64 : index
    %196 = memref.load %arg2[%c64] : memref<294xf32, #tpu.memory_space<smem>>
    %c1_143 = arith.constant 1 : index
    %c2_144 = arith.constant 2 : index
    %c1_145 = arith.constant 1 : index
    %197 = vector.load %arg5[%c1_143, %c2_144, %c1_145] : memref<2x24x128xf32, #tpu.memory_space<vmem>>, vector<1x16x16xf32>
    %198 = vector.shape_cast %197 : vector<1x16x16xf32> to vector<16x16xf32>
    %199 = vector.broadcast %196 : f32 to vector<16x16xf32>
    %200 = arith.mulf %199, %198 : vector<16x16xf32>
    %201 = arith.addf %195, %200 : vector<16x16xf32>
    %c71 = arith.constant 71 : index
    %202 = memref.load %arg2[%c71] : memref<294xf32, #tpu.memory_space<smem>>
    %c1_146 = arith.constant 1 : index
    %c3_147 = arith.constant 3 : index
    %c1_148 = arith.constant 1 : index
    %203 = vector.load %arg5[%c1_146, %c3_147, %c1_148] : memref<2x24x128xf32, #tpu.memory_space<vmem>>, vector<1x16x16xf32>
    %204 = vector.shape_cast %203 : vector<1x16x16xf32> to vector<16x16xf32>
    %205 = vector.broadcast %202 : f32 to vector<16x16xf32>
    %206 = arith.mulf %205, %204 : vector<16x16xf32>
    %207 = arith.addf %201, %206 : vector<16x16xf32>
    %c78 = arith.constant 78 : index
    %208 = memref.load %arg2[%c78] : memref<294xf32, #tpu.memory_space<smem>>
    %c1_149 = arith.constant 1 : index
    %c4_150 = arith.constant 4 : index
    %c1_151 = arith.constant 1 : index
    %209 = vector.load %arg5[%c1_149, %c4_150, %c1_151] : memref<2x24x128xf32, #tpu.memory_space<vmem>>, vector<1x16x16xf32>
    %210 = vector.shape_cast %209 : vector<1x16x16xf32> to vector<16x16xf32>
    %211 = vector.broadcast %208 : f32 to vector<16x16xf32>
    %212 = arith.mulf %211, %210 : vector<16x16xf32>
    %213 = arith.addf %207, %212 : vector<16x16xf32>
    %c85 = arith.constant 85 : index
    %214 = memref.load %arg2[%c85] : memref<294xf32, #tpu.memory_space<smem>>
    %c1_152 = arith.constant 1 : index
    %c5_153 = arith.constant 5 : index
    %c1_154 = arith.constant 1 : index
    %215 = vector.load %arg5[%c1_152, %c5_153, %c1_154] : memref<2x24x128xf32, #tpu.memory_space<vmem>>, vector<1x16x16xf32>
    %216 = vector.shape_cast %215 : vector<1x16x16xf32> to vector<16x16xf32>
    %217 = vector.broadcast %214 : f32 to vector<16x16xf32>
    %218 = arith.mulf %217, %216 : vector<16x16xf32>
    %219 = arith.addf %213, %218 : vector<16x16xf32>
    %c92 = arith.constant 92 : index
    %220 = memref.load %arg2[%c92] : memref<294xf32, #tpu.memory_space<smem>>
    %c1_155 = arith.constant 1 : index
    %c6_156 = arith.constant 6 : index
    %c1_157 = arith.constant 1 : index
    %221 = vector.load %arg5[%c1_155, %c6_156, %c1_157] : memref<2x24x128xf32, #tpu.memory_space<vmem>>, vector<1x16x16xf32>
    %222 = vector.shape_cast %221 : vector<1x16x16xf32> to vector<16x16xf32>
    %223 = vector.broadcast %220 : f32 to vector<16x16xf32>
    %224 = arith.mulf %223, %222 : vector<16x16xf32>
    %225 = arith.addf %219, %224 : vector<16x16xf32>
    %c2_158 = arith.constant 2 : index
    %226 = memref.load %arg2[%c2_158] : memref<294xf32, #tpu.memory_space<smem>>
    %c0_159 = arith.constant 0 : index
    %c0_160 = arith.constant 0 : index
    %c2_161 = arith.constant 2 : index
    %227 = vector.load %arg5[%c0_159, %c0_160, %c2_161] : memref<2x24x128xf32, #tpu.memory_space<vmem>>, vector<1x16x16xf32>
    %228 = vector.shape_cast %227 : vector<1x16x16xf32> to vector<16x16xf32>
    %229 = vector.broadcast %226 : f32 to vector<16x16xf32>
    %230 = arith.mulf %229, %228 : vector<16x16xf32>
    %c9 = arith.constant 9 : index
    %231 = memref.load %arg2[%c9] : memref<294xf32, #tpu.memory_space<smem>>
    %c0_162 = arith.constant 0 : index
    %c1_163 = arith.constant 1 : index
    %c2_164 = arith.constant 2 : index
    %232 = vector.load %arg5[%c0_162, %c1_163, %c2_164] : memref<2x24x128xf32, #tpu.memory_space<vmem>>, vector<1x16x16xf32>
    %233 = vector.shape_cast %232 : vector<1x16x16xf32> to vector<16x16xf32>
    %234 = vector.broadcast %231 : f32 to vector<16x16xf32>
    %235 = arith.mulf %234, %233 : vector<16x16xf32>
    %236 = arith.addf %230, %235 : vector<16x16xf32>
    %c16 = arith.constant 16 : index
    %237 = memref.load %arg2[%c16] : memref<294xf32, #tpu.memory_space<smem>>
    %c0_165 = arith.constant 0 : index
    %c2_166 = arith.constant 2 : index
    %c2_167 = arith.constant 2 : index
    %238 = vector.load %arg5[%c0_165, %c2_166, %c2_167] : memref<2x24x128xf32, #tpu.memory_space<vmem>>, vector<1x16x16xf32>
    %239 = vector.shape_cast %238 : vector<1x16x16xf32> to vector<16x16xf32>
    %240 = vector.broadcast %237 : f32 to vector<16x16xf32>
    %241 = arith.mulf %240, %239 : vector<16x16xf32>
    %242 = arith.addf %236, %241 : vector<16x16xf32>
    %c23 = arith.constant 23 : index
    %243 = memref.load %arg2[%c23] : memref<294xf32, #tpu.memory_space<smem>>
    %c0_168 = arith.constant 0 : index
    %c3_169 = arith.constant 3 : index
    %c2_170 = arith.constant 2 : index
    %244 = vector.load %arg5[%c0_168, %c3_169, %c2_170] : memref<2x24x128xf32, #tpu.memory_space<vmem>>, vector<1x16x16xf32>
    %245 = vector.shape_cast %244 : vector<1x16x16xf32> to vector<16x16xf32>
    %246 = vector.broadcast %243 : f32 to vector<16x16xf32>
    %247 = arith.mulf %246, %245 : vector<16x16xf32>
    %248 = arith.addf %242, %247 : vector<16x16xf32>
    %c30 = arith.constant 30 : index
    %249 = memref.load %arg2[%c30] : memref<294xf32, #tpu.memory_space<smem>>
    %c0_171 = arith.constant 0 : index
    %c4_172 = arith.constant 4 : index
    %c2_173 = arith.constant 2 : index
    %250 = vector.load %arg5[%c0_171, %c4_172, %c2_173] : memref<2x24x128xf32, #tpu.memory_space<vmem>>, vector<1x16x16xf32>
    %251 = vector.shape_cast %250 : vector<1x16x16xf32> to vector<16x16xf32>
    %252 = vector.broadcast %249 : f32 to vector<16x16xf32>
    %253 = arith.mulf %252, %251 : vector<16x16xf32>
    %254 = arith.addf %248, %253 : vector<16x16xf32>
    %c37 = arith.constant 37 : index
    %255 = memref.load %arg2[%c37] : memref<294xf32, #tpu.memory_space<smem>>
    %c0_174 = arith.constant 0 : index
    %c5_175 = arith.constant 5 : index
    %c2_176 = arith.constant 2 : index
    %256 = vector.load %arg5[%c0_174, %c5_175, %c2_176] : memref<2x24x128xf32, #tpu.memory_space<vmem>>, vector<1x16x16xf32>
    %257 = vector.shape_cast %256 : vector<1x16x16xf32> to vector<16x16xf32>
    %258 = vector.broadcast %255 : f32 to vector<16x16xf32>
    %259 = arith.mulf %258, %257 : vector<16x16xf32>
    %260 = arith.addf %254, %259 : vector<16x16xf32>
    %c44 = arith.constant 44 : index
    %261 = memref.load %arg2[%c44] : memref<294xf32, #tpu.memory_space<smem>>
    %c0_177 = arith.constant 0 : index
    %c6_178 = arith.constant 6 : index
    %c2_179 = arith.constant 2 : index
    %262 = vector.load %arg5[%c0_177, %c6_178, %c2_179] : memref<2x24x128xf32, #tpu.memory_space<vmem>>, vector<1x16x16xf32>
    %263 = vector.shape_cast %262 : vector<1x16x16xf32> to vector<16x16xf32>
    %264 = vector.broadcast %261 : f32 to vector<16x16xf32>
    %265 = arith.mulf %264, %263 : vector<16x16xf32>
    %266 = arith.addf %260, %265 : vector<16x16xf32>
    %c51 = arith.constant 51 : index
    %267 = memref.load %arg2[%c51] : memref<294xf32, #tpu.memory_space<smem>>
    %c1_180 = arith.constant 1 : index
    %c0_181 = arith.constant 0 : index
    %c2_182 = arith.constant 2 : index
    %268 = vector.load %arg5[%c1_180, %c0_181, %c2_182] : memref<2x24x128xf32, #tpu.memory_space<vmem>>, vector<1x16x16xf32>
    %269 = vector.shape_cast %268 : vector<1x16x16xf32> to vector<16x16xf32>
    %270 = vector.broadcast %267 : f32 to vector<16x16xf32>
    %271 = arith.mulf %270, %269 : vector<16x16xf32>
    %272 = arith.addf %266, %271 : vector<16x16xf32>
    %c58 = arith.constant 58 : index
    %273 = memref.load %arg2[%c58] : memref<294xf32, #tpu.memory_space<smem>>
    %c1_183 = arith.constant 1 : index
    %c1_184 = arith.constant 1 : index
    %c2_185 = arith.constant 2 : index
    %274 = vector.load %arg5[%c1_183, %c1_184, %c2_185] : memref<2x24x128xf32, #tpu.memory_space<vmem>>, vector<1x16x16xf32>
    %275 = vector.shape_cast %274 : vector<1x16x16xf32> to vector<16x16xf32>
    %276 = vector.broadcast %273 : f32 to vector<16x16xf32>
    %277 = arith.mulf %276, %275 : vector<16x16xf32>
    %278 = arith.addf %272, %277 : vector<16x16xf32>
    %c65 = arith.constant 65 : index
    %279 = memref.load %arg2[%c65] : memref<294xf32, #tpu.memory_space<smem>>
    %c1_186 = arith.constant 1 : index
    %c2_187 = arith.constant 2 : index
    %c2_188 = arith.constant 2 : index
    %280 = vector.load %arg5[%c1_186, %c2_187, %c2_188] : memref<2x24x128xf32, #tpu.memory_space<vmem>>, vector<1x16x16xf32>
    %281 = vector.shape_cast %280 : vector<1x16x16xf32> to vector<16x16xf32>
    %282 = vector.broadcast %279 : f32 to vector<16x16xf32>
    %283 = arith.mulf %282, %281 : vector<16x16xf32>
    %284 = arith.addf %278, %283 : vector<16x16xf32>
    %c72 = arith.constant 72 : index
    %285 = memref.load %arg2[%c72] : memref<294xf32, #tpu.memory_space<smem>>
    %c1_189 = arith.constant 1 : index
    %c3_190 = arith.constant 3 : index
    %c2_191 = arith.constant 2 : index
    %286 = vector.load %arg5[%c1_189, %c3_190, %c2_191] : memref<2x24x128xf32, #tpu.memory_space<vmem>>, vector<1x16x16xf32>
    %287 = vector.shape_cast %286 : vector<1x16x16xf32> to vector<16x16xf32>
    %288 = vector.broadcast %285 : f32 to vector<16x16xf32>
    %289 = arith.mulf %288, %287 : vector<16x16xf32>
    %290 = arith.addf %284, %289 : vector<16x16xf32>
    %c79 = arith.constant 79 : index
    %291 = memref.load %arg2[%c79] : memref<294xf32, #tpu.memory_space<smem>>
    %c1_192 = arith.constant 1 : index
    %c4_193 = arith.constant 4 : index
    %c2_194 = arith.constant 2 : index
    %292 = vector.load %arg5[%c1_192, %c4_193, %c2_194] : memref<2x24x128xf32, #tpu.memory_space<vmem>>, vector<1x16x16xf32>
    %293 = vector.shape_cast %292 : vector<1x16x16xf32> to vector<16x16xf32>
    %294 = vector.broadcast %291 : f32 to vector<16x16xf32>
    %295 = arith.mulf %294, %293 : vector<16x16xf32>
    %296 = arith.addf %290, %295 : vector<16x16xf32>
    %c86 = arith.constant 86 : index
    %297 = memref.load %arg2[%c86] : memref<294xf32, #tpu.memory_space<smem>>
    %c1_195 = arith.constant 1 : index
    %c5_196 = arith.constant 5 : index
    %c2_197 = arith.constant 2 : index
    %298 = vector.load %arg5[%c1_195, %c5_196, %c2_197] : memref<2x24x128xf32, #tpu.memory_space<vmem>>, vector<1x16x16xf32>
    %299 = vector.shape_cast %298 : vector<1x16x16xf32> to vector<16x16xf32>
    %300 = vector.broadcast %297 : f32 to vector<16x16xf32>
    %301 = arith.mulf %300, %299 : vector<16x16xf32>
    %302 = arith.addf %296, %301 : vector<16x16xf32>
    %c93 = arith.constant 93 : index
    %303 = memref.load %arg2[%c93] : memref<294xf32, #tpu.memory_space<smem>>
    %c1_198 = arith.constant 1 : index
    %c6_199 = arith.constant 6 : index
    %c2_200 = arith.constant 2 : index
    %304 = vector.load %arg5[%c1_198, %c6_199, %c2_200] : memref<2x24x128xf32, #tpu.memory_space<vmem>>, vector<1x16x16xf32>
    %305 = vector.shape_cast %304 : vector<1x16x16xf32> to vector<16x16xf32>
    %306 = vector.broadcast %303 : f32 to vector<16x16xf32>
    %307 = arith.mulf %306, %305 : vector<16x16xf32>
    %308 = arith.addf %302, %307 : vector<16x16xf32>
    %c3_201 = arith.constant 3 : index
    %309 = memref.load %arg2[%c3_201] : memref<294xf32, #tpu.memory_space<smem>>
    %c0_202 = arith.constant 0 : index
    %c0_203 = arith.constant 0 : index
    %c3_204 = arith.constant 3 : index
    %310 = vector.load %arg5[%c0_202, %c0_203, %c3_204] : memref<2x24x128xf32, #tpu.memory_space<vmem>>, vector<1x16x16xf32>
    %311 = vector.shape_cast %310 : vector<1x16x16xf32> to vector<16x16xf32>
    %312 = vector.broadcast %309 : f32 to vector<16x16xf32>
    %313 = arith.mulf %312, %311 : vector<16x16xf32>
    %c10 = arith.constant 10 : index
    %314 = memref.load %arg2[%c10] : memref<294xf32, #tpu.memory_space<smem>>
    %c0_205 = arith.constant 0 : index
    %c1_206 = arith.constant 1 : index
    %c3_207 = arith.constant 3 : index
    %315 = vector.load %arg5[%c0_205, %c1_206, %c3_207] : memref<2x24x128xf32, #tpu.memory_space<vmem>>, vector<1x16x16xf32>
    %316 = vector.shape_cast %315 : vector<1x16x16xf32> to vector<16x16xf32>
    %317 = vector.broadcast %314 : f32 to vector<16x16xf32>
    %318 = arith.mulf %317, %316 : vector<16x16xf32>
    %319 = arith.addf %313, %318 : vector<16x16xf32>
    %c17 = arith.constant 17 : index
    %320 = memref.load %arg2[%c17] : memref<294xf32, #tpu.memory_space<smem>>
    %c0_208 = arith.constant 0 : index
    %c2_209 = arith.constant 2 : index
    %c3_210 = arith.constant 3 : index
    %321 = vector.load %arg5[%c0_208, %c2_209, %c3_210] : memref<2x24x128xf32, #tpu.memory_space<vmem>>, vector<1x16x16xf32>
    %322 = vector.shape_cast %321 : vector<1x16x16xf32> to vector<16x16xf32>
    %323 = vector.broadcast %320 : f32 to vector<16x16xf32>
    %324 = arith.mulf %323, %322 : vector<16x16xf32>
    %325 = arith.addf %319, %324 : vector<16x16xf32>
    %c24 = arith.constant 24 : index
    %326 = memref.load %arg2[%c24] : memref<294xf32, #tpu.memory_space<smem>>
    %c0_211 = arith.constant 0 : index
    %c3_212 = arith.constant 3 : index
    %c3_213 = arith.constant 3 : index
    %327 = vector.load %arg5[%c0_211, %c3_212, %c3_213] : memref<2x24x128xf32, #tpu.memory_space<vmem>>, vector<1x16x16xf32>
    %328 = vector.shape_cast %327 : vector<1x16x16xf32> to vector<16x16xf32>
    %329 = vector.broadcast %326 : f32 to vector<16x16xf32>
    %330 = arith.mulf %329, %328 : vector<16x16xf32>
    %331 = arith.addf %325, %330 : vector<16x16xf32>
    %c31 = arith.constant 31 : index
    %332 = memref.load %arg2[%c31] : memref<294xf32, #tpu.memory_space<smem>>
    %c0_214 = arith.constant 0 : index
    %c4_215 = arith.constant 4 : index
    %c3_216 = arith.constant 3 : index
    %333 = vector.load %arg5[%c0_214, %c4_215, %c3_216] : memref<2x24x128xf32, #tpu.memory_space<vmem>>, vector<1x16x16xf32>
    %334 = vector.shape_cast %333 : vector<1x16x16xf32> to vector<16x16xf32>
    %335 = vector.broadcast %332 : f32 to vector<16x16xf32>
    %336 = arith.mulf %335, %334 : vector<16x16xf32>
    %337 = arith.addf %331, %336 : vector<16x16xf32>
    %c38 = arith.constant 38 : index
    %338 = memref.load %arg2[%c38] : memref<294xf32, #tpu.memory_space<smem>>
    %c0_217 = arith.constant 0 : index
    %c5_218 = arith.constant 5 : index
    %c3_219 = arith.constant 3 : index
    %339 = vector.load %arg5[%c0_217, %c5_218, %c3_219] : memref<2x24x128xf32, #tpu.memory_space<vmem>>, vector<1x16x16xf32>
    %340 = vector.shape_cast %339 : vector<1x16x16xf32> to vector<16x16xf32>
    %341 = vector.broadcast %338 : f32 to vector<16x16xf32>
    %342 = arith.mulf %341, %340 : vector<16x16xf32>
    %343 = arith.addf %337, %342 : vector<16x16xf32>
    %c45 = arith.constant 45 : index
    %344 = memref.load %arg2[%c45] : memref<294xf32, #tpu.memory_space<smem>>
    %c0_220 = arith.constant 0 : index
    %c6_221 = arith.constant 6 : index
    %c3_222 = arith.constant 3 : index
    %345 = vector.load %arg5[%c0_220, %c6_221, %c3_222] : memref<2x24x128xf32, #tpu.memory_space<vmem>>, vector<1x16x16xf32>
    %346 = vector.shape_cast %345 : vector<1x16x16xf32> to vector<16x16xf32>
    %347 = vector.broadcast %344 : f32 to vector<16x16xf32>
    %348 = arith.mulf %347, %346 : vector<16x16xf32>
    %349 = arith.addf %343, %348 : vector<16x16xf32>
    %c52 = arith.constant 52 : index
    %350 = memref.load %arg2[%c52] : memref<294xf32, #tpu.memory_space<smem>>
    %c1_223 = arith.constant 1 : index
    %c0_224 = arith.constant 0 : index
    %c3_225 = arith.constant 3 : index
    %351 = vector.load %arg5[%c1_223, %c0_224, %c3_225] : memref<2x24x128xf32, #tpu.memory_space<vmem>>, vector<1x16x16xf32>
    %352 = vector.shape_cast %351 : vector<1x16x16xf32> to vector<16x16xf32>
    %353 = vector.broadcast %350 : f32 to vector<16x16xf32>
    %354 = arith.mulf %353, %352 : vector<16x16xf32>
    %355 = arith.addf %349, %354 : vector<16x16xf32>
    %c59 = arith.constant 59 : index
    %356 = memref.load %arg2[%c59] : memref<294xf32, #tpu.memory_space<smem>>
    %c1_226 = arith.constant 1 : index
    %c1_227 = arith.constant 1 : index
    %c3_228 = arith.constant 3 : index
    %357 = vector.load %arg5[%c1_226, %c1_227, %c3_228] : memref<2x24x128xf32, #tpu.memory_space<vmem>>, vector<1x16x16xf32>
    %358 = vector.shape_cast %357 : vector<1x16x16xf32> to vector<16x16xf32>
    %359 = vector.broadcast %356 : f32 to vector<16x16xf32>
    %360 = arith.mulf %359, %358 : vector<16x16xf32>
    %361 = arith.addf %355, %360 : vector<16x16xf32>
    %c66 = arith.constant 66 : index
    %362 = memref.load %arg2[%c66] : memref<294xf32, #tpu.memory_space<smem>>
    %c1_229 = arith.constant 1 : index
    %c2_230 = arith.constant 2 : index
    %c3_231 = arith.constant 3 : index
    %363 = vector.load %arg5[%c1_229, %c2_230, %c3_231] : memref<2x24x128xf32, #tpu.memory_space<vmem>>, vector<1x16x16xf32>
    %364 = vector.shape_cast %363 : vector<1x16x16xf32> to vector<16x16xf32>
    %365 = vector.broadcast %362 : f32 to vector<16x16xf32>
    %366 = arith.mulf %365, %364 : vector<16x16xf32>
    %367 = arith.addf %361, %366 : vector<16x16xf32>
    %c73 = arith.constant 73 : index
    %368 = memref.load %arg2[%c73] : memref<294xf32, #tpu.memory_space<smem>>
    %c1_232 = arith.constant 1 : index
    %c3_233 = arith.constant 3 : index
    %c3_234 = arith.constant 3 : index
    %369 = vector.load %arg5[%c1_232, %c3_233, %c3_234] : memref<2x24x128xf32, #tpu.memory_space<vmem>>, vector<1x16x16xf32>
    %370 = vector.shape_cast %369 : vector<1x16x16xf32> to vector<16x16xf32>
    %371 = vector.broadcast %368 : f32 to vector<16x16xf32>
    %372 = arith.mulf %371, %370 : vector<16x16xf32>
    %373 = arith.addf %367, %372 : vector<16x16xf32>
    %c80 = arith.constant 80 : index
    %374 = memref.load %arg2[%c80] : memref<294xf32, #tpu.memory_space<smem>>
    %c1_235 = arith.constant 1 : index
    %c4_236 = arith.constant 4 : index
    %c3_237 = arith.constant 3 : index
    %375 = vector.load %arg5[%c1_235, %c4_236, %c3_237] : memref<2x24x128xf32, #tpu.memory_space<vmem>>, vector<1x16x16xf32>
    %376 = vector.shape_cast %375 : vector<1x16x16xf32> to vector<16x16xf32>
    %377 = vector.broadcast %374 : f32 to vector<16x16xf32>
    %378 = arith.mulf %377, %376 : vector<16x16xf32>
    %379 = arith.addf %373, %378 : vector<16x16xf32>
    %c87 = arith.constant 87 : index
    %380 = memref.load %arg2[%c87] : memref<294xf32, #tpu.memory_space<smem>>
    %c1_238 = arith.constant 1 : index
    %c5_239 = arith.constant 5 : index
    %c3_240 = arith.constant 3 : index
    %381 = vector.load %arg5[%c1_238, %c5_239, %c3_240] : memref<2x24x128xf32, #tpu.memory_space<vmem>>, vector<1x16x16xf32>
    %382 = vector.shape_cast %381 : vector<1x16x16xf32> to vector<16x16xf32>
    %383 = vector.broadcast %380 : f32 to vector<16x16xf32>
    %384 = arith.mulf %383, %382 : vector<16x16xf32>
    %385 = arith.addf %379, %384 : vector<16x16xf32>
    %c94 = arith.constant 94 : index
    %386 = memref.load %arg2[%c94] : memref<294xf32, #tpu.memory_space<smem>>
    %c1_241 = arith.constant 1 : index
    %c6_242 = arith.constant 6 : index
    %c3_243 = arith.constant 3 : index
    %387 = vector.load %arg5[%c1_241, %c6_242, %c3_243] : memref<2x24x128xf32, #tpu.memory_space<vmem>>, vector<1x16x16xf32>
    %388 = vector.shape_cast %387 : vector<1x16x16xf32> to vector<16x16xf32>
    %389 = vector.broadcast %386 : f32 to vector<16x16xf32>
    %390 = arith.mulf %389, %388 : vector<16x16xf32>
    %391 = arith.addf %385, %390 : vector<16x16xf32>
    %c4_244 = arith.constant 4 : index
    %392 = memref.load %arg2[%c4_244] : memref<294xf32, #tpu.memory_space<smem>>
    %c0_245 = arith.constant 0 : index
    %c0_246 = arith.constant 0 : index
    %c4_247 = arith.constant 4 : index
    %393 = vector.load %arg5[%c0_245, %c0_246, %c4_247] : memref<2x24x128xf32, #tpu.memory_space<vmem>>, vector<1x16x16xf32>
    %394 = vector.shape_cast %393 : vector<1x16x16xf32> to vector<16x16xf32>
    %395 = vector.broadcast %392 : f32 to vector<16x16xf32>
    %396 = arith.mulf %395, %394 : vector<16x16xf32>
    %c11 = arith.constant 11 : index
    %397 = memref.load %arg2[%c11] : memref<294xf32, #tpu.memory_space<smem>>
    %c0_248 = arith.constant 0 : index
    %c1_249 = arith.constant 1 : index
    %c4_250 = arith.constant 4 : index
    %398 = vector.load %arg5[%c0_248, %c1_249, %c4_250] : memref<2x24x128xf32, #tpu.memory_space<vmem>>, vector<1x16x16xf32>
    %399 = vector.shape_cast %398 : vector<1x16x16xf32> to vector<16x16xf32>
    %400 = vector.broadcast %397 : f32 to vector<16x16xf32>
    %401 = arith.mulf %400, %399 : vector<16x16xf32>
    %402 = arith.addf %396, %401 : vector<16x16xf32>
    %c18 = arith.constant 18 : index
    %403 = memref.load %arg2[%c18] : memref<294xf32, #tpu.memory_space<smem>>
    %c0_251 = arith.constant 0 : index
    %c2_252 = arith.constant 2 : index
    %c4_253 = arith.constant 4 : index
    %404 = vector.load %arg5[%c0_251, %c2_252, %c4_253] : memref<2x24x128xf32, #tpu.memory_space<vmem>>, vector<1x16x16xf32>
    %405 = vector.shape_cast %404 : vector<1x16x16xf32> to vector<16x16xf32>
    %406 = vector.broadcast %403 : f32 to vector<16x16xf32>
    %407 = arith.mulf %406, %405 : vector<16x16xf32>
    %408 = arith.addf %402, %407 : vector<16x16xf32>
    %c25 = arith.constant 25 : index
    %409 = memref.load %arg2[%c25] : memref<294xf32, #tpu.memory_space<smem>>
    %c0_254 = arith.constant 0 : index
    %c3_255 = arith.constant 3 : index
    %c4_256 = arith.constant 4 : index
    %410 = vector.load %arg5[%c0_254, %c3_255, %c4_256] : memref<2x24x128xf32, #tpu.memory_space<vmem>>, vector<1x16x16xf32>
    %411 = vector.shape_cast %410 : vector<1x16x16xf32> to vector<16x16xf32>
    %412 = vector.broadcast %409 : f32 to vector<16x16xf32>
    %413 = arith.mulf %412, %411 : vector<16x16xf32>
    %414 = arith.addf %408, %413 : vector<16x16xf32>
    %c32 = arith.constant 32 : index
    %415 = memref.load %arg2[%c32] : memref<294xf32, #tpu.memory_space<smem>>
    %c0_257 = arith.constant 0 : index
    %c4_258 = arith.constant 4 : index
    %c4_259 = arith.constant 4 : index
    %416 = vector.load %arg5[%c0_257, %c4_258, %c4_259] : memref<2x24x128xf32, #tpu.memory_space<vmem>>, vector<1x16x16xf32>
    %417 = vector.shape_cast %416 : vector<1x16x16xf32> to vector<16x16xf32>
    %418 = vector.broadcast %415 : f32 to vector<16x16xf32>
    %419 = arith.mulf %418, %417 : vector<16x16xf32>
    %420 = arith.addf %414, %419 : vector<16x16xf32>
    %c39 = arith.constant 39 : index
    %421 = memref.load %arg2[%c39] : memref<294xf32, #tpu.memory_space<smem>>
    %c0_260 = arith.constant 0 : index
    %c5_261 = arith.constant 5 : index
    %c4_262 = arith.constant 4 : index
    %422 = vector.load %arg5[%c0_260, %c5_261, %c4_262] : memref<2x24x128xf32, #tpu.memory_space<vmem>>, vector<1x16x16xf32>
    %423 = vector.shape_cast %422 : vector<1x16x16xf32> to vector<16x16xf32>
    %424 = vector.broadcast %421 : f32 to vector<16x16xf32>
    %425 = arith.mulf %424, %423 : vector<16x16xf32>
    %426 = arith.addf %420, %425 : vector<16x16xf32>
    %c46 = arith.constant 46 : index
    %427 = memref.load %arg2[%c46] : memref<294xf32, #tpu.memory_space<smem>>
    %c0_263 = arith.constant 0 : index
    %c6_264 = arith.constant 6 : index
    %c4_265 = arith.constant 4 : index
    %428 = vector.load %arg5[%c0_263, %c6_264, %c4_265] : memref<2x24x128xf32, #tpu.memory_space<vmem>>, vector<1x16x16xf32>
    %429 = vector.shape_cast %428 : vector<1x16x16xf32> to vector<16x16xf32>
    %430 = vector.broadcast %427 : f32 to vector<16x16xf32>
    %431 = arith.mulf %430, %429 : vector<16x16xf32>
    %432 = arith.addf %426, %431 : vector<16x16xf32>
    %c53 = arith.constant 53 : index
    %433 = memref.load %arg2[%c53] : memref<294xf32, #tpu.memory_space<smem>>
    %c1_266 = arith.constant 1 : index
    %c0_267 = arith.constant 0 : index
    %c4_268 = arith.constant 4 : index
    %434 = vector.load %arg5[%c1_266, %c0_267, %c4_268] : memref<2x24x128xf32, #tpu.memory_space<vmem>>, vector<1x16x16xf32>
    %435 = vector.shape_cast %434 : vector<1x16x16xf32> to vector<16x16xf32>
    %436 = vector.broadcast %433 : f32 to vector<16x16xf32>
    %437 = arith.mulf %436, %435 : vector<16x16xf32>
    %438 = arith.addf %432, %437 : vector<16x16xf32>
    %c60 = arith.constant 60 : index
    %439 = memref.load %arg2[%c60] : memref<294xf32, #tpu.memory_space<smem>>
    %c1_269 = arith.constant 1 : index
    %c1_270 = arith.constant 1 : index
    %c4_271 = arith.constant 4 : index
    %440 = vector.load %arg5[%c1_269, %c1_270, %c4_271] : memref<2x24x128xf32, #tpu.memory_space<vmem>>, vector<1x16x16xf32>
    %441 = vector.shape_cast %440 : vector<1x16x16xf32> to vector<16x16xf32>
    %442 = vector.broadcast %439 : f32 to vector<16x16xf32>
    %443 = arith.mulf %442, %441 : vector<16x16xf32>
    %444 = arith.addf %438, %443 : vector<16x16xf32>
    %c67 = arith.constant 67 : index
    %445 = memref.load %arg2[%c67] : memref<294xf32, #tpu.memory_space<smem>>
    %c1_272 = arith.constant 1 : index
    %c2_273 = arith.constant 2 : index
    %c4_274 = arith.constant 4 : index
    %446 = vector.load %arg5[%c1_272, %c2_273, %c4_274] : memref<2x24x128xf32, #tpu.memory_space<vmem>>, vector<1x16x16xf32>
    %447 = vector.shape_cast %446 : vector<1x16x16xf32> to vector<16x16xf32>
    %448 = vector.broadcast %445 : f32 to vector<16x16xf32>
    %449 = arith.mulf %448, %447 : vector<16x16xf32>
    %450 = arith.addf %444, %449 : vector<16x16xf32>
    %c74 = arith.constant 74 : index
    %451 = memref.load %arg2[%c74] : memref<294xf32, #tpu.memory_space<smem>>
    %c1_275 = arith.constant 1 : index
    %c3_276 = arith.constant 3 : index
    %c4_277 = arith.constant 4 : index
    %452 = vector.load %arg5[%c1_275, %c3_276, %c4_277] : memref<2x24x128xf32, #tpu.memory_space<vmem>>, vector<1x16x16xf32>
    %453 = vector.shape_cast %452 : vector<1x16x16xf32> to vector<16x16xf32>
    %454 = vector.broadcast %451 : f32 to vector<16x16xf32>
    %455 = arith.mulf %454, %453 : vector<16x16xf32>
    %456 = arith.addf %450, %455 : vector<16x16xf32>
    %c81 = arith.constant 81 : index
    %457 = memref.load %arg2[%c81] : memref<294xf32, #tpu.memory_space<smem>>
    %c1_278 = arith.constant 1 : index
    %c4_279 = arith.constant 4 : index
    %c4_280 = arith.constant 4 : index
    %458 = vector.load %arg5[%c1_278, %c4_279, %c4_280] : memref<2x24x128xf32, #tpu.memory_space<vmem>>, vector<1x16x16xf32>
    %459 = vector.shape_cast %458 : vector<1x16x16xf32> to vector<16x16xf32>
    %460 = vector.broadcast %457 : f32 to vector<16x16xf32>
    %461 = arith.mulf %460, %459 : vector<16x16xf32>
    %462 = arith.addf %456, %461 : vector<16x16xf32>
    %c88 = arith.constant 88 : index
    %463 = memref.load %arg2[%c88] : memref<294xf32, #tpu.memory_space<smem>>
    %c1_281 = arith.constant 1 : index
    %c5_282 = arith.constant 5 : index
    %c4_283 = arith.constant 4 : index
    %464 = vector.load %arg5[%c1_281, %c5_282, %c4_283] : memref<2x24x128xf32, #tpu.memory_space<vmem>>, vector<1x16x16xf32>
    %465 = vector.shape_cast %464 : vector<1x16x16xf32> to vector<16x16xf32>
    %466 = vector.broadcast %463 : f32 to vector<16x16xf32>
    %467 = arith.mulf %466, %465 : vector<16x16xf32>
    %468 = arith.addf %462, %467 : vector<16x16xf32>
    %c95 = arith.constant 95 : index
    %469 = memref.load %arg2[%c95] : memref<294xf32, #tpu.memory_space<smem>>
    %c1_284 = arith.constant 1 : index
    %c6_285 = arith.constant 6 : index
    %c4_286 = arith.constant 4 : index
    %470 = vector.load %arg5[%c1_284, %c6_285, %c4_286] : memref<2x24x128xf32, #tpu.memory_space<vmem>>, vector<1x16x16xf32>
    %471 = vector.shape_cast %470 : vector<1x16x16xf32> to vector<16x16xf32>
    %472 = vector.broadcast %469 : f32 to vector<16x16xf32>
    %473 = arith.mulf %472, %471 : vector<16x16xf32>
    %474 = arith.addf %468, %473 : vector<16x16xf32>
    %c5_287 = arith.constant 5 : index
    %475 = memref.load %arg2[%c5_287] : memref<294xf32, #tpu.memory_space<smem>>
    %c0_288 = arith.constant 0 : index
    %c0_289 = arith.constant 0 : index
    %c5_290 = arith.constant 5 : index
    %476 = vector.load %arg5[%c0_288, %c0_289, %c5_290] : memref<2x24x128xf32, #tpu.memory_space<vmem>>, vector<1x16x16xf32>
    %477 = vector.shape_cast %476 : vector<1x16x16xf32> to vector<16x16xf32>
    %478 = vector.broadcast %475 : f32 to vector<16x16xf32>
    %479 = arith.mulf %478, %477 : vector<16x16xf32>
    %c12 = arith.constant 12 : index
    %480 = memref.load %arg2[%c12] : memref<294xf32, #tpu.memory_space<smem>>
    %c0_291 = arith.constant 0 : index
    %c1_292 = arith.constant 1 : index
    %c5_293 = arith.constant 5 : index
    %481 = vector.load %arg5[%c0_291, %c1_292, %c5_293] : memref<2x24x128xf32, #tpu.memory_space<vmem>>, vector<1x16x16xf32>
    %482 = vector.shape_cast %481 : vector<1x16x16xf32> to vector<16x16xf32>
    %483 = vector.broadcast %480 : f32 to vector<16x16xf32>
    %484 = arith.mulf %483, %482 : vector<16x16xf32>
    %485 = arith.addf %479, %484 : vector<16x16xf32>
    %c19_294 = arith.constant 19 : index
    %486 = memref.load %arg2[%c19_294] : memref<294xf32, #tpu.memory_space<smem>>
    %c0_295 = arith.constant 0 : index
    %c2_296 = arith.constant 2 : index
    %c5_297 = arith.constant 5 : index
    %487 = vector.load %arg5[%c0_295, %c2_296, %c5_297] : memref<2x24x128xf32, #tpu.memory_space<vmem>>, vector<1x16x16xf32>
    %488 = vector.shape_cast %487 : vector<1x16x16xf32> to vector<16x16xf32>
    %489 = vector.broadcast %486 : f32 to vector<16x16xf32>
    %490 = arith.mulf %489, %488 : vector<16x16xf32>
    %491 = arith.addf %485, %490 : vector<16x16xf32>
    %c26 = arith.constant 26 : index
    %492 = memref.load %arg2[%c26] : memref<294xf32, #tpu.memory_space<smem>>
    %c0_298 = arith.constant 0 : index
    %c3_299 = arith.constant 3 : index
    %c5_300 = arith.constant 5 : index
    %493 = vector.load %arg5[%c0_298, %c3_299, %c5_300] : memref<2x24x128xf32, #tpu.memory_space<vmem>>, vector<1x16x16xf32>
    %494 = vector.shape_cast %493 : vector<1x16x16xf32> to vector<16x16xf32>
    %495 = vector.broadcast %492 : f32 to vector<16x16xf32>
    %496 = arith.mulf %495, %494 : vector<16x16xf32>
    %497 = arith.addf %491, %496 : vector<16x16xf32>
    %c33 = arith.constant 33 : index
    %498 = memref.load %arg2[%c33] : memref<294xf32, #tpu.memory_space<smem>>
    %c0_301 = arith.constant 0 : index
    %c4_302 = arith.constant 4 : index
    %c5_303 = arith.constant 5 : index
    %499 = vector.load %arg5[%c0_301, %c4_302, %c5_303] : memref<2x24x128xf32, #tpu.memory_space<vmem>>, vector<1x16x16xf32>
    %500 = vector.shape_cast %499 : vector<1x16x16xf32> to vector<16x16xf32>
    %501 = vector.broadcast %498 : f32 to vector<16x16xf32>
    %502 = arith.mulf %501, %500 : vector<16x16xf32>
    %503 = arith.addf %497, %502 : vector<16x16xf32>
    %c40 = arith.constant 40 : index
    %504 = memref.load %arg2[%c40] : memref<294xf32, #tpu.memory_space<smem>>
    %c0_304 = arith.constant 0 : index
    %c5_305 = arith.constant 5 : index
    %c5_306 = arith.constant 5 : index
    %505 = vector.load %arg5[%c0_304, %c5_305, %c5_306] : memref<2x24x128xf32, #tpu.memory_space<vmem>>, vector<1x16x16xf32>
    %506 = vector.shape_cast %505 : vector<1x16x16xf32> to vector<16x16xf32>
    %507 = vector.broadcast %504 : f32 to vector<16x16xf32>
    %508 = arith.mulf %507, %506 : vector<16x16xf32>
    %509 = arith.addf %503, %508 : vector<16x16xf32>
    %c47 = arith.constant 47 : index
    %510 = memref.load %arg2[%c47] : memref<294xf32, #tpu.memory_space<smem>>
    %c0_307 = arith.constant 0 : index
    %c6_308 = arith.constant 6 : index
    %c5_309 = arith.constant 5 : index
    %511 = vector.load %arg5[%c0_307, %c6_308, %c5_309] : memref<2x24x128xf32, #tpu.memory_space<vmem>>, vector<1x16x16xf32>
    %512 = vector.shape_cast %511 : vector<1x16x16xf32> to vector<16x16xf32>
    %513 = vector.broadcast %510 : f32 to vector<16x16xf32>
    %514 = arith.mulf %513, %512 : vector<16x16xf32>
    %515 = arith.addf %509, %514 : vector<16x16xf32>
    %c54 = arith.constant 54 : index
    %516 = memref.load %arg2[%c54] : memref<294xf32, #tpu.memory_space<smem>>
    %c1_310 = arith.constant 1 : index
    %c0_311 = arith.constant 0 : index
    %c5_312 = arith.constant 5 : index
    %517 = vector.load %arg5[%c1_310, %c0_311, %c5_312] : memref<2x24x128xf32, #tpu.memory_space<vmem>>, vector<1x16x16xf32>
    %518 = vector.shape_cast %517 : vector<1x16x16xf32> to vector<16x16xf32>
    %519 = vector.broadcast %516 : f32 to vector<16x16xf32>
    %520 = arith.mulf %519, %518 : vector<16x16xf32>
    %521 = arith.addf %515, %520 : vector<16x16xf32>
    %c61 = arith.constant 61 : index
    %522 = memref.load %arg2[%c61] : memref<294xf32, #tpu.memory_space<smem>>
    %c1_313 = arith.constant 1 : index
    %c1_314 = arith.constant 1 : index
    %c5_315 = arith.constant 5 : index
    %523 = vector.load %arg5[%c1_313, %c1_314, %c5_315] : memref<2x24x128xf32, #tpu.memory_space<vmem>>, vector<1x16x16xf32>
    %524 = vector.shape_cast %523 : vector<1x16x16xf32> to vector<16x16xf32>
    %525 = vector.broadcast %522 : f32 to vector<16x16xf32>
    %526 = arith.mulf %525, %524 : vector<16x16xf32>
    %527 = arith.addf %521, %526 : vector<16x16xf32>
    %c68 = arith.constant 68 : index
    %528 = memref.load %arg2[%c68] : memref<294xf32, #tpu.memory_space<smem>>
    %c1_316 = arith.constant 1 : index
    %c2_317 = arith.constant 2 : index
    %c5_318 = arith.constant 5 : index
    %529 = vector.load %arg5[%c1_316, %c2_317, %c5_318] : memref<2x24x128xf32, #tpu.memory_space<vmem>>, vector<1x16x16xf32>
    %530 = vector.shape_cast %529 : vector<1x16x16xf32> to vector<16x16xf32>
    %531 = vector.broadcast %528 : f32 to vector<16x16xf32>
    %532 = arith.mulf %531, %530 : vector<16x16xf32>
    %533 = arith.addf %527, %532 : vector<16x16xf32>
    %c75 = arith.constant 75 : index
    %534 = memref.load %arg2[%c75] : memref<294xf32, #tpu.memory_space<smem>>
    %c1_319 = arith.constant 1 : index
    %c3_320 = arith.constant 3 : index
    %c5_321 = arith.constant 5 : index
    %535 = vector.load %arg5[%c1_319, %c3_320, %c5_321] : memref<2x24x128xf32, #tpu.memory_space<vmem>>, vector<1x16x16xf32>
    %536 = vector.shape_cast %535 : vector<1x16x16xf32> to vector<16x16xf32>
    %537 = vector.broadcast %534 : f32 to vector<16x16xf32>
    %538 = arith.mulf %537, %536 : vector<16x16xf32>
    %539 = arith.addf %533, %538 : vector<16x16xf32>
    %c82 = arith.constant 82 : index
    %540 = memref.load %arg2[%c82] : memref<294xf32, #tpu.memory_space<smem>>
    %c1_322 = arith.constant 1 : index
    %c4_323 = arith.constant 4 : index
    %c5_324 = arith.constant 5 : index
    %541 = vector.load %arg5[%c1_322, %c4_323, %c5_324] : memref<2x24x128xf32, #tpu.memory_space<vmem>>, vector<1x16x16xf32>
    %542 = vector.shape_cast %541 : vector<1x16x16xf32> to vector<16x16xf32>
    %543 = vector.broadcast %540 : f32 to vector<16x16xf32>
    %544 = arith.mulf %543, %542 : vector<16x16xf32>
    %545 = arith.addf %539, %544 : vector<16x16xf32>
    %c89 = arith.constant 89 : index
    %546 = memref.load %arg2[%c89] : memref<294xf32, #tpu.memory_space<smem>>
    %c1_325 = arith.constant 1 : index
    %c5_326 = arith.constant 5 : index
    %c5_327 = arith.constant 5 : index
    %547 = vector.load %arg5[%c1_325, %c5_326, %c5_327] : memref<2x24x128xf32, #tpu.memory_space<vmem>>, vector<1x16x16xf32>
    %548 = vector.shape_cast %547 : vector<1x16x16xf32> to vector<16x16xf32>
    %549 = vector.broadcast %546 : f32 to vector<16x16xf32>
    %550 = arith.mulf %549, %548 : vector<16x16xf32>
    %551 = arith.addf %545, %550 : vector<16x16xf32>
    %c96 = arith.constant 96 : index
    %552 = memref.load %arg2[%c96] : memref<294xf32, #tpu.memory_space<smem>>
    %c1_328 = arith.constant 1 : index
    %c6_329 = arith.constant 6 : index
    %c5_330 = arith.constant 5 : index
    %553 = vector.load %arg5[%c1_328, %c6_329, %c5_330] : memref<2x24x128xf32, #tpu.memory_space<vmem>>, vector<1x16x16xf32>
    %554 = vector.shape_cast %553 : vector<1x16x16xf32> to vector<16x16xf32>
    %555 = vector.broadcast %552 : f32 to vector<16x16xf32>
    %556 = arith.mulf %555, %554 : vector<16x16xf32>
    %557 = arith.addf %551, %556 : vector<16x16xf32>
    %c6_331 = arith.constant 6 : index
    %558 = memref.load %arg2[%c6_331] : memref<294xf32, #tpu.memory_space<smem>>
    %c0_332 = arith.constant 0 : index
    %c0_333 = arith.constant 0 : index
    %c6_334 = arith.constant 6 : index
    %559 = vector.load %arg5[%c0_332, %c0_333, %c6_334] : memref<2x24x128xf32, #tpu.memory_space<vmem>>, vector<1x16x16xf32>
    %560 = vector.shape_cast %559 : vector<1x16x16xf32> to vector<16x16xf32>
    %561 = vector.broadcast %558 : f32 to vector<16x16xf32>
    %562 = arith.mulf %561, %560 : vector<16x16xf32>
    %c13 = arith.constant 13 : index
    %563 = memref.load %arg2[%c13] : memref<294xf32, #tpu.memory_space<smem>>
    %c0_335 = arith.constant 0 : index
    %c1_336 = arith.constant 1 : index
    %c6_337 = arith.constant 6 : index
    %564 = vector.load %arg5[%c0_335, %c1_336, %c6_337] : memref<2x24x128xf32, #tpu.memory_space<vmem>>, vector<1x16x16xf32>
    %565 = vector.shape_cast %564 : vector<1x16x16xf32> to vector<16x16xf32>
    %566 = vector.broadcast %563 : f32 to vector<16x16xf32>
    %567 = arith.mulf %566, %565 : vector<16x16xf32>
    %568 = arith.addf %562, %567 : vector<16x16xf32>
    %c20 = arith.constant 20 : index
    %569 = memref.load %arg2[%c20] : memref<294xf32, #tpu.memory_space<smem>>
    %c0_338 = arith.constant 0 : index
    %c2_339 = arith.constant 2 : index
    %c6_340 = arith.constant 6 : index
    %570 = vector.load %arg5[%c0_338, %c2_339, %c6_340] : memref<2x24x128xf32, #tpu.memory_space<vmem>>, vector<1x16x16xf32>
    %571 = vector.shape_cast %570 : vector<1x16x16xf32> to vector<16x16xf32>
    %572 = vector.broadcast %569 : f32 to vector<16x16xf32>
    %573 = arith.mulf %572, %571 : vector<16x16xf32>
    %574 = arith.addf %568, %573 : vector<16x16xf32>
    %c27 = arith.constant 27 : index
    %575 = memref.load %arg2[%c27] : memref<294xf32, #tpu.memory_space<smem>>
    %c0_341 = arith.constant 0 : index
    %c3_342 = arith.constant 3 : index
    %c6_343 = arith.constant 6 : index
    %576 = vector.load %arg5[%c0_341, %c3_342, %c6_343] : memref<2x24x128xf32, #tpu.memory_space<vmem>>, vector<1x16x16xf32>
    %577 = vector.shape_cast %576 : vector<1x16x16xf32> to vector<16x16xf32>
    %578 = vector.broadcast %575 : f32 to vector<16x16xf32>
    %579 = arith.mulf %578, %577 : vector<16x16xf32>
    %580 = arith.addf %574, %579 : vector<16x16xf32>
    %c34 = arith.constant 34 : index
    %581 = memref.load %arg2[%c34] : memref<294xf32, #tpu.memory_space<smem>>
    %c0_344 = arith.constant 0 : index
    %c4_345 = arith.constant 4 : index
    %c6_346 = arith.constant 6 : index
    %582 = vector.load %arg5[%c0_344, %c4_345, %c6_346] : memref<2x24x128xf32, #tpu.memory_space<vmem>>, vector<1x16x16xf32>
    %583 = vector.shape_cast %582 : vector<1x16x16xf32> to vector<16x16xf32>
    %584 = vector.broadcast %581 : f32 to vector<16x16xf32>
    %585 = arith.mulf %584, %583 : vector<16x16xf32>
    %586 = arith.addf %580, %585 : vector<16x16xf32>
    %c41 = arith.constant 41 : index
    %587 = memref.load %arg2[%c41] : memref<294xf32, #tpu.memory_space<smem>>
    %c0_347 = arith.constant 0 : index
    %c5_348 = arith.constant 5 : index
    %c6_349 = arith.constant 6 : index
    %588 = vector.load %arg5[%c0_347, %c5_348, %c6_349] : memref<2x24x128xf32, #tpu.memory_space<vmem>>, vector<1x16x16xf32>
    %589 = vector.shape_cast %588 : vector<1x16x16xf32> to vector<16x16xf32>
    %590 = vector.broadcast %587 : f32 to vector<16x16xf32>
    %591 = arith.mulf %590, %589 : vector<16x16xf32>
    %592 = arith.addf %586, %591 : vector<16x16xf32>
    %c48 = arith.constant 48 : index
    %593 = memref.load %arg2[%c48] : memref<294xf32, #tpu.memory_space<smem>>
    %c0_350 = arith.constant 0 : index
    %c6_351 = arith.constant 6 : index
    %c6_352 = arith.constant 6 : index
    %594 = vector.load %arg5[%c0_350, %c6_351, %c6_352] : memref<2x24x128xf32, #tpu.memory_space<vmem>>, vector<1x16x16xf32>
    %595 = vector.shape_cast %594 : vector<1x16x16xf32> to vector<16x16xf32>
    %596 = vector.broadcast %593 : f32 to vector<16x16xf32>
    %597 = arith.mulf %596, %595 : vector<16x16xf32>
    %598 = arith.addf %592, %597 : vector<16x16xf32>
    %c55 = arith.constant 55 : index
    %599 = memref.load %arg2[%c55] : memref<294xf32, #tpu.memory_space<smem>>
    %c1_353 = arith.constant 1 : index
    %c0_354 = arith.constant 0 : index
    %c6_355 = arith.constant 6 : index
    %600 = vector.load %arg5[%c1_353, %c0_354, %c6_355] : memref<2x24x128xf32, #tpu.memory_space<vmem>>, vector<1x16x16xf32>
    %601 = vector.shape_cast %600 : vector<1x16x16xf32> to vector<16x16xf32>
    %602 = vector.broadcast %599 : f32 to vector<16x16xf32>
    %603 = arith.mulf %602, %601 : vector<16x16xf32>
    %604 = arith.addf %598, %603 : vector<16x16xf32>
    %c62 = arith.constant 62 : index
    %605 = memref.load %arg2[%c62] : memref<294xf32, #tpu.memory_space<smem>>
    %c1_356 = arith.constant 1 : index
    %c1_357 = arith.constant 1 : index
    %c6_358 = arith.constant 6 : index
    %606 = vector.load %arg5[%c1_356, %c1_357, %c6_358] : memref<2x24x128xf32, #tpu.memory_space<vmem>>, vector<1x16x16xf32>
    %607 = vector.shape_cast %606 : vector<1x16x16xf32> to vector<16x16xf32>
    %608 = vector.broadcast %605 : f32 to vector<16x16xf32>
    %609 = arith.mulf %608, %607 : vector<16x16xf32>
    %610 = arith.addf %604, %609 : vector<16x16xf32>
    %c69 = arith.constant 69 : index
    %611 = memref.load %arg2[%c69] : memref<294xf32, #tpu.memory_space<smem>>
    %c1_359 = arith.constant 1 : index
    %c2_360 = arith.constant 2 : index
    %c6_361 = arith.constant 6 : index
    %612 = vector.load %arg5[%c1_359, %c2_360, %c6_361] : memref<2x24x128xf32, #tpu.memory_space<vmem>>, vector<1x16x16xf32>
    %613 = vector.shape_cast %612 : vector<1x16x16xf32> to vector<16x16xf32>
    %614 = vector.broadcast %611 : f32 to vector<16x16xf32>
    %615 = arith.mulf %614, %613 : vector<16x16xf32>
    %616 = arith.addf %610, %615 : vector<16x16xf32>
    %c76 = arith.constant 76 : index
    %617 = memref.load %arg2[%c76] : memref<294xf32, #tpu.memory_space<smem>>
    %c1_362 = arith.constant 1 : index
    %c3_363 = arith.constant 3 : index
    %c6_364 = arith.constant 6 : index
    %618 = vector.load %arg5[%c1_362, %c3_363, %c6_364] : memref<2x24x128xf32, #tpu.memory_space<vmem>>, vector<1x16x16xf32>
    %619 = vector.shape_cast %618 : vector<1x16x16xf32> to vector<16x16xf32>
    %620 = vector.broadcast %617 : f32 to vector<16x16xf32>
    %621 = arith.mulf %620, %619 : vector<16x16xf32>
    %622 = arith.addf %616, %621 : vector<16x16xf32>
    %c83 = arith.constant 83 : index
    %623 = memref.load %arg2[%c83] : memref<294xf32, #tpu.memory_space<smem>>
    %c1_365 = arith.constant 1 : index
    %c4_366 = arith.constant 4 : index
    %c6_367 = arith.constant 6 : index
    %624 = vector.load %arg5[%c1_365, %c4_366, %c6_367] : memref<2x24x128xf32, #tpu.memory_space<vmem>>, vector<1x16x16xf32>
    %625 = vector.shape_cast %624 : vector<1x16x16xf32> to vector<16x16xf32>
    %626 = vector.broadcast %623 : f32 to vector<16x16xf32>
    %627 = arith.mulf %626, %625 : vector<16x16xf32>
    %628 = arith.addf %622, %627 : vector<16x16xf32>
    %c90 = arith.constant 90 : index
    %629 = memref.load %arg2[%c90] : memref<294xf32, #tpu.memory_space<smem>>
    %c1_368 = arith.constant 1 : index
    %c5_369 = arith.constant 5 : index
    %c6_370 = arith.constant 6 : index
    %630 = vector.load %arg5[%c1_368, %c5_369, %c6_370] : memref<2x24x128xf32, #tpu.memory_space<vmem>>, vector<1x16x16xf32>
    %631 = vector.shape_cast %630 : vector<1x16x16xf32> to vector<16x16xf32>
    %632 = vector.broadcast %629 : f32 to vector<16x16xf32>
    %633 = arith.mulf %632, %631 : vector<16x16xf32>
    %634 = arith.addf %628, %633 : vector<16x16xf32>
    %c97 = arith.constant 97 : index
    %635 = memref.load %arg2[%c97] : memref<294xf32, #tpu.memory_space<smem>>
    %c1_371 = arith.constant 1 : index
    %c6_372 = arith.constant 6 : index
    %c6_373 = arith.constant 6 : index
    %636 = vector.load %arg5[%c1_371, %c6_372, %c6_373] : memref<2x24x128xf32, #tpu.memory_space<vmem>>, vector<1x16x16xf32>
    %637 = vector.shape_cast %636 : vector<1x16x16xf32> to vector<16x16xf32>
    %638 = vector.broadcast %635 : f32 to vector<16x16xf32>
    %639 = arith.mulf %638, %637 : vector<16x16xf32>
    %640 = arith.addf %634, %639 : vector<16x16xf32>
    %641 = arith.addf %142, %225 : vector<16x16xf32>
    %642 = arith.addf %308, %391 : vector<16x16xf32>
    %643 = arith.addf %641, %642 : vector<16x16xf32>
    %644 = arith.addf %474, %557 : vector<16x16xf32>
    %645 = arith.addf %644, %640 : vector<16x16xf32>
    %646 = arith.addf %643, %645 : vector<16x16xf32>
    %c0_374 = arith.constant 0 : index
    %647 = memref.load %arg3[%c0_374] : memref<3xf32, #tpu.memory_space<smem>>
    %648 = vector.broadcast %647 : f32 to vector<16x16xf32>
    %649 = arith.addf %646, %648 : vector<16x16xf32>
    %650 = arith.negf %649 : vector<16x16xf32>
    %651 = math.exp %650 : vector<16x16xf32>
    %cst_375 = arith.constant 1.000000e+00 : f32
    %652 = vector.broadcast %cst_375 : f32 to vector<16x16xf32>
    %653 = arith.addf %652, %651 : vector<16x16xf32>
    %654 = arith.divf %652, %653 : vector<16x16xf32>
    %c98 = arith.constant 98 : index
    %655 = memref.load %arg2[%c98] : memref<294xf32, #tpu.memory_space<smem>>
    %c0_376 = arith.constant 0 : index
    %c0_377 = arith.constant 0 : index
    %c0_378 = arith.constant 0 : index
    %656 = vector.load %arg6[%c0_376, %c0_377, %c0_378] : memref<2x16x128xf32, #tpu.memory_space<vmem>>, vector<1x4x16xf32>
    %657 = vector.shape_cast %656 : vector<1x4x16xf32> to vector<4x16xf32>
    %658 = vector.broadcast %655 : f32 to vector<4x16xf32>
    %659 = arith.mulf %658, %657 : vector<4x16xf32>
    %c105 = arith.constant 105 : index
    %660 = memref.load %arg2[%c105] : memref<294xf32, #tpu.memory_space<smem>>
    %c0_379 = arith.constant 0 : index
    %c1_380 = arith.constant 1 : index
    %c0_381 = arith.constant 0 : index
    %661 = vector.load %arg6[%c0_379, %c1_380, %c0_381] : memref<2x16x128xf32, #tpu.memory_space<vmem>>, vector<1x4x16xf32>
    %662 = vector.shape_cast %661 : vector<1x4x16xf32> to vector<4x16xf32>
    %663 = vector.broadcast %660 : f32 to vector<4x16xf32>
    %664 = arith.mulf %663, %662 : vector<4x16xf32>
    %665 = arith.addf %659, %664 : vector<4x16xf32>
    %c112 = arith.constant 112 : index
    %666 = memref.load %arg2[%c112] : memref<294xf32, #tpu.memory_space<smem>>
    %c0_382 = arith.constant 0 : index
    %c2_383 = arith.constant 2 : index
    %c0_384 = arith.constant 0 : index
    %667 = vector.load %arg6[%c0_382, %c2_383, %c0_384] : memref<2x16x128xf32, #tpu.memory_space<vmem>>, vector<1x4x16xf32>
    %668 = vector.shape_cast %667 : vector<1x4x16xf32> to vector<4x16xf32>
    %669 = vector.broadcast %666 : f32 to vector<4x16xf32>
    %670 = arith.mulf %669, %668 : vector<4x16xf32>
    %671 = arith.addf %665, %670 : vector<4x16xf32>
    %c119 = arith.constant 119 : index
    %672 = memref.load %arg2[%c119] : memref<294xf32, #tpu.memory_space<smem>>
    %c0_385 = arith.constant 0 : index
    %c3_386 = arith.constant 3 : index
    %c0_387 = arith.constant 0 : index
    %673 = vector.load %arg6[%c0_385, %c3_386, %c0_387] : memref<2x16x128xf32, #tpu.memory_space<vmem>>, vector<1x4x16xf32>
    %674 = vector.shape_cast %673 : vector<1x4x16xf32> to vector<4x16xf32>
    %675 = vector.broadcast %672 : f32 to vector<4x16xf32>
    %676 = arith.mulf %675, %674 : vector<4x16xf32>
    %677 = arith.addf %671, %676 : vector<4x16xf32>
    %c126 = arith.constant 126 : index
    %678 = memref.load %arg2[%c126] : memref<294xf32, #tpu.memory_space<smem>>
    %c0_388 = arith.constant 0 : index
    %c4_389 = arith.constant 4 : index
    %c0_390 = arith.constant 0 : index
    %679 = vector.load %arg6[%c0_388, %c4_389, %c0_390] : memref<2x16x128xf32, #tpu.memory_space<vmem>>, vector<1x4x16xf32>
    %680 = vector.shape_cast %679 : vector<1x4x16xf32> to vector<4x16xf32>
    %681 = vector.broadcast %678 : f32 to vector<4x16xf32>
    %682 = arith.mulf %681, %680 : vector<4x16xf32>
    %683 = arith.addf %677, %682 : vector<4x16xf32>
    %c133 = arith.constant 133 : index
    %684 = memref.load %arg2[%c133] : memref<294xf32, #tpu.memory_space<smem>>
    %c0_391 = arith.constant 0 : index
    %c5_392 = arith.constant 5 : index
    %c0_393 = arith.constant 0 : index
    %685 = vector.load %arg6[%c0_391, %c5_392, %c0_393] : memref<2x16x128xf32, #tpu.memory_space<vmem>>, vector<1x4x16xf32>
    %686 = vector.shape_cast %685 : vector<1x4x16xf32> to vector<4x16xf32>
    %687 = vector.broadcast %684 : f32 to vector<4x16xf32>
    %688 = arith.mulf %687, %686 : vector<4x16xf32>
    %689 = arith.addf %683, %688 : vector<4x16xf32>
    %c140 = arith.constant 140 : index
    %690 = memref.load %arg2[%c140] : memref<294xf32, #tpu.memory_space<smem>>
    %c0_394 = arith.constant 0 : index
    %c6_395 = arith.constant 6 : index
    %c0_396 = arith.constant 0 : index
    %691 = vector.load %arg6[%c0_394, %c6_395, %c0_396] : memref<2x16x128xf32, #tpu.memory_space<vmem>>, vector<1x4x16xf32>
    %692 = vector.shape_cast %691 : vector<1x4x16xf32> to vector<4x16xf32>
    %693 = vector.broadcast %690 : f32 to vector<4x16xf32>
    %694 = arith.mulf %693, %692 : vector<4x16xf32>
    %695 = arith.addf %689, %694 : vector<4x16xf32>
    %c147 = arith.constant 147 : index
    %696 = memref.load %arg2[%c147] : memref<294xf32, #tpu.memory_space<smem>>
    %c1_397 = arith.constant 1 : index
    %c0_398 = arith.constant 0 : index
    %c0_399 = arith.constant 0 : index
    %697 = vector.load %arg6[%c1_397, %c0_398, %c0_399] : memref<2x16x128xf32, #tpu.memory_space<vmem>>, vector<1x4x16xf32>
    %698 = vector.shape_cast %697 : vector<1x4x16xf32> to vector<4x16xf32>
    %699 = vector.broadcast %696 : f32 to vector<4x16xf32>
    %700 = arith.mulf %699, %698 : vector<4x16xf32>
    %701 = arith.addf %695, %700 : vector<4x16xf32>
    %c154 = arith.constant 154 : index
    %702 = memref.load %arg2[%c154] : memref<294xf32, #tpu.memory_space<smem>>
    %c1_400 = arith.constant 1 : index
    %c1_401 = arith.constant 1 : index
    %c0_402 = arith.constant 0 : index
    %703 = vector.load %arg6[%c1_400, %c1_401, %c0_402] : memref<2x16x128xf32, #tpu.memory_space<vmem>>, vector<1x4x16xf32>
    %704 = vector.shape_cast %703 : vector<1x4x16xf32> to vector<4x16xf32>
    %705 = vector.broadcast %702 : f32 to vector<4x16xf32>
    %706 = arith.mulf %705, %704 : vector<4x16xf32>
    %707 = arith.addf %701, %706 : vector<4x16xf32>
    %c161 = arith.constant 161 : index
    %708 = memref.load %arg2[%c161] : memref<294xf32, #tpu.memory_space<smem>>
    %c1_403 = arith.constant 1 : index
    %c2_404 = arith.constant 2 : index
    %c0_405 = arith.constant 0 : index
    %709 = vector.load %arg6[%c1_403, %c2_404, %c0_405] : memref<2x16x128xf32, #tpu.memory_space<vmem>>, vector<1x4x16xf32>
    %710 = vector.shape_cast %709 : vector<1x4x16xf32> to vector<4x16xf32>
    %711 = vector.broadcast %708 : f32 to vector<4x16xf32>
    %712 = arith.mulf %711, %710 : vector<4x16xf32>
    %713 = arith.addf %707, %712 : vector<4x16xf32>
    %c168 = arith.constant 168 : index
    %714 = memref.load %arg2[%c168] : memref<294xf32, #tpu.memory_space<smem>>
    %c1_406 = arith.constant 1 : index
    %c3_407 = arith.constant 3 : index
    %c0_408 = arith.constant 0 : index
    %715 = vector.load %arg6[%c1_406, %c3_407, %c0_408] : memref<2x16x128xf32, #tpu.memory_space<vmem>>, vector<1x4x16xf32>
    %716 = vector.shape_cast %715 : vector<1x4x16xf32> to vector<4x16xf32>
    %717 = vector.broadcast %714 : f32 to vector<4x16xf32>
    %718 = arith.mulf %717, %716 : vector<4x16xf32>
    %719 = arith.addf %713, %718 : vector<4x16xf32>
    %c175 = arith.constant 175 : index
    %720 = memref.load %arg2[%c175] : memref<294xf32, #tpu.memory_space<smem>>
    %c1_409 = arith.constant 1 : index
    %c4_410 = arith.constant 4 : index
    %c0_411 = arith.constant 0 : index
    %721 = vector.load %arg6[%c1_409, %c4_410, %c0_411] : memref<2x16x128xf32, #tpu.memory_space<vmem>>, vector<1x4x16xf32>
    %722 = vector.shape_cast %721 : vector<1x4x16xf32> to vector<4x16xf32>
    %723 = vector.broadcast %720 : f32 to vector<4x16xf32>
    %724 = arith.mulf %723, %722 : vector<4x16xf32>
    %725 = arith.addf %719, %724 : vector<4x16xf32>
    %c182 = arith.constant 182 : index
    %726 = memref.load %arg2[%c182] : memref<294xf32, #tpu.memory_space<smem>>
    %c1_412 = arith.constant 1 : index
    %c5_413 = arith.constant 5 : index
    %c0_414 = arith.constant 0 : index
    %727 = vector.load %arg6[%c1_412, %c5_413, %c0_414] : memref<2x16x128xf32, #tpu.memory_space<vmem>>, vector<1x4x16xf32>
    %728 = vector.shape_cast %727 : vector<1x4x16xf32> to vector<4x16xf32>
    %729 = vector.broadcast %726 : f32 to vector<4x16xf32>
    %730 = arith.mulf %729, %728 : vector<4x16xf32>
    %731 = arith.addf %725, %730 : vector<4x16xf32>
    %c189 = arith.constant 189 : index
    %732 = memref.load %arg2[%c189] : memref<294xf32, #tpu.memory_space<smem>>
    %c1_415 = arith.constant 1 : index
    %c6_416 = arith.constant 6 : index
    %c0_417 = arith.constant 0 : index
    %733 = vector.load %arg6[%c1_415, %c6_416, %c0_417] : memref<2x16x128xf32, #tpu.memory_space<vmem>>, vector<1x4x16xf32>
    %734 = vector.shape_cast %733 : vector<1x4x16xf32> to vector<4x16xf32>
    %735 = vector.broadcast %732 : f32 to vector<4x16xf32>
    %736 = arith.mulf %735, %734 : vector<4x16xf32>
    %737 = arith.addf %731, %736 : vector<4x16xf32>
    %c99 = arith.constant 99 : index
    %738 = memref.load %arg2[%c99] : memref<294xf32, #tpu.memory_space<smem>>
    %c0_418 = arith.constant 0 : index
    %c0_419 = arith.constant 0 : index
    %c1_420 = arith.constant 1 : index
    %739 = vector.load %arg6[%c0_418, %c0_419, %c1_420] : memref<2x16x128xf32, #tpu.memory_space<vmem>>, vector<1x4x16xf32>
    %740 = vector.shape_cast %739 : vector<1x4x16xf32> to vector<4x16xf32>
    %741 = vector.broadcast %738 : f32 to vector<4x16xf32>
    %742 = arith.mulf %741, %740 : vector<4x16xf32>
    %c106 = arith.constant 106 : index
    %743 = memref.load %arg2[%c106] : memref<294xf32, #tpu.memory_space<smem>>
    %c0_421 = arith.constant 0 : index
    %c1_422 = arith.constant 1 : index
    %c1_423 = arith.constant 1 : index
    %744 = vector.load %arg6[%c0_421, %c1_422, %c1_423] : memref<2x16x128xf32, #tpu.memory_space<vmem>>, vector<1x4x16xf32>
    %745 = vector.shape_cast %744 : vector<1x4x16xf32> to vector<4x16xf32>
    %746 = vector.broadcast %743 : f32 to vector<4x16xf32>
    %747 = arith.mulf %746, %745 : vector<4x16xf32>
    %748 = arith.addf %742, %747 : vector<4x16xf32>
    %c113 = arith.constant 113 : index
    %749 = memref.load %arg2[%c113] : memref<294xf32, #tpu.memory_space<smem>>
    %c0_424 = arith.constant 0 : index
    %c2_425 = arith.constant 2 : index
    %c1_426 = arith.constant 1 : index
    %750 = vector.load %arg6[%c0_424, %c2_425, %c1_426] : memref<2x16x128xf32, #tpu.memory_space<vmem>>, vector<1x4x16xf32>
    %751 = vector.shape_cast %750 : vector<1x4x16xf32> to vector<4x16xf32>
    %752 = vector.broadcast %749 : f32 to vector<4x16xf32>
    %753 = arith.mulf %752, %751 : vector<4x16xf32>
    %754 = arith.addf %748, %753 : vector<4x16xf32>
    %c120 = arith.constant 120 : index
    %755 = memref.load %arg2[%c120] : memref<294xf32, #tpu.memory_space<smem>>
    %c0_427 = arith.constant 0 : index
    %c3_428 = arith.constant 3 : index
    %c1_429 = arith.constant 1 : index
    %756 = vector.load %arg6[%c0_427, %c3_428, %c1_429] : memref<2x16x128xf32, #tpu.memory_space<vmem>>, vector<1x4x16xf32>
    %757 = vector.shape_cast %756 : vector<1x4x16xf32> to vector<4x16xf32>
    %758 = vector.broadcast %755 : f32 to vector<4x16xf32>
    %759 = arith.mulf %758, %757 : vector<4x16xf32>
    %760 = arith.addf %754, %759 : vector<4x16xf32>
    %c127 = arith.constant 127 : index
    %761 = memref.load %arg2[%c127] : memref<294xf32, #tpu.memory_space<smem>>
    %c0_430 = arith.constant 0 : index
    %c4_431 = arith.constant 4 : index
    %c1_432 = arith.constant 1 : index
    %762 = vector.load %arg6[%c0_430, %c4_431, %c1_432] : memref<2x16x128xf32, #tpu.memory_space<vmem>>, vector<1x4x16xf32>
    %763 = vector.shape_cast %762 : vector<1x4x16xf32> to vector<4x16xf32>
    %764 = vector.broadcast %761 : f32 to vector<4x16xf32>
    %765 = arith.mulf %764, %763 : vector<4x16xf32>
    %766 = arith.addf %760, %765 : vector<4x16xf32>
    %c134 = arith.constant 134 : index
    %767 = memref.load %arg2[%c134] : memref<294xf32, #tpu.memory_space<smem>>
    %c0_433 = arith.constant 0 : index
    %c5_434 = arith.constant 5 : index
    %c1_435 = arith.constant 1 : index
    %768 = vector.load %arg6[%c0_433, %c5_434, %c1_435] : memref<2x16x128xf32, #tpu.memory_space<vmem>>, vector<1x4x16xf32>
    %769 = vector.shape_cast %768 : vector<1x4x16xf32> to vector<4x16xf32>
    %770 = vector.broadcast %767 : f32 to vector<4x16xf32>
    %771 = arith.mulf %770, %769 : vector<4x16xf32>
    %772 = arith.addf %766, %771 : vector<4x16xf32>
    %c141 = arith.constant 141 : index
    %773 = memref.load %arg2[%c141] : memref<294xf32, #tpu.memory_space<smem>>
    %c0_436 = arith.constant 0 : index
    %c6_437 = arith.constant 6 : index
    %c1_438 = arith.constant 1 : index
    %774 = vector.load %arg6[%c0_436, %c6_437, %c1_438] : memref<2x16x128xf32, #tpu.memory_space<vmem>>, vector<1x4x16xf32>
    %775 = vector.shape_cast %774 : vector<1x4x16xf32> to vector<4x16xf32>
    %776 = vector.broadcast %773 : f32 to vector<4x16xf32>
    %777 = arith.mulf %776, %775 : vector<4x16xf32>
    %778 = arith.addf %772, %777 : vector<4x16xf32>
    %c148 = arith.constant 148 : index
    %779 = memref.load %arg2[%c148] : memref<294xf32, #tpu.memory_space<smem>>
    %c1_439 = arith.constant 1 : index
    %c0_440 = arith.constant 0 : index
    %c1_441 = arith.constant 1 : index
    %780 = vector.load %arg6[%c1_439, %c0_440, %c1_441] : memref<2x16x128xf32, #tpu.memory_space<vmem>>, vector<1x4x16xf32>
    %781 = vector.shape_cast %780 : vector<1x4x16xf32> to vector<4x16xf32>
    %782 = vector.broadcast %779 : f32 to vector<4x16xf32>
    %783 = arith.mulf %782, %781 : vector<4x16xf32>
    %784 = arith.addf %778, %783 : vector<4x16xf32>
    %c155 = arith.constant 155 : index
    %785 = memref.load %arg2[%c155] : memref<294xf32, #tpu.memory_space<smem>>
    %c1_442 = arith.constant 1 : index
    %c1_443 = arith.constant 1 : index
    %c1_444 = arith.constant 1 : index
    %786 = vector.load %arg6[%c1_442, %c1_443, %c1_444] : memref<2x16x128xf32, #tpu.memory_space<vmem>>, vector<1x4x16xf32>
    %787 = vector.shape_cast %786 : vector<1x4x16xf32> to vector<4x16xf32>
    %788 = vector.broadcast %785 : f32 to vector<4x16xf32>
    %789 = arith.mulf %788, %787 : vector<4x16xf32>
    %790 = arith.addf %784, %789 : vector<4x16xf32>
    %c162 = arith.constant 162 : index
    %791 = memref.load %arg2[%c162] : memref<294xf32, #tpu.memory_space<smem>>
    %c1_445 = arith.constant 1 : index
    %c2_446 = arith.constant 2 : index
    %c1_447 = arith.constant 1 : index
    %792 = vector.load %arg6[%c1_445, %c2_446, %c1_447] : memref<2x16x128xf32, #tpu.memory_space<vmem>>, vector<1x4x16xf32>
    %793 = vector.shape_cast %792 : vector<1x4x16xf32> to vector<4x16xf32>
    %794 = vector.broadcast %791 : f32 to vector<4x16xf32>
    %795 = arith.mulf %794, %793 : vector<4x16xf32>
    %796 = arith.addf %790, %795 : vector<4x16xf32>
    %c169 = arith.constant 169 : index
    %797 = memref.load %arg2[%c169] : memref<294xf32, #tpu.memory_space<smem>>
    %c1_448 = arith.constant 1 : index
    %c3_449 = arith.constant 3 : index
    %c1_450 = arith.constant 1 : index
    %798 = vector.load %arg6[%c1_448, %c3_449, %c1_450] : memref<2x16x128xf32, #tpu.memory_space<vmem>>, vector<1x4x16xf32>
    %799 = vector.shape_cast %798 : vector<1x4x16xf32> to vector<4x16xf32>
    %800 = vector.broadcast %797 : f32 to vector<4x16xf32>
    %801 = arith.mulf %800, %799 : vector<4x16xf32>
    %802 = arith.addf %796, %801 : vector<4x16xf32>
    %c176 = arith.constant 176 : index
    %803 = memref.load %arg2[%c176] : memref<294xf32, #tpu.memory_space<smem>>
    %c1_451 = arith.constant 1 : index
    %c4_452 = arith.constant 4 : index
    %c1_453 = arith.constant 1 : index
    %804 = vector.load %arg6[%c1_451, %c4_452, %c1_453] : memref<2x16x128xf32, #tpu.memory_space<vmem>>, vector<1x4x16xf32>
    %805 = vector.shape_cast %804 : vector<1x4x16xf32> to vector<4x16xf32>
    %806 = vector.broadcast %803 : f32 to vector<4x16xf32>
    %807 = arith.mulf %806, %805 : vector<4x16xf32>
    %808 = arith.addf %802, %807 : vector<4x16xf32>
    %c183 = arith.constant 183 : index
    %809 = memref.load %arg2[%c183] : memref<294xf32, #tpu.memory_space<smem>>
    %c1_454 = arith.constant 1 : index
    %c5_455 = arith.constant 5 : index
    %c1_456 = arith.constant 1 : index
    %810 = vector.load %arg6[%c1_454, %c5_455, %c1_456] : memref<2x16x128xf32, #tpu.memory_space<vmem>>, vector<1x4x16xf32>
    %811 = vector.shape_cast %810 : vector<1x4x16xf32> to vector<4x16xf32>
    %812 = vector.broadcast %809 : f32 to vector<4x16xf32>
    %813 = arith.mulf %812, %811 : vector<4x16xf32>
    %814 = arith.addf %808, %813 : vector<4x16xf32>
    %c190 = arith.constant 190 : index
    %815 = memref.load %arg2[%c190] : memref<294xf32, #tpu.memory_space<smem>>
    %c1_457 = arith.constant 1 : index
    %c6_458 = arith.constant 6 : index
    %c1_459 = arith.constant 1 : index
    %816 = vector.load %arg6[%c1_457, %c6_458, %c1_459] : memref<2x16x128xf32, #tpu.memory_space<vmem>>, vector<1x4x16xf32>
    %817 = vector.shape_cast %816 : vector<1x4x16xf32> to vector<4x16xf32>
    %818 = vector.broadcast %815 : f32 to vector<4x16xf32>
    %819 = arith.mulf %818, %817 : vector<4x16xf32>
    %820 = arith.addf %814, %819 : vector<4x16xf32>
    %c100 = arith.constant 100 : index
    %821 = memref.load %arg2[%c100] : memref<294xf32, #tpu.memory_space<smem>>
    %c0_460 = arith.constant 0 : index
    %c0_461 = arith.constant 0 : index
    %c2_462 = arith.constant 2 : index
    %822 = vector.load %arg6[%c0_460, %c0_461, %c2_462] : memref<2x16x128xf32, #tpu.memory_space<vmem>>, vector<1x4x16xf32>
    %823 = vector.shape_cast %822 : vector<1x4x16xf32> to vector<4x16xf32>
    %824 = vector.broadcast %821 : f32 to vector<4x16xf32>
    %825 = arith.mulf %824, %823 : vector<4x16xf32>
    %c107 = arith.constant 107 : index
    %826 = memref.load %arg2[%c107] : memref<294xf32, #tpu.memory_space<smem>>
    %c0_463 = arith.constant 0 : index
    %c1_464 = arith.constant 1 : index
    %c2_465 = arith.constant 2 : index
    %827 = vector.load %arg6[%c0_463, %c1_464, %c2_465] : memref<2x16x128xf32, #tpu.memory_space<vmem>>, vector<1x4x16xf32>
    %828 = vector.shape_cast %827 : vector<1x4x16xf32> to vector<4x16xf32>
    %829 = vector.broadcast %826 : f32 to vector<4x16xf32>
    %830 = arith.mulf %829, %828 : vector<4x16xf32>
    %831 = arith.addf %825, %830 : vector<4x16xf32>
    %c114 = arith.constant 114 : index
    %832 = memref.load %arg2[%c114] : memref<294xf32, #tpu.memory_space<smem>>
    %c0_466 = arith.constant 0 : index
    %c2_467 = arith.constant 2 : index
    %c2_468 = arith.constant 2 : index
    %833 = vector.load %arg6[%c0_466, %c2_467, %c2_468] : memref<2x16x128xf32, #tpu.memory_space<vmem>>, vector<1x4x16xf32>
    %834 = vector.shape_cast %833 : vector<1x4x16xf32> to vector<4x16xf32>
    %835 = vector.broadcast %832 : f32 to vector<4x16xf32>
    %836 = arith.mulf %835, %834 : vector<4x16xf32>
    %837 = arith.addf %831, %836 : vector<4x16xf32>
    %c121 = arith.constant 121 : index
    %838 = memref.load %arg2[%c121] : memref<294xf32, #tpu.memory_space<smem>>
    %c0_469 = arith.constant 0 : index
    %c3_470 = arith.constant 3 : index
    %c2_471 = arith.constant 2 : index
    %839 = vector.load %arg6[%c0_469, %c3_470, %c2_471] : memref<2x16x128xf32, #tpu.memory_space<vmem>>, vector<1x4x16xf32>
    %840 = vector.shape_cast %839 : vector<1x4x16xf32> to vector<4x16xf32>
    %841 = vector.broadcast %838 : f32 to vector<4x16xf32>
    %842 = arith.mulf %841, %840 : vector<4x16xf32>
    %843 = arith.addf %837, %842 : vector<4x16xf32>
    %c128 = arith.constant 128 : index
    %844 = memref.load %arg2[%c128] : memref<294xf32, #tpu.memory_space<smem>>
    %c0_472 = arith.constant 0 : index
    %c4_473 = arith.constant 4 : index
    %c2_474 = arith.constant 2 : index
    %845 = vector.load %arg6[%c0_472, %c4_473, %c2_474] : memref<2x16x128xf32, #tpu.memory_space<vmem>>, vector<1x4x16xf32>
    %846 = vector.shape_cast %845 : vector<1x4x16xf32> to vector<4x16xf32>
    %847 = vector.broadcast %844 : f32 to vector<4x16xf32>
    %848 = arith.mulf %847, %846 : vector<4x16xf32>
    %849 = arith.addf %843, %848 : vector<4x16xf32>
    %c135 = arith.constant 135 : index
    %850 = memref.load %arg2[%c135] : memref<294xf32, #tpu.memory_space<smem>>
    %c0_475 = arith.constant 0 : index
    %c5_476 = arith.constant 5 : index
    %c2_477 = arith.constant 2 : index
    %851 = vector.load %arg6[%c0_475, %c5_476, %c2_477] : memref<2x16x128xf32, #tpu.memory_space<vmem>>, vector<1x4x16xf32>
    %852 = vector.shape_cast %851 : vector<1x4x16xf32> to vector<4x16xf32>
    %853 = vector.broadcast %850 : f32 to vector<4x16xf32>
    %854 = arith.mulf %853, %852 : vector<4x16xf32>
    %855 = arith.addf %849, %854 : vector<4x16xf32>
    %c142 = arith.constant 142 : index
    %856 = memref.load %arg2[%c142] : memref<294xf32, #tpu.memory_space<smem>>
    %c0_478 = arith.constant 0 : index
    %c6_479 = arith.constant 6 : index
    %c2_480 = arith.constant 2 : index
    %857 = vector.load %arg6[%c0_478, %c6_479, %c2_480] : memref<2x16x128xf32, #tpu.memory_space<vmem>>, vector<1x4x16xf32>
    %858 = vector.shape_cast %857 : vector<1x4x16xf32> to vector<4x16xf32>
    %859 = vector.broadcast %856 : f32 to vector<4x16xf32>
    %860 = arith.mulf %859, %858 : vector<4x16xf32>
    %861 = arith.addf %855, %860 : vector<4x16xf32>
    %c149 = arith.constant 149 : index
    %862 = memref.load %arg2[%c149] : memref<294xf32, #tpu.memory_space<smem>>
    %c1_481 = arith.constant 1 : index
    %c0_482 = arith.constant 0 : index
    %c2_483 = arith.constant 2 : index
    %863 = vector.load %arg6[%c1_481, %c0_482, %c2_483] : memref<2x16x128xf32, #tpu.memory_space<vmem>>, vector<1x4x16xf32>
    %864 = vector.shape_cast %863 : vector<1x4x16xf32> to vector<4x16xf32>
    %865 = vector.broadcast %862 : f32 to vector<4x16xf32>
    %866 = arith.mulf %865, %864 : vector<4x16xf32>
    %867 = arith.addf %861, %866 : vector<4x16xf32>
    %c156 = arith.constant 156 : index
    %868 = memref.load %arg2[%c156] : memref<294xf32, #tpu.memory_space<smem>>
    %c1_484 = arith.constant 1 : index
    %c1_485 = arith.constant 1 : index
    %c2_486 = arith.constant 2 : index
    %869 = vector.load %arg6[%c1_484, %c1_485, %c2_486] : memref<2x16x128xf32, #tpu.memory_space<vmem>>, vector<1x4x16xf32>
    %870 = vector.shape_cast %869 : vector<1x4x16xf32> to vector<4x16xf32>
    %871 = vector.broadcast %868 : f32 to vector<4x16xf32>
    %872 = arith.mulf %871, %870 : vector<4x16xf32>
    %873 = arith.addf %867, %872 : vector<4x16xf32>
    %c163 = arith.constant 163 : index
    %874 = memref.load %arg2[%c163] : memref<294xf32, #tpu.memory_space<smem>>
    %c1_487 = arith.constant 1 : index
    %c2_488 = arith.constant 2 : index
    %c2_489 = arith.constant 2 : index
    %875 = vector.load %arg6[%c1_487, %c2_488, %c2_489] : memref<2x16x128xf32, #tpu.memory_space<vmem>>, vector<1x4x16xf32>
    %876 = vector.shape_cast %875 : vector<1x4x16xf32> to vector<4x16xf32>
    %877 = vector.broadcast %874 : f32 to vector<4x16xf32>
    %878 = arith.mulf %877, %876 : vector<4x16xf32>
    %879 = arith.addf %873, %878 : vector<4x16xf32>
    %c170 = arith.constant 170 : index
    %880 = memref.load %arg2[%c170] : memref<294xf32, #tpu.memory_space<smem>>
    %c1_490 = arith.constant 1 : index
    %c3_491 = arith.constant 3 : index
    %c2_492 = arith.constant 2 : index
    %881 = vector.load %arg6[%c1_490, %c3_491, %c2_492] : memref<2x16x128xf32, #tpu.memory_space<vmem>>, vector<1x4x16xf32>
    %882 = vector.shape_cast %881 : vector<1x4x16xf32> to vector<4x16xf32>
    %883 = vector.broadcast %880 : f32 to vector<4x16xf32>
    %884 = arith.mulf %883, %882 : vector<4x16xf32>
    %885 = arith.addf %879, %884 : vector<4x16xf32>
    %c177 = arith.constant 177 : index
    %886 = memref.load %arg2[%c177] : memref<294xf32, #tpu.memory_space<smem>>
    %c1_493 = arith.constant 1 : index
    %c4_494 = arith.constant 4 : index
    %c2_495 = arith.constant 2 : index
    %887 = vector.load %arg6[%c1_493, %c4_494, %c2_495] : memref<2x16x128xf32, #tpu.memory_space<vmem>>, vector<1x4x16xf32>
    %888 = vector.shape_cast %887 : vector<1x4x16xf32> to vector<4x16xf32>
    %889 = vector.broadcast %886 : f32 to vector<4x16xf32>
    %890 = arith.mulf %889, %888 : vector<4x16xf32>
    %891 = arith.addf %885, %890 : vector<4x16xf32>
    %c184 = arith.constant 184 : index
    %892 = memref.load %arg2[%c184] : memref<294xf32, #tpu.memory_space<smem>>
    %c1_496 = arith.constant 1 : index
    %c5_497 = arith.constant 5 : index
    %c2_498 = arith.constant 2 : index
    %893 = vector.load %arg6[%c1_496, %c5_497, %c2_498] : memref<2x16x128xf32, #tpu.memory_space<vmem>>, vector<1x4x16xf32>
    %894 = vector.shape_cast %893 : vector<1x4x16xf32> to vector<4x16xf32>
    %895 = vector.broadcast %892 : f32 to vector<4x16xf32>
    %896 = arith.mulf %895, %894 : vector<4x16xf32>
    %897 = arith.addf %891, %896 : vector<4x16xf32>
    %c191 = arith.constant 191 : index
    %898 = memref.load %arg2[%c191] : memref<294xf32, #tpu.memory_space<smem>>
    %c1_499 = arith.constant 1 : index
    %c6_500 = arith.constant 6 : index
    %c2_501 = arith.constant 2 : index
    %899 = vector.load %arg6[%c1_499, %c6_500, %c2_501] : memref<2x16x128xf32, #tpu.memory_space<vmem>>, vector<1x4x16xf32>
    %900 = vector.shape_cast %899 : vector<1x4x16xf32> to vector<4x16xf32>
    %901 = vector.broadcast %898 : f32 to vector<4x16xf32>
    %902 = arith.mulf %901, %900 : vector<4x16xf32>
    %903 = arith.addf %897, %902 : vector<4x16xf32>
    %c101 = arith.constant 101 : index
    %904 = memref.load %arg2[%c101] : memref<294xf32, #tpu.memory_space<smem>>
    %c0_502 = arith.constant 0 : index
    %c0_503 = arith.constant 0 : index
    %c3_504 = arith.constant 3 : index
    %905 = vector.load %arg6[%c0_502, %c0_503, %c3_504] : memref<2x16x128xf32, #tpu.memory_space<vmem>>, vector<1x4x16xf32>
    %906 = vector.shape_cast %905 : vector<1x4x16xf32> to vector<4x16xf32>
    %907 = vector.broadcast %904 : f32 to vector<4x16xf32>
    %908 = arith.mulf %907, %906 : vector<4x16xf32>
    %c108 = arith.constant 108 : index
    %909 = memref.load %arg2[%c108] : memref<294xf32, #tpu.memory_space<smem>>
    %c0_505 = arith.constant 0 : index
    %c1_506 = arith.constant 1 : index
    %c3_507 = arith.constant 3 : index
    %910 = vector.load %arg6[%c0_505, %c1_506, %c3_507] : memref<2x16x128xf32, #tpu.memory_space<vmem>>, vector<1x4x16xf32>
    %911 = vector.shape_cast %910 : vector<1x4x16xf32> to vector<4x16xf32>
    %912 = vector.broadcast %909 : f32 to vector<4x16xf32>
    %913 = arith.mulf %912, %911 : vector<4x16xf32>
    %914 = arith.addf %908, %913 : vector<4x16xf32>
    %c115 = arith.constant 115 : index
    %915 = memref.load %arg2[%c115] : memref<294xf32, #tpu.memory_space<smem>>
    %c0_508 = arith.constant 0 : index
    %c2_509 = arith.constant 2 : index
    %c3_510 = arith.constant 3 : index
    %916 = vector.load %arg6[%c0_508, %c2_509, %c3_510] : memref<2x16x128xf32, #tpu.memory_space<vmem>>, vector<1x4x16xf32>
    %917 = vector.shape_cast %916 : vector<1x4x16xf32> to vector<4x16xf32>
    %918 = vector.broadcast %915 : f32 to vector<4x16xf32>
    %919 = arith.mulf %918, %917 : vector<4x16xf32>
    %920 = arith.addf %914, %919 : vector<4x16xf32>
    %c122 = arith.constant 122 : index
    %921 = memref.load %arg2[%c122] : memref<294xf32, #tpu.memory_space<smem>>
    %c0_511 = arith.constant 0 : index
    %c3_512 = arith.constant 3 : index
    %c3_513 = arith.constant 3 : index
    %922 = vector.load %arg6[%c0_511, %c3_512, %c3_513] : memref<2x16x128xf32, #tpu.memory_space<vmem>>, vector<1x4x16xf32>
    %923 = vector.shape_cast %922 : vector<1x4x16xf32> to vector<4x16xf32>
    %924 = vector.broadcast %921 : f32 to vector<4x16xf32>
    %925 = arith.mulf %924, %923 : vector<4x16xf32>
    %926 = arith.addf %920, %925 : vector<4x16xf32>
    %c129 = arith.constant 129 : index
    %927 = memref.load %arg2[%c129] : memref<294xf32, #tpu.memory_space<smem>>
    %c0_514 = arith.constant 0 : index
    %c4_515 = arith.constant 4 : index
    %c3_516 = arith.constant 3 : index
    %928 = vector.load %arg6[%c0_514, %c4_515, %c3_516] : memref<2x16x128xf32, #tpu.memory_space<vmem>>, vector<1x4x16xf32>
    %929 = vector.shape_cast %928 : vector<1x4x16xf32> to vector<4x16xf32>
    %930 = vector.broadcast %927 : f32 to vector<4x16xf32>
    %931 = arith.mulf %930, %929 : vector<4x16xf32>
    %932 = arith.addf %926, %931 : vector<4x16xf32>
    %c136 = arith.constant 136 : index
    %933 = memref.load %arg2[%c136] : memref<294xf32, #tpu.memory_space<smem>>
    %c0_517 = arith.constant 0 : index
    %c5_518 = arith.constant 5 : index
    %c3_519 = arith.constant 3 : index
    %934 = vector.load %arg6[%c0_517, %c5_518, %c3_519] : memref<2x16x128xf32, #tpu.memory_space<vmem>>, vector<1x4x16xf32>
    %935 = vector.shape_cast %934 : vector<1x4x16xf32> to vector<4x16xf32>
    %936 = vector.broadcast %933 : f32 to vector<4x16xf32>
    %937 = arith.mulf %936, %935 : vector<4x16xf32>
    %938 = arith.addf %932, %937 : vector<4x16xf32>
    %c143 = arith.constant 143 : index
    %939 = memref.load %arg2[%c143] : memref<294xf32, #tpu.memory_space<smem>>
    %c0_520 = arith.constant 0 : index
    %c6_521 = arith.constant 6 : index
    %c3_522 = arith.constant 3 : index
    %940 = vector.load %arg6[%c0_520, %c6_521, %c3_522] : memref<2x16x128xf32, #tpu.memory_space<vmem>>, vector<1x4x16xf32>
    %941 = vector.shape_cast %940 : vector<1x4x16xf32> to vector<4x16xf32>
    %942 = vector.broadcast %939 : f32 to vector<4x16xf32>
    %943 = arith.mulf %942, %941 : vector<4x16xf32>
    %944 = arith.addf %938, %943 : vector<4x16xf32>
    %c150 = arith.constant 150 : index
    %945 = memref.load %arg2[%c150] : memref<294xf32, #tpu.memory_space<smem>>
    %c1_523 = arith.constant 1 : index
    %c0_524 = arith.constant 0 : index
    %c3_525 = arith.constant 3 : index
    %946 = vector.load %arg6[%c1_523, %c0_524, %c3_525] : memref<2x16x128xf32, #tpu.memory_space<vmem>>, vector<1x4x16xf32>
    %947 = vector.shape_cast %946 : vector<1x4x16xf32> to vector<4x16xf32>
    %948 = vector.broadcast %945 : f32 to vector<4x16xf32>
    %949 = arith.mulf %948, %947 : vector<4x16xf32>
    %950 = arith.addf %944, %949 : vector<4x16xf32>
    %c157 = arith.constant 157 : index
    %951 = memref.load %arg2[%c157] : memref<294xf32, #tpu.memory_space<smem>>
    %c1_526 = arith.constant 1 : index
    %c1_527 = arith.constant 1 : index
    %c3_528 = arith.constant 3 : index
    %952 = vector.load %arg6[%c1_526, %c1_527, %c3_528] : memref<2x16x128xf32, #tpu.memory_space<vmem>>, vector<1x4x16xf32>
    %953 = vector.shape_cast %952 : vector<1x4x16xf32> to vector<4x16xf32>
    %954 = vector.broadcast %951 : f32 to vector<4x16xf32>
    %955 = arith.mulf %954, %953 : vector<4x16xf32>
    %956 = arith.addf %950, %955 : vector<4x16xf32>
    %c164 = arith.constant 164 : index
    %957 = memref.load %arg2[%c164] : memref<294xf32, #tpu.memory_space<smem>>
    %c1_529 = arith.constant 1 : index
    %c2_530 = arith.constant 2 : index
    %c3_531 = arith.constant 3 : index
    %958 = vector.load %arg6[%c1_529, %c2_530, %c3_531] : memref<2x16x128xf32, #tpu.memory_space<vmem>>, vector<1x4x16xf32>
    %959 = vector.shape_cast %958 : vector<1x4x16xf32> to vector<4x16xf32>
    %960 = vector.broadcast %957 : f32 to vector<4x16xf32>
    %961 = arith.mulf %960, %959 : vector<4x16xf32>
    %962 = arith.addf %956, %961 : vector<4x16xf32>
    %c171 = arith.constant 171 : index
    %963 = memref.load %arg2[%c171] : memref<294xf32, #tpu.memory_space<smem>>
    %c1_532 = arith.constant 1 : index
    %c3_533 = arith.constant 3 : index
    %c3_534 = arith.constant 3 : index
    %964 = vector.load %arg6[%c1_532, %c3_533, %c3_534] : memref<2x16x128xf32, #tpu.memory_space<vmem>>, vector<1x4x16xf32>
    %965 = vector.shape_cast %964 : vector<1x4x16xf32> to vector<4x16xf32>
    %966 = vector.broadcast %963 : f32 to vector<4x16xf32>
    %967 = arith.mulf %966, %965 : vector<4x16xf32>
    %968 = arith.addf %962, %967 : vector<4x16xf32>
    %c178 = arith.constant 178 : index
    %969 = memref.load %arg2[%c178] : memref<294xf32, #tpu.memory_space<smem>>
    %c1_535 = arith.constant 1 : index
    %c4_536 = arith.constant 4 : index
    %c3_537 = arith.constant 3 : index
    %970 = vector.load %arg6[%c1_535, %c4_536, %c3_537] : memref<2x16x128xf32, #tpu.memory_space<vmem>>, vector<1x4x16xf32>
    %971 = vector.shape_cast %970 : vector<1x4x16xf32> to vector<4x16xf32>
    %972 = vector.broadcast %969 : f32 to vector<4x16xf32>
    %973 = arith.mulf %972, %971 : vector<4x16xf32>
    %974 = arith.addf %968, %973 : vector<4x16xf32>
    %c185 = arith.constant 185 : index
    %975 = memref.load %arg2[%c185] : memref<294xf32, #tpu.memory_space<smem>>
    %c1_538 = arith.constant 1 : index
    %c5_539 = arith.constant 5 : index
    %c3_540 = arith.constant 3 : index
    %976 = vector.load %arg6[%c1_538, %c5_539, %c3_540] : memref<2x16x128xf32, #tpu.memory_space<vmem>>, vector<1x4x16xf32>
    %977 = vector.shape_cast %976 : vector<1x4x16xf32> to vector<4x16xf32>
    %978 = vector.broadcast %975 : f32 to vector<4x16xf32>
    %979 = arith.mulf %978, %977 : vector<4x16xf32>
    %980 = arith.addf %974, %979 : vector<4x16xf32>
    %c192 = arith.constant 192 : index
    %981 = memref.load %arg2[%c192] : memref<294xf32, #tpu.memory_space<smem>>
    %c1_541 = arith.constant 1 : index
    %c6_542 = arith.constant 6 : index
    %c3_543 = arith.constant 3 : index
    %982 = vector.load %arg6[%c1_541, %c6_542, %c3_543] : memref<2x16x128xf32, #tpu.memory_space<vmem>>, vector<1x4x16xf32>
    %983 = vector.shape_cast %982 : vector<1x4x16xf32> to vector<4x16xf32>
    %984 = vector.broadcast %981 : f32 to vector<4x16xf32>
    %985 = arith.mulf %984, %983 : vector<4x16xf32>
    %986 = arith.addf %980, %985 : vector<4x16xf32>
    %c102 = arith.constant 102 : index
    %987 = memref.load %arg2[%c102] : memref<294xf32, #tpu.memory_space<smem>>
    %c0_544 = arith.constant 0 : index
    %c0_545 = arith.constant 0 : index
    %c4_546 = arith.constant 4 : index
    %988 = vector.load %arg6[%c0_544, %c0_545, %c4_546] : memref<2x16x128xf32, #tpu.memory_space<vmem>>, vector<1x4x16xf32>
    %989 = vector.shape_cast %988 : vector<1x4x16xf32> to vector<4x16xf32>
    %990 = vector.broadcast %987 : f32 to vector<4x16xf32>
    %991 = arith.mulf %990, %989 : vector<4x16xf32>
    %c109 = arith.constant 109 : index
    %992 = memref.load %arg2[%c109] : memref<294xf32, #tpu.memory_space<smem>>
    %c0_547 = arith.constant 0 : index
    %c1_548 = arith.constant 1 : index
    %c4_549 = arith.constant 4 : index
    %993 = vector.load %arg6[%c0_547, %c1_548, %c4_549] : memref<2x16x128xf32, #tpu.memory_space<vmem>>, vector<1x4x16xf32>
    %994 = vector.shape_cast %993 : vector<1x4x16xf32> to vector<4x16xf32>
    %995 = vector.broadcast %992 : f32 to vector<4x16xf32>
    %996 = arith.mulf %995, %994 : vector<4x16xf32>
    %997 = arith.addf %991, %996 : vector<4x16xf32>
    %c116 = arith.constant 116 : index
    %998 = memref.load %arg2[%c116] : memref<294xf32, #tpu.memory_space<smem>>
    %c0_550 = arith.constant 0 : index
    %c2_551 = arith.constant 2 : index
    %c4_552 = arith.constant 4 : index
    %999 = vector.load %arg6[%c0_550, %c2_551, %c4_552] : memref<2x16x128xf32, #tpu.memory_space<vmem>>, vector<1x4x16xf32>
    %1000 = vector.shape_cast %999 : vector<1x4x16xf32> to vector<4x16xf32>
    %1001 = vector.broadcast %998 : f32 to vector<4x16xf32>
    %1002 = arith.mulf %1001, %1000 : vector<4x16xf32>
    %1003 = arith.addf %997, %1002 : vector<4x16xf32>
    %c123 = arith.constant 123 : index
    %1004 = memref.load %arg2[%c123] : memref<294xf32, #tpu.memory_space<smem>>
    %c0_553 = arith.constant 0 : index
    %c3_554 = arith.constant 3 : index
    %c4_555 = arith.constant 4 : index
    %1005 = vector.load %arg6[%c0_553, %c3_554, %c4_555] : memref<2x16x128xf32, #tpu.memory_space<vmem>>, vector<1x4x16xf32>
    %1006 = vector.shape_cast %1005 : vector<1x4x16xf32> to vector<4x16xf32>
    %1007 = vector.broadcast %1004 : f32 to vector<4x16xf32>
    %1008 = arith.mulf %1007, %1006 : vector<4x16xf32>
    %1009 = arith.addf %1003, %1008 : vector<4x16xf32>
    %c130 = arith.constant 130 : index
    %1010 = memref.load %arg2[%c130] : memref<294xf32, #tpu.memory_space<smem>>
    %c0_556 = arith.constant 0 : index
    %c4_557 = arith.constant 4 : index
    %c4_558 = arith.constant 4 : index
    %1011 = vector.load %arg6[%c0_556, %c4_557, %c4_558] : memref<2x16x128xf32, #tpu.memory_space<vmem>>, vector<1x4x16xf32>
    %1012 = vector.shape_cast %1011 : vector<1x4x16xf32> to vector<4x16xf32>
    %1013 = vector.broadcast %1010 : f32 to vector<4x16xf32>
    %1014 = arith.mulf %1013, %1012 : vector<4x16xf32>
    %1015 = arith.addf %1009, %1014 : vector<4x16xf32>
    %c137 = arith.constant 137 : index
    %1016 = memref.load %arg2[%c137] : memref<294xf32, #tpu.memory_space<smem>>
    %c0_559 = arith.constant 0 : index
    %c5_560 = arith.constant 5 : index
    %c4_561 = arith.constant 4 : index
    %1017 = vector.load %arg6[%c0_559, %c5_560, %c4_561] : memref<2x16x128xf32, #tpu.memory_space<vmem>>, vector<1x4x16xf32>
    %1018 = vector.shape_cast %1017 : vector<1x4x16xf32> to vector<4x16xf32>
    %1019 = vector.broadcast %1016 : f32 to vector<4x16xf32>
    %1020 = arith.mulf %1019, %1018 : vector<4x16xf32>
    %1021 = arith.addf %1015, %1020 : vector<4x16xf32>
    %c144 = arith.constant 144 : index
    %1022 = memref.load %arg2[%c144] : memref<294xf32, #tpu.memory_space<smem>>
    %c0_562 = arith.constant 0 : index
    %c6_563 = arith.constant 6 : index
    %c4_564 = arith.constant 4 : index
    %1023 = vector.load %arg6[%c0_562, %c6_563, %c4_564] : memref<2x16x128xf32, #tpu.memory_space<vmem>>, vector<1x4x16xf32>
    %1024 = vector.shape_cast %1023 : vector<1x4x16xf32> to vector<4x16xf32>
    %1025 = vector.broadcast %1022 : f32 to vector<4x16xf32>
    %1026 = arith.mulf %1025, %1024 : vector<4x16xf32>
    %1027 = arith.addf %1021, %1026 : vector<4x16xf32>
    %c151 = arith.constant 151 : index
    %1028 = memref.load %arg2[%c151] : memref<294xf32, #tpu.memory_space<smem>>
    %c1_565 = arith.constant 1 : index
    %c0_566 = arith.constant 0 : index
    %c4_567 = arith.constant 4 : index
    %1029 = vector.load %arg6[%c1_565, %c0_566, %c4_567] : memref<2x16x128xf32, #tpu.memory_space<vmem>>, vector<1x4x16xf32>
    %1030 = vector.shape_cast %1029 : vector<1x4x16xf32> to vector<4x16xf32>
    %1031 = vector.broadcast %1028 : f32 to vector<4x16xf32>
    %1032 = arith.mulf %1031, %1030 : vector<4x16xf32>
    %1033 = arith.addf %1027, %1032 : vector<4x16xf32>
    %c158 = arith.constant 158 : index
    %1034 = memref.load %arg2[%c158] : memref<294xf32, #tpu.memory_space<smem>>
    %c1_568 = arith.constant 1 : index
    %c1_569 = arith.constant 1 : index
    %c4_570 = arith.constant 4 : index
    %1035 = vector.load %arg6[%c1_568, %c1_569, %c4_570] : memref<2x16x128xf32, #tpu.memory_space<vmem>>, vector<1x4x16xf32>
    %1036 = vector.shape_cast %1035 : vector<1x4x16xf32> to vector<4x16xf32>
    %1037 = vector.broadcast %1034 : f32 to vector<4x16xf32>
    %1038 = arith.mulf %1037, %1036 : vector<4x16xf32>
    %1039 = arith.addf %1033, %1038 : vector<4x16xf32>
    %c165 = arith.constant 165 : index
    %1040 = memref.load %arg2[%c165] : memref<294xf32, #tpu.memory_space<smem>>
    %c1_571 = arith.constant 1 : index
    %c2_572 = arith.constant 2 : index
    %c4_573 = arith.constant 4 : index
    %1041 = vector.load %arg6[%c1_571, %c2_572, %c4_573] : memref<2x16x128xf32, #tpu.memory_space<vmem>>, vector<1x4x16xf32>
    %1042 = vector.shape_cast %1041 : vector<1x4x16xf32> to vector<4x16xf32>
    %1043 = vector.broadcast %1040 : f32 to vector<4x16xf32>
    %1044 = arith.mulf %1043, %1042 : vector<4x16xf32>
    %1045 = arith.addf %1039, %1044 : vector<4x16xf32>
    %c172 = arith.constant 172 : index
    %1046 = memref.load %arg2[%c172] : memref<294xf32, #tpu.memory_space<smem>>
    %c1_574 = arith.constant 1 : index
    %c3_575 = arith.constant 3 : index
    %c4_576 = arith.constant 4 : index
    %1047 = vector.load %arg6[%c1_574, %c3_575, %c4_576] : memref<2x16x128xf32, #tpu.memory_space<vmem>>, vector<1x4x16xf32>
    %1048 = vector.shape_cast %1047 : vector<1x4x16xf32> to vector<4x16xf32>
    %1049 = vector.broadcast %1046 : f32 to vector<4x16xf32>
    %1050 = arith.mulf %1049, %1048 : vector<4x16xf32>
    %1051 = arith.addf %1045, %1050 : vector<4x16xf32>
    %c179 = arith.constant 179 : index
    %1052 = memref.load %arg2[%c179] : memref<294xf32, #tpu.memory_space<smem>>
    %c1_577 = arith.constant 1 : index
    %c4_578 = arith.constant 4 : index
    %c4_579 = arith.constant 4 : index
    %1053 = vector.load %arg6[%c1_577, %c4_578, %c4_579] : memref<2x16x128xf32, #tpu.memory_space<vmem>>, vector<1x4x16xf32>
    %1054 = vector.shape_cast %1053 : vector<1x4x16xf32> to vector<4x16xf32>
    %1055 = vector.broadcast %1052 : f32 to vector<4x16xf32>
    %1056 = arith.mulf %1055, %1054 : vector<4x16xf32>
    %1057 = arith.addf %1051, %1056 : vector<4x16xf32>
    %c186 = arith.constant 186 : index
    %1058 = memref.load %arg2[%c186] : memref<294xf32, #tpu.memory_space<smem>>
    %c1_580 = arith.constant 1 : index
    %c5_581 = arith.constant 5 : index
    %c4_582 = arith.constant 4 : index
    %1059 = vector.load %arg6[%c1_580, %c5_581, %c4_582] : memref<2x16x128xf32, #tpu.memory_space<vmem>>, vector<1x4x16xf32>
    %1060 = vector.shape_cast %1059 : vector<1x4x16xf32> to vector<4x16xf32>
    %1061 = vector.broadcast %1058 : f32 to vector<4x16xf32>
    %1062 = arith.mulf %1061, %1060 : vector<4x16xf32>
    %1063 = arith.addf %1057, %1062 : vector<4x16xf32>
    %c193 = arith.constant 193 : index
    %1064 = memref.load %arg2[%c193] : memref<294xf32, #tpu.memory_space<smem>>
    %c1_583 = arith.constant 1 : index
    %c6_584 = arith.constant 6 : index
    %c4_585 = arith.constant 4 : index
    %1065 = vector.load %arg6[%c1_583, %c6_584, %c4_585] : memref<2x16x128xf32, #tpu.memory_space<vmem>>, vector<1x4x16xf32>
    %1066 = vector.shape_cast %1065 : vector<1x4x16xf32> to vector<4x16xf32>
    %1067 = vector.broadcast %1064 : f32 to vector<4x16xf32>
    %1068 = arith.mulf %1067, %1066 : vector<4x16xf32>
    %1069 = arith.addf %1063, %1068 : vector<4x16xf32>
    %c103 = arith.constant 103 : index
    %1070 = memref.load %arg2[%c103] : memref<294xf32, #tpu.memory_space<smem>>
    %c0_586 = arith.constant 0 : index
    %c0_587 = arith.constant 0 : index
    %c5_588 = arith.constant 5 : index
    %1071 = vector.load %arg6[%c0_586, %c0_587, %c5_588] : memref<2x16x128xf32, #tpu.memory_space<vmem>>, vector<1x4x16xf32>
    %1072 = vector.shape_cast %1071 : vector<1x4x16xf32> to vector<4x16xf32>
    %1073 = vector.broadcast %1070 : f32 to vector<4x16xf32>
    %1074 = arith.mulf %1073, %1072 : vector<4x16xf32>
    %c110 = arith.constant 110 : index
    %1075 = memref.load %arg2[%c110] : memref<294xf32, #tpu.memory_space<smem>>
    %c0_589 = arith.constant 0 : index
    %c1_590 = arith.constant 1 : index
    %c5_591 = arith.constant 5 : index
    %1076 = vector.load %arg6[%c0_589, %c1_590, %c5_591] : memref<2x16x128xf32, #tpu.memory_space<vmem>>, vector<1x4x16xf32>
    %1077 = vector.shape_cast %1076 : vector<1x4x16xf32> to vector<4x16xf32>
    %1078 = vector.broadcast %1075 : f32 to vector<4x16xf32>
    %1079 = arith.mulf %1078, %1077 : vector<4x16xf32>
    %1080 = arith.addf %1074, %1079 : vector<4x16xf32>
    %c117 = arith.constant 117 : index
    %1081 = memref.load %arg2[%c117] : memref<294xf32, #tpu.memory_space<smem>>
    %c0_592 = arith.constant 0 : index
    %c2_593 = arith.constant 2 : index
    %c5_594 = arith.constant 5 : index
    %1082 = vector.load %arg6[%c0_592, %c2_593, %c5_594] : memref<2x16x128xf32, #tpu.memory_space<vmem>>, vector<1x4x16xf32>
    %1083 = vector.shape_cast %1082 : vector<1x4x16xf32> to vector<4x16xf32>
    %1084 = vector.broadcast %1081 : f32 to vector<4x16xf32>
    %1085 = arith.mulf %1084, %1083 : vector<4x16xf32>
    %1086 = arith.addf %1080, %1085 : vector<4x16xf32>
    %c124 = arith.constant 124 : index
    %1087 = memref.load %arg2[%c124] : memref<294xf32, #tpu.memory_space<smem>>
    %c0_595 = arith.constant 0 : index
    %c3_596 = arith.constant 3 : index
    %c5_597 = arith.constant 5 : index
    %1088 = vector.load %arg6[%c0_595, %c3_596, %c5_597] : memref<2x16x128xf32, #tpu.memory_space<vmem>>, vector<1x4x16xf32>
    %1089 = vector.shape_cast %1088 : vector<1x4x16xf32> to vector<4x16xf32>
    %1090 = vector.broadcast %1087 : f32 to vector<4x16xf32>
    %1091 = arith.mulf %1090, %1089 : vector<4x16xf32>
    %1092 = arith.addf %1086, %1091 : vector<4x16xf32>
    %c131 = arith.constant 131 : index
    %1093 = memref.load %arg2[%c131] : memref<294xf32, #tpu.memory_space<smem>>
    %c0_598 = arith.constant 0 : index
    %c4_599 = arith.constant 4 : index
    %c5_600 = arith.constant 5 : index
    %1094 = vector.load %arg6[%c0_598, %c4_599, %c5_600] : memref<2x16x128xf32, #tpu.memory_space<vmem>>, vector<1x4x16xf32>
    %1095 = vector.shape_cast %1094 : vector<1x4x16xf32> to vector<4x16xf32>
    %1096 = vector.broadcast %1093 : f32 to vector<4x16xf32>
    %1097 = arith.mulf %1096, %1095 : vector<4x16xf32>
    %1098 = arith.addf %1092, %1097 : vector<4x16xf32>
    %c138 = arith.constant 138 : index
    %1099 = memref.load %arg2[%c138] : memref<294xf32, #tpu.memory_space<smem>>
    %c0_601 = arith.constant 0 : index
    %c5_602 = arith.constant 5 : index
    %c5_603 = arith.constant 5 : index
    %1100 = vector.load %arg6[%c0_601, %c5_602, %c5_603] : memref<2x16x128xf32, #tpu.memory_space<vmem>>, vector<1x4x16xf32>
    %1101 = vector.shape_cast %1100 : vector<1x4x16xf32> to vector<4x16xf32>
    %1102 = vector.broadcast %1099 : f32 to vector<4x16xf32>
    %1103 = arith.mulf %1102, %1101 : vector<4x16xf32>
    %1104 = arith.addf %1098, %1103 : vector<4x16xf32>
    %c145 = arith.constant 145 : index
    %1105 = memref.load %arg2[%c145] : memref<294xf32, #tpu.memory_space<smem>>
    %c0_604 = arith.constant 0 : index
    %c6_605 = arith.constant 6 : index
    %c5_606 = arith.constant 5 : index
    %1106 = vector.load %arg6[%c0_604, %c6_605, %c5_606] : memref<2x16x128xf32, #tpu.memory_space<vmem>>, vector<1x4x16xf32>
    %1107 = vector.shape_cast %1106 : vector<1x4x16xf32> to vector<4x16xf32>
    %1108 = vector.broadcast %1105 : f32 to vector<4x16xf32>
    %1109 = arith.mulf %1108, %1107 : vector<4x16xf32>
    %1110 = arith.addf %1104, %1109 : vector<4x16xf32>
    %c152 = arith.constant 152 : index
    %1111 = memref.load %arg2[%c152] : memref<294xf32, #tpu.memory_space<smem>>
    %c1_607 = arith.constant 1 : index
    %c0_608 = arith.constant 0 : index
    %c5_609 = arith.constant 5 : index
    %1112 = vector.load %arg6[%c1_607, %c0_608, %c5_609] : memref<2x16x128xf32, #tpu.memory_space<vmem>>, vector<1x4x16xf32>
    %1113 = vector.shape_cast %1112 : vector<1x4x16xf32> to vector<4x16xf32>
    %1114 = vector.broadcast %1111 : f32 to vector<4x16xf32>
    %1115 = arith.mulf %1114, %1113 : vector<4x16xf32>
    %1116 = arith.addf %1110, %1115 : vector<4x16xf32>
    %c159 = arith.constant 159 : index
    %1117 = memref.load %arg2[%c159] : memref<294xf32, #tpu.memory_space<smem>>
    %c1_610 = arith.constant 1 : index
    %c1_611 = arith.constant 1 : index
    %c5_612 = arith.constant 5 : index
    %1118 = vector.load %arg6[%c1_610, %c1_611, %c5_612] : memref<2x16x128xf32, #tpu.memory_space<vmem>>, vector<1x4x16xf32>
    %1119 = vector.shape_cast %1118 : vector<1x4x16xf32> to vector<4x16xf32>
    %1120 = vector.broadcast %1117 : f32 to vector<4x16xf32>
    %1121 = arith.mulf %1120, %1119 : vector<4x16xf32>
    %1122 = arith.addf %1116, %1121 : vector<4x16xf32>
    %c166 = arith.constant 166 : index
    %1123 = memref.load %arg2[%c166] : memref<294xf32, #tpu.memory_space<smem>>
    %c1_613 = arith.constant 1 : index
    %c2_614 = arith.constant 2 : index
    %c5_615 = arith.constant 5 : index
    %1124 = vector.load %arg6[%c1_613, %c2_614, %c5_615] : memref<2x16x128xf32, #tpu.memory_space<vmem>>, vector<1x4x16xf32>
    %1125 = vector.shape_cast %1124 : vector<1x4x16xf32> to vector<4x16xf32>
    %1126 = vector.broadcast %1123 : f32 to vector<4x16xf32>
    %1127 = arith.mulf %1126, %1125 : vector<4x16xf32>
    %1128 = arith.addf %1122, %1127 : vector<4x16xf32>
    %c173 = arith.constant 173 : index
    %1129 = memref.load %arg2[%c173] : memref<294xf32, #tpu.memory_space<smem>>
    %c1_616 = arith.constant 1 : index
    %c3_617 = arith.constant 3 : index
    %c5_618 = arith.constant 5 : index
    %1130 = vector.load %arg6[%c1_616, %c3_617, %c5_618] : memref<2x16x128xf32, #tpu.memory_space<vmem>>, vector<1x4x16xf32>
    %1131 = vector.shape_cast %1130 : vector<1x4x16xf32> to vector<4x16xf32>
    %1132 = vector.broadcast %1129 : f32 to vector<4x16xf32>
    %1133 = arith.mulf %1132, %1131 : vector<4x16xf32>
    %1134 = arith.addf %1128, %1133 : vector<4x16xf32>
    %c180 = arith.constant 180 : index
    %1135 = memref.load %arg2[%c180] : memref<294xf32, #tpu.memory_space<smem>>
    %c1_619 = arith.constant 1 : index
    %c4_620 = arith.constant 4 : index
    %c5_621 = arith.constant 5 : index
    %1136 = vector.load %arg6[%c1_619, %c4_620, %c5_621] : memref<2x16x128xf32, #tpu.memory_space<vmem>>, vector<1x4x16xf32>
    %1137 = vector.shape_cast %1136 : vector<1x4x16xf32> to vector<4x16xf32>
    %1138 = vector.broadcast %1135 : f32 to vector<4x16xf32>
    %1139 = arith.mulf %1138, %1137 : vector<4x16xf32>
    %1140 = arith.addf %1134, %1139 : vector<4x16xf32>
    %c187 = arith.constant 187 : index
    %1141 = memref.load %arg2[%c187] : memref<294xf32, #tpu.memory_space<smem>>
    %c1_622 = arith.constant 1 : index
    %c5_623 = arith.constant 5 : index
    %c5_624 = arith.constant 5 : index
    %1142 = vector.load %arg6[%c1_622, %c5_623, %c5_624] : memref<2x16x128xf32, #tpu.memory_space<vmem>>, vector<1x4x16xf32>
    %1143 = vector.shape_cast %1142 : vector<1x4x16xf32> to vector<4x16xf32>
    %1144 = vector.broadcast %1141 : f32 to vector<4x16xf32>
    %1145 = arith.mulf %1144, %1143 : vector<4x16xf32>
    %1146 = arith.addf %1140, %1145 : vector<4x16xf32>
    %c194 = arith.constant 194 : index
    %1147 = memref.load %arg2[%c194] : memref<294xf32, #tpu.memory_space<smem>>
    %c1_625 = arith.constant 1 : index
    %c6_626 = arith.constant 6 : index
    %c5_627 = arith.constant 5 : index
    %1148 = vector.load %arg6[%c1_625, %c6_626, %c5_627] : memref<2x16x128xf32, #tpu.memory_space<vmem>>, vector<1x4x16xf32>
    %1149 = vector.shape_cast %1148 : vector<1x4x16xf32> to vector<4x16xf32>
    %1150 = vector.broadcast %1147 : f32 to vector<4x16xf32>
    %1151 = arith.mulf %1150, %1149 : vector<4x16xf32>
    %1152 = arith.addf %1146, %1151 : vector<4x16xf32>
    %c104 = arith.constant 104 : index
    %1153 = memref.load %arg2[%c104] : memref<294xf32, #tpu.memory_space<smem>>
    %c0_628 = arith.constant 0 : index
    %c0_629 = arith.constant 0 : index
    %c6_630 = arith.constant 6 : index
    %1154 = vector.load %arg6[%c0_628, %c0_629, %c6_630] : memref<2x16x128xf32, #tpu.memory_space<vmem>>, vector<1x4x16xf32>
    %1155 = vector.shape_cast %1154 : vector<1x4x16xf32> to vector<4x16xf32>
    %1156 = vector.broadcast %1153 : f32 to vector<4x16xf32>
    %1157 = arith.mulf %1156, %1155 : vector<4x16xf32>
    %c111 = arith.constant 111 : index
    %1158 = memref.load %arg2[%c111] : memref<294xf32, #tpu.memory_space<smem>>
    %c0_631 = arith.constant 0 : index
    %c1_632 = arith.constant 1 : index
    %c6_633 = arith.constant 6 : index
    %1159 = vector.load %arg6[%c0_631, %c1_632, %c6_633] : memref<2x16x128xf32, #tpu.memory_space<vmem>>, vector<1x4x16xf32>
    %1160 = vector.shape_cast %1159 : vector<1x4x16xf32> to vector<4x16xf32>
    %1161 = vector.broadcast %1158 : f32 to vector<4x16xf32>
    %1162 = arith.mulf %1161, %1160 : vector<4x16xf32>
    %1163 = arith.addf %1157, %1162 : vector<4x16xf32>
    %c118 = arith.constant 118 : index
    %1164 = memref.load %arg2[%c118] : memref<294xf32, #tpu.memory_space<smem>>
    %c0_634 = arith.constant 0 : index
    %c2_635 = arith.constant 2 : index
    %c6_636 = arith.constant 6 : index
    %1165 = vector.load %arg6[%c0_634, %c2_635, %c6_636] : memref<2x16x128xf32, #tpu.memory_space<vmem>>, vector<1x4x16xf32>
    %1166 = vector.shape_cast %1165 : vector<1x4x16xf32> to vector<4x16xf32>
    %1167 = vector.broadcast %1164 : f32 to vector<4x16xf32>
    %1168 = arith.mulf %1167, %1166 : vector<4x16xf32>
    %1169 = arith.addf %1163, %1168 : vector<4x16xf32>
    %c125 = arith.constant 125 : index
    %1170 = memref.load %arg2[%c125] : memref<294xf32, #tpu.memory_space<smem>>
    %c0_637 = arith.constant 0 : index
    %c3_638 = arith.constant 3 : index
    %c6_639 = arith.constant 6 : index
    %1171 = vector.load %arg6[%c0_637, %c3_638, %c6_639] : memref<2x16x128xf32, #tpu.memory_space<vmem>>, vector<1x4x16xf32>
    %1172 = vector.shape_cast %1171 : vector<1x4x16xf32> to vector<4x16xf32>
    %1173 = vector.broadcast %1170 : f32 to vector<4x16xf32>
    %1174 = arith.mulf %1173, %1172 : vector<4x16xf32>
    %1175 = arith.addf %1169, %1174 : vector<4x16xf32>
    %c132 = arith.constant 132 : index
    %1176 = memref.load %arg2[%c132] : memref<294xf32, #tpu.memory_space<smem>>
    %c0_640 = arith.constant 0 : index
    %c4_641 = arith.constant 4 : index
    %c6_642 = arith.constant 6 : index
    %1177 = vector.load %arg6[%c0_640, %c4_641, %c6_642] : memref<2x16x128xf32, #tpu.memory_space<vmem>>, vector<1x4x16xf32>
    %1178 = vector.shape_cast %1177 : vector<1x4x16xf32> to vector<4x16xf32>
    %1179 = vector.broadcast %1176 : f32 to vector<4x16xf32>
    %1180 = arith.mulf %1179, %1178 : vector<4x16xf32>
    %1181 = arith.addf %1175, %1180 : vector<4x16xf32>
    %c139 = arith.constant 139 : index
    %1182 = memref.load %arg2[%c139] : memref<294xf32, #tpu.memory_space<smem>>
    %c0_643 = arith.constant 0 : index
    %c5_644 = arith.constant 5 : index
    %c6_645 = arith.constant 6 : index
    %1183 = vector.load %arg6[%c0_643, %c5_644, %c6_645] : memref<2x16x128xf32, #tpu.memory_space<vmem>>, vector<1x4x16xf32>
    %1184 = vector.shape_cast %1183 : vector<1x4x16xf32> to vector<4x16xf32>
    %1185 = vector.broadcast %1182 : f32 to vector<4x16xf32>
    %1186 = arith.mulf %1185, %1184 : vector<4x16xf32>
    %1187 = arith.addf %1181, %1186 : vector<4x16xf32>
    %c146 = arith.constant 146 : index
    %1188 = memref.load %arg2[%c146] : memref<294xf32, #tpu.memory_space<smem>>
    %c0_646 = arith.constant 0 : index
    %c6_647 = arith.constant 6 : index
    %c6_648 = arith.constant 6 : index
    %1189 = vector.load %arg6[%c0_646, %c6_647, %c6_648] : memref<2x16x128xf32, #tpu.memory_space<vmem>>, vector<1x4x16xf32>
    %1190 = vector.shape_cast %1189 : vector<1x4x16xf32> to vector<4x16xf32>
    %1191 = vector.broadcast %1188 : f32 to vector<4x16xf32>
    %1192 = arith.mulf %1191, %1190 : vector<4x16xf32>
    %1193 = arith.addf %1187, %1192 : vector<4x16xf32>
    %c153 = arith.constant 153 : index
    %1194 = memref.load %arg2[%c153] : memref<294xf32, #tpu.memory_space<smem>>
    %c1_649 = arith.constant 1 : index
    %c0_650 = arith.constant 0 : index
    %c6_651 = arith.constant 6 : index
    %1195 = vector.load %arg6[%c1_649, %c0_650, %c6_651] : memref<2x16x128xf32, #tpu.memory_space<vmem>>, vector<1x4x16xf32>
    %1196 = vector.shape_cast %1195 : vector<1x4x16xf32> to vector<4x16xf32>
    %1197 = vector.broadcast %1194 : f32 to vector<4x16xf32>
    %1198 = arith.mulf %1197, %1196 : vector<4x16xf32>
    %1199 = arith.addf %1193, %1198 : vector<4x16xf32>
    %c160 = arith.constant 160 : index
    %1200 = memref.load %arg2[%c160] : memref<294xf32, #tpu.memory_space<smem>>
    %c1_652 = arith.constant 1 : index
    %c1_653 = arith.constant 1 : index
    %c6_654 = arith.constant 6 : index
    %1201 = vector.load %arg6[%c1_652, %c1_653, %c6_654] : memref<2x16x128xf32, #tpu.memory_space<vmem>>, vector<1x4x16xf32>
    %1202 = vector.shape_cast %1201 : vector<1x4x16xf32> to vector<4x16xf32>
    %1203 = vector.broadcast %1200 : f32 to vector<4x16xf32>
    %1204 = arith.mulf %1203, %1202 : vector<4x16xf32>
    %1205 = arith.addf %1199, %1204 : vector<4x16xf32>
    %c167 = arith.constant 167 : index
    %1206 = memref.load %arg2[%c167] : memref<294xf32, #tpu.memory_space<smem>>
    %c1_655 = arith.constant 1 : index
    %c2_656 = arith.constant 2 : index
    %c6_657 = arith.constant 6 : index
    %1207 = vector.load %arg6[%c1_655, %c2_656, %c6_657] : memref<2x16x128xf32, #tpu.memory_space<vmem>>, vector<1x4x16xf32>
    %1208 = vector.shape_cast %1207 : vector<1x4x16xf32> to vector<4x16xf32>
    %1209 = vector.broadcast %1206 : f32 to vector<4x16xf32>
    %1210 = arith.mulf %1209, %1208 : vector<4x16xf32>
    %1211 = arith.addf %1205, %1210 : vector<4x16xf32>
    %c174 = arith.constant 174 : index
    %1212 = memref.load %arg2[%c174] : memref<294xf32, #tpu.memory_space<smem>>
    %c1_658 = arith.constant 1 : index
    %c3_659 = arith.constant 3 : index
    %c6_660 = arith.constant 6 : index
    %1213 = vector.load %arg6[%c1_658, %c3_659, %c6_660] : memref<2x16x128xf32, #tpu.memory_space<vmem>>, vector<1x4x16xf32>
    %1214 = vector.shape_cast %1213 : vector<1x4x16xf32> to vector<4x16xf32>
    %1215 = vector.broadcast %1212 : f32 to vector<4x16xf32>
    %1216 = arith.mulf %1215, %1214 : vector<4x16xf32>
    %1217 = arith.addf %1211, %1216 : vector<4x16xf32>
    %c181 = arith.constant 181 : index
    %1218 = memref.load %arg2[%c181] : memref<294xf32, #tpu.memory_space<smem>>
    %c1_661 = arith.constant 1 : index
    %c4_662 = arith.constant 4 : index
    %c6_663 = arith.constant 6 : index
    %1219 = vector.load %arg6[%c1_661, %c4_662, %c6_663] : memref<2x16x128xf32, #tpu.memory_space<vmem>>, vector<1x4x16xf32>
    %1220 = vector.shape_cast %1219 : vector<1x4x16xf32> to vector<4x16xf32>
    %1221 = vector.broadcast %1218 : f32 to vector<4x16xf32>
    %1222 = arith.mulf %1221, %1220 : vector<4x16xf32>
    %1223 = arith.addf %1217, %1222 : vector<4x16xf32>
    %c188 = arith.constant 188 : index
    %1224 = memref.load %arg2[%c188] : memref<294xf32, #tpu.memory_space<smem>>
    %c1_664 = arith.constant 1 : index
    %c5_665 = arith.constant 5 : index
    %c6_666 = arith.constant 6 : index
    %1225 = vector.load %arg6[%c1_664, %c5_665, %c6_666] : memref<2x16x128xf32, #tpu.memory_space<vmem>>, vector<1x4x16xf32>
    %1226 = vector.shape_cast %1225 : vector<1x4x16xf32> to vector<4x16xf32>
    %1227 = vector.broadcast %1224 : f32 to vector<4x16xf32>
    %1228 = arith.mulf %1227, %1226 : vector<4x16xf32>
    %1229 = arith.addf %1223, %1228 : vector<4x16xf32>
    %c195 = arith.constant 195 : index
    %1230 = memref.load %arg2[%c195] : memref<294xf32, #tpu.memory_space<smem>>
    %c1_667 = arith.constant 1 : index
    %c6_668 = arith.constant 6 : index
    %c6_669 = arith.constant 6 : index
    %1231 = vector.load %arg6[%c1_667, %c6_668, %c6_669] : memref<2x16x128xf32, #tpu.memory_space<vmem>>, vector<1x4x16xf32>
    %1232 = vector.shape_cast %1231 : vector<1x4x16xf32> to vector<4x16xf32>
    %1233 = vector.broadcast %1230 : f32 to vector<4x16xf32>
    %1234 = arith.mulf %1233, %1232 : vector<4x16xf32>
    %1235 = arith.addf %1229, %1234 : vector<4x16xf32>
    %1236 = arith.addf %737, %820 : vector<4x16xf32>
    %1237 = arith.addf %903, %986 : vector<4x16xf32>
    %1238 = arith.addf %1236, %1237 : vector<4x16xf32>
    %1239 = arith.addf %1069, %1152 : vector<4x16xf32>
    %1240 = arith.addf %1239, %1235 : vector<4x16xf32>
    %1241 = arith.addf %1238, %1240 : vector<4x16xf32>
    %c1_670 = arith.constant 1 : index
    %1242 = memref.load %arg3[%c1_670] : memref<3xf32, #tpu.memory_space<smem>>
    %1243 = vector.broadcast %1242 : f32 to vector<4x16xf32>
    %1244 = arith.addf %1241, %1243 : vector<4x16xf32>
    %1245 = arith.negf %1244 : vector<4x16xf32>
    %1246 = math.exp %1245 : vector<4x16xf32>
    %cst_671 = arith.constant 1.000000e+00 : f32
    %1247 = vector.broadcast %cst_671 : f32 to vector<4x16xf32>
    %1248 = arith.addf %1247, %1246 : vector<4x16xf32>
    %1249 = arith.divf %1247, %1248 : vector<4x16xf32>
    %c196 = arith.constant 196 : index
    %1250 = memref.load %arg2[%c196] : memref<294xf32, #tpu.memory_space<smem>>
    %c0_672 = arith.constant 0 : index
    %c0_673 = arith.constant 0 : index
    %c0_674 = arith.constant 0 : index
    %1251 = vector.load %arg7[%c0_672, %c0_673, %c0_674] : memref<2x16x128xf32, #tpu.memory_space<vmem>>, vector<1x4x16xf32>
    %1252 = vector.shape_cast %1251 : vector<1x4x16xf32> to vector<4x16xf32>
    %1253 = vector.broadcast %1250 : f32 to vector<4x16xf32>
    %1254 = arith.mulf %1253, %1252 : vector<4x16xf32>
    %c197 = arith.constant 197 : index
    %1255 = memref.load %arg2[%c197] : memref<294xf32, #tpu.memory_space<smem>>
    %c0_675 = arith.constant 0 : index
    %c1_676 = arith.constant 1 : index
    %c0_677 = arith.constant 0 : index
    %1256 = vector.load %arg7[%c0_675, %c1_676, %c0_677] : memref<2x16x128xf32, #tpu.memory_space<vmem>>, vector<1x4x16xf32>
    %1257 = vector.shape_cast %1256 : vector<1x4x16xf32> to vector<4x16xf32>
    %1258 = vector.broadcast %1255 : f32 to vector<4x16xf32>
    %1259 = arith.mulf %1258, %1257 : vector<4x16xf32>
    %1260 = arith.addf %1254, %1259 : vector<4x16xf32>
    %c198 = arith.constant 198 : index
    %1261 = memref.load %arg2[%c198] : memref<294xf32, #tpu.memory_space<smem>>
    %c0_678 = arith.constant 0 : index
    %c2_679 = arith.constant 2 : index
    %c0_680 = arith.constant 0 : index
    %1262 = vector.load %arg7[%c0_678, %c2_679, %c0_680] : memref<2x16x128xf32, #tpu.memory_space<vmem>>, vector<1x4x16xf32>
    %1263 = vector.shape_cast %1262 : vector<1x4x16xf32> to vector<4x16xf32>
    %1264 = vector.broadcast %1261 : f32 to vector<4x16xf32>
    %1265 = arith.mulf %1264, %1263 : vector<4x16xf32>
    %1266 = arith.addf %1260, %1265 : vector<4x16xf32>
    %c199 = arith.constant 199 : index
    %1267 = memref.load %arg2[%c199] : memref<294xf32, #tpu.memory_space<smem>>
    %c0_681 = arith.constant 0 : index
    %c3_682 = arith.constant 3 : index
    %c0_683 = arith.constant 0 : index
    %1268 = vector.load %arg7[%c0_681, %c3_682, %c0_683] : memref<2x16x128xf32, #tpu.memory_space<vmem>>, vector<1x4x16xf32>
    %1269 = vector.shape_cast %1268 : vector<1x4x16xf32> to vector<4x16xf32>
    %1270 = vector.broadcast %1267 : f32 to vector<4x16xf32>
    %1271 = arith.mulf %1270, %1269 : vector<4x16xf32>
    %1272 = arith.addf %1266, %1271 : vector<4x16xf32>
    %c200 = arith.constant 200 : index
    %1273 = memref.load %arg2[%c200] : memref<294xf32, #tpu.memory_space<smem>>
    %c0_684 = arith.constant 0 : index
    %c4_685 = arith.constant 4 : index
    %c0_686 = arith.constant 0 : index
    %1274 = vector.load %arg7[%c0_684, %c4_685, %c0_686] : memref<2x16x128xf32, #tpu.memory_space<vmem>>, vector<1x4x16xf32>
    %1275 = vector.shape_cast %1274 : vector<1x4x16xf32> to vector<4x16xf32>
    %1276 = vector.broadcast %1273 : f32 to vector<4x16xf32>
    %1277 = arith.mulf %1276, %1275 : vector<4x16xf32>
    %1278 = arith.addf %1272, %1277 : vector<4x16xf32>
    %c201 = arith.constant 201 : index
    %1279 = memref.load %arg2[%c201] : memref<294xf32, #tpu.memory_space<smem>>
    %c0_687 = arith.constant 0 : index
    %c5_688 = arith.constant 5 : index
    %c0_689 = arith.constant 0 : index
    %1280 = vector.load %arg7[%c0_687, %c5_688, %c0_689] : memref<2x16x128xf32, #tpu.memory_space<vmem>>, vector<1x4x16xf32>
    %1281 = vector.shape_cast %1280 : vector<1x4x16xf32> to vector<4x16xf32>
    %1282 = vector.broadcast %1279 : f32 to vector<4x16xf32>
    %1283 = arith.mulf %1282, %1281 : vector<4x16xf32>
    %1284 = arith.addf %1278, %1283 : vector<4x16xf32>
    %c202 = arith.constant 202 : index
    %1285 = memref.load %arg2[%c202] : memref<294xf32, #tpu.memory_space<smem>>
    %c0_690 = arith.constant 0 : index
    %c6_691 = arith.constant 6 : index
    %c0_692 = arith.constant 0 : index
    %1286 = vector.load %arg7[%c0_690, %c6_691, %c0_692] : memref<2x16x128xf32, #tpu.memory_space<vmem>>, vector<1x4x16xf32>
    %1287 = vector.shape_cast %1286 : vector<1x4x16xf32> to vector<4x16xf32>
    %1288 = vector.broadcast %1285 : f32 to vector<4x16xf32>
    %1289 = arith.mulf %1288, %1287 : vector<4x16xf32>
    %1290 = arith.addf %1284, %1289 : vector<4x16xf32>
    %c245 = arith.constant 245 : index
    %1291 = memref.load %arg2[%c245] : memref<294xf32, #tpu.memory_space<smem>>
    %c1_693 = arith.constant 1 : index
    %c0_694 = arith.constant 0 : index
    %c0_695 = arith.constant 0 : index
    %1292 = vector.load %arg7[%c1_693, %c0_694, %c0_695] : memref<2x16x128xf32, #tpu.memory_space<vmem>>, vector<1x4x16xf32>
    %1293 = vector.shape_cast %1292 : vector<1x4x16xf32> to vector<4x16xf32>
    %1294 = vector.broadcast %1291 : f32 to vector<4x16xf32>
    %1295 = arith.mulf %1294, %1293 : vector<4x16xf32>
    %1296 = arith.addf %1290, %1295 : vector<4x16xf32>
    %c246 = arith.constant 246 : index
    %1297 = memref.load %arg2[%c246] : memref<294xf32, #tpu.memory_space<smem>>
    %c1_696 = arith.constant 1 : index
    %c1_697 = arith.constant 1 : index
    %c0_698 = arith.constant 0 : index
    %1298 = vector.load %arg7[%c1_696, %c1_697, %c0_698] : memref<2x16x128xf32, #tpu.memory_space<vmem>>, vector<1x4x16xf32>
    %1299 = vector.shape_cast %1298 : vector<1x4x16xf32> to vector<4x16xf32>
    %1300 = vector.broadcast %1297 : f32 to vector<4x16xf32>
    %1301 = arith.mulf %1300, %1299 : vector<4x16xf32>
    %1302 = arith.addf %1296, %1301 : vector<4x16xf32>
    %c247 = arith.constant 247 : index
    %1303 = memref.load %arg2[%c247] : memref<294xf32, #tpu.memory_space<smem>>
    %c1_699 = arith.constant 1 : index
    %c2_700 = arith.constant 2 : index
    %c0_701 = arith.constant 0 : index
    %1304 = vector.load %arg7[%c1_699, %c2_700, %c0_701] : memref<2x16x128xf32, #tpu.memory_space<vmem>>, vector<1x4x16xf32>
    %1305 = vector.shape_cast %1304 : vector<1x4x16xf32> to vector<4x16xf32>
    %1306 = vector.broadcast %1303 : f32 to vector<4x16xf32>
    %1307 = arith.mulf %1306, %1305 : vector<4x16xf32>
    %1308 = arith.addf %1302, %1307 : vector<4x16xf32>
    %c248 = arith.constant 248 : index
    %1309 = memref.load %arg2[%c248] : memref<294xf32, #tpu.memory_space<smem>>
    %c1_702 = arith.constant 1 : index
    %c3_703 = arith.constant 3 : index
    %c0_704 = arith.constant 0 : index
    %1310 = vector.load %arg7[%c1_702, %c3_703, %c0_704] : memref<2x16x128xf32, #tpu.memory_space<vmem>>, vector<1x4x16xf32>
    %1311 = vector.shape_cast %1310 : vector<1x4x16xf32> to vector<4x16xf32>
    %1312 = vector.broadcast %1309 : f32 to vector<4x16xf32>
    %1313 = arith.mulf %1312, %1311 : vector<4x16xf32>
    %1314 = arith.addf %1308, %1313 : vector<4x16xf32>
    %c249 = arith.constant 249 : index
    %1315 = memref.load %arg2[%c249] : memref<294xf32, #tpu.memory_space<smem>>
    %c1_705 = arith.constant 1 : index
    %c4_706 = arith.constant 4 : index
    %c0_707 = arith.constant 0 : index
    %1316 = vector.load %arg7[%c1_705, %c4_706, %c0_707] : memref<2x16x128xf32, #tpu.memory_space<vmem>>, vector<1x4x16xf32>
    %1317 = vector.shape_cast %1316 : vector<1x4x16xf32> to vector<4x16xf32>
    %1318 = vector.broadcast %1315 : f32 to vector<4x16xf32>
    %1319 = arith.mulf %1318, %1317 : vector<4x16xf32>
    %1320 = arith.addf %1314, %1319 : vector<4x16xf32>
    %c250 = arith.constant 250 : index
    %1321 = memref.load %arg2[%c250] : memref<294xf32, #tpu.memory_space<smem>>
    %c1_708 = arith.constant 1 : index
    %c5_709 = arith.constant 5 : index
    %c0_710 = arith.constant 0 : index
    %1322 = vector.load %arg7[%c1_708, %c5_709, %c0_710] : memref<2x16x128xf32, #tpu.memory_space<vmem>>, vector<1x4x16xf32>
    %1323 = vector.shape_cast %1322 : vector<1x4x16xf32> to vector<4x16xf32>
    %1324 = vector.broadcast %1321 : f32 to vector<4x16xf32>
    %1325 = arith.mulf %1324, %1323 : vector<4x16xf32>
    %1326 = arith.addf %1320, %1325 : vector<4x16xf32>
    %c251 = arith.constant 251 : index
    %1327 = memref.load %arg2[%c251] : memref<294xf32, #tpu.memory_space<smem>>
    %c1_711 = arith.constant 1 : index
    %c6_712 = arith.constant 6 : index
    %c0_713 = arith.constant 0 : index
    %1328 = vector.load %arg7[%c1_711, %c6_712, %c0_713] : memref<2x16x128xf32, #tpu.memory_space<vmem>>, vector<1x4x16xf32>
    %1329 = vector.shape_cast %1328 : vector<1x4x16xf32> to vector<4x16xf32>
    %1330 = vector.broadcast %1327 : f32 to vector<4x16xf32>
    %1331 = arith.mulf %1330, %1329 : vector<4x16xf32>
    %1332 = arith.addf %1326, %1331 : vector<4x16xf32>
    %c203 = arith.constant 203 : index
    %1333 = memref.load %arg2[%c203] : memref<294xf32, #tpu.memory_space<smem>>
    %c0_714 = arith.constant 0 : index
    %c0_715 = arith.constant 0 : index
    %c1_716 = arith.constant 1 : index
    %1334 = vector.load %arg7[%c0_714, %c0_715, %c1_716] : memref<2x16x128xf32, #tpu.memory_space<vmem>>, vector<1x4x16xf32>
    %1335 = vector.shape_cast %1334 : vector<1x4x16xf32> to vector<4x16xf32>
    %1336 = vector.broadcast %1333 : f32 to vector<4x16xf32>
    %1337 = arith.mulf %1336, %1335 : vector<4x16xf32>
    %c204 = arith.constant 204 : index
    %1338 = memref.load %arg2[%c204] : memref<294xf32, #tpu.memory_space<smem>>
    %c0_717 = arith.constant 0 : index
    %c1_718 = arith.constant 1 : index
    %c1_719 = arith.constant 1 : index
    %1339 = vector.load %arg7[%c0_717, %c1_718, %c1_719] : memref<2x16x128xf32, #tpu.memory_space<vmem>>, vector<1x4x16xf32>
    %1340 = vector.shape_cast %1339 : vector<1x4x16xf32> to vector<4x16xf32>
    %1341 = vector.broadcast %1338 : f32 to vector<4x16xf32>
    %1342 = arith.mulf %1341, %1340 : vector<4x16xf32>
    %1343 = arith.addf %1337, %1342 : vector<4x16xf32>
    %c205 = arith.constant 205 : index
    %1344 = memref.load %arg2[%c205] : memref<294xf32, #tpu.memory_space<smem>>
    %c0_720 = arith.constant 0 : index
    %c2_721 = arith.constant 2 : index
    %c1_722 = arith.constant 1 : index
    %1345 = vector.load %arg7[%c0_720, %c2_721, %c1_722] : memref<2x16x128xf32, #tpu.memory_space<vmem>>, vector<1x4x16xf32>
    %1346 = vector.shape_cast %1345 : vector<1x4x16xf32> to vector<4x16xf32>
    %1347 = vector.broadcast %1344 : f32 to vector<4x16xf32>
    %1348 = arith.mulf %1347, %1346 : vector<4x16xf32>
    %1349 = arith.addf %1343, %1348 : vector<4x16xf32>
    %c206 = arith.constant 206 : index
    %1350 = memref.load %arg2[%c206] : memref<294xf32, #tpu.memory_space<smem>>
    %c0_723 = arith.constant 0 : index
    %c3_724 = arith.constant 3 : index
    %c1_725 = arith.constant 1 : index
    %1351 = vector.load %arg7[%c0_723, %c3_724, %c1_725] : memref<2x16x128xf32, #tpu.memory_space<vmem>>, vector<1x4x16xf32>
    %1352 = vector.shape_cast %1351 : vector<1x4x16xf32> to vector<4x16xf32>
    %1353 = vector.broadcast %1350 : f32 to vector<4x16xf32>
    %1354 = arith.mulf %1353, %1352 : vector<4x16xf32>
    %1355 = arith.addf %1349, %1354 : vector<4x16xf32>
    %c207 = arith.constant 207 : index
    %1356 = memref.load %arg2[%c207] : memref<294xf32, #tpu.memory_space<smem>>
    %c0_726 = arith.constant 0 : index
    %c4_727 = arith.constant 4 : index
    %c1_728 = arith.constant 1 : index
    %1357 = vector.load %arg7[%c0_726, %c4_727, %c1_728] : memref<2x16x128xf32, #tpu.memory_space<vmem>>, vector<1x4x16xf32>
    %1358 = vector.shape_cast %1357 : vector<1x4x16xf32> to vector<4x16xf32>
    %1359 = vector.broadcast %1356 : f32 to vector<4x16xf32>
    %1360 = arith.mulf %1359, %1358 : vector<4x16xf32>
    %1361 = arith.addf %1355, %1360 : vector<4x16xf32>
    %c208 = arith.constant 208 : index
    %1362 = memref.load %arg2[%c208] : memref<294xf32, #tpu.memory_space<smem>>
    %c0_729 = arith.constant 0 : index
    %c5_730 = arith.constant 5 : index
    %c1_731 = arith.constant 1 : index
    %1363 = vector.load %arg7[%c0_729, %c5_730, %c1_731] : memref<2x16x128xf32, #tpu.memory_space<vmem>>, vector<1x4x16xf32>
    %1364 = vector.shape_cast %1363 : vector<1x4x16xf32> to vector<4x16xf32>
    %1365 = vector.broadcast %1362 : f32 to vector<4x16xf32>
    %1366 = arith.mulf %1365, %1364 : vector<4x16xf32>
    %1367 = arith.addf %1361, %1366 : vector<4x16xf32>
    %c209 = arith.constant 209 : index
    %1368 = memref.load %arg2[%c209] : memref<294xf32, #tpu.memory_space<smem>>
    %c0_732 = arith.constant 0 : index
    %c6_733 = arith.constant 6 : index
    %c1_734 = arith.constant 1 : index
    %1369 = vector.load %arg7[%c0_732, %c6_733, %c1_734] : memref<2x16x128xf32, #tpu.memory_space<vmem>>, vector<1x4x16xf32>
    %1370 = vector.shape_cast %1369 : vector<1x4x16xf32> to vector<4x16xf32>
    %1371 = vector.broadcast %1368 : f32 to vector<4x16xf32>
    %1372 = arith.mulf %1371, %1370 : vector<4x16xf32>
    %1373 = arith.addf %1367, %1372 : vector<4x16xf32>
    %c252 = arith.constant 252 : index
    %1374 = memref.load %arg2[%c252] : memref<294xf32, #tpu.memory_space<smem>>
    %c1_735 = arith.constant 1 : index
    %c0_736 = arith.constant 0 : index
    %c1_737 = arith.constant 1 : index
    %1375 = vector.load %arg7[%c1_735, %c0_736, %c1_737] : memref<2x16x128xf32, #tpu.memory_space<vmem>>, vector<1x4x16xf32>
    %1376 = vector.shape_cast %1375 : vector<1x4x16xf32> to vector<4x16xf32>
    %1377 = vector.broadcast %1374 : f32 to vector<4x16xf32>
    %1378 = arith.mulf %1377, %1376 : vector<4x16xf32>
    %1379 = arith.addf %1373, %1378 : vector<4x16xf32>
    %c253 = arith.constant 253 : index
    %1380 = memref.load %arg2[%c253] : memref<294xf32, #tpu.memory_space<smem>>
    %c1_738 = arith.constant 1 : index
    %c1_739 = arith.constant 1 : index
    %c1_740 = arith.constant 1 : index
    %1381 = vector.load %arg7[%c1_738, %c1_739, %c1_740] : memref<2x16x128xf32, #tpu.memory_space<vmem>>, vector<1x4x16xf32>
    %1382 = vector.shape_cast %1381 : vector<1x4x16xf32> to vector<4x16xf32>
    %1383 = vector.broadcast %1380 : f32 to vector<4x16xf32>
    %1384 = arith.mulf %1383, %1382 : vector<4x16xf32>
    %1385 = arith.addf %1379, %1384 : vector<4x16xf32>
    %c254 = arith.constant 254 : index
    %1386 = memref.load %arg2[%c254] : memref<294xf32, #tpu.memory_space<smem>>
    %c1_741 = arith.constant 1 : index
    %c2_742 = arith.constant 2 : index
    %c1_743 = arith.constant 1 : index
    %1387 = vector.load %arg7[%c1_741, %c2_742, %c1_743] : memref<2x16x128xf32, #tpu.memory_space<vmem>>, vector<1x4x16xf32>
    %1388 = vector.shape_cast %1387 : vector<1x4x16xf32> to vector<4x16xf32>
    %1389 = vector.broadcast %1386 : f32 to vector<4x16xf32>
    %1390 = arith.mulf %1389, %1388 : vector<4x16xf32>
    %1391 = arith.addf %1385, %1390 : vector<4x16xf32>
    %c255 = arith.constant 255 : index
    %1392 = memref.load %arg2[%c255] : memref<294xf32, #tpu.memory_space<smem>>
    %c1_744 = arith.constant 1 : index
    %c3_745 = arith.constant 3 : index
    %c1_746 = arith.constant 1 : index
    %1393 = vector.load %arg7[%c1_744, %c3_745, %c1_746] : memref<2x16x128xf32, #tpu.memory_space<vmem>>, vector<1x4x16xf32>
    %1394 = vector.shape_cast %1393 : vector<1x4x16xf32> to vector<4x16xf32>
    %1395 = vector.broadcast %1392 : f32 to vector<4x16xf32>
    %1396 = arith.mulf %1395, %1394 : vector<4x16xf32>
    %1397 = arith.addf %1391, %1396 : vector<4x16xf32>
    %c256 = arith.constant 256 : index
    %1398 = memref.load %arg2[%c256] : memref<294xf32, #tpu.memory_space<smem>>
    %c1_747 = arith.constant 1 : index
    %c4_748 = arith.constant 4 : index
    %c1_749 = arith.constant 1 : index
    %1399 = vector.load %arg7[%c1_747, %c4_748, %c1_749] : memref<2x16x128xf32, #tpu.memory_space<vmem>>, vector<1x4x16xf32>
    %1400 = vector.shape_cast %1399 : vector<1x4x16xf32> to vector<4x16xf32>
    %1401 = vector.broadcast %1398 : f32 to vector<4x16xf32>
    %1402 = arith.mulf %1401, %1400 : vector<4x16xf32>
    %1403 = arith.addf %1397, %1402 : vector<4x16xf32>
    %c257 = arith.constant 257 : index
    %1404 = memref.load %arg2[%c257] : memref<294xf32, #tpu.memory_space<smem>>
    %c1_750 = arith.constant 1 : index
    %c5_751 = arith.constant 5 : index
    %c1_752 = arith.constant 1 : index
    %1405 = vector.load %arg7[%c1_750, %c5_751, %c1_752] : memref<2x16x128xf32, #tpu.memory_space<vmem>>, vector<1x4x16xf32>
    %1406 = vector.shape_cast %1405 : vector<1x4x16xf32> to vector<4x16xf32>
    %1407 = vector.broadcast %1404 : f32 to vector<4x16xf32>
    %1408 = arith.mulf %1407, %1406 : vector<4x16xf32>
    %1409 = arith.addf %1403, %1408 : vector<4x16xf32>
    %c258 = arith.constant 258 : index
    %1410 = memref.load %arg2[%c258] : memref<294xf32, #tpu.memory_space<smem>>
    %c1_753 = arith.constant 1 : index
    %c6_754 = arith.constant 6 : index
    %c1_755 = arith.constant 1 : index
    %1411 = vector.load %arg7[%c1_753, %c6_754, %c1_755] : memref<2x16x128xf32, #tpu.memory_space<vmem>>, vector<1x4x16xf32>
    %1412 = vector.shape_cast %1411 : vector<1x4x16xf32> to vector<4x16xf32>
    %1413 = vector.broadcast %1410 : f32 to vector<4x16xf32>
    %1414 = arith.mulf %1413, %1412 : vector<4x16xf32>
    %1415 = arith.addf %1409, %1414 : vector<4x16xf32>
    %c210 = arith.constant 210 : index
    %1416 = memref.load %arg2[%c210] : memref<294xf32, #tpu.memory_space<smem>>
    %c0_756 = arith.constant 0 : index
    %c0_757 = arith.constant 0 : index
    %c2_758 = arith.constant 2 : index
    %1417 = vector.load %arg7[%c0_756, %c0_757, %c2_758] : memref<2x16x128xf32, #tpu.memory_space<vmem>>, vector<1x4x16xf32>
    %1418 = vector.shape_cast %1417 : vector<1x4x16xf32> to vector<4x16xf32>
    %1419 = vector.broadcast %1416 : f32 to vector<4x16xf32>
    %1420 = arith.mulf %1419, %1418 : vector<4x16xf32>
    %c211 = arith.constant 211 : index
    %1421 = memref.load %arg2[%c211] : memref<294xf32, #tpu.memory_space<smem>>
    %c0_759 = arith.constant 0 : index
    %c1_760 = arith.constant 1 : index
    %c2_761 = arith.constant 2 : index
    %1422 = vector.load %arg7[%c0_759, %c1_760, %c2_761] : memref<2x16x128xf32, #tpu.memory_space<vmem>>, vector<1x4x16xf32>
    %1423 = vector.shape_cast %1422 : vector<1x4x16xf32> to vector<4x16xf32>
    %1424 = vector.broadcast %1421 : f32 to vector<4x16xf32>
    %1425 = arith.mulf %1424, %1423 : vector<4x16xf32>
    %1426 = arith.addf %1420, %1425 : vector<4x16xf32>
    %c212 = arith.constant 212 : index
    %1427 = memref.load %arg2[%c212] : memref<294xf32, #tpu.memory_space<smem>>
    %c0_762 = arith.constant 0 : index
    %c2_763 = arith.constant 2 : index
    %c2_764 = arith.constant 2 : index
    %1428 = vector.load %arg7[%c0_762, %c2_763, %c2_764] : memref<2x16x128xf32, #tpu.memory_space<vmem>>, vector<1x4x16xf32>
    %1429 = vector.shape_cast %1428 : vector<1x4x16xf32> to vector<4x16xf32>
    %1430 = vector.broadcast %1427 : f32 to vector<4x16xf32>
    %1431 = arith.mulf %1430, %1429 : vector<4x16xf32>
    %1432 = arith.addf %1426, %1431 : vector<4x16xf32>
    %c213 = arith.constant 213 : index
    %1433 = memref.load %arg2[%c213] : memref<294xf32, #tpu.memory_space<smem>>
    %c0_765 = arith.constant 0 : index
    %c3_766 = arith.constant 3 : index
    %c2_767 = arith.constant 2 : index
    %1434 = vector.load %arg7[%c0_765, %c3_766, %c2_767] : memref<2x16x128xf32, #tpu.memory_space<vmem>>, vector<1x4x16xf32>
    %1435 = vector.shape_cast %1434 : vector<1x4x16xf32> to vector<4x16xf32>
    %1436 = vector.broadcast %1433 : f32 to vector<4x16xf32>
    %1437 = arith.mulf %1436, %1435 : vector<4x16xf32>
    %1438 = arith.addf %1432, %1437 : vector<4x16xf32>
    %c214 = arith.constant 214 : index
    %1439 = memref.load %arg2[%c214] : memref<294xf32, #tpu.memory_space<smem>>
    %c0_768 = arith.constant 0 : index
    %c4_769 = arith.constant 4 : index
    %c2_770 = arith.constant 2 : index
    %1440 = vector.load %arg7[%c0_768, %c4_769, %c2_770] : memref<2x16x128xf32, #tpu.memory_space<vmem>>, vector<1x4x16xf32>
    %1441 = vector.shape_cast %1440 : vector<1x4x16xf32> to vector<4x16xf32>
    %1442 = vector.broadcast %1439 : f32 to vector<4x16xf32>
    %1443 = arith.mulf %1442, %1441 : vector<4x16xf32>
    %1444 = arith.addf %1438, %1443 : vector<4x16xf32>
    %c215 = arith.constant 215 : index
    %1445 = memref.load %arg2[%c215] : memref<294xf32, #tpu.memory_space<smem>>
    %c0_771 = arith.constant 0 : index
    %c5_772 = arith.constant 5 : index
    %c2_773 = arith.constant 2 : index
    %1446 = vector.load %arg7[%c0_771, %c5_772, %c2_773] : memref<2x16x128xf32, #tpu.memory_space<vmem>>, vector<1x4x16xf32>
    %1447 = vector.shape_cast %1446 : vector<1x4x16xf32> to vector<4x16xf32>
    %1448 = vector.broadcast %1445 : f32 to vector<4x16xf32>
    %1449 = arith.mulf %1448, %1447 : vector<4x16xf32>
    %1450 = arith.addf %1444, %1449 : vector<4x16xf32>
    %c216 = arith.constant 216 : index
    %1451 = memref.load %arg2[%c216] : memref<294xf32, #tpu.memory_space<smem>>
    %c0_774 = arith.constant 0 : index
    %c6_775 = arith.constant 6 : index
    %c2_776 = arith.constant 2 : index
    %1452 = vector.load %arg7[%c0_774, %c6_775, %c2_776] : memref<2x16x128xf32, #tpu.memory_space<vmem>>, vector<1x4x16xf32>
    %1453 = vector.shape_cast %1452 : vector<1x4x16xf32> to vector<4x16xf32>
    %1454 = vector.broadcast %1451 : f32 to vector<4x16xf32>
    %1455 = arith.mulf %1454, %1453 : vector<4x16xf32>
    %1456 = arith.addf %1450, %1455 : vector<4x16xf32>
    %c259 = arith.constant 259 : index
    %1457 = memref.load %arg2[%c259] : memref<294xf32, #tpu.memory_space<smem>>
    %c1_777 = arith.constant 1 : index
    %c0_778 = arith.constant 0 : index
    %c2_779 = arith.constant 2 : index
    %1458 = vector.load %arg7[%c1_777, %c0_778, %c2_779] : memref<2x16x128xf32, #tpu.memory_space<vmem>>, vector<1x4x16xf32>
    %1459 = vector.shape_cast %1458 : vector<1x4x16xf32> to vector<4x16xf32>
    %1460 = vector.broadcast %1457 : f32 to vector<4x16xf32>
    %1461 = arith.mulf %1460, %1459 : vector<4x16xf32>
    %1462 = arith.addf %1456, %1461 : vector<4x16xf32>
    %c260 = arith.constant 260 : index
    %1463 = memref.load %arg2[%c260] : memref<294xf32, #tpu.memory_space<smem>>
    %c1_780 = arith.constant 1 : index
    %c1_781 = arith.constant 1 : index
    %c2_782 = arith.constant 2 : index
    %1464 = vector.load %arg7[%c1_780, %c1_781, %c2_782] : memref<2x16x128xf32, #tpu.memory_space<vmem>>, vector<1x4x16xf32>
    %1465 = vector.shape_cast %1464 : vector<1x4x16xf32> to vector<4x16xf32>
    %1466 = vector.broadcast %1463 : f32 to vector<4x16xf32>
    %1467 = arith.mulf %1466, %1465 : vector<4x16xf32>
    %1468 = arith.addf %1462, %1467 : vector<4x16xf32>
    %c261 = arith.constant 261 : index
    %1469 = memref.load %arg2[%c261] : memref<294xf32, #tpu.memory_space<smem>>
    %c1_783 = arith.constant 1 : index
    %c2_784 = arith.constant 2 : index
    %c2_785 = arith.constant 2 : index
    %1470 = vector.load %arg7[%c1_783, %c2_784, %c2_785] : memref<2x16x128xf32, #tpu.memory_space<vmem>>, vector<1x4x16xf32>
    %1471 = vector.shape_cast %1470 : vector<1x4x16xf32> to vector<4x16xf32>
    %1472 = vector.broadcast %1469 : f32 to vector<4x16xf32>
    %1473 = arith.mulf %1472, %1471 : vector<4x16xf32>
    %1474 = arith.addf %1468, %1473 : vector<4x16xf32>
    %c262 = arith.constant 262 : index
    %1475 = memref.load %arg2[%c262] : memref<294xf32, #tpu.memory_space<smem>>
    %c1_786 = arith.constant 1 : index
    %c3_787 = arith.constant 3 : index
    %c2_788 = arith.constant 2 : index
    %1476 = vector.load %arg7[%c1_786, %c3_787, %c2_788] : memref<2x16x128xf32, #tpu.memory_space<vmem>>, vector<1x4x16xf32>
    %1477 = vector.shape_cast %1476 : vector<1x4x16xf32> to vector<4x16xf32>
    %1478 = vector.broadcast %1475 : f32 to vector<4x16xf32>
    %1479 = arith.mulf %1478, %1477 : vector<4x16xf32>
    %1480 = arith.addf %1474, %1479 : vector<4x16xf32>
    %c263 = arith.constant 263 : index
    %1481 = memref.load %arg2[%c263] : memref<294xf32, #tpu.memory_space<smem>>
    %c1_789 = arith.constant 1 : index
    %c4_790 = arith.constant 4 : index
    %c2_791 = arith.constant 2 : index
    %1482 = vector.load %arg7[%c1_789, %c4_790, %c2_791] : memref<2x16x128xf32, #tpu.memory_space<vmem>>, vector<1x4x16xf32>
    %1483 = vector.shape_cast %1482 : vector<1x4x16xf32> to vector<4x16xf32>
    %1484 = vector.broadcast %1481 : f32 to vector<4x16xf32>
    %1485 = arith.mulf %1484, %1483 : vector<4x16xf32>
    %1486 = arith.addf %1480, %1485 : vector<4x16xf32>
    %c264 = arith.constant 264 : index
    %1487 = memref.load %arg2[%c264] : memref<294xf32, #tpu.memory_space<smem>>
    %c1_792 = arith.constant 1 : index
    %c5_793 = arith.constant 5 : index
    %c2_794 = arith.constant 2 : index
    %1488 = vector.load %arg7[%c1_792, %c5_793, %c2_794] : memref<2x16x128xf32, #tpu.memory_space<vmem>>, vector<1x4x16xf32>
    %1489 = vector.shape_cast %1488 : vector<1x4x16xf32> to vector<4x16xf32>
    %1490 = vector.broadcast %1487 : f32 to vector<4x16xf32>
    %1491 = arith.mulf %1490, %1489 : vector<4x16xf32>
    %1492 = arith.addf %1486, %1491 : vector<4x16xf32>
    %c265 = arith.constant 265 : index
    %1493 = memref.load %arg2[%c265] : memref<294xf32, #tpu.memory_space<smem>>
    %c1_795 = arith.constant 1 : index
    %c6_796 = arith.constant 6 : index
    %c2_797 = arith.constant 2 : index
    %1494 = vector.load %arg7[%c1_795, %c6_796, %c2_797] : memref<2x16x128xf32, #tpu.memory_space<vmem>>, vector<1x4x16xf32>
    %1495 = vector.shape_cast %1494 : vector<1x4x16xf32> to vector<4x16xf32>
    %1496 = vector.broadcast %1493 : f32 to vector<4x16xf32>
    %1497 = arith.mulf %1496, %1495 : vector<4x16xf32>
    %1498 = arith.addf %1492, %1497 : vector<4x16xf32>
    %c217 = arith.constant 217 : index
    %1499 = memref.load %arg2[%c217] : memref<294xf32, #tpu.memory_space<smem>>
    %c0_798 = arith.constant 0 : index
    %c0_799 = arith.constant 0 : index
    %c3_800 = arith.constant 3 : index
    %1500 = vector.load %arg7[%c0_798, %c0_799, %c3_800] : memref<2x16x128xf32, #tpu.memory_space<vmem>>, vector<1x4x16xf32>
    %1501 = vector.shape_cast %1500 : vector<1x4x16xf32> to vector<4x16xf32>
    %1502 = vector.broadcast %1499 : f32 to vector<4x16xf32>
    %1503 = arith.mulf %1502, %1501 : vector<4x16xf32>
    %c218 = arith.constant 218 : index
    %1504 = memref.load %arg2[%c218] : memref<294xf32, #tpu.memory_space<smem>>
    %c0_801 = arith.constant 0 : index
    %c1_802 = arith.constant 1 : index
    %c3_803 = arith.constant 3 : index
    %1505 = vector.load %arg7[%c0_801, %c1_802, %c3_803] : memref<2x16x128xf32, #tpu.memory_space<vmem>>, vector<1x4x16xf32>
    %1506 = vector.shape_cast %1505 : vector<1x4x16xf32> to vector<4x16xf32>
    %1507 = vector.broadcast %1504 : f32 to vector<4x16xf32>
    %1508 = arith.mulf %1507, %1506 : vector<4x16xf32>
    %1509 = arith.addf %1503, %1508 : vector<4x16xf32>
    %c219 = arith.constant 219 : index
    %1510 = memref.load %arg2[%c219] : memref<294xf32, #tpu.memory_space<smem>>
    %c0_804 = arith.constant 0 : index
    %c2_805 = arith.constant 2 : index
    %c3_806 = arith.constant 3 : index
    %1511 = vector.load %arg7[%c0_804, %c2_805, %c3_806] : memref<2x16x128xf32, #tpu.memory_space<vmem>>, vector<1x4x16xf32>
    %1512 = vector.shape_cast %1511 : vector<1x4x16xf32> to vector<4x16xf32>
    %1513 = vector.broadcast %1510 : f32 to vector<4x16xf32>
    %1514 = arith.mulf %1513, %1512 : vector<4x16xf32>
    %1515 = arith.addf %1509, %1514 : vector<4x16xf32>
    %c220 = arith.constant 220 : index
    %1516 = memref.load %arg2[%c220] : memref<294xf32, #tpu.memory_space<smem>>
    %c0_807 = arith.constant 0 : index
    %c3_808 = arith.constant 3 : index
    %c3_809 = arith.constant 3 : index
    %1517 = vector.load %arg7[%c0_807, %c3_808, %c3_809] : memref<2x16x128xf32, #tpu.memory_space<vmem>>, vector<1x4x16xf32>
    %1518 = vector.shape_cast %1517 : vector<1x4x16xf32> to vector<4x16xf32>
    %1519 = vector.broadcast %1516 : f32 to vector<4x16xf32>
    %1520 = arith.mulf %1519, %1518 : vector<4x16xf32>
    %1521 = arith.addf %1515, %1520 : vector<4x16xf32>
    %c221 = arith.constant 221 : index
    %1522 = memref.load %arg2[%c221] : memref<294xf32, #tpu.memory_space<smem>>
    %c0_810 = arith.constant 0 : index
    %c4_811 = arith.constant 4 : index
    %c3_812 = arith.constant 3 : index
    %1523 = vector.load %arg7[%c0_810, %c4_811, %c3_812] : memref<2x16x128xf32, #tpu.memory_space<vmem>>, vector<1x4x16xf32>
    %1524 = vector.shape_cast %1523 : vector<1x4x16xf32> to vector<4x16xf32>
    %1525 = vector.broadcast %1522 : f32 to vector<4x16xf32>
    %1526 = arith.mulf %1525, %1524 : vector<4x16xf32>
    %1527 = arith.addf %1521, %1526 : vector<4x16xf32>
    %c222 = arith.constant 222 : index
    %1528 = memref.load %arg2[%c222] : memref<294xf32, #tpu.memory_space<smem>>
    %c0_813 = arith.constant 0 : index
    %c5_814 = arith.constant 5 : index
    %c3_815 = arith.constant 3 : index
    %1529 = vector.load %arg7[%c0_813, %c5_814, %c3_815] : memref<2x16x128xf32, #tpu.memory_space<vmem>>, vector<1x4x16xf32>
    %1530 = vector.shape_cast %1529 : vector<1x4x16xf32> to vector<4x16xf32>
    %1531 = vector.broadcast %1528 : f32 to vector<4x16xf32>
    %1532 = arith.mulf %1531, %1530 : vector<4x16xf32>
    %1533 = arith.addf %1527, %1532 : vector<4x16xf32>
    %c223 = arith.constant 223 : index
    %1534 = memref.load %arg2[%c223] : memref<294xf32, #tpu.memory_space<smem>>
    %c0_816 = arith.constant 0 : index
    %c6_817 = arith.constant 6 : index
    %c3_818 = arith.constant 3 : index
    %1535 = vector.load %arg7[%c0_816, %c6_817, %c3_818] : memref<2x16x128xf32, #tpu.memory_space<vmem>>, vector<1x4x16xf32>
    %1536 = vector.shape_cast %1535 : vector<1x4x16xf32> to vector<4x16xf32>
    %1537 = vector.broadcast %1534 : f32 to vector<4x16xf32>
    %1538 = arith.mulf %1537, %1536 : vector<4x16xf32>
    %1539 = arith.addf %1533, %1538 : vector<4x16xf32>
    %c266 = arith.constant 266 : index
    %1540 = memref.load %arg2[%c266] : memref<294xf32, #tpu.memory_space<smem>>
    %c1_819 = arith.constant 1 : index
    %c0_820 = arith.constant 0 : index
    %c3_821 = arith.constant 3 : index
    %1541 = vector.load %arg7[%c1_819, %c0_820, %c3_821] : memref<2x16x128xf32, #tpu.memory_space<vmem>>, vector<1x4x16xf32>
    %1542 = vector.shape_cast %1541 : vector<1x4x16xf32> to vector<4x16xf32>
    %1543 = vector.broadcast %1540 : f32 to vector<4x16xf32>
    %1544 = arith.mulf %1543, %1542 : vector<4x16xf32>
    %1545 = arith.addf %1539, %1544 : vector<4x16xf32>
    %c267 = arith.constant 267 : index
    %1546 = memref.load %arg2[%c267] : memref<294xf32, #tpu.memory_space<smem>>
    %c1_822 = arith.constant 1 : index
    %c1_823 = arith.constant 1 : index
    %c3_824 = arith.constant 3 : index
    %1547 = vector.load %arg7[%c1_822, %c1_823, %c3_824] : memref<2x16x128xf32, #tpu.memory_space<vmem>>, vector<1x4x16xf32>
    %1548 = vector.shape_cast %1547 : vector<1x4x16xf32> to vector<4x16xf32>
    %1549 = vector.broadcast %1546 : f32 to vector<4x16xf32>
    %1550 = arith.mulf %1549, %1548 : vector<4x16xf32>
    %1551 = arith.addf %1545, %1550 : vector<4x16xf32>
    %c268 = arith.constant 268 : index
    %1552 = memref.load %arg2[%c268] : memref<294xf32, #tpu.memory_space<smem>>
    %c1_825 = arith.constant 1 : index
    %c2_826 = arith.constant 2 : index
    %c3_827 = arith.constant 3 : index
    %1553 = vector.load %arg7[%c1_825, %c2_826, %c3_827] : memref<2x16x128xf32, #tpu.memory_space<vmem>>, vector<1x4x16xf32>
    %1554 = vector.shape_cast %1553 : vector<1x4x16xf32> to vector<4x16xf32>
    %1555 = vector.broadcast %1552 : f32 to vector<4x16xf32>
    %1556 = arith.mulf %1555, %1554 : vector<4x16xf32>
    %1557 = arith.addf %1551, %1556 : vector<4x16xf32>
    %c269 = arith.constant 269 : index
    %1558 = memref.load %arg2[%c269] : memref<294xf32, #tpu.memory_space<smem>>
    %c1_828 = arith.constant 1 : index
    %c3_829 = arith.constant 3 : index
    %c3_830 = arith.constant 3 : index
    %1559 = vector.load %arg7[%c1_828, %c3_829, %c3_830] : memref<2x16x128xf32, #tpu.memory_space<vmem>>, vector<1x4x16xf32>
    %1560 = vector.shape_cast %1559 : vector<1x4x16xf32> to vector<4x16xf32>
    %1561 = vector.broadcast %1558 : f32 to vector<4x16xf32>
    %1562 = arith.mulf %1561, %1560 : vector<4x16xf32>
    %1563 = arith.addf %1557, %1562 : vector<4x16xf32>
    %c270 = arith.constant 270 : index
    %1564 = memref.load %arg2[%c270] : memref<294xf32, #tpu.memory_space<smem>>
    %c1_831 = arith.constant 1 : index
    %c4_832 = arith.constant 4 : index
    %c3_833 = arith.constant 3 : index
    %1565 = vector.load %arg7[%c1_831, %c4_832, %c3_833] : memref<2x16x128xf32, #tpu.memory_space<vmem>>, vector<1x4x16xf32>
    %1566 = vector.shape_cast %1565 : vector<1x4x16xf32> to vector<4x16xf32>
    %1567 = vector.broadcast %1564 : f32 to vector<4x16xf32>
    %1568 = arith.mulf %1567, %1566 : vector<4x16xf32>
    %1569 = arith.addf %1563, %1568 : vector<4x16xf32>
    %c271 = arith.constant 271 : index
    %1570 = memref.load %arg2[%c271] : memref<294xf32, #tpu.memory_space<smem>>
    %c1_834 = arith.constant 1 : index
    %c5_835 = arith.constant 5 : index
    %c3_836 = arith.constant 3 : index
    %1571 = vector.load %arg7[%c1_834, %c5_835, %c3_836] : memref<2x16x128xf32, #tpu.memory_space<vmem>>, vector<1x4x16xf32>
    %1572 = vector.shape_cast %1571 : vector<1x4x16xf32> to vector<4x16xf32>
    %1573 = vector.broadcast %1570 : f32 to vector<4x16xf32>
    %1574 = arith.mulf %1573, %1572 : vector<4x16xf32>
    %1575 = arith.addf %1569, %1574 : vector<4x16xf32>
    %c272 = arith.constant 272 : index
    %1576 = memref.load %arg2[%c272] : memref<294xf32, #tpu.memory_space<smem>>
    %c1_837 = arith.constant 1 : index
    %c6_838 = arith.constant 6 : index
    %c3_839 = arith.constant 3 : index
    %1577 = vector.load %arg7[%c1_837, %c6_838, %c3_839] : memref<2x16x128xf32, #tpu.memory_space<vmem>>, vector<1x4x16xf32>
    %1578 = vector.shape_cast %1577 : vector<1x4x16xf32> to vector<4x16xf32>
    %1579 = vector.broadcast %1576 : f32 to vector<4x16xf32>
    %1580 = arith.mulf %1579, %1578 : vector<4x16xf32>
    %1581 = arith.addf %1575, %1580 : vector<4x16xf32>
    %c224 = arith.constant 224 : index
    %1582 = memref.load %arg2[%c224] : memref<294xf32, #tpu.memory_space<smem>>
    %c0_840 = arith.constant 0 : index
    %c0_841 = arith.constant 0 : index
    %c4_842 = arith.constant 4 : index
    %1583 = vector.load %arg7[%c0_840, %c0_841, %c4_842] : memref<2x16x128xf32, #tpu.memory_space<vmem>>, vector<1x4x16xf32>
    %1584 = vector.shape_cast %1583 : vector<1x4x16xf32> to vector<4x16xf32>
    %1585 = vector.broadcast %1582 : f32 to vector<4x16xf32>
    %1586 = arith.mulf %1585, %1584 : vector<4x16xf32>
    %c225 = arith.constant 225 : index
    %1587 = memref.load %arg2[%c225] : memref<294xf32, #tpu.memory_space<smem>>
    %c0_843 = arith.constant 0 : index
    %c1_844 = arith.constant 1 : index
    %c4_845 = arith.constant 4 : index
    %1588 = vector.load %arg7[%c0_843, %c1_844, %c4_845] : memref<2x16x128xf32, #tpu.memory_space<vmem>>, vector<1x4x16xf32>
    %1589 = vector.shape_cast %1588 : vector<1x4x16xf32> to vector<4x16xf32>
    %1590 = vector.broadcast %1587 : f32 to vector<4x16xf32>
    %1591 = arith.mulf %1590, %1589 : vector<4x16xf32>
    %1592 = arith.addf %1586, %1591 : vector<4x16xf32>
    %c226 = arith.constant 226 : index
    %1593 = memref.load %arg2[%c226] : memref<294xf32, #tpu.memory_space<smem>>
    %c0_846 = arith.constant 0 : index
    %c2_847 = arith.constant 2 : index
    %c4_848 = arith.constant 4 : index
    %1594 = vector.load %arg7[%c0_846, %c2_847, %c4_848] : memref<2x16x128xf32, #tpu.memory_space<vmem>>, vector<1x4x16xf32>
    %1595 = vector.shape_cast %1594 : vector<1x4x16xf32> to vector<4x16xf32>
    %1596 = vector.broadcast %1593 : f32 to vector<4x16xf32>
    %1597 = arith.mulf %1596, %1595 : vector<4x16xf32>
    %1598 = arith.addf %1592, %1597 : vector<4x16xf32>
    %c227 = arith.constant 227 : index
    %1599 = memref.load %arg2[%c227] : memref<294xf32, #tpu.memory_space<smem>>
    %c0_849 = arith.constant 0 : index
    %c3_850 = arith.constant 3 : index
    %c4_851 = arith.constant 4 : index
    %1600 = vector.load %arg7[%c0_849, %c3_850, %c4_851] : memref<2x16x128xf32, #tpu.memory_space<vmem>>, vector<1x4x16xf32>
    %1601 = vector.shape_cast %1600 : vector<1x4x16xf32> to vector<4x16xf32>
    %1602 = vector.broadcast %1599 : f32 to vector<4x16xf32>
    %1603 = arith.mulf %1602, %1601 : vector<4x16xf32>
    %1604 = arith.addf %1598, %1603 : vector<4x16xf32>
    %c228 = arith.constant 228 : index
    %1605 = memref.load %arg2[%c228] : memref<294xf32, #tpu.memory_space<smem>>
    %c0_852 = arith.constant 0 : index
    %c4_853 = arith.constant 4 : index
    %c4_854 = arith.constant 4 : index
    %1606 = vector.load %arg7[%c0_852, %c4_853, %c4_854] : memref<2x16x128xf32, #tpu.memory_space<vmem>>, vector<1x4x16xf32>
    %1607 = vector.shape_cast %1606 : vector<1x4x16xf32> to vector<4x16xf32>
    %1608 = vector.broadcast %1605 : f32 to vector<4x16xf32>
    %1609 = arith.mulf %1608, %1607 : vector<4x16xf32>
    %1610 = arith.addf %1604, %1609 : vector<4x16xf32>
    %c229 = arith.constant 229 : index
    %1611 = memref.load %arg2[%c229] : memref<294xf32, #tpu.memory_space<smem>>
    %c0_855 = arith.constant 0 : index
    %c5_856 = arith.constant 5 : index
    %c4_857 = arith.constant 4 : index
    %1612 = vector.load %arg7[%c0_855, %c5_856, %c4_857] : memref<2x16x128xf32, #tpu.memory_space<vmem>>, vector<1x4x16xf32>
    %1613 = vector.shape_cast %1612 : vector<1x4x16xf32> to vector<4x16xf32>
    %1614 = vector.broadcast %1611 : f32 to vector<4x16xf32>
    %1615 = arith.mulf %1614, %1613 : vector<4x16xf32>
    %1616 = arith.addf %1610, %1615 : vector<4x16xf32>
    %c230 = arith.constant 230 : index
    %1617 = memref.load %arg2[%c230] : memref<294xf32, #tpu.memory_space<smem>>
    %c0_858 = arith.constant 0 : index
    %c6_859 = arith.constant 6 : index
    %c4_860 = arith.constant 4 : index
    %1618 = vector.load %arg7[%c0_858, %c6_859, %c4_860] : memref<2x16x128xf32, #tpu.memory_space<vmem>>, vector<1x4x16xf32>
    %1619 = vector.shape_cast %1618 : vector<1x4x16xf32> to vector<4x16xf32>
    %1620 = vector.broadcast %1617 : f32 to vector<4x16xf32>
    %1621 = arith.mulf %1620, %1619 : vector<4x16xf32>
    %1622 = arith.addf %1616, %1621 : vector<4x16xf32>
    %c273 = arith.constant 273 : index
    %1623 = memref.load %arg2[%c273] : memref<294xf32, #tpu.memory_space<smem>>
    %c1_861 = arith.constant 1 : index
    %c0_862 = arith.constant 0 : index
    %c4_863 = arith.constant 4 : index
    %1624 = vector.load %arg7[%c1_861, %c0_862, %c4_863] : memref<2x16x128xf32, #tpu.memory_space<vmem>>, vector<1x4x16xf32>
    %1625 = vector.shape_cast %1624 : vector<1x4x16xf32> to vector<4x16xf32>
    %1626 = vector.broadcast %1623 : f32 to vector<4x16xf32>
    %1627 = arith.mulf %1626, %1625 : vector<4x16xf32>
    %1628 = arith.addf %1622, %1627 : vector<4x16xf32>
    %c274 = arith.constant 274 : index
    %1629 = memref.load %arg2[%c274] : memref<294xf32, #tpu.memory_space<smem>>
    %c1_864 = arith.constant 1 : index
    %c1_865 = arith.constant 1 : index
    %c4_866 = arith.constant 4 : index
    %1630 = vector.load %arg7[%c1_864, %c1_865, %c4_866] : memref<2x16x128xf32, #tpu.memory_space<vmem>>, vector<1x4x16xf32>
    %1631 = vector.shape_cast %1630 : vector<1x4x16xf32> to vector<4x16xf32>
    %1632 = vector.broadcast %1629 : f32 to vector<4x16xf32>
    %1633 = arith.mulf %1632, %1631 : vector<4x16xf32>
    %1634 = arith.addf %1628, %1633 : vector<4x16xf32>
    %c275 = arith.constant 275 : index
    %1635 = memref.load %arg2[%c275] : memref<294xf32, #tpu.memory_space<smem>>
    %c1_867 = arith.constant 1 : index
    %c2_868 = arith.constant 2 : index
    %c4_869 = arith.constant 4 : index
    %1636 = vector.load %arg7[%c1_867, %c2_868, %c4_869] : memref<2x16x128xf32, #tpu.memory_space<vmem>>, vector<1x4x16xf32>
    %1637 = vector.shape_cast %1636 : vector<1x4x16xf32> to vector<4x16xf32>
    %1638 = vector.broadcast %1635 : f32 to vector<4x16xf32>
    %1639 = arith.mulf %1638, %1637 : vector<4x16xf32>
    %1640 = arith.addf %1634, %1639 : vector<4x16xf32>
    %c276 = arith.constant 276 : index
    %1641 = memref.load %arg2[%c276] : memref<294xf32, #tpu.memory_space<smem>>
    %c1_870 = arith.constant 1 : index
    %c3_871 = arith.constant 3 : index
    %c4_872 = arith.constant 4 : index
    %1642 = vector.load %arg7[%c1_870, %c3_871, %c4_872] : memref<2x16x128xf32, #tpu.memory_space<vmem>>, vector<1x4x16xf32>
    %1643 = vector.shape_cast %1642 : vector<1x4x16xf32> to vector<4x16xf32>
    %1644 = vector.broadcast %1641 : f32 to vector<4x16xf32>
    %1645 = arith.mulf %1644, %1643 : vector<4x16xf32>
    %1646 = arith.addf %1640, %1645 : vector<4x16xf32>
    %c277 = arith.constant 277 : index
    %1647 = memref.load %arg2[%c277] : memref<294xf32, #tpu.memory_space<smem>>
    %c1_873 = arith.constant 1 : index
    %c4_874 = arith.constant 4 : index
    %c4_875 = arith.constant 4 : index
    %1648 = vector.load %arg7[%c1_873, %c4_874, %c4_875] : memref<2x16x128xf32, #tpu.memory_space<vmem>>, vector<1x4x16xf32>
    %1649 = vector.shape_cast %1648 : vector<1x4x16xf32> to vector<4x16xf32>
    %1650 = vector.broadcast %1647 : f32 to vector<4x16xf32>
    %1651 = arith.mulf %1650, %1649 : vector<4x16xf32>
    %1652 = arith.addf %1646, %1651 : vector<4x16xf32>
    %c278 = arith.constant 278 : index
    %1653 = memref.load %arg2[%c278] : memref<294xf32, #tpu.memory_space<smem>>
    %c1_876 = arith.constant 1 : index
    %c5_877 = arith.constant 5 : index
    %c4_878 = arith.constant 4 : index
    %1654 = vector.load %arg7[%c1_876, %c5_877, %c4_878] : memref<2x16x128xf32, #tpu.memory_space<vmem>>, vector<1x4x16xf32>
    %1655 = vector.shape_cast %1654 : vector<1x4x16xf32> to vector<4x16xf32>
    %1656 = vector.broadcast %1653 : f32 to vector<4x16xf32>
    %1657 = arith.mulf %1656, %1655 : vector<4x16xf32>
    %1658 = arith.addf %1652, %1657 : vector<4x16xf32>
    %c279 = arith.constant 279 : index
    %1659 = memref.load %arg2[%c279] : memref<294xf32, #tpu.memory_space<smem>>
    %c1_879 = arith.constant 1 : index
    %c6_880 = arith.constant 6 : index
    %c4_881 = arith.constant 4 : index
    %1660 = vector.load %arg7[%c1_879, %c6_880, %c4_881] : memref<2x16x128xf32, #tpu.memory_space<vmem>>, vector<1x4x16xf32>
    %1661 = vector.shape_cast %1660 : vector<1x4x16xf32> to vector<4x16xf32>
    %1662 = vector.broadcast %1659 : f32 to vector<4x16xf32>
    %1663 = arith.mulf %1662, %1661 : vector<4x16xf32>
    %1664 = arith.addf %1658, %1663 : vector<4x16xf32>
    %c231 = arith.constant 231 : index
    %1665 = memref.load %arg2[%c231] : memref<294xf32, #tpu.memory_space<smem>>
    %c0_882 = arith.constant 0 : index
    %c0_883 = arith.constant 0 : index
    %c5_884 = arith.constant 5 : index
    %1666 = vector.load %arg7[%c0_882, %c0_883, %c5_884] : memref<2x16x128xf32, #tpu.memory_space<vmem>>, vector<1x4x16xf32>
    %1667 = vector.shape_cast %1666 : vector<1x4x16xf32> to vector<4x16xf32>
    %1668 = vector.broadcast %1665 : f32 to vector<4x16xf32>
    %1669 = arith.mulf %1668, %1667 : vector<4x16xf32>
    %c232 = arith.constant 232 : index
    %1670 = memref.load %arg2[%c232] : memref<294xf32, #tpu.memory_space<smem>>
    %c0_885 = arith.constant 0 : index
    %c1_886 = arith.constant 1 : index
    %c5_887 = arith.constant 5 : index
    %1671 = vector.load %arg7[%c0_885, %c1_886, %c5_887] : memref<2x16x128xf32, #tpu.memory_space<vmem>>, vector<1x4x16xf32>
    %1672 = vector.shape_cast %1671 : vector<1x4x16xf32> to vector<4x16xf32>
    %1673 = vector.broadcast %1670 : f32 to vector<4x16xf32>
    %1674 = arith.mulf %1673, %1672 : vector<4x16xf32>
    %1675 = arith.addf %1669, %1674 : vector<4x16xf32>
    %c233 = arith.constant 233 : index
    %1676 = memref.load %arg2[%c233] : memref<294xf32, #tpu.memory_space<smem>>
    %c0_888 = arith.constant 0 : index
    %c2_889 = arith.constant 2 : index
    %c5_890 = arith.constant 5 : index
    %1677 = vector.load %arg7[%c0_888, %c2_889, %c5_890] : memref<2x16x128xf32, #tpu.memory_space<vmem>>, vector<1x4x16xf32>
    %1678 = vector.shape_cast %1677 : vector<1x4x16xf32> to vector<4x16xf32>
    %1679 = vector.broadcast %1676 : f32 to vector<4x16xf32>
    %1680 = arith.mulf %1679, %1678 : vector<4x16xf32>
    %1681 = arith.addf %1675, %1680 : vector<4x16xf32>
    %c234 = arith.constant 234 : index
    %1682 = memref.load %arg2[%c234] : memref<294xf32, #tpu.memory_space<smem>>
    %c0_891 = arith.constant 0 : index
    %c3_892 = arith.constant 3 : index
    %c5_893 = arith.constant 5 : index
    %1683 = vector.load %arg7[%c0_891, %c3_892, %c5_893] : memref<2x16x128xf32, #tpu.memory_space<vmem>>, vector<1x4x16xf32>
    %1684 = vector.shape_cast %1683 : vector<1x4x16xf32> to vector<4x16xf32>
    %1685 = vector.broadcast %1682 : f32 to vector<4x16xf32>
    %1686 = arith.mulf %1685, %1684 : vector<4x16xf32>
    %1687 = arith.addf %1681, %1686 : vector<4x16xf32>
    %c235 = arith.constant 235 : index
    %1688 = memref.load %arg2[%c235] : memref<294xf32, #tpu.memory_space<smem>>
    %c0_894 = arith.constant 0 : index
    %c4_895 = arith.constant 4 : index
    %c5_896 = arith.constant 5 : index
    %1689 = vector.load %arg7[%c0_894, %c4_895, %c5_896] : memref<2x16x128xf32, #tpu.memory_space<vmem>>, vector<1x4x16xf32>
    %1690 = vector.shape_cast %1689 : vector<1x4x16xf32> to vector<4x16xf32>
    %1691 = vector.broadcast %1688 : f32 to vector<4x16xf32>
    %1692 = arith.mulf %1691, %1690 : vector<4x16xf32>
    %1693 = arith.addf %1687, %1692 : vector<4x16xf32>
    %c236 = arith.constant 236 : index
    %1694 = memref.load %arg2[%c236] : memref<294xf32, #tpu.memory_space<smem>>
    %c0_897 = arith.constant 0 : index
    %c5_898 = arith.constant 5 : index
    %c5_899 = arith.constant 5 : index
    %1695 = vector.load %arg7[%c0_897, %c5_898, %c5_899] : memref<2x16x128xf32, #tpu.memory_space<vmem>>, vector<1x4x16xf32>
    %1696 = vector.shape_cast %1695 : vector<1x4x16xf32> to vector<4x16xf32>
    %1697 = vector.broadcast %1694 : f32 to vector<4x16xf32>
    %1698 = arith.mulf %1697, %1696 : vector<4x16xf32>
    %1699 = arith.addf %1693, %1698 : vector<4x16xf32>
    %c237 = arith.constant 237 : index
    %1700 = memref.load %arg2[%c237] : memref<294xf32, #tpu.memory_space<smem>>
    %c0_900 = arith.constant 0 : index
    %c6_901 = arith.constant 6 : index
    %c5_902 = arith.constant 5 : index
    %1701 = vector.load %arg7[%c0_900, %c6_901, %c5_902] : memref<2x16x128xf32, #tpu.memory_space<vmem>>, vector<1x4x16xf32>
    %1702 = vector.shape_cast %1701 : vector<1x4x16xf32> to vector<4x16xf32>
    %1703 = vector.broadcast %1700 : f32 to vector<4x16xf32>
    %1704 = arith.mulf %1703, %1702 : vector<4x16xf32>
    %1705 = arith.addf %1699, %1704 : vector<4x16xf32>
    %c280 = arith.constant 280 : index
    %1706 = memref.load %arg2[%c280] : memref<294xf32, #tpu.memory_space<smem>>
    %c1_903 = arith.constant 1 : index
    %c0_904 = arith.constant 0 : index
    %c5_905 = arith.constant 5 : index
    %1707 = vector.load %arg7[%c1_903, %c0_904, %c5_905] : memref<2x16x128xf32, #tpu.memory_space<vmem>>, vector<1x4x16xf32>
    %1708 = vector.shape_cast %1707 : vector<1x4x16xf32> to vector<4x16xf32>
    %1709 = vector.broadcast %1706 : f32 to vector<4x16xf32>
    %1710 = arith.mulf %1709, %1708 : vector<4x16xf32>
    %1711 = arith.addf %1705, %1710 : vector<4x16xf32>
    %c281 = arith.constant 281 : index
    %1712 = memref.load %arg2[%c281] : memref<294xf32, #tpu.memory_space<smem>>
    %c1_906 = arith.constant 1 : index
    %c1_907 = arith.constant 1 : index
    %c5_908 = arith.constant 5 : index
    %1713 = vector.load %arg7[%c1_906, %c1_907, %c5_908] : memref<2x16x128xf32, #tpu.memory_space<vmem>>, vector<1x4x16xf32>
    %1714 = vector.shape_cast %1713 : vector<1x4x16xf32> to vector<4x16xf32>
    %1715 = vector.broadcast %1712 : f32 to vector<4x16xf32>
    %1716 = arith.mulf %1715, %1714 : vector<4x16xf32>
    %1717 = arith.addf %1711, %1716 : vector<4x16xf32>
    %c282 = arith.constant 282 : index
    %1718 = memref.load %arg2[%c282] : memref<294xf32, #tpu.memory_space<smem>>
    %c1_909 = arith.constant 1 : index
    %c2_910 = arith.constant 2 : index
    %c5_911 = arith.constant 5 : index
    %1719 = vector.load %arg7[%c1_909, %c2_910, %c5_911] : memref<2x16x128xf32, #tpu.memory_space<vmem>>, vector<1x4x16xf32>
    %1720 = vector.shape_cast %1719 : vector<1x4x16xf32> to vector<4x16xf32>
    %1721 = vector.broadcast %1718 : f32 to vector<4x16xf32>
    %1722 = arith.mulf %1721, %1720 : vector<4x16xf32>
    %1723 = arith.addf %1717, %1722 : vector<4x16xf32>
    %c283 = arith.constant 283 : index
    %1724 = memref.load %arg2[%c283] : memref<294xf32, #tpu.memory_space<smem>>
    %c1_912 = arith.constant 1 : index
    %c3_913 = arith.constant 3 : index
    %c5_914 = arith.constant 5 : index
    %1725 = vector.load %arg7[%c1_912, %c3_913, %c5_914] : memref<2x16x128xf32, #tpu.memory_space<vmem>>, vector<1x4x16xf32>
    %1726 = vector.shape_cast %1725 : vector<1x4x16xf32> to vector<4x16xf32>
    %1727 = vector.broadcast %1724 : f32 to vector<4x16xf32>
    %1728 = arith.mulf %1727, %1726 : vector<4x16xf32>
    %1729 = arith.addf %1723, %1728 : vector<4x16xf32>
    %c284 = arith.constant 284 : index
    %1730 = memref.load %arg2[%c284] : memref<294xf32, #tpu.memory_space<smem>>
    %c1_915 = arith.constant 1 : index
    %c4_916 = arith.constant 4 : index
    %c5_917 = arith.constant 5 : index
    %1731 = vector.load %arg7[%c1_915, %c4_916, %c5_917] : memref<2x16x128xf32, #tpu.memory_space<vmem>>, vector<1x4x16xf32>
    %1732 = vector.shape_cast %1731 : vector<1x4x16xf32> to vector<4x16xf32>
    %1733 = vector.broadcast %1730 : f32 to vector<4x16xf32>
    %1734 = arith.mulf %1733, %1732 : vector<4x16xf32>
    %1735 = arith.addf %1729, %1734 : vector<4x16xf32>
    %c285 = arith.constant 285 : index
    %1736 = memref.load %arg2[%c285] : memref<294xf32, #tpu.memory_space<smem>>
    %c1_918 = arith.constant 1 : index
    %c5_919 = arith.constant 5 : index
    %c5_920 = arith.constant 5 : index
    %1737 = vector.load %arg7[%c1_918, %c5_919, %c5_920] : memref<2x16x128xf32, #tpu.memory_space<vmem>>, vector<1x4x16xf32>
    %1738 = vector.shape_cast %1737 : vector<1x4x16xf32> to vector<4x16xf32>
    %1739 = vector.broadcast %1736 : f32 to vector<4x16xf32>
    %1740 = arith.mulf %1739, %1738 : vector<4x16xf32>
    %1741 = arith.addf %1735, %1740 : vector<4x16xf32>
    %c286 = arith.constant 286 : index
    %1742 = memref.load %arg2[%c286] : memref<294xf32, #tpu.memory_space<smem>>
    %c1_921 = arith.constant 1 : index
    %c6_922 = arith.constant 6 : index
    %c5_923 = arith.constant 5 : index
    %1743 = vector.load %arg7[%c1_921, %c6_922, %c5_923] : memref<2x16x128xf32, #tpu.memory_space<vmem>>, vector<1x4x16xf32>
    %1744 = vector.shape_cast %1743 : vector<1x4x16xf32> to vector<4x16xf32>
    %1745 = vector.broadcast %1742 : f32 to vector<4x16xf32>
    %1746 = arith.mulf %1745, %1744 : vector<4x16xf32>
    %1747 = arith.addf %1741, %1746 : vector<4x16xf32>
    %c238 = arith.constant 238 : index
    %1748 = memref.load %arg2[%c238] : memref<294xf32, #tpu.memory_space<smem>>
    %c0_924 = arith.constant 0 : index
    %c0_925 = arith.constant 0 : index
    %c6_926 = arith.constant 6 : index
    %1749 = vector.load %arg7[%c0_924, %c0_925, %c6_926] : memref<2x16x128xf32, #tpu.memory_space<vmem>>, vector<1x4x16xf32>
    %1750 = vector.shape_cast %1749 : vector<1x4x16xf32> to vector<4x16xf32>
    %1751 = vector.broadcast %1748 : f32 to vector<4x16xf32>
    %1752 = arith.mulf %1751, %1750 : vector<4x16xf32>
    %c239 = arith.constant 239 : index
    %1753 = memref.load %arg2[%c239] : memref<294xf32, #tpu.memory_space<smem>>
    %c0_927 = arith.constant 0 : index
    %c1_928 = arith.constant 1 : index
    %c6_929 = arith.constant 6 : index
    %1754 = vector.load %arg7[%c0_927, %c1_928, %c6_929] : memref<2x16x128xf32, #tpu.memory_space<vmem>>, vector<1x4x16xf32>
    %1755 = vector.shape_cast %1754 : vector<1x4x16xf32> to vector<4x16xf32>
    %1756 = vector.broadcast %1753 : f32 to vector<4x16xf32>
    %1757 = arith.mulf %1756, %1755 : vector<4x16xf32>
    %1758 = arith.addf %1752, %1757 : vector<4x16xf32>
    %c240 = arith.constant 240 : index
    %1759 = memref.load %arg2[%c240] : memref<294xf32, #tpu.memory_space<smem>>
    %c0_930 = arith.constant 0 : index
    %c2_931 = arith.constant 2 : index
    %c6_932 = arith.constant 6 : index
    %1760 = vector.load %arg7[%c0_930, %c2_931, %c6_932] : memref<2x16x128xf32, #tpu.memory_space<vmem>>, vector<1x4x16xf32>
    %1761 = vector.shape_cast %1760 : vector<1x4x16xf32> to vector<4x16xf32>
    %1762 = vector.broadcast %1759 : f32 to vector<4x16xf32>
    %1763 = arith.mulf %1762, %1761 : vector<4x16xf32>
    %1764 = arith.addf %1758, %1763 : vector<4x16xf32>
    %c241 = arith.constant 241 : index
    %1765 = memref.load %arg2[%c241] : memref<294xf32, #tpu.memory_space<smem>>
    %c0_933 = arith.constant 0 : index
    %c3_934 = arith.constant 3 : index
    %c6_935 = arith.constant 6 : index
    %1766 = vector.load %arg7[%c0_933, %c3_934, %c6_935] : memref<2x16x128xf32, #tpu.memory_space<vmem>>, vector<1x4x16xf32>
    %1767 = vector.shape_cast %1766 : vector<1x4x16xf32> to vector<4x16xf32>
    %1768 = vector.broadcast %1765 : f32 to vector<4x16xf32>
    %1769 = arith.mulf %1768, %1767 : vector<4x16xf32>
    %1770 = arith.addf %1764, %1769 : vector<4x16xf32>
    %c242 = arith.constant 242 : index
    %1771 = memref.load %arg2[%c242] : memref<294xf32, #tpu.memory_space<smem>>
    %c0_936 = arith.constant 0 : index
    %c4_937 = arith.constant 4 : index
    %c6_938 = arith.constant 6 : index
    %1772 = vector.load %arg7[%c0_936, %c4_937, %c6_938] : memref<2x16x128xf32, #tpu.memory_space<vmem>>, vector<1x4x16xf32>
    %1773 = vector.shape_cast %1772 : vector<1x4x16xf32> to vector<4x16xf32>
    %1774 = vector.broadcast %1771 : f32 to vector<4x16xf32>
    %1775 = arith.mulf %1774, %1773 : vector<4x16xf32>
    %1776 = arith.addf %1770, %1775 : vector<4x16xf32>
    %c243 = arith.constant 243 : index
    %1777 = memref.load %arg2[%c243] : memref<294xf32, #tpu.memory_space<smem>>
    %c0_939 = arith.constant 0 : index
    %c5_940 = arith.constant 5 : index
    %c6_941 = arith.constant 6 : index
    %1778 = vector.load %arg7[%c0_939, %c5_940, %c6_941] : memref<2x16x128xf32, #tpu.memory_space<vmem>>, vector<1x4x16xf32>
    %1779 = vector.shape_cast %1778 : vector<1x4x16xf32> to vector<4x16xf32>
    %1780 = vector.broadcast %1777 : f32 to vector<4x16xf32>
    %1781 = arith.mulf %1780, %1779 : vector<4x16xf32>
    %1782 = arith.addf %1776, %1781 : vector<4x16xf32>
    %c244 = arith.constant 244 : index
    %1783 = memref.load %arg2[%c244] : memref<294xf32, #tpu.memory_space<smem>>
    %c0_942 = arith.constant 0 : index
    %c6_943 = arith.constant 6 : index
    %c6_944 = arith.constant 6 : index
    %1784 = vector.load %arg7[%c0_942, %c6_943, %c6_944] : memref<2x16x128xf32, #tpu.memory_space<vmem>>, vector<1x4x16xf32>
    %1785 = vector.shape_cast %1784 : vector<1x4x16xf32> to vector<4x16xf32>
    %1786 = vector.broadcast %1783 : f32 to vector<4x16xf32>
    %1787 = arith.mulf %1786, %1785 : vector<4x16xf32>
    %1788 = arith.addf %1782, %1787 : vector<4x16xf32>
    %c287 = arith.constant 287 : index
    %1789 = memref.load %arg2[%c287] : memref<294xf32, #tpu.memory_space<smem>>
    %c1_945 = arith.constant 1 : index
    %c0_946 = arith.constant 0 : index
    %c6_947 = arith.constant 6 : index
    %1790 = vector.load %arg7[%c1_945, %c0_946, %c6_947] : memref<2x16x128xf32, #tpu.memory_space<vmem>>, vector<1x4x16xf32>
    %1791 = vector.shape_cast %1790 : vector<1x4x16xf32> to vector<4x16xf32>
    %1792 = vector.broadcast %1789 : f32 to vector<4x16xf32>
    %1793 = arith.mulf %1792, %1791 : vector<4x16xf32>
    %1794 = arith.addf %1788, %1793 : vector<4x16xf32>
    %c288 = arith.constant 288 : index
    %1795 = memref.load %arg2[%c288] : memref<294xf32, #tpu.memory_space<smem>>
    %c1_948 = arith.constant 1 : index
    %c1_949 = arith.constant 1 : index
    %c6_950 = arith.constant 6 : index
    %1796 = vector.load %arg7[%c1_948, %c1_949, %c6_950] : memref<2x16x128xf32, #tpu.memory_space<vmem>>, vector<1x4x16xf32>
    %1797 = vector.shape_cast %1796 : vector<1x4x16xf32> to vector<4x16xf32>
    %1798 = vector.broadcast %1795 : f32 to vector<4x16xf32>
    %1799 = arith.mulf %1798, %1797 : vector<4x16xf32>
    %1800 = arith.addf %1794, %1799 : vector<4x16xf32>
    %c289 = arith.constant 289 : index
    %1801 = memref.load %arg2[%c289] : memref<294xf32, #tpu.memory_space<smem>>
    %c1_951 = arith.constant 1 : index
    %c2_952 = arith.constant 2 : index
    %c6_953 = arith.constant 6 : index
    %1802 = vector.load %arg7[%c1_951, %c2_952, %c6_953] : memref<2x16x128xf32, #tpu.memory_space<vmem>>, vector<1x4x16xf32>
    %1803 = vector.shape_cast %1802 : vector<1x4x16xf32> to vector<4x16xf32>
    %1804 = vector.broadcast %1801 : f32 to vector<4x16xf32>
    %1805 = arith.mulf %1804, %1803 : vector<4x16xf32>
    %1806 = arith.addf %1800, %1805 : vector<4x16xf32>
    %c290 = arith.constant 290 : index
    %1807 = memref.load %arg2[%c290] : memref<294xf32, #tpu.memory_space<smem>>
    %c1_954 = arith.constant 1 : index
    %c3_955 = arith.constant 3 : index
    %c6_956 = arith.constant 6 : index
    %1808 = vector.load %arg7[%c1_954, %c3_955, %c6_956] : memref<2x16x128xf32, #tpu.memory_space<vmem>>, vector<1x4x16xf32>
    %1809 = vector.shape_cast %1808 : vector<1x4x16xf32> to vector<4x16xf32>
    %1810 = vector.broadcast %1807 : f32 to vector<4x16xf32>
    %1811 = arith.mulf %1810, %1809 : vector<4x16xf32>
    %1812 = arith.addf %1806, %1811 : vector<4x16xf32>
    %c291 = arith.constant 291 : index
    %1813 = memref.load %arg2[%c291] : memref<294xf32, #tpu.memory_space<smem>>
    %c1_957 = arith.constant 1 : index
    %c4_958 = arith.constant 4 : index
    %c6_959 = arith.constant 6 : index
    %1814 = vector.load %arg7[%c1_957, %c4_958, %c6_959] : memref<2x16x128xf32, #tpu.memory_space<vmem>>, vector<1x4x16xf32>
    %1815 = vector.shape_cast %1814 : vector<1x4x16xf32> to vector<4x16xf32>
    %1816 = vector.broadcast %1813 : f32 to vector<4x16xf32>
    %1817 = arith.mulf %1816, %1815 : vector<4x16xf32>
    %1818 = arith.addf %1812, %1817 : vector<4x16xf32>
    %c292 = arith.constant 292 : index
    %1819 = memref.load %arg2[%c292] : memref<294xf32, #tpu.memory_space<smem>>
    %c1_960 = arith.constant 1 : index
    %c5_961 = arith.constant 5 : index
    %c6_962 = arith.constant 6 : index
    %1820 = vector.load %arg7[%c1_960, %c5_961, %c6_962] : memref<2x16x128xf32, #tpu.memory_space<vmem>>, vector<1x4x16xf32>
    %1821 = vector.shape_cast %1820 : vector<1x4x16xf32> to vector<4x16xf32>
    %1822 = vector.broadcast %1819 : f32 to vector<4x16xf32>
    %1823 = arith.mulf %1822, %1821 : vector<4x16xf32>
    %1824 = arith.addf %1818, %1823 : vector<4x16xf32>
    %c293 = arith.constant 293 : index
    %1825 = memref.load %arg2[%c293] : memref<294xf32, #tpu.memory_space<smem>>
    %c1_963 = arith.constant 1 : index
    %c6_964 = arith.constant 6 : index
    %c6_965 = arith.constant 6 : index
    %1826 = vector.load %arg7[%c1_963, %c6_964, %c6_965] : memref<2x16x128xf32, #tpu.memory_space<vmem>>, vector<1x4x16xf32>
    %1827 = vector.shape_cast %1826 : vector<1x4x16xf32> to vector<4x16xf32>
    %1828 = vector.broadcast %1825 : f32 to vector<4x16xf32>
    %1829 = arith.mulf %1828, %1827 : vector<4x16xf32>
    %1830 = arith.addf %1824, %1829 : vector<4x16xf32>
    %1831 = arith.addf %1332, %1415 : vector<4x16xf32>
    %1832 = arith.addf %1498, %1581 : vector<4x16xf32>
    %1833 = arith.addf %1831, %1832 : vector<4x16xf32>
    %1834 = arith.addf %1664, %1747 : vector<4x16xf32>
    %1835 = arith.addf %1834, %1830 : vector<4x16xf32>
    %1836 = arith.addf %1833, %1835 : vector<4x16xf32>
    %c2_966 = arith.constant 2 : index
    %1837 = memref.load %arg3[%c2_966] : memref<3xf32, #tpu.memory_space<smem>>
    %1838 = vector.broadcast %1837 : f32 to vector<4x16xf32>
    %1839 = arith.addf %1836, %1838 : vector<4x16xf32>
    %1840 = arith.negf %1839 : vector<4x16xf32>
    %1841 = math.exp %1840 : vector<4x16xf32>
    %cst_967 = arith.constant 1.000000e+00 : f32
    %1842 = vector.broadcast %cst_967 : f32 to vector<4x16xf32>
    %1843 = arith.addf %1842, %1841 : vector<4x16xf32>
    %1844 = arith.divf %1842, %1843 : vector<4x16xf32>
    %c0_968 = arith.constant 0 : index
    %c0_969 = arith.constant 0 : index
    %c0_970 = arith.constant 0 : index
    %c0_971 = arith.constant 0 : index
    %1845 = vector.load %arg1[%c0_968, %c0_969, %c0_970, %c0_971] : memref<1x4x16x16xf32, #tpu.memory_space<vmem>>, vector<1x4x16x16xf32>
    %1846 = vector.shape_cast %1845 : vector<1x4x16x16xf32> to vector<4x16x16xf32>
    %1847 = vector.shape_cast %654 : vector<16x16xf32> to vector<1x16x16xf32>
    %1848 = vector.shape_cast %1249 : vector<4x16xf32> to vector<4x1x16xf32>
    %1849 = vector.broadcast %1847 : vector<1x16x16xf32> to vector<4x16x16xf32>
    %1850 = vector.broadcast %1848 : vector<4x1x16xf32> to vector<4x16x16xf32>
    %1851 = arith.addf %1849, %1850 : vector<4x16x16xf32>
    %1852 = vector.shape_cast %1844 : vector<4x16xf32> to vector<4x16x1xf32>
    %1853 = vector.broadcast %1852 : vector<4x16x1xf32> to vector<4x16x16xf32>
    %1854 = arith.addf %1851, %1853 : vector<4x16x16xf32>
    %1855 = arith.mulf %1846, %1854 : vector<4x16x16xf32>
    %cst_972 = arith.constant 0.333333343 : f32
    %1856 = vector.broadcast %cst_972 : f32 to vector<4x16x16xf32>
    %1857 = arith.mulf %1855, %1856 : vector<4x16x16xf32>
    %c0_973 = arith.constant 0 : index
    %c0_974 = arith.constant 0 : index
    %c0_975 = arith.constant 0 : index
    %c0_976 = arith.constant 0 : index
    %1858 = vector.load %arg4[%c0_973, %c0_974, %c0_975, %c0_976] : memref<1x4x16x16xf32, #tpu.memory_space<vmem>>, vector<1x4x16x16xf32>
    %1859 = vector.shape_cast %1858 : vector<1x4x16x16xf32> to vector<4x16x16xf32>
    %1860 = vector.shape_cast %1857 : vector<4x16x16xf32> to vector<1x4x16x16xf32>
    tpu.vector_store %arg4[%c0_973, %c0_974, %c0_975, %c0_976], %1860 {strides = array<i32>} : memref<1x4x16x16xf32, #tpu.memory_space<vmem>>, vector<1x4x16x16xf32>,
    return
  }
  func.func @transform_0(%arg0: i32) -> (i32, i32, i32, i32) {
    %c0_i32 = arith.constant 0 : i32
    %c0_i32_0 = arith.constant 0 : i32
    %c0_i32_1 = arith.constant 0 : i32
    %c0_i32_2 = arith.constant 0 : i32
    return %arg0, %c0_i32, %c0_i32_0, %c0_i32_1 : i32, i32, i32, i32
  }
  func.func @transform_1(%arg0: i32) -> i32 {
    %c0_i32 = arith.constant 0 : i32
    %c0_i32_0 = arith.constant 0 : i32
    return %c0_i32 : i32
  }
  func.func @transform_2(%arg0: i32) -> i32 {
    %c0_i32 = arith.constant 0 : i32
    %c0_i32_0 = arith.constant 0 : i32
    return %c0_i32 : i32
  }
  func.func @transform_3(%arg0: i32) -> (i32, i32, i32, i32) {
    %c0_i32 = arith.constant 0 : i32
    %c0_i32_0 = arith.constant 0 : i32
    %c0_i32_1 = arith.constant 0 : i32
    %c0_i32_2 = arith.constant 0 : i32
    return %arg0, %c0_i32, %c0_i32_0, %c0_i32_1 : i32, i32, i32, i32
  }
}

</mosaic_0001>

<bundles_post_ra>
// kernel: _triple_attention_impl.1
= control target key start
LH: loop header
LB: loop body
LE: loop exit
PB: predicated region body
PF: predicated region fallthrough
CT: control target
= control target key end

     0   :  { %s5220_s0 = inlined_call_operand.vmem [shape: f32[2,4,16,16], index: 0, kind: input, shape index: {}]   ;;  %s5221_s1 = inlined_call_operand.vmem [shape: f32[294], index: 1, kind: input, shape index: {}]   ;;  %s5222_s2 = inlined_call_operand.vmem [shape: f32[3], index: 2, kind: input, shape index: {}]   ;;  %s5223_s3 = inlined_call_operand.hbm [shape: f32[2,4,16,16], index: 3, kind: output, shape index: {}]  }
   0x1   :  { %5450 = sst [smem:[#allocation148_spill]] %s5220_s0 }
   0x2   :  { %5451 = sst [smem:[#allocation149_spill]] %s5221_s1 }
   0x3   :  { %5452 = sst [smem:[#allocation150_spill]] %s5222_s2 }
   0x4   :  { %5453 = sst [smem:[#allocation151_spill]] %s5223_s3 }
   0x5   :  { %8 = vsyncpa [#allocation7], 0 }
   0x6   :  { %9 = vsyncpa [#allocation9], 0 }
   0x7   :  { %10 = vsyncpa [#allocation6], 0 }
   0x8   :  { %12 = vsyncpa [#allocation6 + $0x1], 0  ;;  %s2905_s12 = smov 0   ;;  %s2907_s13 = smov 0  }
   0x9   :  { %s2909_s14 = smov 0   ;;  %s2911_s15 = smov 0  }
   0xa LB: > { %5454 = sst [smem:[#allocation14_spill]] %s2860_s12  ;;  %s2926_s16 = sadd.s32 4294967295, %s2872_s15   ;;  %s2872_s15 = sphi %s2911_s15, %s6051_s15   ;;  %s2868_s14 = sphi %s2909_s14, %s6054_s14   ;;  %s2864_s13 = sphi %s2907_s13, %s6053_s13   ;;  %s2860_s12 = sphi %s2905_s12, %s6052_s12  }
   0xb   : > { %5455 = sst [smem:[#allocation15_spill]] %s2864_s13  ;;  %s2312_s17 = sadd.s32 4294967294, %s2872_s15  }
   0xc   : > { %5456 = sst [smem:[#allocation16_spill]] %s2868_s14  ;;  %s2930_s18 = sadd.s32 1, %s2872_s15  }
   0xd   : > { %5457 = sst [smem:[#allocation17_spill]] %s2872_s15  ;;  %s93_s19 = sadd.s32 1, %s2868_s14 }
   0xe   : > { %5458 = sst [smem:[#allocation18_spill]] %s2926_s16  ;;  %s90_s20 = ssub.s32 %s2872_s15, %s2930_s18 }
   0xf   : > { %5459 = sst [smem:[#allocation19_spill]] %s2930_s18  ;;  %p103_p0 = scmp.ne.s32.totalorder %s2868_s14, %s2864_s13 }
  0x10   : > { %p91_p1 = scmp.eq.s32.totalorder %s90_s20, 0  ;;  %p104_p2 = scmp.eq.s32.totalorder %s2926_s16, 1 }
  0x11   : > { %p109_p3 = scmp.ne.s32.totalorder %s2864_s13, %s2860_s12  ;;  %p110_p4 = scmp.eq.s32.totalorder %s2312_s17, 1 }
  0x12   : > { %s2941_s21 = scalar_select %p91_p1, %s2868_s14, %s93_s19  }
  0x13   : > { %p2943_p5 = por %p104_p2, %p103_p0  ;;  %p2947_p6 = por %p110_p4, %p109_p3 }
  0x14   : > { %5460 = sst [smem:[#allocation20_spill]] %s2941_s21  ;;  %p2313_p7 = scmp.ge.s32.totalorder %s2872_s15, 1 }
  0x15   : > { %s5461_s22 = scalar_select %p2943_p5, 1, 0 }
  0x16   : > { %s5463_s23 = scalar_select %p2947_p6, 1, 0 }
  0x17   : > { %5462 = sst [smem:[#allocation21_spill]] %s5461_s22  ;;  %p117_p8 = scmp.lt.s32.totalorder %s2872_s15, 3 }
  0x18   : > { %5464 = sst [smem:[#allocation22_spill]] %s5463_s23  ;;  %p5224_p9 = scmp.eq.s32.totalorder %s2926_s16, 0 }
  0x19   : > { %p2954_p10 = pnand %p2313_p7, %p117_p8  ;;  %s5466_s1 = sld [smem:[#allocation149_spill]] }
  0x1a   : > { %s5467_s2 = sld [smem:[#allocation150_spill]] }
  0x1b   : > { %s5465_s24 = scalar_select %p2954_p10, 1, 0 }
  0x1c   : > { %p2639_p11 = pneg %p2954_p10 }
  0x1e   : > { %p2968_p12 = pnand %p5224_p9, %p2639_p11 }
  0x1f   : > { %s130_s27 = sshll.u32 %s5466_s1, 4  ;;  %s131_s27 = int_to_ptr.vmem [resolvable:$true] %s130_s27 }
  0x20   : > { %s141_s30 = sshll.u32 %s5467_s2, 4  ;;  %s2774_s5 = scalar_lea.vmem %s131_s27, 48  ;;  %s142_s30 = int_to_ptr.vmem [resolvable:$true] %s141_s30 }
  0x21   : > { %p2775_p13 = scmp.ne.s32.totalorder %s131_s27, %s2774_s5  ;;  %p2776_p0 = pneg %p2968_p12 }
  0x22   : > { %s2781_s6 = scalar_lea.vmem %s131_s27, 64  ;;  %p2782_p3 = scmp.lt.s32.totalorder %s131_s27, %s131_s27 }
  0x23   : > { %p2777_p1 = pnand %p2776_p0, %p2775_p13  ;;  %p2783_p4 = scmp.lt.s32.totalorder %s2781_s6, %s2774_s5 }
  0x25   : > { %p2778_p2 = pneg %p2777_p1  ;;  %p2784_p7 = por %p2783_p4, %p2782_p3 }
  0x27   : > { %p2785_p8 = pnand %p2784_p7, %p2778_p2 }
  0x29   : > { %2788 = shalt.err (!%p2785_p8)
}
  0x2a   : > { %s2874_s7 = smov [#allocation5]   ;;  %s2789_s8 = scalar_lea.vmem %s142_s30, 16 }
  0x2b   : > { %2642 = dma.vmem_to_smem (!%p2968_p12), %s131_s27, 48, %s2874_s7, [#allocation7]  }
  0x2c   : > { %p2790_p11 = scmp.ne.s32.totalorder %s142_s30, %s2789_s8  ;;  %p2797_p5 = scmp.lt.s32.totalorder %s142_s30, %s142_s30 }
  0x2d   : > { %p2798_p13 = scmp.lt.s32.totalorder %s2789_s8, %s2789_s8 }
  0x2e   : > { %p2792_p9 = pnand %p2790_p11, %p2776_p0 }
  0x2f   : > { %p2799_p1 = por %p2798_p13, %p2797_p5 }
  0x30   : > { %p2793_p6 = pneg %p2792_p9 }
  0x32   : > { %p2800_p10 = pnand %p2799_p1, %p2793_p6 }
  0x34   : > { %2803 = shalt.err (!%p2800_p10)
}
  0x35   : > { %s2875_s9 = smov [#allocation8]   ;;  %p5469_p2 = scmp.ne.s32.totalorder %s5465_s24, 0 }
  0x36   : > { %2645 = dma.vmem_to_smem (!%p2968_p12), %s142_s30, 16, %s2875_s9, [#allocation9]  }
  0x37   : > { %162 = sbr.rel (%p5469_p2) target bundleno = 856 (0x358), region = 32 }
  0x3c   : > { %p5470_p3 = scmp.eq.s32.totalorder %s2926_s16, 0 }
  0x3e   : > { %2847 = dma.done.wait (%p5470_p3), [#allocation7], 48   ;;  %p5471_p4 = pmov %p5470_p3 }
  0x3f   : > { %p5472_p9 = pmov %p5470_p3 }
  0x40   : > { %2849 = vsyncadd (%p5471_p4), [#allocation7], 4294967248 }
  0x41   : > { %2851 = dma.done.wait (%p5472_p9), [#allocation9], 16   ;;  %p5473_p5 = pmov %p5470_p3 }
  0x43   : > { %2853 = vsyncadd (%p5473_p5), [#allocation9], 4294967280 }
  0x44   : > { %172 = sfence }
  0x45   : > { %p191_p6 = scmp.lt.s32.totalorder %s2926_s16, 1  ;;  %vm237_vm0 = vcmask 130048   ;;  %s5474_s0 = sld [smem:[#allocation148_spill]]  ;;  %vm215_vm1 = vcmask 19456   ;;  %v2876_v48 = vmov 0.0   ;;  %vm218_vm2 = vcmask 175256  }
  0x46   : > { %216 = vst.msk [vmem:[#allocation3 + $0x3] sm:$0xf] %vm215_vm1, %v2876_v48  ;;  %225 = vst.msk [vmem:[#allocation4 + $0x3] sm:$0xf] %vm215_vm1, %v2876_v48  ;;  %vm196_vm3 = vcmask 174080   ;;  %vm300_vm4 = vcmask 1041409  }
  0x47   : > { %s192_s10 = scalar_select %p191_p6, %s2926_s16, 1  ;;  %226 = vst.msk [vmem:[#allocation4 + $0x13] sm:$0xf] %vm215_vm1, %v2876_v48  ;;  %217 = vst.msk [vmem:[#allocation3 + $0x13] sm:$0xf] %vm215_vm1, %v2876_v48  ;;  %vm302_vm5 = vcmask 1042434  }
  0x48   : > { %219 = vst.msk [vmem:[#allocation3 + $0x3] sm:$0xf] %vm218_vm2, %v2876_v48  ;;  %227 = vst.msk [vmem:[#allocation4 + $0x3] sm:$0xf] %vm218_vm2, %v2876_v48  ;;  %s3127_s24 = sld [smem:[#allocation5 + $0xd9]]  ;;  %vm201_vm6 = vcmask 23552  }
  0x49   : > { %s2627_s11 = sshll.u32 %s192_s10, 6  ;;  %228 = vst.msk [vmem:[#allocation4 + $0x13] sm:$0xf] %vm218_vm2, %v2876_v48  ;;  %220 = vst.msk [vmem:[#allocation3 + $0x13] sm:$0xf] %vm218_vm2, %v2876_v48  ;;  %s3129_s25 = sld [smem:[#allocation5 + $0xda]] }
  0x4a   : > { %211 = vst.msk [vmem:[#allocation3] sm:$0x7] %vm196_vm3, %v2876_v48  ;;  %213 = vst.msk [vmem:[#allocation3 + $0x7] sm:$0x7] %vm196_vm3, %v2876_v48  ;;  %s3133_s26 = sld [smem:[#allocation5 + $0xdb]]  ;;  %vm304_vm7 = vcmask 1043459  }
  0x4b   : > { %s2999_s20 = scalar_lea.vmem %s5474_s0, %s2627_s11  ;;  %221 = vst.msk [vmem:[#allocation4] sm:$0x7] %vm196_vm3, %v2876_v48  ;;  %197 = vst.msk [vmem:[#allocation2] sm:$0x7] %vm196_vm3, %v2876_v48  ;;  %s3140_s27 = sld [smem:[#allocation5 + $0xdc]]  ;;  %vm206_vm8 = vcmask 179352  }
  0x4c   : > { %5475 = sst [smem:[#allocation23_spill]] %s2999_s20  ;;  %v231_v0 = vld [vmem:[%s2999_s20 + $0x10] sm:$0xff]  ;;  %v229_v1 = vld [vmem:[%s2999_s20] sm:$0xff]  ;;  %v232_v2 = vld [vmem:[%s2999_s20 + $0x18] sm:$0xff]  ;;  %198 = vst.msk [vmem:[#allocation2 + $0x18] sm:$0x7] %vm196_vm3, %v2876_v48 }
  0x4d   : > { %v3005_v3 = vsel %vm237_vm0, %v231_v0, -inf  ;;  %v3008_v4 = vsel %vm237_vm0, %v229_v1, -inf  ;;  %v230_v5 = vld [vmem:[%s2999_s20 + $0x8] sm:$0xff]  ;;  %v3014_v6 = vsel %vm237_vm0, %v232_v2, -inf  ;;  %v233_v9 = vld [vmem:[%s2999_s20 + $0x20] sm:$0xff]  ;;  %v236_v12 = vld [vmem:[%s2999_s20 + $0x38] sm:$0xff] }
  0x4e   : > { %359 = vmax.xlane.f32.xlu1 %v3005_v3  ;;  %355 = vmax.xlane.f32.xlu0 %v3008_v4  ;;  %v3017_v7 = vsel %vm237_vm0, %v230_v5, -inf  ;;  %v234_v8 = vld [vmem:[%s2999_s20 + $0x28] sm:$0xff]  ;;  %v3027_v11 = vsel %vm237_vm0, %v233_v9, -inf  ;;  %v235_v13 = vld [vmem:[%s2999_s20 + $0x30] sm:$0xff]  ;;  %v3034_v14 = vsel %vm237_vm0, %v236_v12, -inf  ;;  %v3040_v16 = vsel %vm237_vm0, %v230_v5, 0.0 }
  0x4f   : > { %v3024_v10 = vsel %vm237_vm0, %v234_v8, -inf  ;;  %v3037_v15 = vsel %vm237_vm0, %v235_v13, -inf  ;;  %v3043_v17 = vsel %vm237_vm0, %v229_v1, 0.0  ;;  %v3046_v18 = vsel %vm237_vm0, %v232_v2, 0.0  ;;  %199 = vst.msk [vmem:[#allocation2 + $0x13] sm:$0x7] %vm196_vm3, %v2876_v48 }
  0x50   : > { %v3049_v19 = vsel %vm237_vm0, %v231_v0, 0.0  ;;  %v311_v20 = vadd.f32 %v3040_v16, %v3043_v17  ;;  %v275_v22 = vmax.f32 %v3005_v3, %v3014_v6  ;;  %v268_v23 = vmax.f32 %v3008_v4, %v3017_v7  ;;  %200 = vst.msk [vmem:[#allocation2 + $0x2b] sm:$0x7] %vm196_vm3, %v2876_v48  ;;  %212 = vst.msk [vmem:[#allocation3 + $0x10] sm:$0x7] %vm196_vm3, %v2876_v48  ;;  %5476 = sst [smem:[#allocation24_spill]] %s3127_s24 }
  0x51   : > { %v318_v21 = vadd.f32 %v3046_v18, %v3049_v19  ;;  %v3062_v24 = vsel %vm237_vm0, %v234_v8, 0.0  ;;  %v3065_v25 = vsel %vm237_vm0, %v233_v9, 0.0  ;;  %v282_v27 = vmax.f32 %v3027_v11, %v3024_v10  ;;  %214 = vst.msk [vmem:[#allocation3 + $0x17] sm:$0x7] %vm196_vm3, %v2876_v48  ;;  %222 = vst.msk [vmem:[#allocation4 + $0x10] sm:$0x7] %vm196_vm3, %v2876_v48 }
  0x52   : > { %361 = vmax.xlane.f32.xlu1 %v3014_v6  ;;  %357 = vmax.xlane.f32.xlu0 %v3017_v7  ;;  %v325_v26 = vadd.f32 %v3062_v24, %v3065_v25  ;;  %v312_v28 = vrot.slane %v311_v20, 4  ;;  %v276_v30 = vrot.slane %v275_v22, 4  ;;  %v269_v31 = vrot.slane %v268_v23, 4  ;;  %223 = vst.msk [vmem:[#allocation4 + $0x7] sm:$0x7] %vm196_vm3, %v2876_v48  ;;  %5477 = sst [smem:[#allocation25_spill]] %s3129_s25 }
  0x53   : > { %v319_v29 = vrot.slane %v318_v21, 4  ;;  %v3074_v32 = vsel %vm237_vm0, %v236_v12, 0.0  ;;  %v3077_v33 = vsel %vm237_vm0, %v235_v13, 0.0  ;;  %v289_v35 = vmax.f32 %v3037_v15, %v3034_v14  ;;  %224 = vst.msk [vmem:[#allocation4 + $0x17] sm:$0x7] %vm196_vm3, %v2876_v48  ;;  %5478 = sst [smem:[#allocation26_spill]] %s3133_s26 }
  0x54   : > { %v332_v34 = vadd.f32 %v3074_v32, %v3077_v33  ;;  %v326_v36 = vrot.slane %v325_v26, 4  ;;  %v283_v37 = vrot.slane %v282_v27, 4  ;;  %v313_v38 = vadd.f32 %v312_v28, %v311_v20  ;;  %5479 = sst [smem:[#allocation27_spill]] %s3140_s27  ;;  %202 = vst.msk [vmem:[#allocation2 + $0x3] sm:$0xff] %vm201_vm6, %v2876_v48  ;;  %203 = vst.msk [vmem:[#allocation2 + $0xb] sm:$0xff] %vm201_vm6, %v2876_v48  ;;  %s2877_s4 = smov 3  }
  0x55   : > { %v320_v39 = vadd.f32 %v319_v29, %v318_v21  ;;  %v277_v40 = vmax.f32 %v275_v22, %v276_v30  ;;  %v270_v41 = vmax.f32 %v268_v23, %v269_v31  ;;  %v290_v43 = vrot.slane %v289_v35, 4  ;;  %s3143_s28 = sld [smem:[#allocation5 + $0xdd]]  ;;  %204 = vst.msk [vmem:[#allocation2 + $0x1b] sm:$0xff] %vm201_vm6, %v2876_v48  ;;  %205 = vst.msk [vmem:[#allocation2 + $0x23] sm:$0xff] %vm201_vm6, %v2876_v48 }
  0x56   : > { %365 = vmax.xlane.f32.xlu1 %v3024_v10  ;;  %363 = vmax.xlane.f32.xlu0 %v3027_v11  ;;  %v333_v42 = vrot.slane %v332_v34, 4  ;;  %v327_v44 = vadd.f32 %v326_v36, %v325_v26  ;;  %v284_v45 = vmax.f32 %v282_v27, %v283_v37  ;;  %v314_v46 = vrot.slane %v313_v38, 2  ;;  %s3145_s29 = sld [smem:[#allocation5 + $0xde]]  ;;  %207 = vst.msk [vmem:[#allocation2 + $0x3] sm:$0xff] %vm206_vm8, %v2876_v48 }
  0x57   : > { %v321_v47 = vrot.slane %v320_v39, 2  ;;  %v278_v49 = vrot.slane %v277_v40, 2  ;;  %v271_v50 = vrot.slane %v270_v41, 2  ;;  %v291_v52 = vmax.f32 %v289_v35, %v290_v43  ;;  %s3153_s30 = sld [smem:[#allocation5 + $0xdf]]  ;;  %208 = vst.msk [vmem:[#allocation2 + $0xb] sm:$0xff] %vm206_vm8, %v2876_v48  ;;  %209 = vst.msk [vmem:[#allocation2 + $0x1b] sm:$0xff] %vm206_vm8, %v2876_v48 }
  0x58   : > { %v334_v51 = vadd.f32 %v333_v42, %v332_v34  ;;  %v328_v53 = vrot.slane %v327_v44, 2  ;;  %v285_v54 = vrot.slane %v284_v45, 2  ;;  %v315_v55 = vadd.f32 %v314_v46, %v313_v38  ;;  %210 = vst.msk [vmem:[#allocation2 + $0x23] sm:$0xff] %vm206_vm8, %v2876_v48  ;;  %s3161_s5 = sld [smem:[#allocation5 + $0xe7]] }
  0x59   : > { %v322_v56 = vadd.f32 %v321_v47, %v320_v39  ;;  %v279_v57 = vmax.f32 %v277_v40, %v278_v49  ;;  %v272_v58 = vmax.f32 %v270_v41, %v271_v50  ;;  %v292_v60 = vrot.slane %v291_v52, 2  ;;  %s3164_s6 = sld [smem:[#allocation5 + $0xe8]] }
  0x5a   : > { %369 = vmax.xlane.f32.xlu1 %v3034_v14  ;;  %367 = vmax.xlane.f32.xlu0 %v3037_v15  ;;  %v335_v59 = vrot.slane %v334_v51, 2  ;;  %v329_v61 = vadd.f32 %v328_v53, %v327_v44  ;;  %v286_v62 = vmax.f32 %v284_v45, %v285_v54  ;;  %v316_v63 = vrot.slane %v315_v55, 1  ;;  %s3168_s7 = sld [smem:[#allocation5 + $0xe9]] }
  0x5b   : > { %v323_v0 = vrot.slane %v322_v56, 1  ;;  %v280_v1 = vrot.slane %v279_v57, 1  ;;  %v273_v2 = vrot.slane %v272_v58, 1  ;;  %v293_v8 = vmax.f32 %v291_v52, %v292_v60  ;;  %5480 = sst [smem:[#allocation28_spill]] %s3143_s28 }
  0x5c   : > { %v336_v5 = vadd.f32 %v335_v59, %v334_v51  ;;  %v330_v9 = vrot.slane %v329_v61, 1  ;;  %v287_v12 = vrot.slane %v286_v62, 1  ;;  %v317_v13 = vadd.f32 %v316_v63, %v315_v55  ;;  %5481 = sst [smem:[#allocation29_spill]] %s3145_s29 }
  0x5d   : > { %v324_v20 = vadd.f32 %v323_v0, %v322_v56  ;;  %v281_v21 = vmax.f32 %v279_v57, %v280_v1  ;;  %v274_v22 = vmax.f32 %v272_v58, %v273_v2  ;;  %v241_v23 = vmax.f32 %v3008_v4, %v3027_v11  ;;  %5482 = sst [smem:[#allocation30_spill]] %s3153_s30 }
  0x5e   : > { %427 = vadd.xlane.f32.xlu1 %v3040_v16  ;;  %425 = vadd.xlane.f32.xlu0 %v3043_v17  ;;  %v243_v26 = vmax.f32 %v3005_v3, %v3037_v15  ;;  %v254_v27 = vadd.f32 %v3049_v19, %v3043_v17  ;;  %v337_v28 = vrot.slane %v336_v5, 1  ;;  %v294_v29 = vrot.slane %v293_v8, 1  ;;  %5483 = sst [smem:[#allocation31_spill]] %s3161_s5 }
  0x5f   : > { %v331_v30 = vadd.f32 %v330_v9, %v329_v61  ;;  %v248_v31 = vmax.f32 %v3017_v7, %v3024_v10  ;;  %v339_v34 = vmul.f32 0.0625, %v317_v13  ;;  %v340_v4 = vmul.f32 0.0625, %v324_v20  ;;  %5484 = sst [smem:[#allocation32_spill]] %s3164_s6 }
  0x60   : > { %v288_v11 = vmax.f32 %v286_v62, %v287_v12  ;;  %v250_v3 = vmax.f32 %v3014_v6, %v3034_v14  ;;  %v261_v15 = vadd.f32 %v3046_v18, %v3040_v16  ;;  %v301_v17 = vsel %vm300_vm4, %v281_v21, %v274_v22  ;;  %5485 = sst [smem:[#allocation33_spill]] %s3168_s7 }
  0x61   : > { %v256_v35 = vadd.f32 %v3065_v25, %v254_v27  ;;  %v338_v36 = vadd.f32 %v337_v28, %v336_v5  ;;  %v295_v7 = vmax.f32 %v293_v8, %v294_v29  ;;  %v341_v10 = vmul.f32 0.0625, %v331_v30  ;;  %s3170_s8 = sld [smem:[#allocation5 + $0xea]] }
  0x62   : > { %431 = vadd.xlane.f32.xlu1 %v3046_v18  ;;  %429 = vadd.xlane.f32.xlu0 %v3049_v19  ;;  %v244_v19 = vmax.f32 %v241_v23, %v243_v26  ;;  %v303_v6 = vsel %vm302_vm5, %v288_v11, %v301_v17  ;;  %v347_v14 = vsel %vm300_vm4, %v340_v4, %v339_v34  ;;  %s3174_s9 = sld [smem:[#allocation5 + $0xeb]]  ;;  %v1819_v48 = vstv %s3127_s24 }
  0x63   : > { %v263_v16 = vadd.f32 %v3062_v24, %v261_v15  ;;  %v251_v18 = vmax.f32 %v248_v31, %v250_v3  ;;  %v342_v37 = vmul.f32 0.0625, %v338_v36  ;;  %v348_v38 = vsel %vm302_vm5, %v341_v10, %v347_v14  ;;  %s3178_s10 = sld [smem:[#allocation5 + $0xec]] }
  0x64   : > { %s3180_s11 = sld [smem:[#allocation5 + $0xed]]  ;;  %v1822_v49 = vstv %s3129_s25  ;;  %v1826_v50 = vstv %s3133_s26  ;;  %v1830_v51 = vstv %s3140_s27  ;;  %v1834_v52 = vstv %s3143_s28 }
  0x65   : > { %v265_v39 = vadd.f32 %v3074_v32, %v263_v16  ;;  %s3182_s17 = sld [smem:[#allocation5 + $0xee]]  ;;  %v1838_v53 = vstv %s3145_s29  ;;  %v1842_v54 = vstv %s3153_s30  ;;  %v1929_v55 = vstv %s3161_s5 }
  0x66   : > { %435 = vadd.xlane.f32.xlu1 %v3062_v24  ;;  %433 = vadd.xlane.f32.xlu0 %v3065_v25  ;;  %v258_v25 = vadd.f32 %v3077_v33, %v256_v35  ;;  %v305_v24 = vsel %vm304_vm7, %v295_v7, %v303_v6  ;;  %s3185_s19 = sld [smem:[#allocation5 + $0xef]]  ;;  %v1932_v56 = vstv %s3164_s6  ;;  %v1936_v57 = vstv %s3168_s7 }
  0x67   : > { %5486 = sst [smem:[#allocation34_spill]] %s3170_s8  ;;  %v511_v41 = vmul.f32 0.25, %v265_v39  ;;  %v1940_v58 = vstv %s3170_s8  ;;  %vm391_vm9 = vcmask 154712   ;;  %vm309_vm10 = vcmask 150552  }
  0x68   : > { %5487 = sst [smem:[#allocation35_spill]] %s3174_s9  ;;  %v510_v40 = vmul.f32 0.25, %v258_v25  ;;  %v1944_v59 = vstv %s3174_s9  ;;  %vm507_vm11 = vcmask 154648  }
  0x69   : > { %5488 = sst [smem:[#allocation36_spill]] %s3178_s10  ;;  %v1948_v60 = vstv %s3178_s10 }
  0x6a   : > { %439 = vadd.xlane.f32.xlu1 %v3074_v32  ;;  %437 = vadd.xlane.f32.xlu0 %v3077_v33  ;;  %v349_v33 = vsel %vm304_vm7, %v342_v37, %v348_v38  ;;  %5489 = sst [smem:[#allocation37_spill]] %s3180_s11  ;;  %v379_v32 = vlaneseq  ;;  %v1952_v61 = vstv %s3180_s11 }
  0x6b   : > { %5490 = sst [smem:[#allocation38_spill]] %s3182_s17  ;;  %v1984_v62 = vstv %s3182_s17 }
  0x6c   : > { %5491 = sst [smem:[#allocation39_spill]] %s3185_s19  ;;  %v380_v42 = vand.u32 127, %v379_v32  ;;  %v3327_v44 = vshrl.u32 %v379_v32, 7  ;;  %v1987_v63 = vstv %s3185_s19 }
  0x6d   : > { %s3188_s0 = sld [smem:[#allocation5 + $0xf0]] }
  0x6e   : > { %s3190_s1 = sld [smem:[#allocation5 + $0xf1]]  ;;  %v381_v43 = vadd.s32 4294967293, %v380_v42  ;;  %5561 = vst [vmem:[#allocation109_spill] sm:$0xff] %v3327_v44  ;;  %v386_v45 = vadd.s32 4294967285, %v380_v42 }
  0x6f   : > { %s3192_s2 = sld [smem:[#allocation5 + $0x10a]] }
  0x70   : > { %s3195_s21 = sld [smem:[#allocation5 + $0x10b]]  ;;  %v3338_v46 = vsub.s32 %v381_v43, %v3327_v44  ;;  %v3341_v47 = vsub.s32 %v386_v45, %v3327_v44 }
  0x71   : > { %s3197_s14 = sld [smem:[#allocation5 + $0x10c]] }
  0x72   : > { %s3199_s18 = sld [smem:[#allocation5 + $0x10d]] }
  0x73   : > { %5492 = sst [smem:[#allocation40_spill]] %s3188_s0  ;;  %v1991_v0 = vstv %s3188_s0 }
  0x74   : > { %5493 = sst [smem:[#allocation41_spill]] %s3190_s1 }
  0x75   : > { %5494 = sst [smem:[#allocation42_spill]] %s3192_s2  ;;  %v1846_v1 = vstv %s3192_s2 }
  0x76   : > { %5495 = sst [smem:[#allocation43_spill]] %s3195_s21  ;;  %v1850_v2 = vstv %s3195_s21 }
  0x77   : > { %5496 = sst [smem:[#allocation44_spill]] %s3197_s14  ;;  %v1854_v5 = vstv %s3197_s14 }
  0x78   : > { %5497 = sst [smem:[#allocation45_spill]] %s3199_s18 }
  0x79   : > { %s3201_s23 = sld [smem:[#allocation5 + $0x10e]] }
  0x7a   : > { %s3203_s12 = sld [smem:[#allocation5 + $0x10f]] }
  0x7b   : > { %501 = vrot.lane.b32.xlu1 %v244_v19, %s2877_s4  ;;  %s3205_s15 = sld [smem:[#allocation5 + $0x110]] }
  0x7c   : > { %s3207_s3 = sld [smem:[#allocation5 + $0x118]] }
  0x7d   : > { %s3209_s22 = sld [smem:[#allocation5 + $0x119]] }
  0x7e   : > { %s3211_s16 = sld [smem:[#allocation5 + $0x11a]] }
  0x7f   : > { %503 = vrot.lane.b32.xlu1 %v251_v18, %s2877_s4  ;;  %5498 = sst [smem:[#allocation46_spill]] %s3201_s23 }
  0x80   : > { %306 = vrot.lane.b32.xlu0 %v305_v24, %s2877_s4  ;;  %5499 = sst [smem:[#allocation47_spill]] %s3203_s12 }
  0x81   : > { %5500 = sst [smem:[#allocation48_spill]] %s3205_s15 }
  0x82   : > { %5501 = sst [smem:[#allocation49_spill]] %s3207_s3 }
  0x83   : > { %350 = vrot.lane.b32.xlu1 %v349_v33, %s2877_s4  ;;  %5502 = sst [smem:[#allocation50_spill]] %s3209_s22 }
  0x84   : > { %514 = vrot.lane.b32.xlu0 %v510_v40, %s2877_s4  ;;  %5503 = sst [smem:[#allocation51_spill]] %s3211_s16 }
  0x85   : > { %s3213_s20 = sld [smem:[#allocation5 + $0x11b]] }
  0x86   : > { %s3217_s13 = sld [smem:[#allocation5 + $0x11d]] }
  0x87   : > { %516 = vrot.lane.b32.xlu1 %v511_v41, %s2877_s4  ;;  %s3215_s4 = sld [smem:[#allocation5 + $0x11c]] }
  0x88   : > { %s3219_s1 = sld [smem:[#allocation5 + $0x11e]] }
  0x89   : > { %s3221_s18 = sld [smem:[#allocation5 + $0xf2]] }
  0x8a   : > { %s3223_s23 = sld [smem:[#allocation5 + $0xf3]] }
  0x8b   : > { %5504 = sst [smem:[#allocation52_spill]] %s3213_s20 }
  0x8c   : > { %5506 = sst [smem:[#allocation54_spill]] %s3217_s13 }
  0x8d   : > { %5505 = sst [smem:[#allocation53_spill]] %s3215_s4 }
  0x8e   : > { %5507 = sst [smem:[#allocation55_spill]] %s3219_s1 }
  0x8f   : > { %5508 = sst [smem:[#allocation56_spill]] %s3221_s18 }
  0x90   : > { %5509 = sst [smem:[#allocation57_spill]] %s3223_s23 }
  0x91   : > { %s3225_s12 = sld [smem:[#allocation5 + $0xf4]] }
  0x92   : > { %s3227_s15 = sld [smem:[#allocation5 + $0x11f]] }
  0x93   : > { %s3229_s3 = sld [smem:[#allocation5 + $0x120]] }
  0x94   : > { %s3231_s22 = sld [smem:[#allocation5 + $0x121]] }
  0x95   : > { %s3233_s16 = sld [smem:[#allocation5 + $0x122]] }
  0x96   : > { %s3235_s20 = sld [smem:[#allocation5 + $0x123]] }
  0x97   : > { %5510 = sst [smem:[#allocation58_spill]] %s3225_s12 }
  0x98   : > { %5511 = sst [smem:[#allocation59_spill]] %s3227_s15 }
  0x99   : > { %5512 = sst [smem:[#allocation60_spill]] %s3229_s3 }
  0x9a   : > { %5513 = sst [smem:[#allocation61_spill]] %s3231_s22 }
  0x9b   : > { %5514 = sst [smem:[#allocation62_spill]] %s3233_s16 }
  0x9c   : > { %5515 = sst [smem:[#allocation63_spill]] %s3235_s20 }
  0x9d   : > { %s3237_s4 = sld [smem:[#allocation5 + $0x124]] }
  0x9e   : > { %s3239_s13 = sld [smem:[#allocation5 + $0x125]] }
  0x9f   : > { %s3241_s1 = sld [smem:[#allocation5 + $0x67]] }
  0xa0   : > { %s3243_s18 = sld [smem:[#allocation5 + $0x6e]] }
  0xa1   : > { %s3245_s23 = sld [smem:[#allocation5 + $0x75]] }
  0xa2   : > { %s3247_s12 = sld [smem:[#allocation5 + $0x7c]] }
  0xa3   : > { %5516 = sst [smem:[#allocation64_spill]] %s3237_s4 }
  0xa4   : > { %5517 = sst [smem:[#allocation65_spill]] %s3239_s13 }
  0xa5   : > { %5518 = sst [smem:[#allocation66_spill]] %s3241_s1 }
  0xa6   : > { %5519 = sst [smem:[#allocation67_spill]] %s3243_s18 }
  0xa7   : > { %5520 = sst [smem:[#allocation68_spill]] %s3245_s23 }
  0xa8   : > { %5521 = sst [smem:[#allocation69_spill]] %s3247_s12 }
  0xa9   : > { %s3249_s15 = sld [smem:[#allocation5 + $0x83]] }
  0xaa   : > { %s3251_s3 = sld [smem:[#allocation5 + $0x8a]] }
  0xab   : > { %s3253_s22 = sld [smem:[#allocation5 + $0x91]] }
  0xac   : > { %s3255_s16 = sld [smem:[#allocation5 + $0x98]] }
  0xad   : > { %s3257_s20 = sld [smem:[#allocation5 + $0x9f]] }
  0xae   : > { %s3259_s4 = sld [smem:[#allocation5 + $0xa6]] }
  0xaf   : > { %5522 = sst [smem:[#allocation70_spill]] %s3249_s15 }
  0xb0   : > { %5523 = sst [smem:[#allocation71_spill]] %s3251_s3 }
  0xb1   : > { %5524 = sst [smem:[#allocation72_spill]] %s3253_s22 }
  0xb2   : > { %5525 = sst [smem:[#allocation73_spill]] %s3255_s16 }
  0xb3   : > { %5526 = sst [smem:[#allocation74_spill]] %s3257_s20 }
  0xb4   : > { %5527 = sst [smem:[#allocation75_spill]] %s3259_s4 }
  0xb5   : > { %s3261_s13 = sld [smem:[#allocation5 + $0xad]] }
  0xb6   : > { %s3263_s1 = sld [smem:[#allocation5 + $0xb4]] }
  0xb7   : > { %s3265_s18 = sld [smem:[#allocation5 + $0xbb]] }
  0xb8   : > { %s3267_s23 = sld [smem:[#allocation5 + $0xc2]] }
  0xb9   : > { %s3269_s12 = sld [smem:[#allocation5 + $0x65]] }
  0xba   : > { %s3271_s15 = sld [smem:[#allocation5 + $0x6c]] }
  0xbb   : > { %5528 = sst [smem:[#allocation76_spill]] %s3261_s13 }
  0xbc   : > { %5529 = sst [smem:[#allocation77_spill]] %s3263_s1 }
  0xbd   : > { %5530 = sst [smem:[#allocation78_spill]] %s3265_s18 }
  0xbe   : > { %5531 = sst [smem:[#allocation79_spill]] %s3267_s23 }
  0xbf   : > { %5532 = sst [smem:[#allocation80_spill]] %s3269_s12 }
  0xc0   : > { %5533 = sst [smem:[#allocation81_spill]] %s3271_s15 }
  0xc1   : > { %s3273_s3 = sld [smem:[#allocation5 + $0x73]] }
  0xc2   : > { %s3275_s22 = sld [smem:[#allocation5 + $0x7a]] }
  0xc3   : > { %s3277_s16 = sld [smem:[#allocation5 + $0x81]] }
  0xc4   : > { %s3279_s20 = sld [smem:[#allocation5 + $0x88]] }
  0xc5   : > { %s3281_s4 = sld [smem:[#allocation5 + $0x8f]] }
  0xc6   : > { %s3283_s13 = sld [smem:[#allocation5 + $0x96]] }
  0xc7   : > { %5534 = sst [smem:[#allocation82_spill]] %s3273_s3 }
  0xc8   : > { %5535 = sst [smem:[#allocation83_spill]] %s3275_s22 }
  0xc9   : > { %5536 = sst [smem:[#allocation84_spill]] %s3277_s16 }
  0xca   : > { %5537 = sst [smem:[#allocation85_spill]] %s3279_s20 }
  0xcb   : > { %5538 = sst [smem:[#allocation86_spill]] %s3281_s4 }
  0xcc   : > { %5539 = sst [smem:[#allocation87_spill]] %s3283_s13 }
  0xcd   : > { %s3285_s1 = sld [smem:[#allocation5 + $0x9d]] }
  0xce   : > { %s3287_s18 = sld [smem:[#allocation5 + $0xa4]] }
  0xcf   : > { %s3289_s23 = sld [smem:[#allocation5 + $0xab]] }
  0xd0   : > { %s3291_s12 = sld [smem:[#allocation5 + $0xb2]] }
  0xd1   : > { %s3293_s15 = sld [smem:[#allocation5 + $0xb9]] }
  0xd2   : > { %s3295_s3 = sld [smem:[#allocation5 + $0xc0]] }
  0xd3   : > { %5540 = sst [smem:[#allocation88_spill]] %s3285_s1 }
  0xd4   : > { %5541 = sst [smem:[#allocation89_spill]] %s3287_s18 }
  0xd5   : > { %5542 = sst [smem:[#allocation90_spill]] %s3289_s23 }
  0xd6   : > { %5543 = sst [smem:[#allocation91_spill]] %s3291_s12 }
  0xd7   : > { %5544 = sst [smem:[#allocation92_spill]] %s3293_s15  ;;  %v3400_v3 = vpop.xlane.xlu1 %359  ;;  %v3402_v15 = vpop.xlane.xlu0 %355 }
  0xd8   : > { %5545 = sst [smem:[#allocation93_spill]] %s3295_s3 }
  0xd9   : > { %s3297_s22 = sld [smem:[#allocation5 + $0x68]] }
  0xda   : > { %s3299_s16 = sld [smem:[#allocation5 + $0x6f]] }
  0xdb   : > { %s3301_s20 = sld [smem:[#allocation5 + $0x76]]  ;;  %v362_v40 = vpop.xlane.xlu1 %361  ;;  %v358_v41 = vpop.xlane.xlu0 %357 }
  0xdc   : > { %s3303_s4 = sld [smem:[#allocation5 + $0x7d]]  ;;  %v400_v24 = vrot.slane %v362_v40, %v3341_v47  ;;  %v390_v36 = vrot.slane %v358_v41, %v3341_v47  ;;  %v396_v40 = vrot.slane %v3400_v3, %v3338_v46  ;;  %v385_v41 = vrot.slane %v3402_v15, %v3338_v46 }
  0xdd   : > { %s3305_s13 = sld [smem:[#allocation5 + $0x84]] }
  0xde   : > { %s3307_s1 = sld [smem:[#allocation5 + $0x8b]]  ;;  %v401_v3 = vsel %vm391_vm9, %v400_v24, %v396_v40  ;;  %v392_v15 = vsel %vm391_vm9, %v390_v36, %v385_v41 }
  0xdf   : > { %5546 = sst [smem:[#allocation94_spill]] %s3297_s22  ;;  %v366_v20 = vpop.xlane.xlu1 %365  ;;  %v364_v37 = vpop.xlane.xlu0 %363 }
  0xe0   : > { %5547 = sst [smem:[#allocation95_spill]] %s3299_s16  ;;  %v409_v33 = vrot.slane %v366_v20, %v3341_v47  ;;  %v405_v28 = vrot.slane %v364_v37, %v3338_v46 }
  0xe1   : > { %5548 = sst [smem:[#allocation96_spill]] %s3301_s20 }
  0xe2   : > { %5549 = sst [smem:[#allocation97_spill]] %s3303_s4  ;;  %v410_v37 = vsel %vm391_vm9, %v409_v33, %v405_v28  ;;  %v420_v28 = vsel %vm300_vm4, %v401_v3, %v392_v15 }
  0xe3   : > { %5550 = sst [smem:[#allocation98_spill]] %s3305_s13  ;;  %v370_v32 = vpop.xlane.xlu1 %369  ;;  %v368_v29 = vpop.xlane.xlu0 %367 }
  0xe4   : > { %5551 = sst [smem:[#allocation99_spill]] %s3307_s1  ;;  %v418_v36 = vrot.slane %v370_v32, %v3341_v47  ;;  %v414_v24 = vrot.slane %v368_v29, %v3338_v46  ;;  %v421_v32 = vsel %vm302_vm5, %v410_v37, %v420_v28 }
  0xe5   : > { %s3309_s18 = sld [smem:[#allocation5 + $0x92]] }
  0xe6   : > { %s3311_s12 = sld [smem:[#allocation5 + $0x99]]  ;;  %v419_v29 = vsel %vm391_vm9, %v418_v36, %v414_v24 }
  0xe7   : > { %s3313_s15 = sld [smem:[#allocation5 + $0xa0]]  ;;  %v422_v3 = vsel %vm304_vm7, %v419_v29, %v421_v32  ;;  %v428_v15 = vpop.xlane.xlu1 %427  ;;  %v426_v42 = vpop.xlane.xlu0 %425 }
  0xe8   : > { %s3315_s3 = sld [smem:[#allocation5 + $0xa7]]  ;;  %424 = vst.msk [vmem:[#allocation4 + $0x3] sm:$0xf] %vm309_vm10, %v422_v3  ;;  %v442_v35 = vmul.f32 0.0625, %v428_v15  ;;  %v441_v36 = vmul.f32 0.0625, %v426_v42 }
  0xe9   : > { %s3317_s22 = sld [smem:[#allocation5 + $0xae]] }
  0xea   : > { %s3319_s20 = sld [smem:[#allocation5 + $0xb5]]  ;;  %v464_v42 = vrot.slane %v442_v35, %v3341_v47 }
  0xeb   : > { %5552 = sst [smem:[#allocation100_spill]] %s3309_s18  ;;  %v432_v24 = vpop.xlane.xlu1 %431  ;;  %v430_v32 = vpop.xlane.xlu0 %429 }
  0xec   : > { %5553 = sst [smem:[#allocation101_spill]] %s3311_s12  ;;  %v444_v20 = vmul.f32 0.0625, %v432_v24  ;;  %v443_v37 = vmul.f32 0.0625, %v430_v32 }
  0xed   : > { %5554 = sst [smem:[#allocation102_spill]] %s3313_s15 }
  0xee   : > { %5555 = sst [smem:[#allocation103_spill]] %s3315_s3  ;;  %v473_v15 = vrot.slane %v444_v20, %v3341_v47  ;;  %v469_v13 = vrot.slane %v443_v37, %v3338_v46  ;;  %v460_v37 = vrot.slane %v441_v36, %v3338_v46 }
  0xef   : > { %5556 = sst [smem:[#allocation104_spill]] %s3317_s22  ;;  %v436_v24 = vpop.xlane.xlu1 %435  ;;  %v434_v32 = vpop.xlane.xlu0 %433  ;;  %v3540_v40 = vld [vmem:[#allocation4] sm:$0xf] }
  0xf0   : > { %5557 = sst [smem:[#allocation105_spill]] %s3319_s20  ;;  %v3542_v3 = vld [vmem:[#allocation4 + $0x1] sm:$0xf]  ;;  %v446_v27 = vmul.f32 0.0625, %v436_v24  ;;  %v445_v35 = vmul.f32 0.0625, %v434_v32  ;;  %v1820_v28 = vmul.f32 %v1819_v48, %v3540_v40  ;;  %v474_v24 = vsel %vm391_vm9, %v473_v15, %v469_v13 }
  0xf1   : > { %s3321_s13 = sld [smem:[#allocation5 + $0xbc]]  ;;  %v3550_v33 = vld [vmem:[#allocation4 + $0x2] sm:$0xf]  ;;  %v1823_v20 = vmul.f32 %v1822_v49, %v3542_v3  ;;  %v1930_v13 = vmul.f32 %v1929_v55, %v3540_v40  ;;  %v465_v15 = vsel %vm391_vm9, %v464_v42, %v460_v37 }
  0xf2   : > { %s3323_s1 = sld [smem:[#allocation5 + $0xc3]]  ;;  %v3557_v29 = vld [vmem:[#allocation4 + $0x3] sm:$0xf]  ;;  %v482_v48 = vrot.slane %v446_v27, %v3341_v47  ;;  %v478_v32 = vrot.slane %v445_v35, %v3338_v46  ;;  %v1827_v36 = vmul.f32 %v1826_v50, %v3550_v33  ;;  %v1933_v27 = vmul.f32 %v1932_v56, %v3542_v3 }
  0xf3   : > { %s3325_s18 = sld [smem:[#allocation5 + $0x3]]  ;;  %v440_v39 = vpop.xlane.xlu1 %439  ;;  %v438_v26 = vpop.xlane.xlu0 %437  ;;  %v3573_v49 = vld [vmem:[#allocation4 + $0x4] sm:$0xf]  ;;  %v1824_v41 = vadd.f32 %v1823_v20, %v1820_v28  ;;  %v1831_v43 = vmul.f32 %v1830_v51, %v3557_v29  ;;  %v1937_v56 = vmul.f32 %v1936_v57, %v3550_v33  ;;  %v493_v42 = vsel %vm300_vm4, %v474_v24, %v465_v15 }
  0xf4   : > { %s3329_s22 = sld [smem:[#allocation5 + $0xa]]  ;;  %5673 = vst [vmem:[#allocation133_spill] sm:$0xff] %v3573_v49  ;;  %v448_v35 = vmul.f32 0.0625, %v440_v39  ;;  %v447_v19 = vmul.f32 0.0625, %v438_v26  ;;  %v483_v50 = vsel %vm391_vm9, %v482_v48, %v478_v32  ;;  %v1934_v28 = vadd.f32 %v1933_v27, %v1930_v13  ;;  %v3633_v13 = vld [vmem:[#allocation4 + $0x6] sm:$0xf] }
  0xf5   : > { %s3331_s20 = sld [smem:[#allocation5 + $0x11]]  ;;  %v1828_v55 = vadd.f32 %v1827_v36, %v1824_v41  ;;  %v1835_v39 = vmul.f32 %v1834_v52, %v3573_v49  ;;  %v1941_v36 = vmul.f32 %v1940_v58, %v3557_v29  ;;  %v1988_v58 = vmul.f32 %v1987_v63, %v3542_v3 }
  0xf6   : > { %s3333_s3 = sld [smem:[#allocation5 + $0x18]]  ;;  %v491_v26 = vrot.slane %v448_v35, %v3341_v47  ;;  %v487_v51 = vrot.slane %v447_v19, %v3338_v46  ;;  %v1938_v57 = vadd.f32 %v1937_v56, %v1934_v28  ;;  %v1985_v47 = vmul.f32 %v1984_v62, %v3540_v40  ;;  %v3618_v19 = vld [vmem:[#allocation4 + $0x5] sm:$0xf] }
  0xf7   : > { %5558 = sst [smem:[#allocation106_spill]] %s3321_s13  ;;  %v307_v41 = vpop.permute.xlu0 %306  ;;  %v502_v20 = vpop.permute.xlu1 %501  ;;  %v1832_v37 = vadd.f32 %v1831_v43, %v1828_v55  ;;  %v494_v46 = vsel %vm302_vm5, %v483_v50, %v493_v42  ;;  %v1945_v32 = vmul.f32 %v1944_v59, %v3573_v49  ;;  %v1992_v27 = vmul.f32 %v1991_v0, %v3550_v33 }
  0xf8   : > { %5559 = sst [smem:[#allocation107_spill]] %s3323_s1  ;;  %v492_v52 = vsel %vm391_vm9, %v491_v26, %v487_v51  ;;  %310 = vst.msk [vmem:[#allocation3 + $0x3] sm:$0xf] %vm309_vm10, %v307_v41  ;;  %v1942_v48 = vadd.f32 %v1941_v36, %v1938_v57  ;;  %v1989_v63 = vadd.f32 %v1988_v58, %v1985_v47  ;;  %v1839_v55 = vmul.f32 %v1838_v53, %v3618_v19 }
  0xf9   : > { %5560 = sst [smem:[#allocation108_spill]] %s3325_s18  ;;  %508 = vst.msk [vmem:[#allocation2 + $0x3] sm:$0xff] %vm507_vm11, %v502_v20  ;;  %v495_v62 = vsel %vm304_vm7, %v492_v52, %v494_v46  ;;  %v1836_v24 = vadd.f32 %v1835_v39, %v1832_v37  ;;  %v1949_v56 = vmul.f32 %v1948_v60, %v3618_v19  ;;  %v1843_v41 = vmul.f32 %v1842_v54, %v3633_v13 }
  0xfa   : > { %s3335_s13 = sld [smem:[#allocation5 + $0x1f]]  ;;  %498 = vst.msk [vmem:[#allocation4 + $0x13] sm:$0xf] %vm309_vm10, %v495_v62  ;;  %v1946_v28 = vadd.f32 %v1945_v32, %v1942_v48  ;;  %v1993_v0 = vadd.f32 %v1992_v27, %v1989_v63  ;;  %v5795_v42 = vstv %s3329_s22 }
  0xfb   : > { %5562 = sst [smem:[#allocation110_spill]] %s3331_s20  ;;  %v504_v59 = vpop.permute.xlu1 %503  ;;  %v515_v50 = vpop.permute.xlu0 %514  ;;  %v1840_v53 = vadd.f32 %v1839_v55, %v1836_v24 }
  0xfc   : > { %5563 = sst [smem:[#allocation111_spill]] %s3333_s3  ;;  %509 = vst.msk [vmem:[#allocation2 + $0xb] sm:$0xff] %vm507_vm11, %v504_v59  ;;  %521 = vst.msk [vmem:[#allocation2 + $0x1b] sm:$0xff] %vm507_vm11, %v515_v50  ;;  %v1950_v37 = vadd.f32 %v1949_v56, %v1946_v28 }
  0xfd   : > { %s3344_s18 = sld [smem:[#allocation5 + $0x26]] }
  0xfe   : > { %s5567_s3 = sld [smem:[#allocation41_spill]] }
  0xff   : > { %s3356_s24 = sld [smem:[#allocation5 + $0x34]]  ;;  %v3665_v47 = vld [vmem:[#allocation3] sm:$0xf]  ;;  %v351_v54 = vpop.permute.xlu1 %350 }
 0x100   : > { %5564 = sst [smem:[#allocation112_spill]] %s3335_s13  ;;  %5693 = vst [vmem:[#allocation134_spill] sm:$0xff] %v3665_v47  ;;  %v3667_v46 = vld [vmem:[#allocation3 + $0x1] sm:$0xf]  ;;  %354 = vst.msk [vmem:[#allocation3 + $0x13] sm:$0xf] %vm309_vm10, %v351_v54 }
 0x101   : > { %s3350_s13 = sld [smem:[#allocation5 + $0x2d]]  ;;  %5694 = vst [vmem:[#allocation135_spill] sm:$0xff] %v3667_v46  ;;  %v3679_v24 = vld [vmem:[#allocation3 + $0x2] sm:$0xf]  ;;  %v3696_v55 = vld [vmem:[#allocation4 + $0x10] sm:$0xf] }
 0x102   : > { %s5570_s25 = sld [smem:[#allocation46_spill]]  ;;  %5695 = vst [vmem:[#allocation136_spill] sm:$0xff] %v3679_v24  ;;  %v3694_v50 = vld [vmem:[#allocation3 + $0x3] sm:$0xf] }
 0x103   : > { %5565 = sst [smem:[#allocation113_spill]] %s3344_s18  ;;  %5699 = vst [vmem:[#allocation137_spill] sm:$0xff] %v3694_v50 }
 0x104   : > { %s5569_s18 = sld [smem:[#allocation45_spill]]  ;;  %v1995_v8 = vstv %s5567_s3 }
 0x105   : > { %5568 = sst [smem:[#allocation115_spill]] %s3356_s24  ;;  %v1996_v26 = vmul.f32 %v1995_v8, %v3557_v29 }
 0x106   : > { %s3362_s28 = sld [smem:[#allocation5 + $0x3b]] }
 0x107   : > { %5566 = sst [smem:[#allocation114_spill]] %s3350_s13  ;;  %v1997_v57 = vadd.f32 %v1996_v26, %v1993_v0  ;;  %v3703_v26 = vld [vmem:[#allocation3 + $0x4] sm:$0xf] }
 0x108   : > { %s5574_s13 = sld [smem:[#allocation49_spill]]  ;;  %v1862_v12 = vstv %s5570_s25  ;;  %5704 = vst [vmem:[#allocation138_spill] sm:$0xff] %v3703_v26 }
 0x109   : > { %s5575_s29 = sld [smem:[#allocation50_spill]] }
 0x10a   : > { %s5576_s30 = sld [smem:[#allocation51_spill]]  ;;  %v1858_v9 = vstv %s5569_s18 }
 0x10b   : > { %s3368_s6 = sld [smem:[#allocation5 + $0x42]] }
 0x10c   : > { %5573 = sst [smem:[#allocation116_spill]] %s3362_s28 }
 0x10d   : > { %s5582_s9 = sld [smem:[#allocation56_spill]] }
 0x10e   : > { %s3374_s10 = sld [smem:[#allocation5 + $0x49]]  ;;  %v1956_v21 = vstv %s5574_s13 }
 0x10f   : > { %s5584_s28 = sld [smem:[#allocation57_spill]]  ;;  %v1960_v22 = vstv %s5575_s29 }
 0x110   : > { %s5585_s11 = sld [smem:[#allocation58_spill]]  ;;  %v1964_v23 = vstv %s5576_s30 }
 0x111   : > { %5578 = sst [smem:[#allocation117_spill]] %s3368_s6 }
 0x112   : > { %s5586_s17 = sld [smem:[#allocation59_spill]] }
 0x113   : > { %s5587_s19 = sld [smem:[#allocation60_spill]]  ;;  %v1999_v30 = vstv %s5582_s9 }
 0x114   : > { %5583 = sst [smem:[#allocation118_spill]] %s3374_s10  ;;  %v2000_v60 = vmul.f32 %v1999_v30, %v3573_v49  ;;  %v1953_v30 = vmul.f32 %v1952_v61, %v3633_v13 }
 0x115   : > { %s3380_s0 = sld [smem:[#allocation5 + $0x50]]  ;;  %v2003_v31 = vstv %s5584_s28 }
 0x116   : > { %s5589_s21 = sld [smem:[#allocation61_spill]]  ;;  %v2007_v34 = vstv %s5585_s11  ;;  %v2004_v52 = vmul.f32 %v2003_v31, %v3618_v19  ;;  %v2001_v48 = vadd.f32 %v2000_v60, %v1997_v57  ;;  %v1844_v31 = vadd.f32 %v1843_v41, %v1840_v53 }
 0x117   : > { %s3386_s2 = sld [smem:[#allocation5 + $0x57]]  ;;  %v2008_v58 = vmul.f32 %v2007_v34, %v3633_v13  ;;  %v1847_v53 = vmul.f32 %v1846_v1, %v3696_v55  ;;  %v1957_v41 = vmul.f32 %v1956_v21, %v3696_v55 }
 0x118   : > { %s5595_s26 = sld [smem:[#allocation66_spill]]  ;;  %v2011_v4 = vstv %s5586_s17  ;;  %v2005_v28 = vadd.f32 %v2004_v52, %v2001_v48 }
 0x119   : > { %s3392_s18 = sld [smem:[#allocation5 + $0x5e]]  ;;  %v2015_v11 = vstv %s5587_s19  ;;  %v2012_v57 = vmul.f32 %v2011_v4, %v3696_v55  ;;  %v3734_v4 = vld [vmem:[#allocation4 + $0x13] sm:$0xf] }
 0x11a   : > { %s5597_s27 = sld [smem:[#allocation67_spill]] }
 0x11b   : > { %5588 = sst [smem:[#allocation119_spill]] %s3380_s0 }
 0x11c   : > { %s5598_s13 = sld [smem:[#allocation68_spill]]  ;;  %v2019_v17 = vstv %s5589_s21 }
 0x11d   : > { %5591 = sst [smem:[#allocation120_spill]] %s3386_s2 }
 0x11e   : > { %s5599_s30 = sld [smem:[#allocation69_spill]]  ;;  %v1491_v10 = vstv %s5595_s26 }
 0x11f   : > { %5596 = sst [smem:[#allocation121_spill]] %s3392_s18  ;;  %v1492_v32 = vmul.f32 %v1491_v10, %v3665_v47  ;;  %v3698_v10 = vld [vmem:[#allocation4 + $0x11] sm:$0xf] }
 0x120   : > { %s5600_s5 = sld [smem:[#allocation70_spill]]  ;;  %v1494_v6 = vstv %s5597_s27 }
 0x121   : > { %s3398_s29 = sld [smem:[#allocation5 + $0x5]]  ;;  %v1495_v63 = vmul.f32 %v1494_v6, %v3667_v46  ;;  %v1954_v6 = vadd.f32 %v1953_v30, %v1950_v37  ;;  %v2009_v37 = vadd.f32 %v2008_v58, %v2005_v28  ;;  %v3745_v58 = vld [vmem:[#allocation4 + $0x14] sm:$0xf] }
 0x122   : > { %s5602_s2 = sld [smem:[#allocation71_spill]]  ;;  %v1498_v14 = vstv %s5598_s13 }
 0x123   : > { %s3408_s17 = sld [smem:[#allocation5 + $0xc]]  ;;  %v1496_v60 = vadd.f32 %v1495_v63, %v1492_v32  ;;  %v1958_v54 = vadd.f32 %v1957_v41, %v1954_v6  ;;  %v2013_v52 = vadd.f32 %v2012_v57, %v2009_v37  ;;  %v3759_v6 = vld [vmem:[#allocation4 + $0x15] sm:$0xf] }
 0x124   : > { %s3414_s18 = sld [smem:[#allocation5 + $0x13]]  ;;  %v1502_v16 = vstv %s5599_s30 }
 0x125   : > { %s5612_s0 = sld [smem:[#allocation80_spill]]  ;;  %v1503_v30 = vmul.f32 %v1502_v16, %v3694_v50 }
 0x126   : > { %v1506_v18 = vstv %s5600_s5  ;;  %s5613_s21 = sld [smem:[#allocation81_spill]] }
 0x127   : > { %5601 = sst [smem:[#allocation122_spill]] %s3398_s29 }
 0x128   : > { %v1510_v25 = vstv %s5602_s2  ;;  %s5614_s14 = sld [smem:[#allocation82_spill]] }
 0x129   : > { %5608 = sst [smem:[#allocation123_spill]] %s3408_s17 }
 0x12a   : > { %s3420_s10 = sld [smem:[#allocation5 + $0x1a]] }
 0x12b   : > { %s3426_s27 = sld [smem:[#allocation5 + $0x21]]  ;;  %v1381_v45 = vstv %s5612_s0 }
 0x12c   : > { %s3432_s2 = sld [smem:[#allocation5 + $0x28]]  ;;  %v1384_v7 = vstv %s5613_s21  ;;  %v1382_v1 = vmul.f32 %v1381_v45, %v3665_v47  ;;  %v1961_v45 = vmul.f32 %v1960_v22, %v3698_v10  ;;  %v2016_v22 = vmul.f32 %v2015_v11, %v3698_v10 }
 0x12d   : > { %s3438_s24 = sld [smem:[#allocation5 + $0x2f]]  ;;  %v1385_v21 = vmul.f32 %v1384_v7, %v3667_v46  ;;  %v1507_v7 = vmul.f32 %v1506_v18, %v3703_v26 }
 0x12e   : > { %v1388_v38 = vstv %s5614_s14  ;;  %s3444_s29 = sld [smem:[#allocation5 + $0x36]]  ;;  %v1962_v63 = vadd.f32 %v1961_v45, %v1958_v54  ;;  %v2017_v11 = vadd.f32 %v2016_v22, %v2013_v52  ;;  %v3792_v22 = vld [vmem:[#allocation3 + $0x10] sm:$0xf] }
 0x12f   : > { %s3450_s19 = sld [smem:[#allocation5 + $0x3d]]  ;;  %5736 = vst [vmem:[#allocation141_spill] sm:$0xff] %v3792_v22 }
 0x130   : > { %s3456_s13 = sld [smem:[#allocation5 + $0x44]] }
 0x131   : > { %s3464_s28 = sld [smem:[#allocation5 + $0x4b]] }
 0x132   : > { %5622 = sst [smem:[#allocation124_spill]] %s3432_s2 }
 0x133   : > { %5625 = sst [smem:[#allocation125_spill]] %s3438_s24 }
 0x134   : > { %5628 = sst [smem:[#allocation126_spill]] %s3444_s29 }
 0x135   : > { %5630 = sst [smem:[#allocation127_spill]] %s3450_s19 }
 0x136   : > { %5634 = sst [smem:[#allocation128_spill]] %s3456_s13 }
 0x137   : > { %5635 = sst [smem:[#allocation129_spill]] %s3464_s28 }
 0x138   : > { %s3470_s23 = sld [smem:[#allocation5 + $0x52]] }
 0x139   : > { %s3476_s25 = sld [smem:[#allocation5 + $0x59]] }
 0x13a   : > { %s3482_s17 = sld [smem:[#allocation5 + $0x60]] }
 0x13b   : > { %s5644_s30 = sld [smem:[#allocation111_spill]] }
 0x13c   : > { %s5645_s26 = sld [smem:[#allocation112_spill]] }
 0x13d   : > { %s3488_s4 = sld [smem:[#allocation5 + $0x6]] }
 0x13e   : > { %5638 = sst [smem:[#allocation130_spill]] %s3470_s23 }
 0x13f   : > { %5641 = sst [smem:[#allocation131_spill]] %s3476_s25 }
 0x140   : > { %5643 = sst [smem:[#allocation132_spill]] %s3482_s17 }
 0x141   : > { %s5648_s15 = sld [smem:[#allocation114_spill]] }
 0x142   : > { %s5649_s11 = sld [smem:[#allocation115_spill]] }
 0x143   : > { %5646 = sst [smem:[#allocation111_spill]] %s3488_s4 }
 0x144   : > { %s3494_s12 = sld [smem:[#allocation5 + $0xd]] }
 0x145   : > { %s5651_s16 = sld [smem:[#allocation116_spill]] }
 0x146   : > { %s5652_s7 = sld [smem:[#allocation118_spill]] }
 0x147   : > { %s5653_s8 = sld [smem:[#allocation119_spill]] }
 0x148   : > { %s3500_s14 = sld [smem:[#allocation5 + $0x14]] }
 0x149   : > { %s5657_s3 = sld [smem:[#allocation122_spill]] }
 0x14a   : > { %5650 = sst [smem:[#allocation112_spill]] %s3494_s12 }
 0x14b   : > { %s5658_s21 = sld [smem:[#allocation123_spill]] }
 0x14c   : > { %s3506_s0 = sld [smem:[#allocation5 + $0x1b]] }
 0x14d   : > { %s3513_s20 = sld [smem:[#allocation5 + $0x22]] }
 0x14e   : > { %5654 = sst [smem:[#allocation114_spill]] %s3500_s14 }
 0x14f   : > { %s3519_s9 = sld [smem:[#allocation5 + $0x29]] }
 0x150   : > { %s3525_s6 = sld [smem:[#allocation5 + $0x30]] }
 0x151   : > { %s3547_s23 = sld [smem:[#allocation5 + $0x37]] }
 0x152   : > { %5659 = sst [smem:[#allocation115_spill]] %s3506_s0 }
 0x153   : > { %5660 = sst [smem:[#allocation116_spill]] %s3513_s20 }
 0x154   : > { %s3555_s17 = sld [smem:[#allocation5 + $0x3e]] }
 0x155   : > { %5661 = sst [smem:[#allocation118_spill]] %s3519_s9 }
 0x156   : > { %5662 = sst [smem:[#allocation119_spill]] %s3525_s6 }
 0x157   : > { %5665 = sst [smem:[#allocation122_spill]] %s3547_s23 }
 0x158   : > { %s3565_s4 = sld [smem:[#allocation5 + $0x45]] }
 0x159   : > { %s3571_s28 = sld [smem:[#allocation5 + $0x4c]] }
 0x15a   : > { %s3584_s20 = sld [smem:[#allocation5 + $0xcb]] }
 0x15b   : > { %s3590_s0 = sld [smem:[#allocation5 + $0xcc]] }
 0x15c   : > { %s3596_s12 = sld [smem:[#allocation5 + $0xcd]] }
 0x15d   : > { %s3604_s1 = sld [smem:[#allocation5 + $0x53]] }
 0x15e   : > { %5669 = sst [smem:[#allocation123_spill]] %s3565_s4 }
 0x15f   : > { %5671 = sst [smem:[#allocation24_spill]] %s3571_s28 }
 0x160   : > { %s3612_s13 = sld [smem:[#allocation5 + $0x5a]]  ;;  %v1709_v51 = vstv %s3584_s20 }
 0x161   : > { %s3624_s25 = sld [smem:[#allocation5 + $0x61]]  ;;  %v1712_v39 = vstv %s3590_s0  ;;  %v1710_v36 = vmul.f32 %v1709_v51, %v3540_v40  ;;  %v3705_v51 = vld [vmem:[#allocation3 + $0x5] sm:$0xf] }
 0x162   : > { %s3630_s29 = sld [smem:[#allocation5 + $0xce]]  ;;  %v1716_v20 = vstv %s3596_s12  ;;  %v1713_v8 = vmul.f32 %v1712_v39, %v3542_v3  ;;  %v517_v39 = vpop.permute.xlu1 %516 }
 0x163   : > { %5678 = sst [smem:[#allocation25_spill]] %s3604_s1  ;;  %v3691_v34 = vmul.f32 %v1716_v20, %v3550_v33  ;;  %v1499_v20 = vmul.f32 %v1498_v14, %v3679_v24  ;;  %522 = vst.msk [vmem:[#allocation2 + $0x23] sm:$0xff] %vm507_vm11, %v517_v39  ;;  %v1851_v14 = vmul.f32 %v1850_v2, %v3698_v10  ;;  %v1511_v2 = vmul.f32 %v1510_v25, %v3705_v51 }
 0x164   : > { %s3640_s2 = sld [smem:[#allocation5 + $0xcf]]  ;;  %v3700_v56 = vadd.f32 %v1713_v8, %v1710_v36  ;;  %v3726_v36 = vld [vmem:[#allocation4 + $0x12] sm:$0xf]  ;;  %v1848_v8 = vadd.f32 %v1847_v53, %v1844_v31  ;;  %v1386_v31 = vadd.f32 %v1385_v21, %v1382_v1  ;;  %v1389_v25 = vmul.f32 %v1388_v38, %v3679_v24 }
 0x165   : > { %s5716_s14 = sld [smem:[#allocation52_spill]]  ;;  %v1855_v16 = vmul.f32 %v1854_v5, %v3726_v36  ;;  %v1500_v32 = vadd.f32 %v1499_v20, %v1496_v60  ;;  %v1965_v18 = vmul.f32 %v1964_v23, %v3726_v36  ;;  %v1859_v5 = vmul.f32 %v1858_v9, %v3734_v4  ;;  %v3773_v60 = vld [vmem:[#allocation3 + $0x6] sm:$0xf]  ;;  %v3778_v9 = vld [vmem:[#allocation4 + $0x16] sm:$0xf] }
 0x166   : > { %5680 = sst [smem:[#allocation26_spill]] %s3612_s13  ;;  %v1852_v48 = vadd.f32 %v1851_v14, %v1848_v8  ;;  %v2020_v39 = vmul.f32 %v2019_v17, %v3726_v36  ;;  %v1863_v23 = vmul.f32 %v1862_v12, %v3745_v58  ;;  %5724 = vst [vmem:[#allocation139_spill] sm:$0xff] %v3773_v60  ;;  %5727 = vst [vmem:[#allocation140_spill] sm:$0xff] %v3778_v9 }
 0x167   : > { %5683 = sst [smem:[#allocation31_spill]] %s3624_s25  ;;  %v1966_v53 = vadd.f32 %v1965_v18, %v1962_v63  ;;  %v1504_v21 = vadd.f32 %v1503_v30, %v1500_v32 }
 0x168   : > { %v1720_v59 = vstv %s3630_s29  ;;  %s5717_s24 = sld [smem:[#allocation83_spill]]  ;;  %v1856_v28 = vadd.f32 %v1855_v16, %v1852_v48  ;;  %v2021_v17 = vadd.f32 %v2020_v39, %v2017_v11 }
 0x169   : > { %s5718_s9 = sld [smem:[#allocation62_spill]] }
 0x16a   : > { %v1724_v0 = vstv %s3640_s2  ;;  %s5719_s19 = sld [smem:[#allocation47_spill]]  ;;  %v1860_v57 = vadd.f32 %v1859_v5, %v1856_v28  ;;  %v1508_v28 = vadd.f32 %v1507_v7, %v1504_v21 }
 0x16b   : > { %s5720_s25 = sld [smem:[#allocation53_spill]]  ;;  %v5722_v41 = vstv %s5716_s14 }
 0x16c   : > { %s5721_s6 = sld [smem:[#allocation63_spill]]  ;;  %v1969_v38 = vmul.f32 %v5722_v41, %v3734_v4  ;;  %v1864_v63 = vadd.f32 %v1863_v23, %v1860_v57  ;;  %v1512_v7 = vadd.f32 %v1511_v2, %v1508_v28 }
 0x16d   : > { %s5723_s0 = sld [smem:[#allocation72_spill]] }
 0x16e   : > { %v5725_v20 = vstv %s5717_s24  ;;  %s5726_s23 = sld [smem:[#allocation48_spill]]  ;;  %v1970_v54 = vadd.f32 %v1969_v38, %v1966_v53 }
 0x16f   : > { %v1393_v37 = vmul.f32 %v5725_v20, %v3694_v50  ;;  %s5728_s20 = sld [smem:[#allocation54_spill]]  ;;  %v5730_v1 = vstv %s5718_s9 }
 0x170   : > { %s5729_s5 = sld [smem:[#allocation64_spill]]  ;;  %v2024_v12 = vmul.f32 %v5730_v1, %v3734_v4  ;;  %v5731_v8 = vstv %s5719_s19  ;;  %v3806_v1 = vld [vmem:[#allocation3 + $0x11] sm:$0xf] }
 0x171   : > { %v1867_v14 = vmul.f32 %v5731_v8, %v3759_v6  ;;  %v5732_v45 = vstv %s5720_s25  ;;  %s5733_s4 = sld [smem:[#allocation73_spill]]  ;;  %5743 = vst [vmem:[#allocation142_spill] sm:$0xff] %v3806_v1 }
 0x172   : > { %v1973_v52 = vmul.f32 %v5732_v45, %v3745_v58  ;;  %v5734_v48 = vstv %s5721_s6  ;;  %s5735_s12 = sld [smem:[#allocation55_spill]]  ;;  %v2025_v18 = vadd.f32 %v2024_v12, %v2021_v17  ;;  %v3814_v45 = vld [vmem:[#allocation3 + $0x12] sm:$0xf] }
 0x173   : > { %v2028_v16 = vmul.f32 %v5734_v48, %v3745_v58  ;;  %s5737_s14 = sld [smem:[#allocation84_spill]]  ;;  %v5738_v30 = vstv %s5723_s0  ;;  %v1868_v23 = vadd.f32 %v1867_v14, %v1864_v63  ;;  %5748 = vst [vmem:[#allocation143_spill] sm:$0xff] %v3814_v45 }
 0x174   : > { %v1515_v32 = vmul.f32 %v5738_v30, %v3773_v60  ;;  %v5739_v5 = vstv %s5726_s23  ;;  %v1974_v39 = vadd.f32 %v1973_v52, %v1970_v54  ;;  %s5742_s24 = sld [smem:[#allocation74_spill]]  ;;  %v1390_v52 = vadd.f32 %v1389_v25, %v1386_v31 }
 0x175   : > { %v1871_v11 = vmul.f32 %v5739_v5, %v3778_v9  ;;  %v5740_v53 = vstv %s5728_s20  ;;  %s5744_s9 = sld [smem:[#allocation65_spill]]  ;;  %v2029_v57 = vadd.f32 %v2028_v16, %v2025_v18  ;;  %v3819_v16 = vld [vmem:[#allocation3 + $0x13] sm:$0xf]  ;;  %s5394_s20 = smov 127  }
 0x176   : > { %v1977_v41 = vmul.f32 %v5740_v53, %v3759_v6  ;;  %v5741_v38 = vstv %s5729_s5  ;;  %s5745_s19 = sld [smem:[#allocation85_spill]]  ;;  %5751 = vst [vmem:[#allocation144_spill] sm:$0xff] %v3819_v16  ;;  %v1516_v2 = vadd.f32 %v1515_v32, %v1512_v7  ;;  %v1394_v31 = vadd.f32 %v1393_v37, %v1390_v52  ;;  %v3831_v32 = vld [vmem:[#allocation3 + $0x14] sm:$0xf] }
 0x177   : > { %v2032_v20 = vmul.f32 %v5741_v38, %v3759_v6  ;;  %v5746_v17 = vstv %s5733_s4  ;;  %s5750_s25 = sld [smem:[#allocation75_spill]]  ;;  %v1872_v5 = vadd.f32 %v1871_v11, %v1868_v23  ;;  %v3833_v11 = vld [vmem:[#allocation3 + $0x15] sm:$0xf]  ;;  %v3841_v37 = vmul.f32 %v1720_v59, %v3557_v29 }
 0x178   : > { %v1519_v12 = vmul.f32 %v5746_v17, %v3792_v22  ;;  %v1978_v21 = vadd.f32 %v1977_v41, %v1974_v39  ;;  %v5747_v8 = vstv %s5735_s12  ;;  %s5753_s6 = sld [smem:[#allocation76_spill]]  ;;  %v3849_v17 = vld [vmem:[#allocation3 + $0x16] sm:$0xf] }
 0x179   : > { %v1981_v54 = vmul.f32 %v5747_v8, %v3778_v9  ;;  %v5749_v48 = vstv %s5737_s14  ;;  %v2033_v14 = vadd.f32 %v2032_v20, %v2029_v57  ;;  %s5755_s0 = sld [smem:[#allocation86_spill]]  ;;  %2044 = vrot.lane.b32.xlu0 %v1872_v5, %s5394_s20  ;;  %v3846_v57 = vmul.f32 %v1724_v0, %v3573_v49 }
 0x17a   : > { %v1397_v30 = vmul.f32 %v5749_v48, %v3703_v26  ;;  %v5752_v63 = vstv %s5742_s24  ;;  %s5757_s23 = sld [smem:[#allocation94_spill]]  ;;  %v1520_v38 = vadd.f32 %v1519_v12, %v1516_v2 }
 0x17b   : > { %v1523_v18 = vmul.f32 %v5752_v63, %v3806_v1  ;;  %v1982_v28 = vadd.f32 %v1981_v54, %v1978_v21  ;;  %v5754_v39 = vstv %s5744_s9  ;;  %s5758_s5 = sld [smem:[#allocation95_spill]] }
 0x17c   : > { %v2036_v53 = vmul.f32 %v5754_v39, %v3778_v9  ;;  %v5756_v25 = vstv %s5745_s19  ;;  %s5759_s4 = sld [smem:[#allocation96_spill]]  ;;  %v1398_v8 = vadd.f32 %v1397_v30, %v1394_v31 }
 0x17d   : > { %v1401_v41 = vmul.f32 %v5756_v25, %v3705_v51  ;;  %s5760_s12 = sld [smem:[#allocation77_spill]]  ;;  %v5762_v20 = vstv %s5750_s25  ;;  %2054 = vrot.lane.b32.xlu1 %v1982_v28, %s5394_s20  ;;  %v1524_v29 = vadd.f32 %v1523_v18, %v1520_v38  ;;  %v3875_v25 = vld [vmem:[#allocation2] sm:$0xff] }
 0x17e   : > { %s5761_s14 = sld [smem:[#allocation78_spill]]  ;;  %v1527_v23 = vmul.f32 %v5762_v20, %v3814_v45  ;;  %v2037_v7 = vadd.f32 %v2036_v53, %v2033_v14  ;;  %v5764_v21 = vstv %s5753_s6  ;;  %v3877_v38 = vld [vmem:[#allocation2 + $0x1] sm:$0xff] }
 0x17f   : > { %s5763_s24 = sld [smem:[#allocation87_spill]]  ;;  %v1531_v12 = vmul.f32 %v5764_v21, %v3819_v16  ;;  %v5766_v54 = vstv %s5755_s0  ;;  %v1402_v53 = vadd.f32 %v1401_v41, %v1398_v8 }
 0x180   : > { %s5765_s9 = sld [smem:[#allocation79_spill]]  ;;  %v1405_v52 = vmul.f32 %v5766_v54, %v3773_v60  ;;  %v5768_v59 = vstv %s5757_s23  ;;  %s5396_s23 = smov 126   ;;  %v1528_v20 = vadd.f32 %v1527_v23, %v1524_v29 }
 0x181   : > { %s5767_s29 = sld [smem:[#allocation97_spill]]  ;;  %v1547_v48 = vmul.f32 %v5768_v59, %v3665_v47  ;;  %v5769_v0 = vstv %s5758_s5  ;;  %2059 = vrot.lane.b32.xlu0 %v2037_v7, %s5396_s23 }
 0x182   : > { %v1550_v5 = vmul.f32 %v5769_v0, %v3667_v46  ;;  %v5770_v14 = vstv %s5759_s4  ;;  %s5771_s2 = sld [smem:[#allocation88_spill]]  ;;  %v3886_v0 = vld [vmem:[#allocation2 + $0x2] sm:$0xff] }
 0x183   : > { %v1554_v2 = vmul.f32 %v5770_v14, %v3679_v24  ;;  %v5772_v63 = vstv %s5760_s12  ;;  %s5773_s19 = sld [smem:[#allocation89_spill]]  ;;  %v1406_v14 = vadd.f32 %v1405_v52, %v1402_v53 }
 0x184   : > { %v1535_v28 = vmul.f32 %v5772_v63, %v3831_v32  ;;  %v5774_v30 = vstv %s5761_s14  ;;  %s5775_s25 = sld [smem:[#allocation90_spill]]  ;;  %v1551_v41 = vadd.f32 %v1550_v5, %v1547_v48  ;;  %v1532_v48 = vadd.f32 %v1531_v12, %v1528_v20  ;;  %v3914_v20 = vld [vmem:[#allocation2 + $0x4] sm:$0xff] }
 0x185   : > { %v1539_v39 = vmul.f32 %v5774_v30, %v3833_v11  ;;  %v5776_v18 = vstv %s5763_s24  ;;  %s5777_s6 = sld [smem:[#allocation91_spill]]  ;;  %v803_v12 = vmul.f32 %v5795_v42, %v3877_v38  ;;  %v5802_v42 = vstv %s5644_s30 }
 0x186   : > { %v1409_v31 = vmul.f32 %v5776_v18, %v3792_v22  ;;  %s5778_s0 = sld [smem:[#allocation98_spill]]  ;;  %v5780_v21 = vstv %s5765_s9  ;;  %v1555_v52 = vadd.f32 %v1554_v2, %v1551_v41 }
 0x187   : > { %s5779_s5 = sld [smem:[#allocation92_spill]]  ;;  %v1543_v54 = vmul.f32 %v5780_v21, %v3849_v17  ;;  %v5782_v8 = vstv %s5767_s29  ;;  %v3897_v21 = vld [vmem:[#allocation2 + $0x3] sm:$0xff] }
 0x188   : > { %s5781_s4 = sld [smem:[#allocation108_spill]]  ;;  %v1558_v59 = vmul.f32 %v5782_v8, %v3694_v50  ;;  %v5783_v63 = vstv %s5771_s2  ;;  %v815_v43 = vmul.f32 %v5802_v42, %v3897_v21  ;;  %v4018_v50 = vld [vmem:[#allocation2 + $0xb] sm:$0xff] }
 0x189   : > { %s5784_s12 = sld [smem:[#allocation99_spill]]  ;;  %v1413_v30 = vmul.f32 %v5783_v63, %v3806_v1  ;;  %v5785_v7 = vstv %s5773_s19  ;;  %v1410_v63 = vadd.f32 %v1409_v31, %v1406_v14 }
 0x18a   : > { %s5786_s14 = sld [smem:[#allocation110_spill]]  ;;  %v1417_v23 = vmul.f32 %v5785_v7, %v3814_v45  ;;  %v5787_v29 = vstv %s5775_s25  ;;  %v1559_v2 = vadd.f32 %v1558_v59, %v1555_v52 }
 0x18b   : > { %v1421_v18 = vmul.f32 %v5787_v29, %v3819_v16  ;;  %s5788_s24 = sld [smem:[#allocation93_spill]]  ;;  %v5789_v5 = vstv %s5777_s6 }
 0x18c   : > { %v1425_v8 = vmul.f32 %v5789_v5, %v3831_v32  ;;  %v5790_v53 = vstv %s5778_s0  ;;  %s5792_s9 = sld [smem:[#allocation100_spill]]  ;;  %v1536_v5 = vadd.f32 %v1535_v28, %v1532_v48  ;;  %v3928_v28 = vld [vmem:[#allocation2 + $0x5] sm:$0xff] }
 0x18d   : > { %v1562_v27 = vmul.f32 %v5790_v53, %v3703_v26  ;;  %v5791_v61 = vstv %s5779_s5  ;;  %s5794_s29 = sld [smem:[#allocation101_spill]] }
 0x18e   : > { %v1429_v7 = vmul.f32 %v5791_v61, %v3833_v11  ;;  %v5793_v62 = vstv %s5781_s4  ;;  %s5796_s2 = sld [smem:[#allocation102_spill]]  ;;  %v1414_v61 = vadd.f32 %v1413_v30, %v1410_v63  ;;  %v1540_v59 = vadd.f32 %v1539_v39, %v1536_v5 }
 0x18f   : > { %v799_v29 = vmul.f32 %v5793_v62, %v3875_v25  ;;  %v5797_v41 = vstv %s5784_s12  ;;  %s5799_s19 = sld [smem:[#allocation103_spill]]  ;;  %v1563_v48 = vadd.f32 %v1562_v27, %v1559_v2 }
 0x190   : > { %v1566_v31 = vmul.f32 %v5797_v41, %v3705_v51  ;;  %v5798_v14 = vstv %s5786_s14  ;;  %s5801_s25 = sld [smem:[#allocation104_spill]]  ;;  %v1418_v63 = vadd.f32 %v1417_v23, %v1414_v61  ;;  %v1544_v39 = vadd.f32 %v1543_v54, %v1540_v59  ;;  %v3948_v23 = vld [vmem:[#allocation2 + $0x6] sm:$0xff]  ;;  %v3957_v59 = vld [vmem:[#allocation2 + $0x18] sm:$0xff] }
 0x191   : > { %v809_v53 = vmul.f32 %v5798_v14, %v3886_v0  ;;  %v5800_v35 = vstv %s5788_s24  ;;  %v805_v15 = vadd.f32 %v803_v12, %v799_v29  ;;  %s5803_s6 = sld [smem:[#allocation105_spill]]  ;;  %v5808_v12 = vstv %s5645_s26 }
 0x192   : > { %v1433_v62 = vmul.f32 %v5800_v35, %v3849_v17  ;;  %s5804_s0 = sld [smem:[#allocation113_spill]]  ;;  %v5805_v51 = vstv %s5792_s9  ;;  %v821_v42 = vmul.f32 %v5808_v12, %v3914_v20  ;;  %v1567_v5 = vadd.f32 %v1566_v31, %v1563_v48  ;;  %1616 = vrot.lane.b32.xlu0 %v1544_v39, %s5394_s20  ;;  %v3959_v48 = vld [vmem:[#allocation2 + $0x19] sm:$0xff] }
 0x193   : > { %v1570_v52 = vmul.f32 %v5805_v51, %v3773_v60  ;;  %v5806_v41 = vstv %s5794_s29  ;;  %v811_v29 = vadd.f32 %v809_v53, %v805_v15  ;;  %s5810_s5 = sld [smem:[#allocation106_spill]]  ;;  %v1422_v61 = vadd.f32 %v1421_v18, %v1418_v63 }
 0x194   : > { %v1574_v30 = vmul.f32 %v5806_v41, %v3792_v22  ;;  %v5807_v14 = vstv %s5796_s2  ;;  %s5813_s12 = sld [smem:[#allocation107_spill]]  ;;  %v5816_v18 = vstv %s5658_s21  ;;  %v5833_v60 = vstv %s5652_s7 }
 0x195   : > { %v1578_v35 = vmul.f32 %v5807_v14, %v3806_v1  ;;  %v5809_v27 = vstv %s5799_s19  ;;  %v817_v14 = vadd.f32 %v815_v43, %v811_v29  ;;  %v1571_v31 = vadd.f32 %v1570_v52, %v1567_v5  ;;  %v3973_v5 = vld [vmem:[#allocation2 + $0x1a] sm:$0xff]  ;;  %s5820_s24 = sld [smem:[#allocation117_spill]] }
 0x196   : > { %v1582_v2 = vmul.f32 %v5809_v27, %v3814_v45  ;;  %v5811_v51 = vstv %s5801_s25  ;;  %v5815_v27 = vstv %s5657_s3  ;;  %v967_v63 = vmul.f32 %v5816_v18, %v3877_v38  ;;  %v3983_v45 = vld [vmem:[#allocation2 + $0x1b] sm:$0xff]  ;;  %s5827_s9 = sld [smem:[#allocation124_spill]] }
 0x197   : > { %v1586_v41 = vmul.f32 %v5811_v51, %v3819_v16  ;;  %v5812_v15 = vstv %s5803_s6  ;;  %v963_v51 = vmul.f32 %v5815_v27, %v3875_v25  ;;  %v1426_v29 = vadd.f32 %v1425_v8, %v1422_v61  ;;  %5822 = vst [vmem:[#allocation145_spill] sm:$0xff] %v3983_v45  ;;  %s5829_s29 = sld [smem:[#allocation120_spill]] }
 0x198   : > { %v1590_v53 = vmul.f32 %v5812_v15, %v3831_v32  ;;  %v5814_v12 = vstv %s5804_s0  ;;  %v5817_v32 = vstv %s3414_s18  ;;  %v823_v15 = vadd.f32 %v821_v42, %v817_v14  ;;  %v3990_v42 = vld [vmem:[#allocation2 + $0x8] sm:$0xff]  ;;  %s5832_s2 = sld [smem:[#allocation121_spill]] }
 0x199   : > { %v827_v54 = vmul.f32 %v5814_v12, %v3928_v28  ;;  %v973_v43 = vmul.f32 %v5817_v32, %v3886_v0  ;;  %v5818_v39 = vstv %s5810_s5  ;;  %v5819_v12 = vstv %s5648_s15  ;;  %v3985_v32 = vld [vmem:[#allocation2 + $0x1c] sm:$0xff]  ;;  %s5835_s19 = sld [smem:[#allocation125_spill]] }
 0x19a   : > { %v1594_v52 = vmul.f32 %v5818_v39, %v3833_v11  ;;  %v833_v44 = vmul.f32 %v5819_v12, %v3948_v23  ;;  %v1575_v27 = vadd.f32 %v1574_v30, %v1571_v31  ;;  %v5821_v16 = vstv %s5813_s12  ;;  %5823 = vst [vmem:[#allocation146_spill] sm:$0xff] %v3985_v32  ;;  %v3998_v12 = vld [vmem:[#allocation2 + $0x9] sm:$0xff]  ;;  %s5837_s25 = sld [smem:[#allocation126_spill]] }
 0x19b   : > { %v3981_v18 = vmul.f32 %v5821_v16, %v3849_v17  ;;  %v969_v8 = vadd.f32 %v967_v63, %v963_v51  ;;  %v5824_v11 = vstv %s3420_s10  ;;  %v1430_v14 = vadd.f32 %v1429_v7, %v1426_v29  ;;  %v4000_v51 = vld [vmem:[#allocation2 + $0xa] sm:$0xff]  ;;  %s5842_s6 = sld [smem:[#allocation127_spill]] }
 0x19c   : > { %v979_v61 = vmul.f32 %v5824_v11, %v3897_v21  ;;  %v829_v39 = vadd.f32 %v827_v54, %v823_v15  ;;  %v5825_v30 = vstv %s5649_s11  ;;  %v5826_v16 = vstv %s5651_s16  ;;  %v4002_v11 = vld [vmem:[#allocation2 + $0x1d] sm:$0xff]  ;;  %s5843_s5 = sld [smem:[#allocation128_spill]] }
 0x19d   : > { %v839_v31 = vmul.f32 %v5825_v30, %v3957_v59  ;;  %v845_v17 = vmul.f32 %v5826_v16, %v3959_v48  ;;  %v1579_v63 = vadd.f32 %v1578_v35, %v1575_v27  ;;  %v5828_v1 = vstv %s5820_s24  ;;  %v4010_v16 = vld [vmem:[#allocation2 + $0x1e] sm:$0xff]  ;;  %s4044_s12 = sld [smem:[#allocation5 + $0xd0]] }
 0x19e   : > { %v851_v7 = vmul.f32 %v5828_v1, %v3973_v5  ;;  %v975_v54 = vadd.f32 %v973_v43, %v969_v8  ;;  %v5830_v29 = vstv %s3426_s27  ;;  %v1434_v30 = vadd.f32 %v1433_v62, %v1430_v14  ;;  %5831 = vst [vmem:[#allocation147_spill] sm:$0xff] %v4010_v16  ;;  %s4062_s23 = sld [smem:[#allocation5 + $0xfc]] }
 0x19f   : > { %v985_v15 = vmul.f32 %v5830_v29, %v3914_v20  ;;  %v835_v22 = vadd.f32 %v833_v44, %v829_v39  ;;  %v857_v35 = vmul.f32 %v5833_v60, %v3983_v45  ;;  %v5834_v27 = vstv %s5653_s8 }
 0x1a0   : > { %v863_v26 = vmul.f32 %v5834_v27, %v3985_v32  ;;  %v1583_v1 = vadd.f32 %v1582_v2, %v1579_v63  ;;  %v981_v43 = vadd.f32 %v979_v61, %v975_v54  ;;  %v5836_v8 = vstv %s5827_s9  ;;  %1606 = vrot.lane.b32.xlu1 %v1434_v30, %s5394_s20  ;;  %v4036_v63 = vld [vmem:[#allocation2 + $0xc] sm:$0xff]  ;;  %s5852_s20 = sld [smem:[#allocation111_spill]] }
 0x1a1   : > { %v991_v29 = vmul.f32 %v5836_v8, %v3928_v28  ;;  %v5838_v62 = vstv %s5781_s4  ;;  %v841_v44 = vadd.f32 %v839_v31, %v835_v22  ;;  %v5839_v60 = vstv %s5829_s29  ;;  %s5845_s4 = sld [smem:[#allocation129_spill]] }
 0x1a2   : > { %v800_v14 = vmul.f32 %v5838_v62, %v3990_v42  ;;  %v869_v39 = vmul.f32 %v5839_v60, %v4002_v11  ;;  %v5840_v27 = vstv %s3329_s22  ;;  %v5841_v2 = vstv %s5786_s14  ;;  %v4046_v60 = vld [vmem:[#allocation2 + $0xd] sm:$0xff]  ;;  %s5849_s22 = sld [smem:[#allocation130_spill]] }
 0x1a3   : > { %v804_v24 = vmul.f32 %v5840_v27, %v3998_v12  ;;  %v810_v61 = vmul.f32 %v5841_v2, %v4000_v51  ;;  %v1587_v54 = vadd.f32 %v1586_v41, %v1583_v1  ;;  %v5844_v8 = vstv %s5832_s2  ;;  %s4054_s14 = sld [smem:[#allocation5 + $0xd1]] }
 0x1a4   : > { %v875_v62 = vmul.f32 %v5844_v8, %v4010_v16  ;;  %v987_v30 = vadd.f32 %v985_v15, %v981_v43  ;;  %v5846_v22 = vstv %s5835_s19  ;;  %v847_v27 = vadd.f32 %v845_v17, %v841_v44  ;;  %v4067_v44 = vld [vmem:[#allocation2 + $0xe] sm:$0xff] }
 0x1a5   : > { %v997_v31 = vmul.f32 %v5846_v22, %v3948_v23  ;;  %v5847_v2 = vstv %s5837_s25  ;;  %v806_v47 = vadd.f32 %v804_v24, %v800_v14  ;;  %v5848_v41 = vstv %s5644_s30  ;;  %s5853_s25 = sld [smem:[#allocation112_spill]] }
 0x1a6   : > { %v1003_v46 = vmul.f32 %v5847_v2, %v3957_v59  ;;  %v816_v1 = vmul.f32 %v5848_v41, %v4018_v50  ;;  %v1591_v15 = vadd.f32 %v1590_v53, %v1587_v54  ;;  %v993_v43 = vadd.f32 %v991_v29, %v987_v30  ;;  %s5856_s30 = sld [smem:[#allocation114_spill]] }
 0x1a7   : > { %v5850_v8 = vstv %s5842_s6  ;;  %v5851_v49 = vstv %s5843_s5  ;;  %v853_v24 = vadd.f32 %v851_v7, %v847_v27  ;;  %v5854_v17 = vstv %s5845_s4  ;;  %s4072_s6 = sld [smem:[#allocation5 + $0xfd]] }
 0x1a8   : > { %v1009_v22 = vmul.f32 %v5850_v8, %v3959_v48  ;;  %v1015_v9 = vmul.f32 %v5851_v49, %v3973_v5  ;;  %v1021_v14 = vmul.f32 %v5854_v17, %v3983_v45  ;;  %v812_v2 = vadd.f32 %v810_v61, %v806_v47  ;;  %s4080_s4 = sld [smem:[#allocation5 + $0xfe]]  ;;  %v4082_v17 = vld [vmem:[#allocation2 + $0x20] sm:$0xff] }
 0x1a9   : > { %v5855_v53 = vstv %s5645_s26  ;;  %v1595_v54 = vadd.f32 %v1594_v52, %v1591_v15  ;;  %v999_v49 = vadd.f32 %v997_v31, %v993_v43  ;;  %v5858_v30 = vstv %s5849_s22  ;;  %s5861_s5 = sld [smem:[#allocation115_spill]] }
 0x1aa   : > { %v822_v29 = vmul.f32 %v5855_v53, %v4036_v63  ;;  %v1027_v41 = vmul.f32 %v5858_v30, %v3985_v32  ;;  %v5859_v7 = vstv %s5804_s0  ;;  %v859_v8 = vadd.f32 %v857_v35, %v853_v24  ;;  %s4090_s26 = sld [smem:[#allocation5 + $0xff]]  ;;  %v4101_v30 = vld [vmem:[#allocation2 + $0x21] sm:$0xff] }
 0x1ab   : > { %v828_v27 = vmul.f32 %v5859_v7, %v4046_v60  ;;  %v818_v47 = vadd.f32 %v816_v1, %v812_v2  ;;  %v5862_v61 = vstv %s5852_s20  ;;  %v5863_v45 = vstv %s5853_s25  ;;  %s5865_s0 = sld [smem:[#allocation132_spill]]  ;;  %v4105_v7 = vld [vmem:[#allocation2 + $0x23] sm:$0xff] }
 0x1ac   : > { %v1046_v53 = vmul.f32 %v5862_v61, %v3990_v42  ;;  %v1050_v52 = vmul.f32 %v5863_v45, %v3998_v12  ;;  %v1599_v31 = vadd.f32 %v3981_v18, %v1595_v54  ;;  %v1005_v15 = vadd.f32 %v1003_v46, %v999_v49  ;;  %v4103_v45 = vld [vmem:[#allocation2 + $0x22] sm:$0xff]  ;;  %s5869_s25 = sld [smem:[#allocation116_spill]] }
 0x1ad   : > { %5857 = sst [smem:[#allocation32_spill]] %s4072_s6  ;;  %v5866_v43 = vstv %s5648_s15  ;;  %v5867_v24 = vstv %s5856_s30  ;;  %v865_v2 = vadd.f32 %v863_v26, %v859_v8  ;;  %v824_v18 = vadd.f32 %v822_v29, %v818_v47  ;;  %s5871_s30 = smov 126  }
 0x1ae   : > { %5860 = sst [smem:[#allocation27_spill]] %s4080_s4  ;;  %v834_v35 = vmul.f32 %v5866_v43, %v4067_v44  ;;  %v1056_v1 = vmul.f32 %v5867_v24, %v4000_v51  ;;  %v1052_v54 = vadd.f32 %v1050_v52, %v1046_v53  ;;  %1621 = vrot.lane.b32.xlu1 %v1599_v31, %s5871_s30  ;;  %v1011_v26 = vadd.f32 %v1009_v22, %v1005_v15  ;;  %v4124_v52 = vld [vmem:[#allocation2 + $0x24] sm:$0xff] }
 0x1af   : > { %s5864_s6 = sld [smem:[#allocation131_spill]]  ;;  %v5870_v46 = vstv %s5861_s5  ;;  %v5874_v29 = vstv %s5649_s11  ;;  %v871_v53 = vadd.f32 %v869_v39, %v865_v2  ;;  %v5880_v39 = vstv %s5652_s7 }
 0x1b0   : > { %s4099_s4 = sld [smem:[#allocation5 + $0x100]]  ;;  %v1062_v49 = vmul.f32 %v5870_v46, %v4018_v50  ;;  %v840_v47 = vmul.f32 %v5874_v29, %v4082_v17  ;;  %v830_v46 = vadd.f32 %v828_v27, %v824_v18  ;;  %v1058_v32 = vadd.f32 %v1056_v1, %v1052_v54  ;;  %v4142_v1 = vld [vmem:[#allocation2 + $0x25] sm:$0xff] }
 0x1b1   : > { %s4110_s15 = sld [smem:[#allocation5 + $0x101]]  ;;  %v5873_v43 = vstv %s5865_s0  ;;  %v1017_v15 = vadd.f32 %v1015_v9, %v1011_v26  ;;  %v5879_v29 = vstv %s5820_s24  ;;  %v858_v2 = vmul.f32 %v5880_v39, %v4105_v7 }
 0x1b2   : > { %v1039_v24 = vmul.f32 %v5873_v43, %v4010_v16  ;;  %s5876_s5 = sld [smem:[#allocation118_spill]]  ;;  %v5877_v31 = vstv %s5869_s25  ;;  %v852_v16 = vmul.f32 %v5879_v29, %v4103_v45  ;;  %v877_v27 = vadd.f32 %v875_v62, %v871_v53 }
 0x1b3   : > { %v1068_v22 = vmul.f32 %v5877_v31, %v4036_v63  ;;  %s4129_s30 = sld [smem:[#allocation5 + $0xd2]]  ;;  %v836_v18 = vadd.f32 %v834_v35, %v830_v46  ;;  %v1064_v54 = vadd.f32 %v1062_v49, %v1058_v32  ;;  %v1023_v31 = vadd.f32 %v1021_v14, %v1017_v15 }
 0x1b4   : > { %s4140_s11 = sld [smem:[#allocation5 + $0xd3]]  ;;  %v5884_v29 = vstv %s5653_s8  ;;  %v5885_v62 = vstv %s5657_s3  ;;  %v5886_v35 = vstv %s5658_s21 }
 0x1b5   : > { %v5872_v8 = vstv %s5864_s6  ;;  %v864_v39 = vmul.f32 %v5884_v29, %v4124_v52  ;;  %v964_v53 = vmul.f32 %v5885_v62, %v3990_v42  ;;  %v968_v32 = vmul.f32 %v5886_v35, %v3998_v12  ;;  %s5887_s7 = sld [smem:[#allocation122_spill]] }
 0x1b6   : > { %5868 = sst [smem:[#allocation33_spill]] %s4099_s4  ;;  %v1033_v61 = vmul.f32 %v5872_v8, %v4002_v11  ;;  %v5878_v8 = vstv %s5651_s16  ;;  %v842_v49 = vadd.f32 %v840_v47, %v836_v18  ;;  %v1070_v14 = vadd.f32 %v1068_v22, %v1064_v54 }
 0x1b7   : > { %s4122_s4 = sld [smem:[#allocation5 + $0x102]]  ;;  %v846_v43 = vmul.f32 %v5878_v8, %v4101_v30  ;;  %v4149_v8 = vld [vmem:[#allocation2 + $0x26] sm:$0xff]  ;;  %v1029_v42 = vadd.f32 %v1027_v41, %v1023_v31  ;;  %v5891_v12 = vstv %s5829_s29  ;;  %v970_v35 = vadd.f32 %v968_v32, %v964_v53 }
 0x1b8   : > { %v5883_v9 = vstv %s5876_s5  ;;  %s4147_s16 = sld [smem:[#allocation5 + $0xd4]]  ;;  %v870_v62 = vmul.f32 %v5891_v12, %v4142_v1  ;;  %v5894_v18 = vstv %s5832_s2  ;;  %v5896_v53 = vstv %s3555_s17 }
 0x1b9   : > { %v1074_v26 = vmul.f32 %v5883_v9, %v4046_v60  ;;  %s4160_s24 = sld [smem:[#allocation5 + $0xd5]]  ;;  %v5890_v9 = vstv %s3414_s18  ;;  %v848_v22 = vadd.f32 %v846_v43, %v842_v49  ;;  %v876_v54 = vmul.f32 %v5894_v18, %v4149_v8 }
 0x1ba   : > { %5881 = sst [smem:[#allocation34_spill]] %s4140_s11  ;;  %s5888_s11 = smov 127   ;;  %v974_v29 = vmul.f32 %v5890_v9, %v4000_v51  ;;  %v1035_v31 = vadd.f32 %v1033_v61, %v1029_v42  ;;  %v1092_v32 = vmul.f32 %v5896_v53, %v4101_v30  ;;  %v5897_v9 = vstv %s3426_s27 }
 0x1bb   : > { %1137 = vrot.lane.b32.xlu0 %v877_v27, %s5888_s11  ;;  %s4169_s3 = sld [smem:[#allocation5 + $0xd6]]  ;;  %v5893_v27 = vstv %s3420_s10  ;;  %v1076_v51 = vadd.f32 %v1074_v26, %v1070_v14  ;;  %v986_v43 = vmul.f32 %v5897_v9, %v4036_v63  ;;  %v854_v49 = vadd.f32 %v852_v16, %v848_v22 }
 0x1bc   : > { %s5892_s21 = sld [smem:[#allocation123_spill]]  ;;  %v980_v47 = vmul.f32 %v5893_v27, %v4018_v50  ;;  %v976_v50 = vadd.f32 %v974_v29, %v970_v35  ;;  %v5900_v27 = vstv %s3571_s28  ;;  %v1041_v42 = vadd.f32 %v1039_v24, %v1035_v31 }
 0x1bd   : > { %5875 = sst [smem:[#allocation28_spill]] %s4122_s4  ;;  %v1104_v61 = vmul.f32 %v5900_v27, %v4105_v7  ;;  %v5902_v29 = vstv %s3604_s1  ;;  %v5903_v18 = vstv %s5827_s9  ;;  %v1718_v24 = vadd.f32 %v3691_v34, %v3700_v56 }
 0x1be   : > { %s5882_s4 = sld [smem:[#allocation119_spill]]  ;;  %v1110_v35 = vmul.f32 %v5902_v29, %v4124_v52  ;;  %v982_v63 = vadd.f32 %v980_v47, %v976_v50  ;;  %v992_v16 = vmul.f32 %v5903_v18, %v4046_v60  ;;  %v1728_v53 = vstv %s4044_s12 }
 0x1bf   : > { %s4177_s8 = sld [smem:[#allocation5 + $0xd7]]  ;;  %1157 = vrot.lane.b32.xlu0 %v1041_v42, %s5888_s11  ;;  %v1722_v34 = vadd.f32 %v3841_v37, %v1718_v24  ;;  %v1732_v56 = vstv %s4054_s14  ;;  %v1729_v37 = vmul.f32 %v1728_v53, %v3618_v19 }
 0x1c0   : > { %s4185_s18 = sld [smem:[#allocation5 + $0xd8]]  ;;  %v988_v31 = vadd.f32 %v986_v43, %v982_v63 }
 0x1c1   : > { %s4193_s10 = sld [smem:[#allocation5 + $0x103]] }
 0x1c2   : > { %s5898_s29 = sld [smem:[#allocation31_spill]]  ;;  %v5899_v14 = vstv %s5892_s21 }
 0x1c3   : > { %v1098_v12 = vmul.f32 %v5899_v14, %v4103_v45  ;;  %s4201_s2 = sld [smem:[#allocation5 + $0x104]] }
 0x1c4   : > { %v5889_v46 = vstv %s5882_s4  ;;  %s4209_s27 = sld [smem:[#allocation5 + $0x105]] }
 0x1c5   : > { %v1080_v15 = vmul.f32 %v5889_v46, %v4067_v44  ;;  %v5895_v46 = vstv %s5887_s7  ;;  %s5906_s28 = sld [smem:[#allocation126_spill]] }
 0x1c6   : > { %v1086_v41 = vmul.f32 %v5895_v46, %v4082_v17  ;;  %s4216_s1 = sld [smem:[#allocation5 + $0x106]] }
 0x1c7   : > { %v1082_v26 = vadd.f32 %v1080_v15, %v1076_v51  ;;  %v860_v15 = vadd.f32 %v858_v2, %v854_v49  ;;  %v5905_v51 = vstv %s3612_s13  ;;  %v5910_v2 = vstv %s5835_s19  ;;  %s4226_s9 = sld [smem:[#allocation5 + $0x107]] }
 0x1c8   : > { %v1116_v46 = vmul.f32 %v5905_v51, %v4142_v1  ;;  %v5909_v60 = vstv %s5898_s29  ;;  %s5913_s13 = sld [smem:[#allocation129_spill]]  ;;  %v994_v49 = vadd.f32 %v992_v16, %v988_v31  ;;  %v5925_v51 = vstv %s5864_s6 }
 0x1c9   : > { %5901 = sst [smem:[#allocation38_spill]] %s4201_s2  ;;  %v1088_v22 = vadd.f32 %v1086_v41, %v1082_v26  ;;  %v1122_v47 = vmul.f32 %v5909_v60, %v4149_v8  ;;  %v998_v41 = vmul.f32 %v5910_v2, %v4067_v44  ;;  %v866_v50 = vadd.f32 %v864_v39, %v860_v15 }
 0x1ca   : > { %5904 = sst [smem:[#allocation39_spill]] %s4209_s27  ;;  %v1736_v44 = vstv %s4062_s23  ;;  %v1034_v24 = vmul.f32 %v5925_v51, %v4142_v1  ;;  %v1748_v2 = vstv %s4090_s26 }
 0x1cb   : > { %s5907_s2 = sld [smem:[#allocation127_spill]]  ;;  %v1094_v9 = vadd.f32 %v1092_v32, %v1088_v22  ;;  %v5915_v26 = vstv %s5906_s28  ;;  %v872_v42 = vadd.f32 %v870_v62, %v866_v50  ;;  %v1726_v32 = vadd.f32 %v3846_v57, %v1722_v34 }
 0x1cc   : > { %5908 = sst [smem:[#allocation35_spill]] %s4216_s1  ;;  %v1004_v14 = vmul.f32 %v5915_v26, %v4082_v17  ;;  %v1000_v29 = vadd.f32 %v998_v41, %v994_v49  ;;  %v1733_v62 = vmul.f32 %v1732_v56, %v3633_v13  ;;  %v1737_v15 = vmul.f32 %v1736_v44, %v3696_v55 }
 0x1cd   : > { %5911 = sst [smem:[#allocation40_spill]] %s4226_s9  ;;  %v1100_v39 = vadd.f32 %v1098_v12, %v1094_v9  ;;  %v878_v12 = vadd.f32 %v876_v54, %v872_v42  ;;  %v1730_v16 = vadd.f32 %v1729_v37, %v1726_v32  ;;  %v5924_v22 = vstv %s5849_s22 }
 0x1ce   : > { %s5912_s27 = sld [smem:[#allocation128_spill]] }
 0x1cf   : > { %s4230_s1 = sld [smem:[#allocation5 + $0x108]]  ;;  %v1106_v57 = vadd.f32 %v1104_v61, %v1100_v39  ;;  %1139 = vrot.lane.b32.xlu1 %v878_v12, %s5888_s11  ;;  %v1734_v61 = vadd.f32 %v1733_v62, %v1730_v16  ;;  %v1749_v39 = vmul.f32 %v1748_v2, %v3734_v4 }
 0x1d0   : > { %s4239_s19 = sld [smem:[#allocation5 + $0x109]] }
 0x1d1   : > { %v5916_v43 = vstv %s5907_s2  ;;  %s5918_s12 = sld [smem:[#allocation32_spill]]  ;;  %v1112_v54 = vadd.f32 %v1110_v35, %v1106_v57  ;;  %v1738_v56 = vadd.f32 %v1737_v15, %v1734_v61  ;;  %v1764_v57 = vstv %s4129_s30 }
 0x1d2   : > { %v1010_v27 = vmul.f32 %v5916_v43, %v4101_v30  ;;  %s4243_s14 = sld [smem:[#allocation5 + $0xe0]]  ;;  %v5920_v30 = vstv %s5913_s13  ;;  %v5931_v43 = vstv %s5865_s0  ;;  %v1765_v15 = vmul.f32 %v1764_v57, %v3540_v40 }
 0x1d3   : > { %v1022_v18 = vmul.f32 %v5920_v30, %v4105_v7  ;;  %s5921_s28 = sld [smem:[#allocation27_spill]]  ;;  %v1028_v7 = vmul.f32 %v5924_v22, %v4124_v52  ;;  %v5928_v52 = vstv %s5852_s20  ;;  %v1118_v35 = vadd.f32 %v1116_v46, %v1112_v54 }
 0x1d4   : > { %v5919_v17 = vstv %s5912_s27  ;;  %s4252_s23 = sld [smem:[#allocation5 + $0xe1]]  ;;  %v1045_v53 = vmul.f32 %v5928_v52, %v3875_v25  ;;  %v1040_v25 = vmul.f32 %v5931_v43, %v4149_v8  ;;  %v5937_v30 = vstv %s5876_s5  ;;  %v5943_v43 = vld [vmem:[#allocation133_spill] sm:$0xff] }
 0x1d5   : > { %5914 = sst [smem:[#allocation29_spill]] %s4230_s1  ;;  %v1016_v63 = vmul.f32 %v5919_v17, %v4103_v45  ;;  %v1006_v45 = vadd.f32 %v1004_v14, %v1000_v29  ;;  %v1124_v46 = vadd.f32 %v1122_v47, %v1118_v35  ;;  %v5935_v29 = vstv %s5869_s25 }
 0x1d6   : > { %5917 = sst [smem:[#allocation36_spill]] %s4239_s19  ;;  %v1756_v17 = vstv %s4110_s15  ;;  %v1073_v62 = vmul.f32 %v5937_v30, %v3928_v28  ;;  %v1771_v22 = vstv %s4147_s16  ;;  %v1775_v54 = vstv %s4160_s24  ;;  %v5950_v30 = vld [vmem:[#allocation146_spill] sm:$0xff] }
 0x1d7   : > { %s5922_s2 = sld [smem:[#allocation112_spill]]  ;;  %v1740_v60 = vstv %s5918_s12  ;;  %v1012_v41 = vadd.f32 %v1010_v27, %v1006_v45  ;;  %v1772_v40 = vmul.f32 %v1771_v22, %v3550_v33 }
 0x1d8   : > { %s5923_s19 = sld [smem:[#allocation114_spill]]  ;;  %v1741_v49 = vmul.f32 %v1740_v60, %v3698_v10  ;;  %v5938_v60 = vstv %s5882_s4 }
 0x1d9   : > { %s4255_s1 = sld [smem:[#allocation5 + $0xe2]]  ;;  %v1744_v31 = vstv %s5921_s28  ;;  %v1018_v14 = vadd.f32 %v1016_v63, %v1012_v41 }
 0x1da   : > { %s5926_s13 = sld [smem:[#allocation33_spill]]  ;;  %v1742_v44 = vadd.f32 %v1741_v49, %v1738_v56  ;;  %v1745_v42 = vmul.f32 %v1744_v31, %v3726_v36  ;;  %v1757_v31 = vmul.f32 %v1756_v17, %v3759_v6  ;;  %v5941_v56 = vstv %s3555_s17  ;;  %v4369_v17 = vld [vmem:[#allocation4] sm:$0xf] }
 0x1db   : > { %s4264_s27 = sld [smem:[#allocation5 + $0xe3]]  ;;  %v1024_v8 = vadd.f32 %v1022_v18, %v1018_v14  ;;  %v1783_v49 = vstv %s4177_s8 }
 0x1dc   : > { %s5927_s9 = sld [smem:[#allocation115_spill]]  ;;  %v1746_v47 = vadd.f32 %v1745_v42, %v1742_v44  ;;  %v1791_v44 = vstv %s4193_s10  ;;  %v1784_v42 = vmul.f32 %v1783_v49, %v3618_v19 }
 0x1dd   : > { %s4269_s29 = sld [smem:[#allocation5 + $0xe4]]  ;;  %v5929_v1 = vstv %s5922_s2  ;;  %v1030_v18 = vadd.f32 %v1028_v7, %v1024_v8  ;;  %v1079_v7 = vmul.f32 %v5938_v60, %v3948_v23  ;;  %v5946_v8 = vld [vmem:[#allocation145_spill] sm:$0xff] }
 0x1de   : > { %v1049_v50 = vmul.f32 %v5929_v1, %v3877_v38  ;;  %v5930_v9 = vstv %s5923_s19  ;;  %s4280_s6 = sld [smem:[#allocation5 + $0xe5]]  ;;  %v5940_v1 = vld [vmem:[#allocation140_spill] sm:$0xff] }
 0x1df   : > { %v1055_v34 = vmul.f32 %v5930_v9, %v3886_v0  ;;  %s4284_s22 = sld [smem:[#allocation5 + $0xe6]]  ;;  %v1036_v51 = vadd.f32 %v1034_v24, %v1030_v18  ;;  %v5939_v24 = vstv %s5887_s7  ;;  %v1881_v57 = vstv %s4255_s1 }
 0x1e0   : > { %v1752_v26 = vstv %s5926_s13  ;;  %v1051_v27 = vadd.f32 %v1049_v50, %v1045_v53  ;;  %s5933_s20 = sld [smem:[#allocation28_spill]]  ;;  %v1085_v52 = vmul.f32 %v5939_v24, %v3957_v59  ;;  %v1779_v53 = vstv %s4169_s3 }
 0x1e1   : > { %s4292_s26 = sld [smem:[#allocation5 + $0x111]]  ;;  %v1753_v32 = vmul.f32 %v1752_v26, %v3745_v58  ;;  %v1091_v59 = vmul.f32 %v5941_v56, %v3959_v48 }
 0x1e2   : > { %v5932_v38 = vstv %s5927_s9  ;;  %s5934_s19 = sld [smem:[#allocation34_spill]]  ;;  %v1057_v37 = vadd.f32 %v1055_v34, %v1051_v27  ;;  %s5936_s9 = smov 126   ;;  %v2713_v34 = vld [vmem:[#allocation4 + $0x3] sm:$0xf] }
 0x1e3   : > { %v1061_v0 = vmul.f32 %v5932_v38, %v3897_v21  ;;  %s4296_s12 = sld [smem:[#allocation5 + $0x112]]  ;;  %v1067_v21 = vmul.f32 %v5935_v29, %v3914_v20  ;;  %1169 = vrot.lane.b32.xlu0 %v1124_v46, %s5936_s9  ;;  %v1750_v20 = vadd.f32 %v1749_v39, %v1746_v47  ;;  %v1776_v33 = vmul.f32 %v2713_v34, %v1775_v54  ;;  %v4393_v54 = vld [vmem:[#allocation4 + $0x2] sm:$0xf] }
 0x1e4   : > { %s4302_s0 = sld [smem:[#allocation5 + $0x113]]  ;;  %v5944_v38 = vstv %s5892_s21  ;;  %v1787_v46 = vstv %s4185_s18  ;;  %v1874_v29 = vstv %s4243_s14  ;;  %v1792_v47 = vmul.f32 %v1791_v44, %v3696_v55  ;;  %v5962_v44 = vld [vmem:[#allocation135_spill] sm:$0xff] }
 0x1e5   : > { %s4310_s28 = sld [smem:[#allocation5 + $0x114]]  ;;  %v1063_v12 = vadd.f32 %v1061_v0, %v1057_v37  ;;  %v1754_v61 = vadd.f32 %v1753_v32, %v1750_v20  ;;  %v1097_v0 = vmul.f32 %v5944_v38, %v3973_v5  ;;  %v1875_v19 = vmul.f32 %v4369_v17, %v1874_v29 }
 0x1e6   : > { %v1760_v63 = vstv %s5933_s20  ;;  %s4314_s25 = sld [smem:[#allocation5 + $0x115]]  ;;  %v1897_v49 = vstv %s4284_s22 }
 0x1e7   : > { %s4319_s15 = sld [smem:[#allocation5 + $0x116]]  ;;  %v1069_v28 = vadd.f32 %v1067_v21, %v1063_v12  ;;  %v1758_v23 = vadd.f32 %v1757_v31, %v1754_v61  ;;  %v1761_v50 = vmul.f32 %v1760_v63, %v5940_v1  ;;  %v1788_v21 = vmul.f32 %v1787_v46, %v3633_v13 }
 0x1e8   : > { %v1767_v16 = vstv %s5934_s19  ;;  %s4325_s5 = sld [smem:[#allocation5 + $0x117]]  ;;  %v1877_v12 = vstv %s4252_s23  ;;  %v1882_v61 = vmul.f32 %v4393_v54, %v1881_v57  ;;  %v1901_v38 = vstv %s4292_s26 }
 0x1e9   : > { %v1768_v45 = vmul.f32 %v1767_v16, %v3542_v3  ;;  %s4329_s30 = sld [smem:[#allocation5 + $0x63]]  ;;  %v1042_v3 = vadd.f32 %v1040_v25, %v1036_v51  ;;  %v1075_v41 = vadd.f32 %v1073_v62, %v1069_v28  ;;  %v1762_v26 = vadd.f32 %v1761_v50, %v1758_v23  ;;  %v4381_v16 = vld [vmem:[#allocation4 + $0x1] sm:$0xf] }
 0x1ea   : > { %s4335_s4 = sld [smem:[#allocation5 + $0x6a]]  ;;  %v1780_v25 = vmul.f32 %v1779_v53, %v5943_v43  ;;  %v1878_v20 = vmul.f32 %v4381_v16, %v1877_v12  ;;  %v1885_v28 = vstv %s4264_s27  ;;  %v1905_v57 = vstv %s4296_s12 }
 0x1eb   : > { %v1769_v2 = vadd.f32 %v1768_v45, %v1765_v15  ;;  %s4338_s16 = sld [smem:[#allocation5 + $0x71]]  ;;  %1159 = vrot.lane.b32.xlu1 %v1042_v3, %s5888_s11  ;;  %v1081_v35 = vadd.f32 %v1079_v7, %v1075_v41  ;;  %2039 = vrot.lane.b32.xlu0 %v1762_v26, %s5888_s11  ;;  %v1889_v41 = vstv %s4269_s29  ;;  %v4424_v26 = vld [vmem:[#allocation4 + $0x5] sm:$0xf] }
 0x1ec   : > { %s5942_s7 = sld [smem:[#allocation24_spill]]  ;;  %v1879_v7 = vadd.f32 %v1878_v20, %v1875_v19  ;;  %v5966_v20 = vld [vmem:[#allocation138_spill] sm:$0xff] }
 0x1ed   : > { %v1773_v9 = vadd.f32 %v1772_v40, %v1769_v2  ;;  %s4345_s24 = sld [smem:[#allocation5 + $0x78]]  ;;  %v1087_v27 = vadd.f32 %v1085_v52, %v1081_v35  ;;  %v5955_v2 = vld [vmem:[#allocation147_spill] sm:$0xff]  ;;  %v1886_v52 = vmul.f32 %v2713_v34, %v1885_v28 }
 0x1ee   : > { %s4348_s3 = sld [smem:[#allocation5 + $0x7f]]  ;;  %v1883_v24 = vadd.f32 %v1882_v61, %v1879_v7 }
 0x1ef   : > { %v1777_v14 = vadd.f32 %v1776_v33, %v1773_v9  ;;  %s4355_s2 = sld [smem:[#allocation5 + $0x86]]  ;;  %v1093_v39 = vadd.f32 %v1091_v59, %v1087_v27  ;;  %v4410_v9 = vld [vmem:[#allocation4 + $0x4] sm:$0xf]  ;;  %v1271_v43 = vstv %s4329_s30 }
 0x1f0   : > { %s5945_s17 = sld [smem:[#allocation25_spill]]  ;;  %v1887_v50 = vadd.f32 %v1886_v52, %v1883_v24  ;;  %v1890_v33 = vmul.f32 %v4410_v9, %v1889_v41  ;;  %v5967_v52 = vld [vmem:[#allocation139_spill] sm:$0xff] }
 0x1f1   : > { %v1781_v48 = vadd.f32 %v1780_v25, %v1777_v14  ;;  %s4359_s8 = sld [smem:[#allocation5 + $0x8d]]  ;;  %v1099_v63 = vadd.f32 %v1097_v0, %v1093_v39  ;;  %v1274_v25 = vstv %s4335_s4  ;;  %v1278_v27 = vstv %s4338_s16  ;;  %v5961_v0 = vld [vmem:[#allocation134_spill] sm:$0xff]  ;;  %v5963_v39 = vld [vmem:[#allocation136_spill] sm:$0xff] }
 0x1f2   : > { %v5947_v32 = vstv %s5942_s7  ;;  %s4365_s21 = sld [smem:[#allocation5 + $0x94]]  ;;  %v1891_v59 = vadd.f32 %v1890_v33, %v1887_v50  ;;  %v1272_v46 = vmul.f32 %v1271_v43, %v5961_v0  ;;  %v4496_v43 = vld [vmem:[#allocation3 + $0x2] sm:$0xf] }
 0x1f3   : > { %v1103_v37 = vmul.f32 %v5947_v32, %v5946_v8  ;;  %v1785_v5 = vadd.f32 %v1784_v42, %v1781_v48  ;;  %s5948_s18 = sld [smem:[#allocation26_spill]]  ;;  %v1275_v48 = vmul.f32 %v1274_v25, %v5962_v44  ;;  %v1279_v8 = vmul.f32 %v1278_v27, %v5963_v39  ;;  %v4504_v44 = vld [vmem:[#allocation3 + $0x3] sm:$0xf]  ;;  %v4509_v39 = vld [vmem:[#allocation4 + $0x12] sm:$0xf] }
 0x1f4   : > { %s5949_s10 = sld [smem:[#allocation38_spill]]  ;;  %v1282_v32 = vstv %s4345_s24 }
 0x1f5   : > { %s4372_s13 = sld [smem:[#allocation5 + $0x9b]]  ;;  %v1789_v13 = vadd.f32 %v1788_v21, %v1785_v5  ;;  %v1105_v15 = vadd.f32 %v1103_v37, %v1099_v63  ;;  %v1286_v37 = vstv %s4348_s3  ;;  %v1276_v21 = vadd.f32 %v1275_v48, %v1272_v46 }
 0x1f6   : > { %v5951_v62 = vstv %s5945_s17  ;;  %s4379_s14 = sld [smem:[#allocation5 + $0xa2]]  ;;  %v1290_v12 = vstv %s4355_s2 }
 0x1f7   : > { %v1109_v18 = vmul.f32 %v5951_v62, %v5950_v30  ;;  %s5952_s20 = sld [smem:[#allocation31_spill]]  ;;  %v1793_v60 = vadd.f32 %v1792_v47, %v1789_v13  ;;  %v5964_v47 = vld [vmem:[#allocation137_spill] sm:$0xff]  ;;  %v1280_v13 = vadd.f32 %v1279_v8, %v1276_v21 }
 0x1f8   : > { %s4384_s19 = sld [smem:[#allocation5 + $0xa9]]  ;;  %v1283_v19 = vmul.f32 %v1282_v32, %v5964_v47  ;;  %v4448_v30 = vld [vmem:[#allocation4 + $0x6] sm:$0xf]  ;;  %v1298_v61 = vstv %s4365_s21  ;;  %v1921_v32 = vstv %s4319_s15 }
 0x1f9   : > { %v5953_v45 = vstv %s5948_s18  ;;  %s5954_s7 = sld [smem:[#allocation39_spill]]  ;;  %v1111_v31 = vadd.f32 %v1109_v18, %v1105_v15  ;;  %v1898_v62 = vmul.f32 %v4448_v30, %v1897_v49  ;;  %v1902_v18 = vmul.f32 %v1901_v38, %v3696_v55 }
 0x1fa   : > { %v1115_v22 = vmul.f32 %v5953_v45, %v4002_v11  ;;  %v1795_v51 = vstv %s5949_s10  ;;  %s4391_s23 = sld [smem:[#allocation5 + $0xb0]]  ;;  %v1287_v15 = vmul.f32 %v1286_v37, %v5966_v20  ;;  %v1284_v28 = vadd.f32 %v1283_v19, %v1280_v13  ;;  %v5969_v37 = vld [vmem:[#allocation142_spill] sm:$0xff]  ;;  %v4517_v19 = vld [vmem:[#allocation3 + $0x4] sm:$0xf] }
 0x1fb   : > { %s4396_s1 = sld [smem:[#allocation5 + $0xb7]]  ;;  %v1796_v11 = vmul.f32 %v1795_v51, %v3698_v10  ;;  %v1893_v10 = vstv %s4280_s6  ;;  %v1294_v51 = vstv %s4359_s8  ;;  %v1917_v38 = vstv %s4314_s25  ;;  %v4529_v13 = vld [vmem:[#allocation4 + $0x13] sm:$0xf] }
 0x1fc   : > { %s4402_s17 = sld [smem:[#allocation5 + $0xbe]]  ;;  %v1117_v53 = vadd.f32 %v1115_v22, %v1111_v31  ;;  %v1894_v14 = vmul.f32 %v4424_v26, %v1893_v10  ;;  %v1288_v24 = vadd.f32 %v1287_v15, %v1284_v28  ;;  %v1306_v21 = vstv %s4379_s14  ;;  %v4532_v15 = vld [vmem:[#allocation4 + $0x14] sm:$0xf] }
 0x1fd   : > { %v5956_v40 = vstv %s5952_s20  ;;  %s5958_s27 = sld [smem:[#allocation35_spill]]  ;;  %v1797_v1 = vadd.f32 %v1796_v11, %v1793_v60  ;;  %v4464_v60 = vld [vmem:[#allocation3 + $0x5] sm:$0xf]  ;;  %v1913_v11 = vstv %s4310_s28 }
 0x1fe   : > { %v1121_v3 = vmul.f32 %v5956_v40, %v5955_v2  ;;  %s4405_s18 = sld [smem:[#allocation5 + $0x66]]  ;;  %v1895_v42 = vadd.f32 %v1894_v14, %v1891_v59  ;;  %v1291_v7 = vmul.f32 %v4464_v60, %v1290_v12  ;;  %v4471_v2 = vld [vmem:[#allocation4 + $0x11] sm:$0xf]  ;;  %v4491_v59 = vld [vmem:[#allocation3 + $0x1] sm:$0xf]  ;;  %v1914_v20 = vmul.f32 %v4529_v13, %v1913_v11 }
 0x1ff   : > { %v1799_v23 = vstv %s5954_s7  ;;  %s4408_s10 = sld [smem:[#allocation5 + $0x6d]]  ;;  %v1906_v40 = vmul.f32 %v4471_v2, %v1905_v57 }
 0x200   : > { %s4414_s29 = sld [smem:[#allocation5 + $0x74]]  ;;  %v1123_v34 = vadd.f32 %v1121_v3, %v1117_v53  ;;  %v1800_v35 = vmul.f32 %v1799_v23, %v3726_v36  ;;  %v1899_v22 = vadd.f32 %v1898_v62, %v1895_v42  ;;  %v1909_v3 = vstv %s4302_s0  ;;  %v5968_v23 = vld [vmem:[#allocation141_spill] sm:$0xff] }
 0x201   : > { %s4416_s20 = sld [smem:[#allocation5 + $0x7b]]  ;;  %v1295_v53 = vmul.f32 %v1294_v51, %v5967_v52  ;;  %v1292_v10 = vadd.f32 %v1291_v7, %v1288_v24  ;;  %v1910_v8 = vmul.f32 %v4509_v39, %v1909_v3  ;;  %v4537_v51 = vld [vmem:[#allocation4 + $0x15] sm:$0xf] }
 0x202   : > { %5957 = sst [smem:[#allocation41_spill]] %s4402_s17  ;;  %1167 = vrot.lane.b32.xlu1 %v1123_v34, %s5936_s9  ;;  %v1801_v36 = vadd.f32 %v1800_v35, %v1797_v1  ;;  %v1299_v1 = vmul.f32 %v1298_v61, %v5968_v23  ;;  %v1302_v34 = vstv %s4372_s13  ;;  %v4488_v35 = vld [vmem:[#allocation3] sm:$0xf]  ;;  %v1922_v28 = vmul.f32 %v4537_v51, %v1921_v32  ;;  %v5970_v7 = vld [vmem:[#allocation143_spill] sm:$0xff] }
 0x203   : > { %v1803_v56 = vstv %s5958_s27  ;;  %s4421_s7 = sld [smem:[#allocation5 + $0x82]]  ;;  %v1296_v0 = vadd.f32 %v1295_v53, %v1292_v10  ;;  %v1307_v61 = vmul.f32 %v1306_v21, %v5970_v7  ;;  %v5971_v23 = vld [vmem:[#allocation144_spill] sm:$0xff]  ;;  %v4584_v21 = vld [vmem:[#allocation3 + $0x14] sm:$0xf] }
 0x204   : > { %s5959_s6 = sld [smem:[#allocation40_spill]]  ;;  %v1804_v29 = vmul.f32 %v1803_v56, %v3734_v4 }
 0x205   : > { %s4430_s11 = sld [smem:[#allocation5 + $0x89]]  ;;  %v1439_v50 = vstv %s4408_s10 }
 0x206   : > { %s5960_s17 = sld [smem:[#allocation29_spill]]  ;;  %v1805_v4 = vadd.f32 %v1804_v29, %v1801_v36  ;;  %v1443_v33 = vstv %s4414_s29  ;;  %v1440_v49 = vmul.f32 %v4491_v59, %v1439_v50  ;;  %v1303_v29 = vmul.f32 %v1302_v34, %v5969_v37 }
 0x207   : > { %s4435_s22 = sld [smem:[#allocation5 + $0x90]]  ;;  %v1444_v25 = vmul.f32 %v4496_v43, %v1443_v33  ;;  %v1447_v27 = vstv %s4416_s20 }
 0x208   : > { %s4440_s30 = sld [smem:[#allocation5 + $0x97]]  ;;  %v1448_v48 = vmul.f32 %v4504_v44, %v1447_v27 }
 0x209   : > { %s4445_s26 = sld [smem:[#allocation5 + $0x9e]]  ;;  %v1451_v36 = vstv %s4421_s7 }
 0x20a   : > { %v1807_v5 = vstv %s5959_s6  ;;  %s5965_s4 = sld [smem:[#allocation36_spill]] }
 0x20b   : > { %s4453_s16 = sld [smem:[#allocation5 + $0xa5]]  ;;  %v1808_v45 = vmul.f32 %v1807_v5, %v3745_v58  ;;  %v1903_v58 = vadd.f32 %v1902_v18, %v1899_v22  ;;  %v1300_v5 = vadd.f32 %v1299_v1, %v1296_v0  ;;  %v1925_v18 = vstv %s4325_s5 }
 0x20c   : > { %v1811_v63 = vstv %s5960_s17  ;;  %s4457_s24 = sld [smem:[#allocation5 + $0xac]]  ;;  %v1455_v12 = vstv %s4430_s11 }
 0x20d   : > { %s4461_s3 = sld [smem:[#allocation5 + $0xb3]]  ;;  %v1812_v31 = vmul.f32 %v1811_v63, %v3759_v6  ;;  %v1809_v41 = vadd.f32 %v1808_v45, %v1805_v4  ;;  %v1436_v6 = vstv %s4405_s18  ;;  %v1907_v14 = vadd.f32 %v1906_v40, %v1903_v58  ;;  %v4526_v4 = vld [vmem:[#allocation4 + $0x16] sm:$0xf] }
 0x20e   : > { %s4468_s12 = sld [smem:[#allocation5 + $0xba]]  ;;  %v1437_v56 = vmul.f32 %v4488_v35, %v1436_v6  ;;  %v1452_v63 = vmul.f32 %v4517_v19, %v1451_v36  ;;  %v1918_v45 = vmul.f32 %v4532_v15, %v1917_v38  ;;  %v4547_v40 = vmul.f32 %v4526_v4, %v1925_v18 }
 0x20f   : > { %s4475_s2 = sld [smem:[#allocation5 + $0xc1]]  ;;  %v1813_v42 = vadd.f32 %v1812_v31, %v1809_v41  ;;  %v1911_v62 = vadd.f32 %v1910_v8, %v1907_v14  ;;  %v1310_v31 = vstv %s4384_s19  ;;  %v1456_v41 = vmul.f32 %v4464_v60, %v1455_v12  ;;  %v4591_v12 = vld [vmem:[#allocation3 + $0x10] sm:$0xf] }
 0x210   : > { %v1815_v55 = vstv %s5965_s4  ;;  %s4479_s8 = sld [smem:[#allocation5 + $0x64]]  ;;  %v1441_v46 = vadd.f32 %v1440_v49, %v1437_v56  ;;  %v1459_v24 = vstv %s4435_s22  ;;  %v1311_v1 = vmul.f32 %v1310_v31, %v5971_v23  ;;  %5974 = vst [vmem:[#allocation133_spill] sm:$0xff] %v4591_v12 }
 0x211   : > { %s4485_s21 = sld [smem:[#allocation5 + $0x6b]]  ;;  %v1816_v57 = vmul.f32 %v4526_v4, %v1815_v55  ;;  %v1304_v55 = vadd.f32 %v1303_v29, %v1300_v5  ;;  %v1915_v11 = vadd.f32 %v1914_v20, %v1911_v62  ;;  %v1314_v6 = vstv %s4391_s23 }
 0x212   : > { %s4494_s0 = sld [smem:[#allocation5 + $0x72]]  ;;  %v1445_v47 = vadd.f32 %v1444_v25, %v1441_v46  ;;  %v4568_v25 = vld [vmem:[#allocation3 + $0x6] sm:$0xf]  ;;  %v1463_v46 = vstv %s4440_s30  ;;  %v1318_v8 = vstv %s4396_s1 }
 0x213   : > { %s4501_s28 = sld [smem:[#allocation5 + $0x79]]  ;;  %v4544_v58 = vadd.f32 %v1816_v57, %v1813_v42  ;;  %v1308_v10 = vadd.f32 %v1307_v61, %v1304_v55  ;;  %5973 = vst [vmem:[#allocation140_spill] sm:$0xff] %v4568_v25  ;;  %v1460_v27 = vmul.f32 %v4568_v25, %v1459_v24  ;;  %v1919_v0 = vadd.f32 %v1918_v45, %v1915_v11  ;;  %v4597_v55 = vld [vmem:[#allocation3 + $0x15] sm:$0xf] }
 0x214   : > { %s4507_s13 = sld [smem:[#allocation5 + $0x80]]  ;;  %v1449_v22 = vadd.f32 %v1448_v48, %v1445_v47  ;;  %v1315_v47 = vmul.f32 %v4584_v21, %v1314_v6  ;;  %v1464_v57 = vmul.f32 %v4591_v12, %v1463_v46  ;;  %v1319_v7 = vmul.f32 %v4597_v55, %v1318_v8  ;;  %v4600_v61 = vld [vmem:[#allocation3 + $0x16] sm:$0xf] }
 0x215   : > { %s4514_s17 = sld [smem:[#allocation5 + $0x87]]  ;;  %v1312_v5 = vadd.f32 %v1311_v1, %v1308_v10  ;;  %v4621_v10 = vld [vmem:[#allocation2] sm:$0xff] }
 0x216   : > { %s4520_s25 = sld [smem:[#allocation5 + $0x8e]]  ;;  %v1453_v3 = vadd.f32 %v1452_v63, %v1449_v22  ;;  %v1326_v52 = vstv %s4479_s8  ;;  %v1467_v63 = vstv %s4445_s26  ;;  %v1923_v22 = vadd.f32 %v1922_v28, %v1919_v0  ;;  %v4639_v46 = vld [vmem:[#allocation2 + $0x2] sm:$0xff] }
 0x217   : > { %s4524_s27 = sld [smem:[#allocation5 + $0x95]]  ;;  %v1329_v53 = vstv %s4485_s21  ;;  %v1327_v50 = vmul.f32 %v4488_v35, %v1326_v52  ;;  %v1471_v28 = vstv %s4453_s16  ;;  %v1316_v52 = vadd.f32 %v1315_v47, %v1312_v5 }
 0x218   : > { %s4535_s15 = sld [smem:[#allocation5 + $0x9c]]  ;;  %v1330_v33 = vmul.f32 %v4491_v59, %v1329_v53  ;;  %v1333_v34 = vstv %s4494_s0  ;;  %v1457_v14 = vadd.f32 %v1456_v41, %v1453_v3  ;;  %v1927_v8 = vadd.f32 %v4547_v40, %v1923_v22  ;;  %v2045_v40 = vpop.permute.xlu0 %2044 }
 0x219   : > { %s4542_s11 = sld [smem:[#allocation5 + $0xa3]]  ;;  %v1337_v56 = vstv %s4501_s28  ;;  %v1334_v38 = vmul.f32 %v4496_v43, %v1333_v34  ;;  %v1320_v47 = vadd.f32 %v1319_v7, %v1316_v52 }
 0x21a   : > { %s4550_s5 = sld [smem:[#allocation5 + $0xaa]]  ;;  %v1341_v49 = vstv %s4507_s13  ;;  %v1331_v36 = vadd.f32 %v1330_v33, %v1327_v50  ;;  %v1338_v48 = vmul.f32 %v4504_v44, %v1337_v56  ;;  %v1461_v18 = vadd.f32 %v1460_v27, %v1457_v14 }
 0x21b   : > { %s4555_s14 = sld [smem:[#allocation5 + $0xb1]]  ;;  %v1345_v42 = vstv %s4514_s17  ;;  %v1342_v29 = vmul.f32 %v4517_v19, %v1341_v49  ;;  %v4629_v49 = vld [vmem:[#allocation2 + $0x1] sm:$0xff] }
 0x21c   : > { %s4561_s19 = sld [smem:[#allocation5 + $0x2]]  ;;  %v1335_v37 = vadd.f32 %v1334_v38, %v1331_v36  ;;  %v1349_v62 = vstv %s4520_s25  ;;  %v1346_v45 = vmul.f32 %v4464_v60, %v1345_v42  ;;  %v4608_v60 = vld [vmem:[#allocation3 + $0x11] sm:$0xf]  ;;  %v1465_v6 = vadd.f32 %v1464_v57, %v1461_v18 }
 0x21d   : > { %s5972_s18 = sld [smem:[#allocation41_spill]]  ;;  %v1353_v3 = vstv %s4524_s27  ;;  %5975 = vst [vmem:[#allocation145_spill] sm:$0xff] %v4608_v60  ;;  %v1468_v41 = vmul.f32 %v4608_v60, %v1467_v63  ;;  %v1350_v24 = vmul.f32 %v4568_v25, %v1349_v62  ;;  %v4656_v63 = vld [vmem:[#allocation3 + $0x12] sm:$0xf]  ;;  %s5984_s27 = smov 127  }
 0x21e   : > { %s4566_s10 = sld [smem:[#allocation5 + $0x9]]  ;;  %v1339_v20 = vadd.f32 %v1338_v48, %v1335_v37  ;;  %v1357_v53 = vstv %s4535_s15  ;;  %v1354_v33 = vmul.f32 %v4591_v12, %v1353_v3  ;;  %5978 = vst [vmem:[#allocation147_spill] sm:$0xff] %v4656_v63  ;;  %v1472_v62 = vmul.f32 %v4656_v63, %v1471_v28  ;;  %v4664_v3 = vld [vmem:[#allocation2 + $0x4] sm:$0xff]  ;;  %s5408_s15 = smov 124  }
 0x21f   : > { %s4572_s23 = sld [smem:[#allocation5 + $0x10]]  ;;  %v1361_v56 = vstv %s4542_s11  ;;  %v1358_v0 = vmul.f32 %v4608_v60, %v1357_v53  ;;  %5979 = vst [vmem:[#allocation134_spill] sm:$0xff] %v4664_v3  ;;  %v2047_v28 = vadd.f32 %v2045_v40, %v4544_v58 }
 0x220   : > { %s4577_s29 = sld [smem:[#allocation5 + $0x17]]  ;;  %v1343_v11 = vadd.f32 %v1342_v29, %v1339_v20  ;;  %v4649_v29 = vld [vmem:[#allocation2 + $0x3] sm:$0xff]  ;;  %v1362_v20 = vmul.f32 %v4656_v63, %v1361_v56 }
 0x221   : > { %s4582_s20 = sld [smem:[#allocation5 + $0x1e]]  ;;  %5977 = vst [vmem:[#allocation146_spill] sm:$0xff] %v4649_v29  ;;  %v4677_v56 = vld [vmem:[#allocation2 + $0x5] sm:$0xff]  ;;  %2049 = vrot.lane.b32.xlu1 %v2047_v28, %s5936_s9 }
 0x222   : > { %s4589_s7 = sld [smem:[#allocation5 + $0xb8]]  ;;  %v716_v23 = vstv %s4561_s19  ;;  %v1347_v50 = vadd.f32 %v1346_v45, %v1343_v11  ;;  %v1365_v45 = vstv %s4550_s5  ;;  %v2055_v11 = vpop.permute.xlu1 %2054  ;;  %5980 = vst [vmem:[#allocation135_spill] sm:$0xff] %v4677_v56 }
 0x223   : > { %v1322_v32 = vstv %s5972_s18  ;;  %s4595_s1 = sld [smem:[#allocation5 + $0x25]]  ;;  %v717_v34 = vmul.f32 %v4621_v10, %v716_v23 }
 0x224   : > { %v4603_v31 = vmul.f32 %v4600_v61, %v1322_v32  ;;  %s4606_s6 = sld [smem:[#allocation5 + $0xbf]]  ;;  %v720_v1 = vstv %s4566_s10  ;;  %v1351_v38 = vadd.f32 %v1350_v24, %v1347_v50  ;;  %v1475_v32 = vstv %s4457_s24  ;;  %s5992_s10 = smov 124  }
 0x225   : > { %s4613_s22 = sld [smem:[#allocation5 + $0x2c]]  ;;  %v721_v14 = vmul.f32 %v4629_v49, %v720_v1  ;;  %v726_v27 = vstv %s4572_s23  ;;  %v1469_v24 = vadd.f32 %v1468_v41, %v1465_v6  ;;  %v1479_v50 = vstv %s4461_s3  ;;  %v4686_v41 = vld [vmem:[#allocation3 + $0x13] sm:$0xf] }
 0x226   : > { %s4618_s30 = sld [smem:[#allocation5 + $0x33]]  ;;  %v732_v36 = vstv %s4577_s29  ;;  %v727_v48 = vmul.f32 %v4639_v46, %v726_v27  ;;  %v1355_v18 = vadd.f32 %v1354_v33, %v1351_v38  ;;  %v1369_v33 = vstv %s4555_s14  ;;  %5981 = vst [vmem:[#allocation136_spill] sm:$0xff] %v4686_v41  ;;  %s5997_s29 = smov 127  }
 0x227   : > { %s4626_s26 = sld [smem:[#allocation5 + $0x3a]]  ;;  %v738_v42 = vstv %s4582_s20  ;;  %v723_v37 = vadd.f32 %v721_v14, %v717_v34  ;;  %v733_v5 = vmul.f32 %v4649_v29, %v732_v36  ;;  %v2057_v38 = vadd.f32 %v2055_v11, %v1927_v8  ;;  %v4692_v8 = vld [vmem:[#allocation2 + $0x6] sm:$0xff] }
 0x228   : > { %s4636_s4 = sld [smem:[#allocation5 + $0x1]]  ;;  %v739_v7 = vmul.f32 %v4664_v3, %v738_v42  ;;  %v1359_v52 = vadd.f32 %v1358_v0, %v1355_v18  ;;  %v1324_v58 = vadd.f32 %v4603_v31, %v1320_v47  ;;  %v1476_v6 = vmul.f32 %v4686_v41, %v1475_v32  ;;  %5983 = vst [vmem:[#allocation137_spill] sm:$0xff] %v4692_v8 }
 0x229   : > { %s4645_s16 = sld [smem:[#allocation5 + $0x8]]  ;;  %v5418_v57 = vstv %s4595_s1  ;;  %v729_v22 = vadd.f32 %v727_v48, %v723_v37  ;;  %v1366_v0 = vmul.f32 %v4686_v41, %v1365_v45  ;;  %v2060_v48 = vpop.permute.xlu0 %2059  ;;  %v1473_v47 = vadd.f32 %v1472_v62, %v1469_v24  ;;  %v4711_v62 = vld [vmem:[#allocation2 + $0x18] sm:$0xff] }
 0x22a   : > { %s4654_s8 = sld [smem:[#allocation5 + $0xf]]  ;;  %v745_v14 = vmul.f32 %v4677_v56, %v5418_v57  ;;  %v1363_v37 = vadd.f32 %v1362_v20, %v1359_v52  ;;  %v2062_v32 = vadd.f32 %v2060_v48, %v2057_v38  ;;  %v1370_v40 = vmul.f32 %v4584_v21, %v1369_v33  ;;  %1601 = vrot.lane.b32.xlu1 %v1324_v58, %s5984_s27 }
 0x22b   : > { %s4660_s24 = sld [smem:[#allocation5 + $0x16]]  ;;  %v5407_v53 = vstv %s4613_s22  ;;  %v735_v34 = vadd.f32 %v733_v5, %v729_v22  ;;  %v1373_v48 = vstv %s4589_s7  ;;  %v5990_v41 = vstv %s4595_s1 }
 0x22c   : > { %s4669_s21 = sld [smem:[#allocation5 + $0x1d]]  ;;  %v751_v18 = vmul.f32 %v4692_v8, %v5407_v53  ;;  %v5405_v31 = vstv %s4618_s30  ;;  %2064 = vrot.lane.b32.xlu0 %v2062_v32, %s5408_s15  ;;  %v1374_v53 = vmul.f32 %v4597_v55, %v1373_v48 }
 0x22d   : > { %5976 = sst [smem:[#allocation30_spill]] %s4626_s26  ;;  %v741_v5 = vadd.f32 %v739_v7, %v735_v34  ;;  %v5410_v45 = vstv %s4626_s26  ;;  %v757_v11 = vmul.f32 %v4711_v62, %v5405_v31  ;;  %v1367_v34 = vadd.f32 %v1366_v0, %v1363_v37 }
 0x22e   : > { %s4673_s0 = sld [smem:[#allocation5 + $0x41]]  ;;  %v5417_v22 = vstv %s4636_s4  ;;  %v1480_v31 = vmul.f32 %v4584_v21, %v1479_v50  ;;  %v1477_v21 = vadd.f32 %v1476_v6, %v1473_v47 }
 0x22f   : > { %s4682_s28 = sld [smem:[#allocation5 + $0x24]]  ;;  %v747_v20 = vadd.f32 %v745_v14, %v741_v5  ;;  %v5416_v7 = vstv %s4645_s16  ;;  %v635_v24 = vmul.f32 %v4621_v10, %v5417_v22  ;;  %v1371_v50 = vadd.f32 %v1370_v40, %v1367_v34 }
 0x230   : > { %s4690_s3 = sld [smem:[#allocation5 + $0x48]]  ;;  %v5411_v28 = vstv %s4654_s8  ;;  %v639_v52 = vmul.f32 %v4629_v49, %v5416_v7 }
 0x231   : > { %s4698_s13 = sld [smem:[#allocation5 + $0x2b]]  ;;  %v5406_v33 = vstv %s4660_s24  ;;  %v753_v14 = vadd.f32 %v751_v18, %v747_v20  ;;  %v645_v38 = vmul.f32 %v4639_v46, %v5411_v28  ;;  %v4742_v20 = vld [vmem:[#allocation2 + $0x19] sm:$0xff]  ;;  %v1375_v7 = vadd.f32 %v1374_v53, %v1371_v50 }
 0x232   : > { %s4702_s17 = sld [smem:[#allocation5 + $0x4f]]  ;;  %v5413_v58 = vstv %s4669_s21  ;;  %v641_v5 = vadd.f32 %v639_v52, %v635_v24  ;;  %v651_v32 = vmul.f32 %v4649_v29, %v5406_v33  ;;  %v763_v24 = vmul.f32 %v4742_v20, %v5410_v45 }
 0x233   : > { %s4707_s25 = sld [smem:[#allocation5 + $0x32]]  ;;  %v759_v18 = vadd.f32 %v757_v11, %v753_v14  ;;  %v657_v33 = vmul.f32 %v4664_v3, %v5413_v58  ;;  %v1483_v14 = vstv %s4468_s12  ;;  %v1377_v45 = vstv %s4606_s6  ;;  %v4764_v58 = vld [vmem:[#allocation2 + $0x1a] sm:$0xff] }
 0x234   : > { %s4723_s11 = sld [smem:[#allocation5 + $0x39]]  ;;  %v5415_v0 = vstv %s4673_s0  ;;  %v647_v52 = vadd.f32 %v645_v38, %v641_v5  ;;  %v1487_v5 = vstv %s4475_s2  ;;  %5987 = vst [vmem:[#allocation138_spill] sm:$0xff] %v4764_v58  ;;  %v1378_v22 = vmul.f32 %v4600_v61, %v1377_v45 }
 0x235   : > { %s4725_s5 = sld [smem:[#allocation5 + $0x56]]  ;;  %v5414_v37 = vstv %s4682_s28  ;;  %v769_v6 = vmul.f32 %v4764_v58, %v5415_v0  ;;  %v765_v34 = vadd.f32 %v763_v24, %v759_v18  ;;  %v1481_v0 = vadd.f32 %v1480_v31, %v1477_v21 }
 0x236   : > { %5982 = sst [smem:[#allocation56_spill]] %s4690_s3  ;;  %v653_v28 = vadd.f32 %v651_v32, %v647_v52  ;;  %v663_v38 = vmul.f32 %v4677_v56, %v5414_v37  ;;  %v5421_v47 = vstv %s4690_s3  ;;  %v1484_v37 = vmul.f32 %v4597_v55, %v1483_v14 }
 0x237   : > { %s4735_s14 = sld [smem:[#allocation5 + $0x40]]  ;;  %v5426_v11 = vstv %s4698_s13  ;;  %v1488_v57 = vmul.f32 %v4600_v61, %v1487_v5  ;;  %v771_v45 = vadd.f32 %v769_v6, %v765_v34 }
 0x238   : > { %s4740_s18 = sld [smem:[#allocation5 + $0x4]]  ;;  %v659_v48 = vadd.f32 %v657_v33, %v653_v28  ;;  %v669_v32 = vmul.f32 %v4692_v8, %v5426_v11  ;;  %v4787_v33 = vld [vmem:[#allocation2 + $0x1b] sm:$0xff]  ;;  %v5423_v31 = vstv %s4702_s17  ;;  %v1485_v14 = vadd.f32 %v1484_v37, %v1481_v0 }
 0x239   : > { %s4750_s7 = sld [smem:[#allocation5 + $0xb]]  ;;  %v5425_v40 = vstv %s4707_s25  ;;  %v775_v55 = vmul.f32 %v4787_v33, %v5421_v47  ;;  %v4805_v47 = vld [vmem:[#allocation2 + $0x1c] sm:$0xff] }
 0x23a   : > { %5985 = sst [smem:[#allocation37_spill]] %s4723_s11  ;;  %v5420_v52 = vstv %s4723_s11  ;;  %v665_v18 = vadd.f32 %v663_v38, %v659_v48  ;;  %v675_v28 = vmul.f32 %v4711_v62, %v5425_v40  ;;  %v1379_v38 = vadd.f32 %v1378_v22, %v1375_v7 }
 0x23b   : > { %5986 = sst [smem:[#allocation57_spill]] %s4725_s5  ;;  %v681_v53 = vmul.f32 %v4742_v20, %v5420_v52  ;;  %v5429_v5 = vstv %s4725_s5  ;;  %v1607_v52 = vpop.permute.xlu1 %1606  ;;  %v781_v6 = vmul.f32 %v4805_v47, %v5423_v31  ;;  %v777_v31 = vadd.f32 %v775_v55, %v771_v45 }
 0x23c   : > { %s4754_s15 = sld [smem:[#allocation5 + $0x47]]  ;;  %v671_v24 = vadd.f32 %v669_v32, %v665_v18  ;;  %v1609_v22 = vadd.f32 %v1607_v52, %v1379_v38  ;;  %v1489_v40 = vadd.f32 %v1488_v57, %v1485_v14  ;;  %v4828_v52 = vld [vmem:[#allocation2 + $0x1d] sm:$0xff] }
 0x23d   : > { %s4761_s26 = sld [smem:[#allocation5 + $0x4e]]  ;;  %v5424_v61 = vstv %s4735_s14  ;;  %v787_v38 = vmul.f32 %v4828_v52, %v5429_v5  ;;  %v783_v5 = vadd.f32 %v781_v6, %v777_v31  ;;  %v4869_v6 = vld [vmem:[#allocation2 + $0x1e] sm:$0xff] }
 0x23e   : > { %s4771_s27 = sld [smem:[#allocation5 + $0x55]]  ;;  %v5434_v21 = vstv %s4740_s18  ;;  %v677_v34 = vadd.f32 %v675_v28, %v671_v24  ;;  %v687_v32 = vmul.f32 %v4764_v58, %v5424_v61  ;;  %1611 = vrot.lane.b32.xlu0 %v1609_v22, %s5936_s9  ;;  %v4845_v22 = vld [vmem:[#allocation2 + $0x8] sm:$0xff] }
 0x23f   : > { %s4777_s12 = sld [smem:[#allocation5 + $0x12]]  ;;  %v5433_v50 = vstv %s4750_s7  ;;  %v881_v37 = vmul.f32 %v4621_v10, %v5434_v21  ;;  %v1622_v21 = vpop.permute.xlu1 %1621 }
 0x240   : > { %s4785_s2 = sld [smem:[#allocation5 + $0x5c]]  ;;  %v885_v18 = vmul.f32 %v4629_v49, %v5433_v50  ;;  %v683_v28 = vadd.f32 %v681_v53, %v677_v34  ;;  %v1617_v34 = vpop.permute.xlu0 %1616  ;;  %v4864_v50 = vld [vmem:[#allocation2 + $0xb] sm:$0xff] }
 0x241   : > { %s4799_s6 = sld [smem:[#allocation5 + $0x19]]  ;;  %v1619_v31 = vadd.f32 %v1617_v34, %v1489_v40 }
 0x242   : > { %s4802_s3 = sld [smem:[#allocation5 + $0x5d]]  ;;  %v5431_v48 = vstv %s4754_s15  ;;  %v689_v11 = vadd.f32 %v687_v32, %v683_v28  ;;  %v887_v57 = vadd.f32 %v885_v18, %v881_v37  ;;  %v718_v32 = vmul.f32 %v4845_v22, %v716_v23  ;;  %v4850_v28 = vld [vmem:[#allocation2 + $0x9] sm:$0xff] }
 0x243   : > { %v5430_v0 = vstv %s4761_s26  ;;  %s4814_s11 = sld [smem:[#allocation5 + $0x20]]  ;;  %v693_v24 = vmul.f32 %v4787_v33, %v5431_v48 }
 0x244   : > { %v5428_v7 = vstv %s4771_s27  ;;  %v699_v55 = vmul.f32 %v4805_v47, %v5430_v0  ;;  %s4843_s5 = sld [smem:[#allocation5 + $0x27]]  ;;  %v4856_v0 = vld [vmem:[#allocation2 + $0xa] sm:$0xff] }
 0x245   : > { %v5432_v61 = vstv %s4777_s12  ;;  %v705_v53 = vmul.f32 %v4828_v52, %v5428_v7  ;;  %v722_v7 = vmul.f32 %v4850_v28, %v720_v1  ;;  %v695_v37 = vadd.f32 %v693_v24, %v689_v11  ;;  %s4862_s19 = sld [smem:[#allocation5 + $0x2e]] }
 0x246   : > { %v5435_v45 = vstv %s4785_s2  ;;  %v891_v14 = vmul.f32 %v4639_v46, %v5432_v61  ;;  %v728_v48 = vmul.f32 %v4856_v0, %v726_v27  ;;  %v734_v1 = vmul.f32 %v4864_v50, %v732_v36  ;;  %v4878_v36 = vld [vmem:[#allocation2 + $0xc] sm:$0xff]  ;;  %s4905_s23 = sld [smem:[#allocation5 + $0x35]] }
 0x247   : > { %v5437_v18 = vstv %s4799_s6  ;;  %v724_v23 = vadd.f32 %v722_v7, %v718_v32  ;;  %v701_v11 = vadd.f32 %v699_v55, %v695_v37  ;;  %v711_v27 = vmul.f32 %v4869_v6, %v5435_v45  ;;  %5988 = vst [vmem:[#allocation139_spill] sm:$0xff] %v4878_v36  ;;  %s5998_s20 = sld [smem:[#allocation30_spill]] }
 0x248   : > { %v893_v61 = vadd.f32 %v891_v14, %v887_v57  ;;  %v897_v7 = vmul.f32 %v4649_v29, %v5437_v18  ;;  %v740_v40 = vmul.f32 %v4878_v36, %v738_v42  ;;  %v5989_v55 = vstv %s4802_s3  ;;  %v4886_v14 = vld [vmem:[#allocation2 + $0xd] sm:$0xff]  ;;  %s4926_s1 = sld [smem:[#allocation5 + $0x3c]] }
 0x249   : > { %v730_v32 = vadd.f32 %v728_v48, %v724_v23  ;;  %v793_v34 = vmul.f32 %v4869_v6, %v5989_v55  ;;  %v789_v37 = vadd.f32 %v787_v38, %v783_v5  ;;  %v1624_v45 = vadd.f32 %v1622_v21, %v1619_v31 }
 0x24a   : > { %v707_v24 = vadd.f32 %v705_v53, %v701_v11  ;;  %v746_v18 = vmul.f32 %v4886_v14, %v5990_v41  ;;  %v5991_v48 = vstv %s4636_s4  ;;  %v5993_v42 = vstv %s4814_s11  ;;  %s4959_s4 = sld [smem:[#allocation5 + $0x43]] }
 0x24b   : > { %v736_v57 = vadd.f32 %v734_v1, %v730_v32  ;;  %v636_v23 = vmul.f32 %v4845_v22, %v5991_v48  ;;  %1626 = vrot.lane.b32.xlu1 %v1624_v45, %s5992_s10  ;;  %v903_v5 = vmul.f32 %v4664_v3, %v5993_v42  ;;  %v5994_v21 = vstv %s4645_s16  ;;  %v1138_v32 = vpop.permute.xlu0 %1137  ;;  %s4978_s16 = sld [smem:[#allocation5 + $0x4a]] }
 0x24c   : > { %v713_v63 = vadd.f32 %v711_v27, %v707_v24  ;;  %v640_v38 = vmul.f32 %v4850_v28, %v5994_v21  ;;  %v5995_v53 = vstv %s4654_s8  ;;  %v899_v31 = vadd.f32 %v897_v7, %v893_v61  ;;  %v4907_v27 = vld [vmem:[#allocation2 + $0xe] sm:$0xff]  ;;  %s4984_s8 = sld [smem:[#allocation5 + $0x51]] }
 0x24d   : > { %v646_v1 = vmul.f32 %v4856_v0, %v5995_v53  ;;  %v908_v41 = vstv %s4843_s5  ;;  %v742_v11 = vadd.f32 %v740_v40, %v736_v57  ;;  %v5996_v24 = vstv %s4613_s22  ;;  %v4917_v40 = vld [vmem:[#allocation2 + $0x20] sm:$0xff]  ;;  %s6009_s22 = sld [smem:[#allocation56_spill]] }
 0x24e   : > { %v752_v45 = vmul.f32 %v4907_v27, %v5996_v24  ;;  %v795_v55 = vadd.f32 %v793_v34, %v789_v37  ;;  %1127 = vrot.lane.b32.xlu0 %v713_v63, %s5997_s29  ;;  %v642_v48 = vadd.f32 %v640_v38, %v636_v23  ;;  %v5999_v42 = vstv %s4660_s24  ;;  %s6021_s24 = sld [smem:[#allocation57_spill]] }
 0x24f   : > { %v652_v61 = vmul.f32 %v4864_v50, %v5999_v42  ;;  %v914_v7 = vstv %s4862_s19  ;;  %v748_v21 = vadd.f32 %v746_v18, %v742_v11  ;;  %v6000_v57 = vstv %s4618_s30  ;;  %v4928_v11 = vld [vmem:[#allocation2 + $0x21] sm:$0xff]  ;;  %s6010_s30 = sld [smem:[#allocation37_spill]] }
 0x250   : > { %v758_v53 = vmul.f32 %v4917_v40, %v6000_v57  ;;  %v1143_v24 = vadd.f32 %v1138_v32, %v795_v55  ;;  %v909_v34 = vmul.f32 %v4677_v56, %v908_v41  ;;  %v648_v63 = vadd.f32 %v646_v1, %v642_v48  ;;  %s2532_s5 = sld [smem:[#allocation5 + $0xf8]] }
 0x251   : > { %v6001_v37 = vstv %s4669_s21  ;;  %v905_v38 = vadd.f32 %v903_v5, %v899_v31  ;;  %v754_v18 = vadd.f32 %v752_v45, %v748_v21  ;;  %v6002_v42 = vstv %s5998_s20  ;;  %s4997_s21 = sld [smem:[#allocation5 + $0x58]] }
 0x252   : > { %v658_v23 = vmul.f32 %v4878_v36, %v6001_v37  ;;  %v764_v60 = vmul.f32 %v4928_v11, %v6002_v42  ;;  %v6003_v57 = vstv %s4740_s18  ;;  %1147 = vrot.lane.b32.xlu0 %v1143_v24, %s5936_s9  ;;  %v654_v1 = vadd.f32 %v652_v61, %v648_v63  ;;  %v4946_v42 = vld [vmem:[#allocation2 + $0x22] sm:$0xff]  ;;  %s2534_s18 = sld [smem:[#allocation5 + $0xfa]] }
 0x253   : > { %v882_v32 = vmul.f32 %v4845_v22, %v6003_v57  ;;  %v6004_v55 = vstv %s4682_s28  ;;  %v6005_v5 = vstv %s4750_s7  ;;  %v6006_v45 = vstv %s4777_s12  ;;  %6007 = vst [vmem:[#allocation141_spill] sm:$0xff] %v4946_v42  ;;  %s5024_s28 = sld [smem:[#allocation5 + $0xc5]] }
 0x254   : > { %v664_v48 = vmul.f32 %v4886_v14, %v6004_v55  ;;  %v886_v31 = vmul.f32 %v4850_v28, %v6005_v5  ;;  %v892_v21 = vmul.f32 %v4856_v0, %v6006_v45  ;;  %v760_v37 = vadd.f32 %v758_v53, %v754_v18  ;;  %s2535_s7 = sld [smem:[#allocation5 + $0xfb]] }
 0x255   : > { %v6008_v56 = vstv %s4673_s0  ;;  %v660_v61 = vadd.f32 %v658_v23, %v654_v1  ;;  %v6011_v24 = vstv %s4698_s13  ;;  %v6012_v12 = vstv %s4799_s6  ;;  %s5003_s0 = sld [smem:[#allocation5 + $0x5f]] }
 0x256   : > { %v770_v57 = vmul.f32 %v4946_v42, %v6008_v56  ;;  %v670_v63 = vmul.f32 %v4907_v27, %v6011_v24  ;;  %v888_v55 = vadd.f32 %v886_v31, %v882_v32  ;;  %v898_v5 = vmul.f32 %v4864_v50, %v6012_v12  ;;  %v4967_v31 = vld [vmem:[#allocation2 + $0x23] sm:$0xff]  ;;  %s2525_s13 = sld [smem:[#allocation5 + $0xc7]] }
 0x257   : > { %v911_v3 = vadd.f32 %v909_v34, %v905_v38  ;;  %v915_v45 = vmul.f32 %v4692_v8, %v914_v7  ;;  %v920_v25 = vstv %s4905_s23  ;;  %v766_v53 = vadd.f32 %v764_v60, %v760_v37  ;;  %6015 = vst [vmem:[#allocation142_spill] sm:$0xff] %v4967_v31  ;;  %s2620_s12 = sld [smem:[#allocation8 + $0x2]] }
 0x258   : > { %v666_v18 = vadd.f32 %v664_v48, %v660_v61  ;;  %v6013_v29 = vstv %s4707_s25  ;;  %v894_v23 = vadd.f32 %v892_v21, %v888_v55  ;;  %v6014_v1 = vstv %s4814_s11  ;;  %s2528_s25 = sld [smem:[#allocation5 + $0xca]] }
 0x259   : > { %v676_v56 = vmul.f32 %v4917_v40, %v6013_v29  ;;  %v904_v32 = vmul.f32 %v4878_v36, %v6014_v1  ;;  %v6016_v12 = vstv %s6009_s22  ;;  %v6017_v38 = vstv %s6010_s30  ;;  %s2531_s11 = sld [smem:[#allocation5 + $0xf7]] }
 0x25a   : > { %v776_v34 = vmul.f32 %v4967_v31, %v6016_v12  ;;  %v682_v24 = vmul.f32 %v4928_v11, %v6017_v38  ;;  %v772_v60 = vadd.f32 %v770_v57, %v766_v53  ;;  %v672_v48 = vadd.f32 %v670_v63, %v666_v18  ;;  %v4986_v57 = vld [vmem:[#allocation2 + $0x24] sm:$0xff]  ;;  %s2423_s6 = sld [smem:[#allocation5 + $0x69]] }
 0x25b   : > { %v900_v37 = vadd.f32 %v898_v5, %v894_v23  ;;  %v910_v61 = vmul.f32 %v4886_v14, %v908_v41  ;;  %v917_v29 = vadd.f32 %v915_v45, %v911_v3  ;;  %v921_v21 = vmul.f32 %v4711_v62, %v920_v25  ;;  %s2424_s19 = sld [smem:[#allocation5 + $0x70]] }
 0x25c   : > { %v926_v55 = vstv %s4926_s1  ;;  %v678_v1 = vadd.f32 %v676_v56, %v672_v48  ;;  %v6018_v8 = vstv %s4735_s14  ;;  %v916_v38 = vmul.f32 %v4907_v27, %v914_v7  ;;  %s2533_s14 = sld [smem:[#allocation5 + $0xf9]] }
 0x25d   : > { %v688_v12 = vmul.f32 %v4946_v42, %v6018_v8  ;;  %v906_v36 = vadd.f32 %v904_v32, %v900_v37  ;;  %v6019_v41 = vstv %s4702_s17  ;;  %v6020_v63 = vstv %s4754_s15  ;;  %s2526_s17 = sld [smem:[#allocation5 + $0xc8]] }
 0x25e   : > { %v782_v3 = vmul.f32 %v4986_v57, %v6019_v41  ;;  %v694_v5 = vmul.f32 %v4967_v31, %v6020_v63  ;;  %v778_v45 = vadd.f32 %v776_v34, %v772_v60  ;;  %v684_v53 = vadd.f32 %v682_v24, %v678_v1  ;;  %s2530_s15 = sld [smem:[#allocation5 + $0xf6]] }
 0x25f   : > { %v912_v18 = vadd.f32 %v910_v61, %v906_v36  ;;  %v922_v8 = vmul.f32 %v4917_v40, %v920_v25  ;;  %v923_v56 = vadd.f32 %v921_v21, %v917_v29  ;;  %v927_v7 = vmul.f32 %v4742_v20, %v926_v55  ;;  %v5005_v36 = vld [vmem:[#allocation2 + $0x25] sm:$0xff]  ;;  %s5060_s23 = sld [smem:[#allocation5]] }
 0x260   : > { %v932_v23 = vstv %s4959_s4  ;;  %v690_v32 = vadd.f32 %v688_v12, %v684_v53  ;;  %v6022_v48 = vstv %s4761_s26  ;;  %v928_v63 = vmul.f32 %v4928_v11, %v926_v55  ;;  %s5016_s26 = sld [smem:[#allocation5 + $0xc4]] }
 0x261   : > { %v700_v37 = vmul.f32 %v4986_v57, %v6022_v48  ;;  %v918_v41 = vadd.f32 %v916_v38, %v912_v18  ;;  %v6023_v25 = vstv %s6021_s24  ;;  %v6024_v24 = vstv %s4771_s27  ;;  %v5018_v18 = vld [vmem:[#allocation2 + $0x26] sm:$0xff]  ;;  %s2529_s27 = sld [smem:[#allocation5 + $0xf5]] }
 0x262   : > { %v788_v34 = vmul.f32 %v5005_v36, %v6023_v25  ;;  %v706_v60 = vmul.f32 %v5005_v36, %v6024_v24  ;;  %v784_v61 = vadd.f32 %v782_v3, %v778_v45  ;;  %v696_v29 = vadd.f32 %v694_v5, %v690_v32  ;;  %s5066_s20 = sld [smem:[#allocation5 + $0x7e]] }
 0x263   : > { %v924_v21 = vadd.f32 %v922_v8, %v918_v41  ;;  %v934_v1 = vmul.f32 %v4946_v42, %v932_v23  ;;  %v929_v12 = vadd.f32 %v927_v7, %v923_v56  ;;  %v933_v55 = vmul.f32 %v4764_v58, %v932_v23  ;;  %s5070_s1 = sld [smem:[#allocation5 + $0xe]] }
 0x264   : > { %v938_v38 = vstv %s4978_s16  ;;  %v702_v53 = vadd.f32 %v700_v37, %v696_v29  ;;  %v6025_v48 = vstv %s4785_s2  ;;  %v944_v5 = vstv %s4984_s8  ;;  %s2422_s2 = sld [smem:[#allocation5 + $0x62]] }
 0x265   : > { %v712_v25 = vmul.f32 %v5018_v18, %v6025_v48  ;;  %v930_v24 = vadd.f32 %v928_v63, %v924_v21  ;;  %v940_v3 = vmul.f32 %v4967_v31, %v938_v38  ;;  %v6026_v45 = vstv %s4802_s3  ;;  %v1140_v63 = vpop.permute.xlu1 %1139  ;;  %s2524_s3 = sld [smem:[#allocation5 + $0xc6]] }
 0x266   : > { %v794_v8 = vmul.f32 %v5018_v18, %v6026_v45  ;;  %v790_v56 = vadd.f32 %v788_v34, %v784_v61  ;;  %v708_v7 = vadd.f32 %v706_v60, %v702_v53  ;;  %v946_v32 = vmul.f32 %v4986_v57, %v944_v5  ;;  %s5073_s22 = sld [smem:[#allocation5 + $0x85]] }
 0x267   : > { %v936_v23 = vadd.f32 %v934_v1, %v930_v24  ;;  %v935_v37 = vadd.f32 %v933_v55, %v929_v12  ;;  %v939_v41 = vmul.f32 %v4787_v33, %v938_v38  ;;  %v950_v29 = vstv %s4997_s21  ;;  %v1158_v12 = vpop.permute.xlu0 %1157  ;;  %s5078_s30 = sld [smem:[#allocation5 + $0x15]] }
 0x268   : > { %v714_v21 = vadd.f32 %v712_v25, %v708_v7  ;;  %v952_v31 = vmul.f32 %v5005_v36, %v950_v29  ;;  %v956_v58 = vstv %s5003_s0  ;;  %v796_v42 = vadd.f32 %v794_v8, %v790_v56  ;;  %s5082_s4 = sld [smem:[#allocation5 + $0x8c]] }
 0x269   : > { %v942_v48 = vadd.f32 %v940_v3, %v936_v23  ;;  %v958_v60 = vmul.f32 %v5018_v18, %v956_v58  ;;  %v941_v61 = vadd.f32 %v939_v41, %v935_v37  ;;  %v945_v1 = vmul.f32 %v4805_v47, %v944_v5  ;;  %v1160_v25 = vpop.permute.xlu1 %1159  ;;  %s5090_s16 = sld [smem:[#allocation5 + $0x1c]] }
 0x26a   : > { %1129 = vrot.lane.b32.xlu1 %v714_v21, %s5997_s29  ;;  %v1144_v55 = vadd.f32 %v1140_v63, %v796_v42  ;;  %v1641_v53 = vstv %s5016_s26  ;;  %v1645_v24 = vstv %s5024_s28  ;;  %v951_v7 = vmul.f32 %v4828_v52, %v950_v29  ;;  %s5062_s29 = sld [smem:[#allocation5 + $0x7]] }
 0x26b   : > { %v948_v34 = vadd.f32 %v946_v32, %v942_v48  ;;  %v1642_v45 = vmul.f32 %v4369_v17, %v1641_v53  ;;  %v1646_v8 = vmul.f32 %v4381_v16, %v1645_v24  ;;  %v947_v56 = vadd.f32 %v945_v1, %v941_v61  ;;  %v1170_v32 = vpop.permute.xlu0 %1169  ;;  %v2768_v48 = vld [vmem:[#allocation4 + $0x3] sm:$0xf]  ;;  %s5094_s8 = sld [smem:[#allocation5 + $0x93]] }
 0x26c   : > { %v1650_v37 = vstv %s2524_s3  ;;  %v957_v41 = vmul.f32 %v4869_v6, %v956_v58  ;;  %v1655_v21 = vstv %s2525_s13  ;;  %v1670_v24 = vstv %s2528_s25  ;;  %s5099_s24 = sld [smem:[#allocation5 + $0x23]] }
 0x26d   : > { %v954_v38 = vadd.f32 %v952_v31, %v948_v34  ;;  %v1647_v42 = vadd.f32 %v1646_v8, %v1642_v45  ;;  %v953_v31 = vadd.f32 %v951_v7, %v947_v56  ;;  %v1651_v63 = vmul.f32 %v4393_v54, %v1650_v37  ;;  %v2769_v45 = vld [vmem:[#allocation4 + $0x10] sm:$0xf]  ;;  %s2430_s21 = sld [smem:[#allocation5 + $0x9a]] }
 0x26e   : > { %1149 = vrot.lane.b32.xlu1 %v1144_v55, %s5936_s9  ;;  %s2527_s9 = sld [smem:[#allocation5 + $0xc9]]  ;;  %v1656_v34 = vmul.f32 %v2768_v48, %v1655_v21  ;;  %v1680_v7 = vstv %s2530_s15  ;;  %v1700_v21 = vstv %s2534_s18 }
 0x26f   : > { %v960_v3 = vadd.f32 %v958_v60, %v954_v38  ;;  %v1652_v17 = vadd.f32 %v1651_v63, %v1647_v42  ;;  %v959_v16 = vadd.f32 %v957_v41, %v953_v31  ;;  %v1660_v60 = vstv %s2526_s17  ;;  %s2328_s0 = sld [smem:[#allocation5 + $0x2a]] }
 0x270   : > { %v1661_v38 = vmul.f32 %v4410_v9, %v1660_v60  ;;  %v1681_v9 = vmul.f32 %v4471_v2, %v1680_v7  ;;  %v1695_v41 = vstv %s2533_s14  ;;  %v1705_v2 = vstv %s2535_s7  ;;  %s2431_s26 = sld [smem:[#allocation5 + $0xa1]] }
 0x271   : > { %v1164_v23 = vadd.f32 %v1160_v25, %v960_v3  ;;  %v1163_v29 = vadd.f32 %v1158_v12, %v959_v16  ;;  %v1657_v61 = vadd.f32 %v1656_v34, %v1652_v17  ;;  %v1675_v25 = vstv %s2529_s27  ;;  %s2329_s28 = sld [smem:[#allocation5 + $0x31]] }
 0x272   : > { %v1671_v12 = vmul.f32 %v4448_v30, %v1670_v24  ;;  %v1676_v8 = vmul.f32 %v2769_v45, %v1675_v25  ;;  %v1696_v63 = vmul.f32 %v4532_v15, %v1695_v41  ;;  %v1701_v16 = vmul.f32 %v4537_v51, %v1700_v21  ;;  %s2432_s3 = sld [smem:[#allocation5 + $0xa8]] }
 0x273   : > { %v1174_v5 = vadd.f32 %v1170_v32, %v1164_v23  ;;  %v1662_v53 = vadd.f32 %v1661_v38, %v1657_v61  ;;  %v1685_v32 = vstv %s2531_s11  ;;  %v1706_v34 = vmul.f32 %v4526_v4, %v1705_v2  ;;  %v6027_v4 = vld [vmem:[#allocation109_spill] sm:$0xff]  ;;  %s2330_s13 = sld [smem:[#allocation5 + $0x38]] }
 0x274   : > { %v1168_v1 = vpop.permute.xlu1 %1167  ;;  %v1665_v58 = vstv %s2527_s9  ;;  %v1686_v37 = vmul.f32 %v4509_v39, %v1685_v32  ;;  %v2040_v39 = vpop.permute.xlu0 %2039  ;;  %v1203_v51 = vstv %s2422_s2  ;;  %v1207_v24 = vstv %s2423_s6  ;;  %s2433_s17 = sld [smem:[#allocation5 + $0xaf]] }
 0x275   : > { %1179 = vrot.lane.b32.xlu1 %v1174_v5, %s5992_s10  ;;  %v1173_v55 = vadd.f32 %v1168_v1, %v1163_v29  ;;  %v1666_v54 = vmul.f32 %v4424_v26, %v1665_v58  ;;  %v1690_v26 = vstv %s2532_s5  ;;  %v5058_v25 = vsub.s32 0, %v6027_v4  ;;  %s2331_s9 = sld [smem:[#allocation5 + $0x3f]] }
 0x276   : > { %v1691_v31 = vmul.f32 %v4529_v13, %v1690_v26  ;;  %v2069_v13 = vstv %s2620_s12  ;;  %v1208_v45 = vmul.f32 %v4491_v59, %v1207_v24  ;;  %v2151_v7 = vsub.s32 1, %v6027_v4  ;;  %v6030_v24 = vld [vmem:[#allocation139_spill] sm:$0xff]  ;;  %s2434_s25 = sld [smem:[#allocation5 + $0xb6]] }
 0x277   : > { %1177 = vrot.lane.b32.xlu0 %v1173_v55, %s5992_s10  ;;  %v1667_v3 = vadd.f32 %v1666_v54, %v1662_v53  ;;  %s2425_s10 = sld [smem:[#allocation5 + $0x77]]  ;;  %v2162_v59 = vsub.s32 2, %v6027_v4 }
 0x278   : > { %s2332_s27 = sld [smem:[#allocation5 + $0x46]] }
 0x279   : > { %v1672_v56 = vadd.f32 %v1671_v12, %v1667_v3  ;;  %v1204_v12 = vmul.f32 %v4488_v35, %v1203_v51  ;;  %s5120_s15 = sld [smem:[#allocation5 + $0xbd]] }
 0x27a   : > { %s2333_s11 = sld [smem:[#allocation5 + $0x4d]] }
 0x27b   : > { %v1677_v23 = vadd.f32 %v1676_v8, %v1672_v56  ;;  %v1212_v8 = vstv %s2424_s19  ;;  %s2334_s5 = sld [smem:[#allocation5 + $0x54]] }
 0x27c   : > { %s2335_s14 = sld [smem:[#allocation5 + $0x5b]] }
 0x27d   : > { %v1682_v5 = vadd.f32 %v1681_v9, %v1677_v23  ;;  %v1209_v23 = vadd.f32 %v1208_v45, %v1204_v12  ;;  %v1213_v9 = vmul.f32 %v4496_v43, %v1212_v8  ;;  %v1217_v32 = vstv %s2425_s10  ;;  %v6031_v45 = vld [vmem:[#allocation134_spill] sm:$0xff]  ;;  %s2520_s18 = sld [smem:[#allocation8 + $0x1]] }
 0x27e   : > { %s1185_s7 = sld [smem:[#allocation8]] }
 0x27f   : > { %v1687_v42 = vadd.f32 %v1686_v37, %v1682_v5  ;;  %v526_v5 = vstv %s5060_s23  ;;  %v532_v37 = vstv %s5062_s29  ;;  %v1214_v26 = vadd.f32 %v1213_v9, %v1209_v23  ;;  %s6041_s12 = sld [smem:[#allocation15_spill]] }
 0x280   : > { %v528_v43 = vmul.f32 %v4845_v22, %v526_v5  ;;  %v534_v41 = vmul.f32 %v4850_v28, %v532_v37  ;;  %v527_v21 = vmul.f32 %v4621_v10, %v526_v5  ;;  %v1227_v22 = vstv %s5073_s22  ;;  %v6033_v5 = vld [vmem:[#allocation135_spill] sm:$0xff]  ;;  %s6042_s2 = sld [smem:[#allocation23_spill]] }
 0x281   : > { %v1692_v30 = vadd.f32 %v1691_v31, %v1687_v42  ;;  %v1218_v42 = vmul.f32 %v4504_v44, %v1217_v32  ;;  %v1222_v31 = vstv %s5066_s20  ;;  %v1242_v9 = vstv %s2430_s21  ;;  %s6043_s23 = sld [smem:[#allocation18_spill]]  ;;  %s2882_s21 = smov [#allocation10]  }
 0x282   : > { %v1223_v2 = vmul.f32 %v4517_v19, %v1222_v31  ;;  %v536_v28 = vadd.f32 %v534_v41, %v528_v43  ;;  %v6034_v31 = vld [vmem:[#allocation145_spill] sm:$0xff]  ;;  %v1247_v41 = vstv %s2431_s26  ;;  %s6044_s29 = sld [smem:[#allocation21_spill]] }
 0x283   : > { %v1697_v17 = vadd.f32 %v1696_v63, %v1692_v30  ;;  %v2173_v63 = vsub.s32 3, %v6027_v4  ;;  %v1219_v44 = vadd.f32 %v1218_v42, %v1214_v26  ;;  %v572_v26 = vstv %s2328_s0  ;;  %s2808_s0 = sshll.u32 %s2882_s21, 4  ;;  %s2809_s0 = int_to_ptr.vmem [resolvable:$false] %s2808_s0 }
 0x284   : > { %v1243_v43 = vmul.f32 %v6034_v31, %v1242_v9  ;;  %s2810_s26 = scalar_lea.vmem %s2809_s0, 2048 }
 0x285   : > { %v1702_v48 = vadd.f32 %v1701_v16, %v1697_v17  ;;  %v533_v17 = vmul.f32 %v4629_v49, %v532_v37  ;;  %v540_v16 = vstv %s5070_s1  ;;  %s188_s6 = sand.u32 1, %s6041_s12  }
 0x286   : > { %v541_v49 = vmul.f32 %v4639_v46, %v540_v16  ;;  %s2320_s19 = sshll.u32 %s188_s6, 6 }
 0x287   : > { %v1707_v29 = vadd.f32 %v1706_v34, %v1702_v48  ;;  %v542_v48 = vmul.f32 %v4856_v0, %v540_v16  ;;  %v535_v10 = vadd.f32 %v533_v17, %v527_v21  ;;  %v6035_v17 = vld [vmem:[#allocation137_spill] sm:$0xff]  ;;  %s5146_s10 = scalar_lea.vmem [#allocation10], %s2320_s19  ;;  %s2628_s20 = sshll.u32 %s6043_s23, 10 }
 0x288   : > { %v573_v16 = vmul.f32 %v6035_v17, %v572_v26  ;;  %s2228_s1 = sshll.u32 %s5146_s10, 4  ;;  %p6046_p12 = scmp.ne.s32.totalorder %s6044_s29, 0  ;;  %s5172_s1 = int_to_ptr.vmem [resolvable:$true] %s2228_s1 }
 0x289   : > { %v2042_v61 = vadd.f32 %v2040_v39, %v1707_v29  ;;  %v548_v39 = vstv %s5078_s30  ;;  %v1224_v29 = vadd.f32 %v1223_v2, %v1219_v44  ;;  %v580_v44 = vstv %s2329_s28  ;;  %p2811_p8 = scmp.lt.s32.totalorder %s5172_s1, %s2809_s0 }
 0x28a   : > { %v550_v0 = vmul.f32 %v4864_v50, %v548_v39  ;;  %v6032_v50 = vld [vmem:[#allocation133_spill] sm:$0xff] }
 0x293   : > { %v2050_v60 = vpop.permute.xlu1 %2049 }
 0x294   : > { %v2052_v1 = vadd.f32 %v2050_v60, %v2042_v61  ;;  %v2770_v60 = vld [vmem:[#allocation3 + $0x5] sm:$0xf]  ;;  %v1232_v61 = vstv %s5082_s4  ;;  %s6045_s4 = sld [smem:[#allocation151_spill]] }
 0x295   : > { %v1228_v19 = vmul.f32 %v2770_v60, %v1227_v22 }
 0x297   : > { %v1229_v46 = vadd.f32 %v1228_v19, %v1224_v29  ;;  %v1257_v19 = vstv %s2433_s17 }
 0x29e   : > { %v2065_v55 = vpop.permute.xlu0 %2064 }
 0x29f   : > { %v2067_v38 = vadd.f32 %v2065_v55, %v2052_v1  ;;  %v544_v1 = vadd.f32 %v542_v48, %v536_v28  ;;  %v6028_v55 = vld [vmem:[#allocation146_spill] sm:$0xff]  ;;  %v1252_v28 = vstv %s2432_s3 }
 0x2a1   : > { %v2070_v58 = vadd.f32 %v2069_v13, %v2067_v38  ;;  %v543_v13 = vadd.f32 %v541_v49, %v535_v10  ;;  %v549_v38 = vmul.f32 %v6028_v55, %v548_v39  ;;  %v552_v51 = vadd.f32 %v550_v0, %v544_v1 }
 0x2a2   : > { %v581_v49 = vmul.f32 %v4711_v62, %v580_v44  ;;  %v588_v39 = vstv %s2330_s13  ;;  %v596_v55 = vstv %s2331_s9 }
 0x2a3   : > { %v2621_v53 = vmul.f32 -1.442695, %v2070_v58  ;;  %v556_v58 = vstv %s5090_s16  ;;  %v551_v12 = vadd.f32 %v549_v38, %v543_v13  ;;  %v590_v1 = vmul.f32 %v4928_v11, %v588_v39  ;;  %v2771_v38 = vld [vmem:[#allocation3 + $0x14] sm:$0xf]  ;;  %s5170_s16 = scalar_lea.hbm %s6045_s4, %s2628_s20 }
 0x2a4   : > { %v557_v8 = vmul.f32 %v6031_v45, %v556_v58  ;;  %v589_v13 = vmul.f32 %v4742_v20, %v588_v39  ;;  %v1258_v62 = vmul.f32 %v2771_v38, %v1257_v19  ;;  %v2772_v45 = vld [vmem:[#allocation3 + $0x15] sm:$0xf]  ;;  %v1267_v20 = vstv %s5120_s15 }
 0x2a5   : > { %2697 = vpow2.f32 %v2621_v53  ;;  %v6029_v53 = vld [vmem:[#allocation140_spill] sm:$0xff]  ;;  %v1631_v39 = vstv %s2520_s18 }
 0x2b2   : > { %v2698_v15 = vpop.eup %2697 }
 0x2b3   : > { %v2074_v54 = vadd.f32 1.0, %v2698_v15  ;;  %v1233_v15 = vmul.f32 %v6029_v53, %v1232_v61  ;;  %v6038_v53 = vld [vmem:[#allocation141_spill] sm:$0xff] }
 0x2b5   : > { %2699 = vrcp.f32 %v2074_v54  ;;  %v1237_v54 = vstv %s5094_s8  ;;  %s5180_s8 = scalar_lea.sflag [#allocation6], %s188_s6 }
 0x2b6   : > { %v1238_v23 = vmul.f32 %v6032_v50, %v1237_v54  ;;  %v1602_v54 = vpop.permute.xlu1 %1601 }
 0x2c2   : > { %v2700_v3 = vpop.eup %2699 }
 0x2c3   : > { %v2141_v56 = vrot.slane %v2700_v3, %v5058_v25  ;;  %v2152_v35 = vrot.slane %v2700_v3, %v2151_v7  ;;  %v2163_v30 = vrot.slane %v2700_v3, %v2162_v59  ;;  %v2174_v34 = vrot.slane %v2700_v3, %v2173_v63 }
 0x2c4   : > { %v558_v3 = vmul.f32 %v6030_v24, %v556_v58  ;;  %v1234_v7 = vadd.f32 %v1233_v15, %v1229_v46  ;;  %v559_v59 = vadd.f32 %v557_v8, %v551_v12  ;;  %v574_v63 = vmul.f32 %v4907_v27, %v572_v26  ;;  %v6037_v27 = vld [vmem:[#allocation136_spill] sm:$0xff]  ;;  %v6039_v24 = vld [vmem:[#allocation138_spill] sm:$0xff]  ;;  %v1612_v26 = vpop.permute.xlu0 %1611 }
 0x2c5   : > { %2147 = vbcast.lane.b32.xlu1 %v2141_v56, 264  ;;  %2143 = vbcast.lane.b32.xlu0 %v2141_v56, 256  ;;  %v564_v56 = vstv %s5099_s24  ;;  %v1253_v60 = vmul.f32 %v6037_v27, %v1252_v28  ;;  %v1262_v58 = vstv %s2434_s25  ;;  %v598_v15 = vmul.f32 %v6038_v53, %v596_v55  ;;  %s2804_s24 = scalar_lea.vmem %s5172_s1, 1024 }
 0x2c6   : > { %v560_v32 = vadd.f32 %v558_v3, %v552_v51  ;;  %v565_v37 = vmul.f32 %v6033_v5, %v564_v56  ;;  %v1239_v42 = vadd.f32 %v1238_v23, %v1234_v7  ;;  %v597_v3 = vmul.f32 %v6039_v24, %v596_v55  ;;  %v6040_v7 = vld [vmem:[#allocation142_spill] sm:$0xff]  ;;  %p2805_p10 = scmp.ne.s32.totalorder %s5172_s1, %s2804_s24  ;;  %p2812_p11 = scmp.lt.s32.totalorder %s2810_s26, %s2804_s24 }
 0x2c7   : > { %v604_v12 = vstv %s2332_s27  ;;  %v1263_v8 = vmul.f32 %v2772_v45, %v1262_v58  ;;  %v2773_v5 = vld [vmem:[#allocation3 + $0x16] sm:$0xf]  ;;  %v2881_v24 = vmov 1966171168  }
 0x2c8   : > { %v567_v21 = vadd.f32 %v565_v37, %v559_v59  ;;  %v1244_v2 = vadd.f32 %v1243_v43, %v1239_v42  ;;  %v606_v50 = vmul.f32 %v6040_v7, %v604_v12  ;;  %v605_v9 = vmul.f32 %v4787_v33, %v604_v12  ;;  %p2806_p0 = pnand %p2805_p10, %p6046_p12  ;;  %p2813_p13 = por %p2812_p11, %p2811_p8 }
 0x2c9   : > { %2158 = vbcast.lane.b32.xlu1 %v2152_v35, 264  ;;  %2154 = vbcast.lane.b32.xlu0 %v2152_v35, 256  ;;  %v566_v35 = vmul.f32 %v4886_v14, %v564_v56  ;;  %v6036_v14 = vld [vmem:[#allocation147_spill] sm:$0xff]  ;;  %v1268_v37 = vmul.f32 %v2773_v5, %v1267_v20 }
 0x2ca   : > { %v1248_v22 = vmul.f32 %v6036_v14, %v1247_v41  ;;  %v575_v10 = vadd.f32 %v573_v16, %v567_v21  ;;  %v628_v14 = vstv %s2335_s14  ;;  %p2807_p7 = pneg %p2806_p0 }
 0x2cc   : > { %v1249_v29 = vadd.f32 %v1248_v22, %v1244_v2  ;;  %v583_v0 = vadd.f32 %v581_v49, %v575_v10  ;;  %v1128_v22 = vpop.permute.xlu0 %1127  ;;  %p2814_p1 = pnand %p2813_p13, %p2807_p7 }
 0x2cd   : > { %2169 = vbcast.lane.b32.xlu1 %v2163_v30, 264  ;;  %2165 = vbcast.lane.b32.xlu0 %v2163_v30, 256  ;;  %v568_v30 = vadd.f32 %v566_v35, %v560_v32  ;;  %v1627_v32 = vpop.permute.xlu1 %1626  ;;  %v612_v35 = vstv %s2333_s11 }
 0x2ce   : > { %v591_v51 = vadd.f32 %v589_v13, %v583_v0  ;;  %v614_v31 = vmul.f32 %v4986_v57, %v612_v35  ;;  %v613_v41 = vmul.f32 %v4805_v47, %v612_v35  ;;  %v630_v57 = vmul.f32 %v5018_v18, %v628_v14 }
 0x2cf   : > { %v576_v48 = vadd.f32 %v574_v63, %v568_v30  ;;  %v620_v30 = vstv %s2334_s5  ;;  %v629_v47 = vmul.f32 %v4869_v6, %v628_v14  ;;  %v1186_v18 = vstv %s1185_s7 }
 0x2d0   : > { %v599_v23 = vadd.f32 %v597_v3, %v591_v51  ;;  %v622_v33 = vmul.f32 %v5005_v36, %v620_v30  ;;  %v621_v2 = vmul.f32 %v4828_v52, %v620_v30  ;;  %v2087_v3 = vunpack.c.l.s4 %v2881_v24 }
 0x2d1   : > { %2180 = vbcast.lane.b32.xlu1 %v2174_v34, 264  ;;  %2176 = vbcast.lane.b32.xlu0 %v2174_v34, 256  ;;  %v582_v34 = vmul.f32 %v4917_v40, %v580_v44  ;;  %v1254_v40 = vadd.f32 %v1253_v60, %v1249_v29  ;;  %v1148_v29 = vpop.permute.xlu0 %1147 }
 0x2d2   : > { %v607_v43 = vadd.f32 %v605_v9, %v599_v23  ;;  %v2088_v45 = vunpack.c.0.s8 %v2087_v3 }
 0x2d3   : > { %v584_v61 = vadd.f32 %v582_v34, %v576_v48  ;;  %v1259_v11 = vadd.f32 %v1258_v62, %v1254_v40 }
 0x2d4   : > { %v615_v44 = vadd.f32 %v613_v41, %v607_v43 }
 0x2d5   : > { %v592_v46 = vadd.f32 %v590_v1, %v584_v61  ;;  %v1264_v59 = vadd.f32 %v1263_v8, %v1259_v11  ;;  %v2091_v8 = vsub.s32 %v2088_v45, %v6027_v4 }
 0x2d6   : > { %v623_v34 = vadd.f32 %v621_v2, %v615_v44  ;;  %v2080_v2 = vld [vmem:[%s6042_s2 + $0x18] sm:$0xff] }
 0x2d7   : > { %v600_v56 = vadd.f32 %v598_v15, %v592_v46  ;;  %v1269_v63 = vadd.f32 %v1268_v37, %v1264_v59  ;;  %v2077_v37 = vld [vmem:[%s6042_s2] sm:$0xff] }
 0x2d8   : > { %v631_v36 = vadd.f32 %v629_v47, %v623_v34 }
 0x2d9   : > { %v608_v42 = vadd.f32 %v606_v50, %v600_v56  ;;  %v1604_v16 = vadd.f32 %v1602_v54, %v1269_v63 }
 0x2da   : > { %v1133_v61 = vadd.f32 %v1128_v22, %v631_v36 }
 0x2db   : > { %v616_v17 = vadd.f32 %v614_v31, %v608_v42  ;;  %v1614_v28 = vadd.f32 %v1612_v26, %v1604_v16  ;;  %v2078_v42 = vld [vmem:[%s6042_s2 + $0x8] sm:$0xff]  ;;  %v2079_v16 = vld [vmem:[%s6042_s2 + $0x10] sm:$0xff] }
 0x2dc   : > { %v1130_v21 = vpop.permute.xlu1 %1129  ;;  %v1153_v55 = vadd.f32 %v1148_v29, %v1133_v61 }
 0x2dd   : > { %v624_v48 = vadd.f32 %v622_v33, %v616_v17  ;;  %v1629_v10 = vadd.f32 %v1627_v32, %v1614_v28 }
 0x2df   : > { %v632_v27 = vadd.f32 %v630_v57, %v624_v48  ;;  %v1632_v60 = vadd.f32 %v1631_v39, %v1629_v10 }
 0x2e0   : > { %v1150_v49 = vpop.permute.xlu1 %1149 }
 0x2e1   : > { %v1134_v19 = vadd.f32 %v1130_v21, %v632_v27  ;;  %v2521_v13 = vmul.f32 -1.442695, %v1632_v60  ;;  %v2081_v27 = vld [vmem:[%s6042_s2 + $0x20] sm:$0xff]  ;;  %v2082_v60 = vld [vmem:[%s6042_s2 + $0x28] sm:$0xff] }
 0x2e3   : > { %v1154_v1 = vadd.f32 %v1150_v49, %v1134_v19  ;;  %2701 = vpow2.f32 %v2521_v13 }
 0x2e7   : > { %v1180_v52 = vpop.permute.xlu1 %1179 }
 0x2e8   : > { %v1184_v40 = vadd.f32 %v1180_v52, %v1154_v1 }
 0x2e9   : > { %v1178_v0 = vpop.permute.xlu0 %1177 }
 0x2ea   : > { %v1183_v38 = vadd.f32 %v1178_v0, %v1153_v55  ;;  %v1188_v6 = vadd.f32 %v1186_v18, %v1184_v40 }
 0x2ec   : > { %v1187_v62 = vadd.f32 %v1186_v18, %v1183_v38  ;;  %v2421_v58 = vmul.f32 -1.442695, %v1188_v6  ;;  %v2083_v6 = vld [vmem:[%s6042_s2 + $0x30] sm:$0xff] }
 0x2ee   : > { %v2420_v46 = vmul.f32 -1.442695, %v1187_v62  ;;  %2703 = vpow2.f32 %v2421_v58  ;;  %v2084_v58 = vld [vmem:[%s6042_s2 + $0x38] sm:$0xff] }
 0x2f0   : > { %2705 = vpow2.f32 %v2420_v46  ;;  %v2702_v53 = vpop.eup %2701 }
 0x2f1   : > { %v1636_v15 = vadd.f32 1.0, %v2702_v53 }
 0x2f3   : > { %2707 = vrcp.f32 %v1636_v15 }
 0x2fb   : > { %v2704_v54 = vpop.eup %2703 }
 0x2fc   : > { %v1196_v12 = vadd.f32 1.0, %v2704_v54 }
 0x2fd   : > { %v2706_v51 = vpop.eup %2705 }
 0x2fe   : > { %v1195_v11 = vadd.f32 1.0, %v2706_v51  ;;  %2709 = vrcp.f32 %v1196_v12 }
 0x300   : > { %2711 = vrcp.f32 %v1195_v11  ;;  %v2708_v20 = vpop.eup %2707 }
 0x301   : > { %v2092_v56 = vrot.slane %v2708_v20, %v2091_v8 }
 0x303   : > { %v2100_v7 = vrot.slane %v2092_v56, %v2091_v8  ;;  %v2093_v50 = vcombine.high %v2092_v56, %v2092_v56 }
 0x305   : > { %v2113_v32 = vrot.slane %v2100_v7, %v5058_v25  ;;  %v2107_v35 = vrot.slane %v2093_v50, %v2091_v8  ;;  %v2108_v4 = vcombine.high %v2100_v7, %v2100_v7 }
 0x307   : > { %v2117_v30 = vrot.slane %v2107_v35, %v5058_v25  ;;  %v2121_v22 = vrot.slane %v2108_v4, %v5058_v25  ;;  %v2109_v28 = vcombine.high %v2107_v35, %v2107_v35 }
 0x309   : > { %v2125_v61 = vrot.slane %v2109_v28, %v5058_v25 }
 0x30b   : > { %v2710_v23 = vpop.eup %2709 }
 0x30c   : > { %v2131_v5 = vadd.f32 %v2710_v23, %v2113_v32  ;;  %v2133_v33 = vadd.f32 %v2710_v23, %v2117_v30  ;;  %v2135_v29 = vadd.f32 %v2710_v23, %v2121_v22  ;;  %v2137_v38 = vadd.f32 %v2710_v23, %v2125_v61 }
 0x30d   : > { %v2712_v9 = vpop.eup %2711 }
 0x30e   : > { %v2130_v59 = vadd.f32 %v2712_v9, %v2113_v32  ;;  %v2132_v17 = vadd.f32 %v2712_v9, %v2117_v30  ;;  %v2134_v39 = vadd.f32 %v2712_v9, %v2121_v22  ;;  %v2136_v18 = vadd.f32 %v2712_v9, %v2125_v61 }
 0x337   : > { %v2144_v26 = vpop.permute.xlu0 %2143  ;;  %v2148_v31 = vpop.permute.xlu1 %2147 }
 0x338   : > { %v2182_v43 = vadd.f32 %v2144_v26, %v2130_v59  ;;  %v2183_v41 = vadd.f32 %v2148_v31, %v2131_v5 }
 0x33a   : > { %v2190_v63 = vmul.f32 %v2182_v43, %v2077_v37  ;;  %v2191_v21 = vmul.f32 %v2183_v41, %v2078_v42 }
 0x33b   : > { %v2155_v44 = vpop.permute.xlu0 %2154  ;;  %v2159_v14 = vpop.permute.xlu1 %2158 }
 0x33c   : > { %v2198_v48 = vmul.f32 0.33333334, %v2190_v63  ;;  %v2199_v57 = vmul.f32 0.33333334, %v2191_v21  ;;  %v2184_v34 = vadd.f32 %v2155_v44, %v2132_v17  ;;  %v2185_v47 = vadd.f32 %v2159_v14, %v2133_v33 }
 0x33e   : > { %2206 = vst.msk [vmem:[%s5146_s10] sm:$0xff] %vm237_vm0, %v2198_v48  ;;  %2207 = vst.msk [vmem:[%s5146_s10 + $0x8] sm:$0xff] %vm237_vm0, %v2199_v57  ;;  %v2192_v10 = vmul.f32 %v2184_v34, %v2079_v16  ;;  %v2193_v49 = vmul.f32 %v2185_v47, %v2080_v2 }
 0x33f   : > { %v2166_v36 = vpop.permute.xlu0 %2165  ;;  %v2170_v19 = vpop.permute.xlu1 %2169 }
 0x340   : > { %v2200_v52 = vmul.f32 0.33333334, %v2192_v10  ;;  %v2201_v1 = vmul.f32 0.33333334, %v2193_v49  ;;  %v2186_v0 = vadd.f32 %v2166_v36, %v2134_v39  ;;  %v2187_v13 = vadd.f32 %v2170_v19, %v2135_v29 }
 0x342   : > { %2208 = vst.msk [vmem:[%s5146_s10 + $0x10] sm:$0xff] %vm237_vm0, %v2200_v52  ;;  %2209 = vst.msk [vmem:[%s5146_s10 + $0x18] sm:$0xff] %vm237_vm0, %v2201_v1  ;;  %v2194_v55 = vmul.f32 %v2186_v0, %v2081_v27  ;;  %v2195_v40 = vmul.f32 %v2187_v13, %v2082_v60 }
 0x343   : > { %v2177_v62 = vpop.permute.xlu0 %2176  ;;  %v2181_v25 = vpop.permute.xlu1 %2180 }
 0x344   : > { %v2202_v46 = vmul.f32 0.33333334, %v2194_v55  ;;  %v2203_v53 = vmul.f32 0.33333334, %v2195_v40  ;;  %v2188_v15 = vadd.f32 %v2177_v62, %v2136_v18  ;;  %v2189_v54 = vadd.f32 %v2181_v25, %v2137_v38 }
 0x346   : > { %2210 = vst.msk [vmem:[%s5146_s10 + $0x20] sm:$0xff] %vm237_vm0, %v2202_v46  ;;  %2211 = vst.msk [vmem:[%s5146_s10 + $0x28] sm:$0xff] %vm237_vm0, %v2203_v53  ;;  %v2196_v51 = vmul.f32 %v2188_v15, %v2083_v6  ;;  %v2197_v24 = vmul.f32 %v2189_v54, %v2084_v58 }
 0x348   : > { %v2204_v3 = vmul.f32 0.33333334, %v2196_v51  ;;  %v2205_v12 = vmul.f32 0.33333334, %v2197_v24 }
 0x34a   : > { %2212 = vst.msk [vmem:[%s5146_s10 + $0x30] sm:$0xff] %vm237_vm0, %v2204_v3  ;;  %2213 = vst.msk [vmem:[%s5146_s10 + $0x38] sm:$0xff] %vm237_vm0, %v2205_v12 }
 0x34b   : > { %2817 = shalt.err (!%p2814_p1)
}
 0x34c   : > { %s2818_s28 = scalar_lea.hbm %s5170_s16, 1024  ;;  %s2822_s17 = scalar_lea.hbm %s6045_s4, 2048 }
 0x34d   : > { %p2819_p2 = scmp.ne.s32.totalorder %s5170_s16, %s2818_s28  ;;  %p2823_p9 = scmp.lt.s32.totalorder %s5170_s16, %s6045_s4 }
 0x34e   : > { %p2824_p5 = scmp.lt.s32.totalorder %s2822_s17, %s2818_s28 }
 0x34f   : > { %p2820_p3 = pnand %p2819_p2, %p6046_p12 }
 0x350   : > { %p2825_p6 = por %p2824_p5, %p2823_p9 }
 0x351   : > { %p2821_p4 = pneg %p2820_p3 }
 0x353   : > { %p2826_p10 = pnand %p2825_p6, %p2821_p4 }
 0x355   : > { %2829 = shalt.err (!%p2826_p10)
}
 0x356   : > { %s2883_s27 = smov 128   ;;  %s2884_s15 = smov 8  }
 0x357   : > { %2637 = dma.vmem_to_hbm [thread:$0]  (%p6046_p12), %s5172_s1, 1024, %s5170_s16, %s5180_s8, %s2883_s27, %s2883_s27, %s2884_s15  }
 0x358 PF: > { %s6047_s11 = sld [smem:[#allocation17_spill]] }
 0x359   : > { %s6048_s5 = sld [smem:[#allocation14_spill]] }
 0x35a   : > { %s6049_s14 = sld [smem:[#allocation22_spill]] }
 0x35e   : > { %p2654_p0 = scmp.ge.s32.totalorder %s6047_s11, 2 }
 0x35f   : > { %s2243_s18 = sand.u32 1, %s6048_s5  }
 0x360   : > { %p6050_p7 = scmp.ne.s32.totalorder %s6049_s14, 0  ;;  %s2244_s7 = scalar_lea.sflag [#allocation6], %s2243_s18 }
 0x362   : > { %p2647_p8 = pnand %p2654_p0, %p6050_p7 }
 0x364   : > { %p2648_p11 = pneg %p2647_p8 }
 0x366   : > { %2855 = dma.done.wait (%p2648_p11), %s2244_s7, 1024  }
 0x367   : > { %2857 = vsyncadd (%p2648_p11), %s2244_s7, 4294966272  ;;  %s6051_s15 = sld [smem:[#allocation19_spill]] }
 0x368   : > { %s6052_s12 = sld [smem:[#allocation15_spill]] }
 0x369   : > { %s6053_s13 = sld [smem:[#allocation16_spill]] }
 0x36a   : > { %s6054_s14 = sld [smem:[#allocation20_spill]] }
 0x36d   : > { %p15_p13 = scmp.ge.s32.totalorder %s6051_s15, 4  }
 0x36f   :  { %17 = sbr.rel (!%p15_p13) target bundleno = 10 (0xa), region = 79 }
 0x374   :  { %2249 = vsyncpa [#allocation6], 1 }
 0x375   :  { %2251 = vsyncpa [#allocation6 + $0x1], 1 }
 0x376   :  { %2252 = vsyncpa [#allocation7], 1 }
 0x377   :  { %2254 = vsyncpa [#allocation7 + $0x1], 1 }
 0x378   :  { %2255 = vsyncpa [#allocation9], 1 }

</bundles_post_ra>
